<compile_context>
chip_gen: v7x
topology: tpu7x:2x2x1
jax: 0.10.0
libtpu: 0.0.40
codegen_flags: <defaults>
</compile_context>

<pallas_src>
import functools

import jax
import jax.numpy as jnp
from jax.experimental import pallas as pl
from jax.experimental.pallas import tpu as pltpu

BN_EPS = 1e-5


# ----------------------------------------------------------------------------
# Pallas kernels: tiled matmul, f32 accumulator preloaded with bias at k==0,
# optional residual add + ReLU epilogue, bf16 output.
# ----------------------------------------------------------------------------
def _mm_kernel(x_ref, w_ref, b_ref, o_ref, acc_ref, *, apply_relu):
    k = pl.program_id(2)

    @pl.when(k == 0)
    def _():
        acc_ref[...] = jnp.broadcast_to(b_ref[...], acc_ref.shape)

    acc_ref[...] += jnp.dot(x_ref[...], w_ref[...],
                            preferred_element_type=jnp.float32)

    @pl.when(k == pl.num_programs(2) - 1)
    def _():
        y = acc_ref[...]
        if apply_relu:
            y = jnp.maximum(y, 0.0)
        o_ref[...] = y.astype(o_ref.dtype)


def _mm_res_kernel(x_ref, w_ref, b_ref, res_ref, o_ref, acc_ref, *,
                   apply_relu):
    k = pl.program_id(2)

    @pl.when(k == 0)
    def _():
        acc_ref[...] = jnp.broadcast_to(b_ref[...], acc_ref.shape)

    acc_ref[...] += jnp.dot(x_ref[...], w_ref[...],
                            preferred_element_type=jnp.float32)

    @pl.when(k == pl.num_programs(2) - 1)
    def _():
        y = acc_ref[...] + res_ref[...].astype(jnp.float32)
        if apply_relu:
            y = jnp.maximum(y, 0.0)
        o_ref[...] = y.astype(o_ref.dtype)


# ----------------------------------------------------------------------------
# Tiling helpers
# ----------------------------------------------------------------------------
def _round_up(x, m):
    return ((x + m - 1) // m) * m


def _cdiv(a, b):
    return -(-a // b)


def _choose_tile(dim_pad, unit, max_tile):
    """Largest multiple of `unit` that divides `dim_pad` and is <= max_tile."""
    q = dim_pad // unit
    best = 1
    for d in range(1, q + 1):
        if q % d == 0 and d * unit <= max_tile:
            best = d
    return best * unit


def _vmem_budget_bytes():
    """Per-generation VMEM budget (v5e/v6e: 128 MiB, v7x: only 64 MiB)."""
    cap = None
    try:
        cap = getattr(pltpu.get_tpu_info(), "vmem_capacity_bytes", None)
    except Exception:
        cap = None
    if not cap:
        cap = 64 * 1024 * 1024          # conservative (v7x physical)
    return int(cap * 0.45)


# ----------------------------------------------------------------------------
# Fused  relu?( patches @ wfold + bias [+ residual] )  on the MXU
# ----------------------------------------------------------------------------
def _fused_matmul(patches, wfold, bias, residual, apply_relu):
    M, K = patches.shape
    Cout = wfold.shape[1]

    Kp = _round_up(K, 128)
    Np = _round_up(Cout, 128)
    TK = _choose_tile(Kp, 128, 2048)
    TN = _choose_tile(Np, 128, 512)          # 256-multiples when Np allows
    Mp16 = _round_up(M, 16)                  # 16-row unit = full bf16 packing
    TM = min(512, Mp16)

    budget = _vmem_budget_bytes()

    def footprint(tm, tk, tn):
        fp = 2 * (tm * tk * 2 + tk * tn * 2 + tm * tn * 2 + tn * 4)
        if residual is not None:
            fp += 2 * tm * tn * 2
        return fp + tm * tn * 4              # f32 accumulator scratch

    while footprint(TM, TK, TN) > budget:
        if TK > 128:
            TK = _choose_tile(Kp, 128, TK // 2)
        elif TN > 128:
            TN = _choose_tile(Np, 128, TN // 2)
        elif TM > 16:
            TM = _round_up(max(16, TM // 2), 16)
        else:
            break

    # Megacore (v7x has 2 TensorCores): give a parallel axis >=2 blocks.
    if Mp16 >= 64 and TM >= Mp16 and Np // TN == 1:
        TM = _round_up(_cdiv(Mp16, 2), 16)

    Mp = _round_up(M, TM)

    x = patches.astype(jnp.bfloat16)
    if (Mp, Kp) != (M, K):
        x = jnp.pad(x, ((0, Mp - M), (0, Kp - K)))
    w = wfold.astype(jnp.bfloat16)
    if (Kp, Np) != (K, Cout):
        w = jnp.pad(w, ((0, Kp - K), (0, Np - Cout)))
    b = bias.reshape(1, Cout).astype(jnp.float32)
    if Np != Cout:
        b = jnp.pad(b, ((0, 0), (0, Np - Cout)))

    grid = (Mp // TM, Np // TN, Kp // TK)
    in_specs = [
        pl.BlockSpec((TM, TK), lambda i, j, k: (i, k)),
        pl.BlockSpec((TK, TN), lambda i, j, k: (k, j)),
        pl.BlockSpec((1, TN), lambda i, j, k: (0, j)),
    ]
    args = [x, w, b]
    bytes_accessed = (Mp * Kp + Kp * Np + Mp * Np) * 2 + Np * 4

    if residual is not None:
        r = residual.astype(jnp.bfloat16)
        if (Mp - M) or (Np - Cout):
            r = jnp.pad(r, ((0, Mp - M), (0, Np - Cout)))
        in_specs.append(pl.BlockSpec((TM, TN), lambda i, j, k: (i, j)))
        args.append(r)
        bytes_accessed += Mp * Np * 2
        kernel = functools.partial(_mm_res_kernel, apply_relu=apply_relu)
    else:
        kernel = functools.partial(_mm_kernel, apply_relu=apply_relu)

    vmem_limit = int(min(max(2 * footprint(TM, TK, TN), 32 * 1024 * 1024),
                         56 * 1024 * 1024))

    out = pl.pallas_call(
        kernel,
        out_shape=jax.ShapeDtypeStruct((Mp, Np), jnp.bfloat16),
        grid_spec=pltpu.PrefetchScalarGridSpec(
            num_scalar_prefetch=0,
            grid=grid,
            in_specs=in_specs,
            out_specs=pl.BlockSpec((TM, TN), lambda i, j, k: (i, j)),
            scratch_shapes=[pltpu.VMEM((TM, TN), jnp.float32)],
        ),
        compiler_params=pltpu.CompilerParams(
            dimension_semantics=("parallel", "parallel", "arbitrary"),
            vmem_limit_bytes=vmem_limit),
        cost_estimate=pl.CostEstimate(flops=2 * Mp * Kp * Np,
                                      transcendentals=0,
                                      bytes_accessed=int(bytes_accessed)),
    )(*args)

    return out[:M, :Cout]


# ----------------------------------------------------------------------------
# Glue: bf16 im2col patch extraction + BN folding
# ----------------------------------------------------------------------------
def _extract_patches(x_nhwc, kh, kw, stride, pad):
    N, H, W, C = x_nhwc.shape
    xp = x_nhwc
    if pad:
        xp = jnp.pad(xp, ((0, 0), (pad, pad), (pad, pad), (0, 0)))
    OH = (H + 2 * pad - kh) // stride + 1
    OW = (W + 2 * pad - kw) // stride + 1
    cols = []
    for i in range(kh):
        for j in range(kw):
            sl = xp[:, i:i + stride * (OH - 1) + 1:stride,
                    j:j + stride * (OW - 1) + 1:stride, :]
            cols.append(sl)
    patches = jnp.concatenate(cols, axis=-1) if len(cols) > 1 else cols[0]
    return patches.reshape(N * OH * OW, kh * kw * C), OH, OW


def _fold_bn(w_oihw, bn):
    """Fold eval-mode BatchNorm scale into the conv weight matrix (bf16)."""
    Cout, Cin, KH, KW = w_oihw.shape
    # Column order of patches is (kh, kw, cin) with cin fastest -> match it.
    wmat = jnp.transpose(w_oihw, (2, 3, 1, 0)).reshape(KH * KW * Cin, Cout)
    scale = bn["gamma"] / jnp.sqrt(bn["var"] + BN_EPS)          # (Cout,)
    bias = bn["beta"] - bn["mean"] * scale                      # (Cout,)
    wfold = (wmat.astype(jnp.float32) * scale[None, :]).astype(jnp.bfloat16)
    return wfold, bias.astype(jnp.float32)


def _conv_from_patches(patches, wfold, bias, N, OH, OW, relu, residual=None):
    M = N * OH * OW
    Cout = wfold.shape[1]
    res = None if residual is None else residual.reshape(M, Cout)
    out = _fused_matmul(patches, wfold, bias, res, relu)
    return out.reshape(N, OH, OW, Cout)


def _conv_bn(x_nhwc, w_oihw, bn, stride, pad, relu, residual=None):
    """Conv2d(bias=False) -> BatchNorm(eval) [-> +residual] [-> ReLU]."""
    Cout, Cin, KH, KW = w_oihw.shape
    N = x_nhwc.shape[0]
    patches, OH, OW = _extract_patches(x_nhwc, KH, KW, stride, pad)
    wfold, bias = _fold_bn(w_oihw, bn)
    return _conv_from_patches(patches, wfold, bias, N, OH, OW, relu, residual)


# ----------------------------------------------------------------------------
# ResNet-18 BasicBlock / encoder forward
# ----------------------------------------------------------------------------
def _basic_block(x, blk):
    stride = blk["stride"]
    N, H, W, Cin = x.shape
    if "down_w" in blk:
        # Gather x once: the 1x1 stride-s (pad 0) downsample patches are
        # exactly the centre-tap columns of conv1's 3x3 stride-s (pad 1)
        # patch matrix.
        patches, OH, OW = _extract_patches(x, 3, 3, stride, 1)
        w1, b1 = _fold_bn(blk["conv1_w"], blk["bn1"])
        out = _conv_from_patches(patches, w1, b1, N, OH, OW, relu=True)
        wd, bd = _fold_bn(blk["down_w"], blk["down_bn"])
        centre = patches[:, 4 * Cin:5 * Cin]
        identity = _conv_from_patches(centre, wd, bd, N, OH, OW, relu=False)
    else:
        identity = x
        out = _conv_bn(x, blk["conv1_w"], blk["bn1"], stride, 1, relu=True)
    # conv2 + bn2 + residual add + ReLU fused into one kernel epilogue.
    return _conv_bn(out, blk["conv2_w"], blk["bn2"], 1, 1, relu=True,
                    residual=identity)


def unet_encoder_forward(x_nchw, params):
    """Matches UnetEncoder.forward: conv1->bn1->relu, then layer1..4,
    returning the 4 intermediate features (NCHW, like PyTorch)."""
    x = jnp.transpose(x_nchw, (0, 2, 3, 1)).astype(jnp.bfloat16)  # NHWC bf16
    x = _conv_bn(x, params["conv1_w"], params["bn1"], stride=2, pad=3,
                 relu=True)
    # NOTE: self.encoder.maxpool was deleted in __init__, so no pooling here.
    features = []
    for li in range(1, 5):
        for blk in params[f"layer{li}"]:
            x = _basic_block(x, blk)
        features.append(jnp.transpose(x, (0, 3, 1, 2)).astype(jnp.float32))
    return features


# ----------------------------------------------------------------------------
# Deterministic synthetic parameter initialization (ResNet-18 shapes)
# ----------------------------------------------------------------------------
def _init_conv(key, cout, cin, kh, kw):
    fan_in = cin * kh * kw
    std = (2.0 / fan_in) ** 0.5
    return std * jax.random.normal(key, (cout, cin, kh, kw), jnp.float32)


def _init_bn(key, c):
    k1, k2, k3, k4 = jax.random.split(key, 4)
    return dict(
        gamma=1.0 + 0.1 * jax.random.normal(k1, (c,), jnp.float32),
        beta=0.1 * jax.random.normal(k2, (c,), jnp.float32),
        mean=0.1 * jax.random.normal(k3, (c,), jnp.float32),
        var=0.5 + jax.random.uniform(k4, (c,), jnp.float32),
    )


def init_resnet18_params(key, in_channels=1):
    keys = iter(jax.random.split(key, 256))
    p = {}
    p["conv1_w"] = _init_conv(next(keys), 64, in_channels, 7, 7)
    p["bn1"] = _init_bn(next(keys), 64)
    inplanes = 64
    for li, planes in enumerate([64, 128, 256, 512], start=1):
        blocks = []
        for bi in range(2):  # resnet18: 2 BasicBlocks per layer
            stride = 2 if (li > 1 and bi == 0) else 1
            blk = {"stride": stride,
                   "conv1_w": _init_conv(next(keys), planes, inplanes, 3, 3),
                   "bn1": _init_bn(next(keys), planes),
                   "conv2_w": _init_conv(next(keys), planes, planes, 3, 3),
                   "bn2": _init_bn(next(keys), planes)}
            if stride != 1 or inplanes != planes:
                blk["down_w"] = _init_conv(next(keys), planes, inplanes, 1, 1)
                blk["down_bn"] = _init_bn(next(keys), planes)
            blocks.append(blk)
            inplanes = planes
        p[f"layer{li}"] = blocks
    return p


# ----------------------------------------------------------------------------
if __name__ == "__main__":
    key = jax.random.PRNGKey(0)
    pkey, xkey = jax.random.split(key)
    params = init_resnet18_params(pkey, in_channels=1)

    # Small input consistent with the module: batch=2, in_channels=1, 16x16.
    x = jax.random.normal(xkey, (2, 1, 16, 16), jnp.float32)

    fwd = jax.jit(lambda inp: unet_encoder_forward(inp, params))
    features = jax.block_until_ready(fwd(x))

    expected = [(2, 64, 8, 8), (2, 128, 4, 4), (2, 256, 2, 2), (2, 512, 1, 1)]
    assert [tuple(f.shape) for f in features] == expected, \
        [tuple(f.shape) for f in features]
    assert all(bool(jnp.all(jnp.isfinite(f))) for f in features)

    print("KERNEL_OK")
</pallas_src>

<mosaic_0001>
module attributes {stable_mosaic.version = 11 : i64} {
  func.func @_mm_kernel(%arg0: i32, %arg1: i32, %arg2: i32, %arg3: memref<64x128xbf16, #tpu.memory_space<vmem>>, %arg4: memref<128x128xbf16, #tpu.memory_space<vmem>>, %arg5: memref<1x128xf32, #tpu.memory_space<vmem>>, %arg6: memref<64x128xbf16, #tpu.memory_space<vmem>>, %arg7: memref<64x128xf32, #tpu.memory_space<vmem>>) attributes {dimension_semantics = [#tpu.dimension_semantics<parallel>, #tpu.dimension_semantics<parallel>, #tpu.dimension_semantics<arbitrary>], iteration_bounds = array<i64: 2, 1, 1>, scalar_prefetch = 0 : i64, scratch_operands = 1 : i64, tpu.core_type = #tpu.core_type<tc>, window_params = [{transform_indices = @transform_0, window_bounds = array<i64: 64, 128>}, {transform_indices = @transform_1, window_bounds = array<i64: 128, 128>}, {transform_indices = @transform_2, window_bounds = array<i64: 1, 128>}, {transform_indices = @transform_3, window_bounds = array<i64: 64, 128>}]} {
    %c0_i32 = arith.constant 0 : i32
    %0 = arith.cmpi eq, %arg2, %c0_i32 : i32
    %1 = arith.extui %0 : i1 to i32
    %c0_i32_0 = arith.constant 0 : i32
    %2 = arith.cmpi ne, %1, %c0_i32_0 : i32
    scf.if %2 {
      %c0_10 = arith.constant 0 : index
      %c0_11 = arith.constant 0 : index
      %12 = vector.load %arg5[%c0_10, %c0_11] : memref<1x128xf32, #tpu.memory_space<vmem>>, vector<1x128xf32>
      %13 = vector.shape_cast %12 : vector<1x128xf32> to vector<1x128xf32>
      %14 = vector.broadcast %13 : vector<1x128xf32> to vector<64x128xf32>
      %c0_12 = arith.constant 0 : index
      %c0_13 = arith.constant 0 : index
      %15 = vector.load %arg7[%c0_12, %c0_13] : memref<64x128xf32, #tpu.memory_space<vmem>>, vector<64x128xf32>
      tpu.vector_store %arg7[%c0_12, %c0_13], %14 {strides = array<i32>} : memref<64x128xf32, #tpu.memory_space<vmem>>, vector<64x128xf32>,
    } else {
    }
    %c0 = arith.constant 0 : index
    %c0_1 = arith.constant 0 : index
    %3 = vector.load %arg7[%c0, %c0_1] : memref<64x128xf32, #tpu.memory_space<vmem>>, vector<64x128xf32>
    %c0_2 = arith.constant 0 : index
    %c0_3 = arith.constant 0 : index
    %4 = vector.load %arg3[%c0_2, %c0_3] : memref<64x128xbf16, #tpu.memory_space<vmem>>, vector<64x128xbf16>
    %c0_4 = arith.constant 0 : index
    %c0_5 = arith.constant 0 : index
    %5 = vector.load %arg4[%c0_4, %c0_5] : memref<128x128xbf16, #tpu.memory_space<vmem>>, vector<128x128xbf16>
    %cst = arith.constant dense<0.000000e+00> : vector<64x128xf32>
    %6 = tpu.matmul %4, %5, %cst {dimension_numbers = #tpu.dot_dimension_numbers<[1], [0], [0], [1], [0, 0, 1, 1], [], []>} : vector<64x128xbf16>, vector<128x128xbf16>, vector<64x128xf32> -> vector<64x128xf32>
    %7 = arith.addf %3, %6 : vector<64x128xf32>
    %c0_6 = arith.constant 0 : index
    %c0_7 = arith.constant 0 : index
    %8 = vector.load %arg7[%c0_6, %c0_7] : memref<64x128xf32, #tpu.memory_space<vmem>>, vector<64x128xf32>
    tpu.vector_store %arg7[%c0_6, %c0_7], %7 {strides = array<i32>} : memref<64x128xf32, #tpu.memory_space<vmem>>, vector<64x128xf32>,
    %c0_i32_8 = arith.constant 0 : i32
    %9 = arith.cmpi eq, %arg2, %c0_i32_8 : i32
    %10 = arith.extui %9 : i1 to i32
    %c0_i32_9 = arith.constant 0 : i32
    %11 = arith.cmpi ne, %10, %c0_i32_9 : i32
    scf.if %11 {
      %c0_10 = arith.constant 0 : index
      %c0_11 = arith.constant 0 : index
      %12 = vector.load %arg7[%c0_10, %c0_11] : memref<64x128xf32, #tpu.memory_space<vmem>>, vector<64x128xf32>
      %cst_12 = arith.constant 0.000000e+00 : f32
      %13 = vector.broadcast %cst_12 : f32 to vector<64x128xf32>
      %14 = arith.maximumf %12, %13 : vector<64x128xf32>
      %15 = arith.truncf %14 : vector<64x128xf32> to vector<64x128xbf16>
      %c0_13 = arith.constant 0 : index
      %c0_14 = arith.constant 0 : index
      %16 = vector.load %arg6[%c0_13, %c0_14] : memref<64x128xbf16, #tpu.memory_space<vmem>>, vector<64x128xbf16>
      tpu.vector_store %arg6[%c0_13, %c0_14], %15 {strides = array<i32>} : memref<64x128xbf16, #tpu.memory_space<vmem>>, vector<64x128xbf16>,
    } else {
    }
    return
  }
  func.func @transform_0(%arg0: i32, %arg1: i32, %arg2: i32) -> (i32, i32) {
    %c0_i32 = arith.constant 0 : i32
    return %arg0, %arg2 : i32, i32
  }
  func.func @transform_1(%arg0: i32, %arg1: i32, %arg2: i32) -> (i32, i32) {
    %c0_i32 = arith.constant 0 : i32
    return %arg2, %arg1 : i32, i32
  }
  func.func @transform_2(%arg0: i32, %arg1: i32, %arg2: i32) -> (i32, i32) {
    %c0_i32 = arith.constant 0 : i32
    %c0_i32_0 = arith.constant 0 : i32
    return %c0_i32, %arg1 : i32, i32
  }
  func.func @transform_3(%arg0: i32, %arg1: i32, %arg2: i32) -> (i32, i32) {
    %c0_i32 = arith.constant 0 : i32
    return %arg0, %arg1 : i32, i32
  }
}

module attributes {stable_mosaic.version = 11 : i64} {
  func.func @_mm_kernel(%arg0: i32, %arg1: i32, %arg2: i32, %arg3: memref<64x640xbf16, #tpu.memory_space<vmem>>, %arg4: memref<640x128xbf16, #tpu.memory_space<vmem>>, %arg5: memref<1x128xf32, #tpu.memory_space<vmem>>, %arg6: memref<64x128xbf16, #tpu.memory_space<vmem>>, %arg7: memref<64x128xf32, #tpu.memory_space<vmem>>) attributes {dimension_semantics = [#tpu.dimension_semantics<parallel>, #tpu.dimension_semantics<parallel>, #tpu.dimension_semantics<arbitrary>], iteration_bounds = array<i64: 2, 1, 1>, scalar_prefetch = 0 : i64, scratch_operands = 1 : i64, tpu.core_type = #tpu.core_type<tc>, window_params = [{transform_indices = @transform_0, window_bounds = array<i64: 64, 640>}, {transform_indices = @transform_1, window_bounds = array<i64: 640, 128>}, {transform_indices = @transform_2, window_bounds = array<i64: 1, 128>}, {transform_indices = @transform_3, window_bounds = array<i64: 64, 128>}]} {
    %c0_i32 = arith.constant 0 : i32
    %0 = arith.cmpi eq, %arg2, %c0_i32 : i32
    %1 = arith.extui %0 : i1 to i32
    %c0_i32_0 = arith.constant 0 : i32
    %2 = arith.cmpi ne, %1, %c0_i32_0 : i32
    scf.if %2 {
      %c0_10 = arith.constant 0 : index
      %c0_11 = arith.constant 0 : index
      %12 = vector.load %arg5[%c0_10, %c0_11] : memref<1x128xf32, #tpu.memory_space<vmem>>, vector<1x128xf32>
      %13 = vector.shape_cast %12 : vector<1x128xf32> to vector<1x128xf32>
      %14 = vector.broadcast %13 : vector<1x128xf32> to vector<64x128xf32>
      %c0_12 = arith.constant 0 : index
      %c0_13 = arith.constant 0 : index
      %15 = vector.load %arg7[%c0_12, %c0_13] : memref<64x128xf32, #tpu.memory_space<vmem>>, vector<64x128xf32>
      tpu.vector_store %arg7[%c0_12, %c0_13], %14 {strides = array<i32>} : memref<64x128xf32, #tpu.memory_space<vmem>>, vector<64x128xf32>,
    } else {
    }
    %c0 = arith.constant 0 : index
    %c0_1 = arith.constant 0 : index
    %3 = vector.load %arg7[%c0, %c0_1] : memref<64x128xf32, #tpu.memory_space<vmem>>, vector<64x128xf32>
    %c0_2 = arith.constant 0 : index
    %c0_3 = arith.constant 0 : index
    %4 = vector.load %arg3[%c0_2, %c0_3] : memref<64x640xbf16, #tpu.memory_space<vmem>>, vector<64x640xbf16>
    %c0_4 = arith.constant 0 : index
    %c0_5 = arith.constant 0 : index
    %5 = vector.load %arg4[%c0_4, %c0_5] : memref<640x128xbf16, #tpu.memory_space<vmem>>, vector<640x128xbf16>
    %cst = arith.constant dense<0.000000e+00> : vector<64x128xf32>
    %6 = tpu.matmul %4, %5, %cst {dimension_numbers = #tpu.dot_dimension_numbers<[1], [0], [0], [1], [0, 0, 1, 1], [], []>} : vector<64x640xbf16>, vector<640x128xbf16>, vector<64x128xf32> -> vector<64x128xf32>
    %7 = arith.addf %3, %6 : vector<64x128xf32>
    %c0_6 = arith.constant 0 : index
    %c0_7 = arith.constant 0 : index
    %8 = vector.load %arg7[%c0_6, %c0_7] : memref<64x128xf32, #tpu.memory_space<vmem>>, vector<64x128xf32>
    tpu.vector_store %arg7[%c0_6, %c0_7], %7 {strides = array<i32>} : memref<64x128xf32, #tpu.memory_space<vmem>>, vector<64x128xf32>,
    %c0_i32_8 = arith.constant 0 : i32
    %9 = arith.cmpi eq, %arg2, %c0_i32_8 : i32
    %10 = arith.extui %9 : i1 to i32
    %c0_i32_9 = arith.constant 0 : i32
    %11 = arith.cmpi ne, %10, %c0_i32_9 : i32
    scf.if %11 {
      %c0_10 = arith.constant 0 : index
      %c0_11 = arith.constant 0 : index
      %12 = vector.load %arg7[%c0_10, %c0_11] : memref<64x128xf32, #tpu.memory_space<vmem>>, vector<64x128xf32>
      %cst_12 = arith.constant 0.000000e+00 : f32
      %13 = vector.broadcast %cst_12 : f32 to vector<64x128xf32>
      %14 = arith.maximumf %12, %13 : vector<64x128xf32>
      %15 = arith.truncf %14 : vector<64x128xf32> to vector<64x128xbf16>
      %c0_13 = arith.constant 0 : index
      %c0_14 = arith.constant 0 : index
      %16 = vector.load %arg6[%c0_13, %c0_14] : memref<64x128xbf16, #tpu.memory_space<vmem>>, vector<64x128xbf16>
      tpu.vector_store %arg6[%c0_13, %c0_14], %15 {strides = array<i32>} : memref<64x128xbf16, #tpu.memory_space<vmem>>, vector<64x128xbf16>,
    } else {
    }
    return
  }
  func.func @transform_0(%arg0: i32, %arg1: i32, %arg2: i32) -> (i32, i32) {
    %c0_i32 = arith.constant 0 : i32
    return %arg0, %arg2 : i32, i32
  }
  func.func @transform_1(%arg0: i32, %arg1: i32, %arg2: i32) -> (i32, i32) {
    %c0_i32 = arith.constant 0 : i32
    return %arg2, %arg1 : i32, i32
  }
  func.func @transform_2(%arg0: i32, %arg1: i32, %arg2: i32) -> (i32, i32) {
    %c0_i32 = arith.constant 0 : i32
    %c0_i32_0 = arith.constant 0 : i32
    return %c0_i32, %arg1 : i32, i32
  }
  func.func @transform_3(%arg0: i32, %arg1: i32, %arg2: i32) -> (i32, i32) {
    %c0_i32 = arith.constant 0 : i32
    return %arg0, %arg1 : i32, i32
  }
}

module attributes {stable_mosaic.version = 11 : i64} {
  func.func @_mm_res_kernel(%arg0: i32, %arg1: i32, %arg2: i32, %arg3: memref<64x640xbf16, #tpu.memory_space<vmem>>, %arg4: memref<640x128xbf16, #tpu.memory_space<vmem>>, %arg5: memref<1x128xf32, #tpu.memory_space<vmem>>, %arg6: memref<64x128xbf16, #tpu.memory_space<vmem>>, %arg7: memref<64x128xbf16, #tpu.memory_space<vmem>>, %arg8: memref<64x128xf32, #tpu.memory_space<vmem>>) attributes {dimension_semantics = [#tpu.dimension_semantics<parallel>, #tpu.dimension_semantics<parallel>, #tpu.dimension_semantics<arbitrary>], iteration_bounds = array<i64: 2, 1, 1>, scalar_prefetch = 0 : i64, scratch_operands = 1 : i64, tpu.core_type = #tpu.core_type<tc>, window_params = [{transform_indices = @transform_0, window_bounds = array<i64: 64, 640>}, {transform_indices = @transform_1, window_bounds = array<i64: 640, 128>}, {transform_indices = @transform_2, window_bounds = array<i64: 1, 128>}, {transform_indices = @transform_3, window_bounds = array<i64: 64, 128>}, {transform_indices = @transform_4, window_bounds = array<i64: 64, 128>}]} {
    %c0_i32 = arith.constant 0 : i32
    %0 = arith.cmpi eq, %arg2, %c0_i32 : i32
    %1 = arith.extui %0 : i1 to i32
    %c0_i32_0 = arith.constant 0 : i32
    %2 = arith.cmpi ne, %1, %c0_i32_0 : i32
    scf.if %2 {
      %c0_10 = arith.constant 0 : index
      %c0_11 = arith.constant 0 : index
      %12 = vector.load %arg5[%c0_10, %c0_11] : memref<1x128xf32, #tpu.memory_space<vmem>>, vector<1x128xf32>
      %13 = vector.shape_cast %12 : vector<1x128xf32> to vector<1x128xf32>
      %14 = vector.broadcast %13 : vector<1x128xf32> to vector<64x128xf32>
      %c0_12 = arith.constant 0 : index
      %c0_13 = arith.constant 0 : index
      %15 = vector.load %arg8[%c0_12, %c0_13] : memref<64x128xf32, #tpu.memory_space<vmem>>, vector<64x128xf32>
      tpu.vector_store %arg8[%c0_12, %c0_13], %14 {strides = array<i32>} : memref<64x128xf32, #tpu.memory_space<vmem>>, vector<64x128xf32>,
    } else {
    }
    %c0 = arith.constant 0 : index
    %c0_1 = arith.constant 0 : index
    %3 = vector.load %arg8[%c0, %c0_1] : memref<64x128xf32, #tpu.memory_space<vmem>>, vector<64x128xf32>
    %c0_2 = arith.constant 0 : index
    %c0_3 = arith.constant 0 : index
    %4 = vector.load %arg3[%c0_2, %c0_3] : memref<64x640xbf16, #tpu.memory_space<vmem>>, vector<64x640xbf16>
    %c0_4 = arith.constant 0 : index
    %c0_5 = arith.constant 0 : index
    %5 = vector.load %arg4[%c0_4, %c0_5] : memref<640x128xbf16, #tpu.memory_space<vmem>>, vector<640x128xbf16>
    %cst = arith.constant dense<0.000000e+00> : vector<64x128xf32>
    %6 = tpu.matmul %4, %5, %cst {dimension_numbers = #tpu.dot_dimension_numbers<[1], [0], [0], [1], [0, 0, 1, 1], [], []>} : vector<64x640xbf16>, vector<640x128xbf16>, vector<64x128xf32> -> vector<64x128xf32>
    %7 = arith.addf %3, %6 : vector<64x128xf32>
    %c0_6 = arith.constant 0 : index
    %c0_7 = arith.constant 0 : index
    %8 = vector.load %arg8[%c0_6, %c0_7] : memref<64x128xf32, #tpu.memory_space<vmem>>, vector<64x128xf32>
    tpu.vector_store %arg8[%c0_6, %c0_7], %7 {strides = array<i32>} : memref<64x128xf32, #tpu.memory_space<vmem>>, vector<64x128xf32>,
    %c0_i32_8 = arith.constant 0 : i32
    %9 = arith.cmpi eq, %arg2, %c0_i32_8 : i32
    %10 = arith.extui %9 : i1 to i32
    %c0_i32_9 = arith.constant 0 : i32
    %11 = arith.cmpi ne, %10, %c0_i32_9 : i32
    scf.if %11 {
      %c0_10 = arith.constant 0 : index
      %c0_11 = arith.constant 0 : index
      %12 = vector.load %arg8[%c0_10, %c0_11] : memref<64x128xf32, #tpu.memory_space<vmem>>, vector<64x128xf32>
      %c0_12 = arith.constant 0 : index
      %c0_13 = arith.constant 0 : index
      %13 = vector.load %arg6[%c0_12, %c0_13] : memref<64x128xbf16, #tpu.memory_space<vmem>>, vector<64x128xbf16>
      %14 = arith.extf %13 : vector<64x128xbf16> to vector<64x128xf32>
      %15 = arith.addf %12, %14 : vector<64x128xf32>
      %cst_14 = arith.constant 0.000000e+00 : f32
      %16 = vector.broadcast %cst_14 : f32 to vector<64x128xf32>
      %17 = arith.maximumf %15, %16 : vector<64x128xf32>
      %18 = arith.truncf %17 : vector<64x128xf32> to vector<64x128xbf16>
      %c0_15 = arith.constant 0 : index
      %c0_16 = arith.constant 0 : index
      %19 = vector.load %arg7[%c0_15, %c0_16] : memref<64x128xbf16, #tpu.memory_space<vmem>>, vector<64x128xbf16>
      tpu.vector_store %arg7[%c0_15, %c0_16], %18 {strides = array<i32>} : memref<64x128xbf16, #tpu.memory_space<vmem>>, vector<64x128xbf16>,
    } else {
    }
    return
  }
  func.func @transform_0(%arg0: i32, %arg1: i32, %arg2: i32) -> (i32, i32) {
    %c0_i32 = arith.constant 0 : i32
    return %arg0, %arg2 : i32, i32
  }
  func.func @transform_1(%arg0: i32, %arg1: i32, %arg2: i32) -> (i32, i32) {
    %c0_i32 = arith.constant 0 : i32
    return %arg2, %arg1 : i32, i32
  }
  func.func @transform_2(%arg0: i32, %arg1: i32, %arg2: i32) -> (i32, i32) {
    %c0_i32 = arith.constant 0 : i32
    %c0_i32_0 = arith.constant 0 : i32
    return %c0_i32, %arg1 : i32, i32
  }
  func.func @transform_3(%arg0: i32, %arg1: i32, %arg2: i32) -> (i32, i32) {
    %c0_i32 = arith.constant 0 : i32
    return %arg0, %arg1 : i32, i32
  }
  func.func @transform_4(%arg0: i32, %arg1: i32, %arg2: i32) -> (i32, i32) {
    %c0_i32 = arith.constant 0 : i32
    return %arg0, %arg1 : i32, i32
  }
}

module attributes {stable_mosaic.version = 11 : i64} {
  func.func @_mm_kernel(%arg0: i32, %arg1: i32, %arg2: i32, %arg3: memref<32x640xbf16, #tpu.memory_space<vmem>>, %arg4: memref<640x128xbf16, #tpu.memory_space<vmem>>, %arg5: memref<1x128xf32, #tpu.memory_space<vmem>>, %arg6: memref<32x128xbf16, #tpu.memory_space<vmem>>, %arg7: memref<32x128xf32, #tpu.memory_space<vmem>>) attributes {dimension_semantics = [#tpu.dimension_semantics<parallel>, #tpu.dimension_semantics<parallel>, #tpu.dimension_semantics<arbitrary>], iteration_bounds = array<i64: 1, 1, 1>, scalar_prefetch = 0 : i64, scratch_operands = 1 : i64, tpu.core_type = #tpu.core_type<tc>, window_params = [{transform_indices = @transform_0, window_bounds = array<i64: 32, 640>}, {transform_indices = @transform_1, window_bounds = array<i64: 640, 128>}, {transform_indices = @transform_2, window_bounds = array<i64: 1, 128>}, {transform_indices = @transform_3, window_bounds = array<i64: 32, 128>}]} {
    %c0_i32 = arith.constant 0 : i32
    %0 = arith.cmpi eq, %arg2, %c0_i32 : i32
    %1 = arith.extui %0 : i1 to i32
    %c0_i32_0 = arith.constant 0 : i32
    %2 = arith.cmpi ne, %1, %c0_i32_0 : i32
    scf.if %2 {
      %c0_10 = arith.constant 0 : index
      %c0_11 = arith.constant 0 : index
      %12 = vector.load %arg5[%c0_10, %c0_11] : memref<1x128xf32, #tpu.memory_space<vmem>>, vector<1x128xf32>
      %13 = vector.shape_cast %12 : vector<1x128xf32> to vector<1x128xf32>
      %14 = vector.broadcast %13 : vector<1x128xf32> to vector<32x128xf32>
      %c0_12 = arith.constant 0 : index
      %c0_13 = arith.constant 0 : index
      %15 = vector.load %arg7[%c0_12, %c0_13] : memref<32x128xf32, #tpu.memory_space<vmem>>, vector<32x128xf32>
      tpu.vector_store %arg7[%c0_12, %c0_13], %14 {strides = array<i32>} : memref<32x128xf32, #tpu.memory_space<vmem>>, vector<32x128xf32>,
    } else {
    }
    %c0 = arith.constant 0 : index
    %c0_1 = arith.constant 0 : index
    %3 = vector.load %arg7[%c0, %c0_1] : memref<32x128xf32, #tpu.memory_space<vmem>>, vector<32x128xf32>
    %c0_2 = arith.constant 0 : index
    %c0_3 = arith.constant 0 : index
    %4 = vector.load %arg3[%c0_2, %c0_3] : memref<32x640xbf16, #tpu.memory_space<vmem>>, vector<32x640xbf16>
    %c0_4 = arith.constant 0 : index
    %c0_5 = arith.constant 0 : index
    %5 = vector.load %arg4[%c0_4, %c0_5] : memref<640x128xbf16, #tpu.memory_space<vmem>>, vector<640x128xbf16>
    %cst = arith.constant dense<0.000000e+00> : vector<32x128xf32>
    %6 = tpu.matmul %4, %5, %cst {dimension_numbers = #tpu.dot_dimension_numbers<[1], [0], [0], [1], [0, 0, 1, 1], [], []>} : vector<32x640xbf16>, vector<640x128xbf16>, vector<32x128xf32> -> vector<32x128xf32>
    %7 = arith.addf %3, %6 : vector<32x128xf32>
    %c0_6 = arith.constant 0 : index
    %c0_7 = arith.constant 0 : index
    %8 = vector.load %arg7[%c0_6, %c0_7] : memref<32x128xf32, #tpu.memory_space<vmem>>, vector<32x128xf32>
    tpu.vector_store %arg7[%c0_6, %c0_7], %7 {strides = array<i32>} : memref<32x128xf32, #tpu.memory_space<vmem>>, vector<32x128xf32>,
    %c0_i32_8 = arith.constant 0 : i32
    %9 = arith.cmpi eq, %arg2, %c0_i32_8 : i32
    %10 = arith.extui %9 : i1 to i32
    %c0_i32_9 = arith.constant 0 : i32
    %11 = arith.cmpi ne, %10, %c0_i32_9 : i32
    scf.if %11 {
      %c0_10 = arith.constant 0 : index
      %c0_11 = arith.constant 0 : index
      %12 = vector.load %arg7[%c0_10, %c0_11] : memref<32x128xf32, #tpu.memory_space<vmem>>, vector<32x128xf32>
      %cst_12 = arith.constant 0.000000e+00 : f32
      %13 = vector.broadcast %cst_12 : f32 to vector<32x128xf32>
      %14 = arith.maximumf %12, %13 : vector<32x128xf32>
      %15 = arith.truncf %14 : vector<32x128xf32> to vector<32x128xbf16>
      %c0_13 = arith.constant 0 : index
      %c0_14 = arith.constant 0 : index
      %16 = vector.load %arg6[%c0_13, %c0_14] : memref<32x128xbf16, #tpu.memory_space<vmem>>, vector<32x128xbf16>
      tpu.vector_store %arg6[%c0_13, %c0_14], %15 {strides = array<i32>} : memref<32x128xbf16, #tpu.memory_space<vmem>>, vector<32x128xbf16>,
    } else {
    }
    return
  }
  func.func @transform_0(%arg0: i32, %arg1: i32, %arg2: i32) -> (i32, i32) {
    %c0_i32 = arith.constant 0 : i32
    return %arg0, %arg2 : i32, i32
  }
  func.func @transform_1(%arg0: i32, %arg1: i32, %arg2: i32) -> (i32, i32) {
    %c0_i32 = arith.constant 0 : i32
    return %arg2, %arg1 : i32, i32
  }
  func.func @transform_2(%arg0: i32, %arg1: i32, %arg2: i32) -> (i32, i32) {
    %c0_i32 = arith.constant 0 : i32
    %c0_i32_0 = arith.constant 0 : i32
    return %c0_i32, %arg1 : i32, i32
  }
  func.func @transform_3(%arg0: i32, %arg1: i32, %arg2: i32) -> (i32, i32) {
    %c0_i32 = arith.constant 0 : i32
    return %arg0, %arg1 : i32, i32
  }
}

module attributes {stable_mosaic.version = 11 : i64} {
  func.func @_mm_kernel(%arg0: i32, %arg1: i32, %arg2: i32, %arg3: memref<32x128xbf16, #tpu.memory_space<vmem>>, %arg4: memref<128x128xbf16, #tpu.memory_space<vmem>>, %arg5: memref<1x128xf32, #tpu.memory_space<vmem>>, %arg6: memref<32x128xbf16, #tpu.memory_space<vmem>>, %arg7: memref<32x128xf32, #tpu.memory_space<vmem>>) attributes {dimension_semantics = [#tpu.dimension_semantics<parallel>, #tpu.dimension_semantics<parallel>, #tpu.dimension_semantics<arbitrary>], iteration_bounds = array<i64: 1, 1, 1>, scalar_prefetch = 0 : i64, scratch_operands = 1 : i64, tpu.core_type = #tpu.core_type<tc>, window_params = [{transform_indices = @transform_0, window_bounds = array<i64: 32, 128>}, {transform_indices = @transform_1, window_bounds = array<i64: 128, 128>}, {transform_indices = @transform_2, window_bounds = array<i64: 1, 128>}, {transform_indices = @transform_3, window_bounds = array<i64: 32, 128>}]} {
    %c0_i32 = arith.constant 0 : i32
    %0 = arith.cmpi eq, %arg2, %c0_i32 : i32
    %1 = arith.extui %0 : i1 to i32
    %c0_i32_0 = arith.constant 0 : i32
    %2 = arith.cmpi ne, %1, %c0_i32_0 : i32
    scf.if %2 {
      %c0_10 = arith.constant 0 : index
      %c0_11 = arith.constant 0 : index
      %12 = vector.load %arg5[%c0_10, %c0_11] : memref<1x128xf32, #tpu.memory_space<vmem>>, vector<1x128xf32>
      %13 = vector.shape_cast %12 : vector<1x128xf32> to vector<1x128xf32>
      %14 = vector.broadcast %13 : vector<1x128xf32> to vector<32x128xf32>
      %c0_12 = arith.constant 0 : index
      %c0_13 = arith.constant 0 : index
      %15 = vector.load %arg7[%c0_12, %c0_13] : memref<32x128xf32, #tpu.memory_space<vmem>>, vector<32x128xf32>
      tpu.vector_store %arg7[%c0_12, %c0_13], %14 {strides = array<i32>} : memref<32x128xf32, #tpu.memory_space<vmem>>, vector<32x128xf32>,
    } else {
    }
    %c0 = arith.constant 0 : index
    %c0_1 = arith.constant 0 : index
    %3 = vector.load %arg7[%c0, %c0_1] : memref<32x128xf32, #tpu.memory_space<vmem>>, vector<32x128xf32>
    %c0_2 = arith.constant 0 : index
    %c0_3 = arith.constant 0 : index
    %4 = vector.load %arg3[%c0_2, %c0_3] : memref<32x128xbf16, #tpu.memory_space<vmem>>, vector<32x128xbf16>
    %c0_4 = arith.constant 0 : index
    %c0_5 = arith.constant 0 : index
    %5 = vector.load %arg4[%c0_4, %c0_5] : memref<128x128xbf16, #tpu.memory_space<vmem>>, vector<128x128xbf16>
    %cst = arith.constant dense<0.000000e+00> : vector<32x128xf32>
    %6 = tpu.matmul %4, %5, %cst {dimension_numbers = #tpu.dot_dimension_numbers<[1], [0], [0], [1], [0, 0, 1, 1], [], []>} : vector<32x128xbf16>, vector<128x128xbf16>, vector<32x128xf32> -> vector<32x128xf32>
    %7 = arith.addf %3, %6 : vector<32x128xf32>
    %c0_6 = arith.constant 0 : index
    %c0_7 = arith.constant 0 : index
    %8 = vector.load %arg7[%c0_6, %c0_7] : memref<32x128xf32, #tpu.memory_space<vmem>>, vector<32x128xf32>
    tpu.vector_store %arg7[%c0_6, %c0_7], %7 {strides = array<i32>} : memref<32x128xf32, #tpu.memory_space<vmem>>, vector<32x128xf32>,
    %c0_i32_8 = arith.constant 0 : i32
    %9 = arith.cmpi eq, %arg2, %c0_i32_8 : i32
    %10 = arith.extui %9 : i1 to i32
    %c0_i32_9 = arith.constant 0 : i32
    %11 = arith.cmpi ne, %10, %c0_i32_9 : i32
    scf.if %11 {
      %c0_10 = arith.constant 0 : index
      %c0_11 = arith.constant 0 : index
      %12 = vector.load %arg7[%c0_10, %c0_11] : memref<32x128xf32, #tpu.memory_space<vmem>>, vector<32x128xf32>
      %13 = arith.truncf %12 : vector<32x128xf32> to vector<32x128xbf16>
      %c0_12 = arith.constant 0 : index
      %c0_13 = arith.constant 0 : index
      %14 = vector.load %arg6[%c0_12, %c0_13] : memref<32x128xbf16, #tpu.memory_space<vmem>>, vector<32x128xbf16>
      tpu.vector_store %arg6[%c0_12, %c0_13], %13 {strides = array<i32>} : memref<32x128xbf16, #tpu.memory_space<vmem>>, vector<32x128xbf16>,
    } else {
    }
    return
  }
  func.func @transform_0(%arg0: i32, %arg1: i32, %arg2: i32) -> (i32, i32) {
    %c0_i32 = arith.constant 0 : i32
    return %arg0, %arg2 : i32, i32
  }
  func.func @transform_1(%arg0: i32, %arg1: i32, %arg2: i32) -> (i32, i32) {
    %c0_i32 = arith.constant 0 : i32
    return %arg2, %arg1 : i32, i32
  }
  func.func @transform_2(%arg0: i32, %arg1: i32, %arg2: i32) -> (i32, i32) {
    %c0_i32 = arith.constant 0 : i32
    %c0_i32_0 = arith.constant 0 : i32
    return %c0_i32, %arg1 : i32, i32
  }
  func.func @transform_3(%arg0: i32, %arg1: i32, %arg2: i32) -> (i32, i32) {
    %c0_i32 = arith.constant 0 : i32
    return %arg0, %arg1 : i32, i32
  }
}

module attributes {stable_mosaic.version = 11 : i64} {
  func.func @_mm_res_kernel(%arg0: i32, %arg1: i32, %arg2: i32, %arg3: memref<32x1152xbf16, #tpu.memory_space<vmem>>, %arg4: memref<1152x128xbf16, #tpu.memory_space<vmem>>, %arg5: memref<1x128xf32, #tpu.memory_space<vmem>>, %arg6: memref<32x128xbf16, #tpu.memory_space<vmem>>, %arg7: memref<32x128xbf16, #tpu.memory_space<vmem>>, %arg8: memref<32x128xf32, #tpu.memory_space<vmem>>) attributes {dimension_semantics = [#tpu.dimension_semantics<parallel>, #tpu.dimension_semantics<parallel>, #tpu.dimension_semantics<arbitrary>], iteration_bounds = array<i64: 1, 1, 1>, scalar_prefetch = 0 : i64, scratch_operands = 1 : i64, tpu.core_type = #tpu.core_type<tc>, window_params = [{transform_indices = @transform_0, window_bounds = array<i64: 32, 1152>}, {transform_indices = @transform_1, window_bounds = array<i64: 1152, 128>}, {transform_indices = @transform_2, window_bounds = array<i64: 1, 128>}, {transform_indices = @transform_3, window_bounds = array<i64: 32, 128>}, {transform_indices = @transform_4, window_bounds = array<i64: 32, 128>}]} {
    %c0_i32 = arith.constant 0 : i32
    %0 = arith.cmpi eq, %arg2, %c0_i32 : i32
    %1 = arith.extui %0 : i1 to i32
    %c0_i32_0 = arith.constant 0 : i32
    %2 = arith.cmpi ne, %1, %c0_i32_0 : i32
    scf.if %2 {
      %c0_10 = arith.constant 0 : index
      %c0_11 = arith.constant 0 : index
      %12 = vector.load %arg5[%c0_10, %c0_11] : memref<1x128xf32, #tpu.memory_space<vmem>>, vector<1x128xf32>
      %13 = vector.shape_cast %12 : vector<1x128xf32> to vector<1x128xf32>
      %14 = vector.broadcast %13 : vector<1x128xf32> to vector<32x128xf32>
      %c0_12 = arith.constant 0 : index
      %c0_13 = arith.constant 0 : index
      %15 = vector.load %arg8[%c0_12, %c0_13] : memref<32x128xf32, #tpu.memory_space<vmem>>, vector<32x128xf32>
      tpu.vector_store %arg8[%c0_12, %c0_13], %14 {strides = array<i32>} : memref<32x128xf32, #tpu.memory_space<vmem>>, vector<32x128xf32>,
    } else {
    }
    %c0 = arith.constant 0 : index
    %c0_1 = arith.constant 0 : index
    %3 = vector.load %arg8[%c0, %c0_1] : memref<32x128xf32, #tpu.memory_space<vmem>>, vector<32x128xf32>
    %c0_2 = arith.constant 0 : index
    %c0_3 = arith.constant 0 : index
    %4 = vector.load %arg3[%c0_2, %c0_3] : memref<32x1152xbf16, #tpu.memory_space<vmem>>, vector<32x1152xbf16>
    %c0_4 = arith.constant 0 : index
    %c0_5 = arith.constant 0 : index
    %5 = vector.load %arg4[%c0_4, %c0_5] : memref<1152x128xbf16, #tpu.memory_space<vmem>>, vector<1152x128xbf16>
    %cst = arith.constant dense<0.000000e+00> : vector<32x128xf32>
    %6 = tpu.matmul %4, %5, %cst {dimension_numbers = #tpu.dot_dimension_numbers<[1], [0], [0], [1], [0, 0, 1, 1], [], []>} : vector<32x1152xbf16>, vector<1152x128xbf16>, vector<32x128xf32> -> vector<32x128xf32>
    %7 = arith.addf %3, %6 : vector<32x128xf32>
    %c0_6 = arith.constant 0 : index
    %c0_7 = arith.constant 0 : index
    %8 = vector.load %arg8[%c0_6, %c0_7] : memref<32x128xf32, #tpu.memory_space<vmem>>, vector<32x128xf32>
    tpu.vector_store %arg8[%c0_6, %c0_7], %7 {strides = array<i32>} : memref<32x128xf32, #tpu.memory_space<vmem>>, vector<32x128xf32>,
    %c0_i32_8 = arith.constant 0 : i32
    %9 = arith.cmpi eq, %arg2, %c0_i32_8 : i32
    %10 = arith.extui %9 : i1 to i32
    %c0_i32_9 = arith.constant 0 : i32
    %11 = arith.cmpi ne, %10, %c0_i32_9 : i32
    scf.if %11 {
      %c0_10 = arith.constant 0 : index
      %c0_11 = arith.constant 0 : index
      %12 = vector.load %arg8[%c0_10, %c0_11] : memref<32x128xf32, #tpu.memory_space<vmem>>, vector<32x128xf32>
      %c0_12 = arith.constant 0 : index
      %c0_13 = arith.constant 0 : index
      %13 = vector.load %arg6[%c0_12, %c0_13] : memref<32x128xbf16, #tpu.memory_space<vmem>>, vector<32x128xbf16>
      %14 = arith.extf %13 : vector<32x128xbf16> to vector<32x128xf32>
      %15 = arith.addf %12, %14 : vector<32x128xf32>
      %cst_14 = arith.constant 0.000000e+00 : f32
      %16 = vector.broadcast %cst_14 : f32 to vector<32x128xf32>
      %17 = arith.maximumf %15, %16 : vector<32x128xf32>
      %18 = arith.truncf %17 : vector<32x128xf32> to vector<32x128xbf16>
      %c0_15 = arith.constant 0 : index
      %c0_16 = arith.constant 0 : index
      %19 = vector.load %arg7[%c0_15, %c0_16] : memref<32x128xbf16, #tpu.memory_space<vmem>>, vector<32x128xbf16>
      tpu.vector_store %arg7[%c0_15, %c0_16], %18 {strides = array<i32>} : memref<32x128xbf16, #tpu.memory_space<vmem>>, vector<32x128xbf16>,
    } else {
    }
    return
  }
  func.func @transform_0(%arg0: i32, %arg1: i32, %arg2: i32) -> (i32, i32) {
    %c0_i32 = arith.constant 0 : i32
    return %arg0, %arg2 : i32, i32
  }
  func.func @transform_1(%arg0: i32, %arg1: i32, %arg2: i32) -> (i32, i32) {
    %c0_i32 = arith.constant 0 : i32
    return %arg2, %arg1 : i32, i32
  }
  func.func @transform_2(%arg0: i32, %arg1: i32, %arg2: i32) -> (i32, i32) {
    %c0_i32 = arith.constant 0 : i32
    %c0_i32_0 = arith.constant 0 : i32
    return %c0_i32, %arg1 : i32, i32
  }
  func.func @transform_3(%arg0: i32, %arg1: i32, %arg2: i32) -> (i32, i32) {
    %c0_i32 = arith.constant 0 : i32
    return %arg0, %arg1 : i32, i32
  }
  func.func @transform_4(%arg0: i32, %arg1: i32, %arg2: i32) -> (i32, i32) {
    %c0_i32 = arith.constant 0 : i32
    return %arg0, %arg1 : i32, i32
  }
}

module attributes {stable_mosaic.version = 11 : i64} {
  func.func @_mm_kernel(%arg0: i32, %arg1: i32, %arg2: i32, %arg3: memref<32x1152xbf16, #tpu.memory_space<vmem>>, %arg4: memref<1152x128xbf16, #tpu.memory_space<vmem>>, %arg5: memref<1x128xf32, #tpu.memory_space<vmem>>, %arg6: memref<32x128xbf16, #tpu.memory_space<vmem>>, %arg7: memref<32x128xf32, #tpu.memory_space<vmem>>) attributes {dimension_semantics = [#tpu.dimension_semantics<parallel>, #tpu.dimension_semantics<parallel>, #tpu.dimension_semantics<arbitrary>], iteration_bounds = array<i64: 1, 1, 1>, scalar_prefetch = 0 : i64, scratch_operands = 1 : i64, tpu.core_type = #tpu.core_type<tc>, window_params = [{transform_indices = @transform_0, window_bounds = array<i64: 32, 1152>}, {transform_indices = @transform_1, window_bounds = array<i64: 1152, 128>}, {transform_indices = @transform_2, window_bounds = array<i64: 1, 128>}, {transform_indices = @transform_3, window_bounds = array<i64: 32, 128>}]} {
    %c0_i32 = arith.constant 0 : i32
    %0 = arith.cmpi eq, %arg2, %c0_i32 : i32
    %1 = arith.extui %0 : i1 to i32
    %c0_i32_0 = arith.constant 0 : i32
    %2 = arith.cmpi ne, %1, %c0_i32_0 : i32
    scf.if %2 {
      %c0_10 = arith.constant 0 : index
      %c0_11 = arith.constant 0 : index
      %12 = vector.load %arg5[%c0_10, %c0_11] : memref<1x128xf32, #tpu.memory_space<vmem>>, vector<1x128xf32>
      %13 = vector.shape_cast %12 : vector<1x128xf32> to vector<1x128xf32>
      %14 = vector.broadcast %13 : vector<1x128xf32> to vector<32x128xf32>
      %c0_12 = arith.constant 0 : index
      %c0_13 = arith.constant 0 : index
      %15 = vector.load %arg7[%c0_12, %c0_13] : memref<32x128xf32, #tpu.memory_space<vmem>>, vector<32x128xf32>
      tpu.vector_store %arg7[%c0_12, %c0_13], %14 {strides = array<i32>} : memref<32x128xf32, #tpu.memory_space<vmem>>, vector<32x128xf32>,
    } else {
    }
    %c0 = arith.constant 0 : index
    %c0_1 = arith.constant 0 : index
    %3 = vector.load %arg7[%c0, %c0_1] : memref<32x128xf32, #tpu.memory_space<vmem>>, vector<32x128xf32>
    %c0_2 = arith.constant 0 : index
    %c0_3 = arith.constant 0 : index
    %4 = vector.load %arg3[%c0_2, %c0_3] : memref<32x1152xbf16, #tpu.memory_space<vmem>>, vector<32x1152xbf16>
    %c0_4 = arith.constant 0 : index
    %c0_5 = arith.constant 0 : index
    %5 = vector.load %arg4[%c0_4, %c0_5] : memref<1152x128xbf16, #tpu.memory_space<vmem>>, vector<1152x128xbf16>
    %cst = arith.constant dense<0.000000e+00> : vector<32x128xf32>
    %6 = tpu.matmul %4, %5, %cst {dimension_numbers = #tpu.dot_dimension_numbers<[1], [0], [0], [1], [0, 0, 1, 1], [], []>} : vector<32x1152xbf16>, vector<1152x128xbf16>, vector<32x128xf32> -> vector<32x128xf32>
    %7 = arith.addf %3, %6 : vector<32x128xf32>
    %c0_6 = arith.constant 0 : index
    %c0_7 = arith.constant 0 : index
    %8 = vector.load %arg7[%c0_6, %c0_7] : memref<32x128xf32, #tpu.memory_space<vmem>>, vector<32x128xf32>
    tpu.vector_store %arg7[%c0_6, %c0_7], %7 {strides = array<i32>} : memref<32x128xf32, #tpu.memory_space<vmem>>, vector<32x128xf32>,
    %c0_i32_8 = arith.constant 0 : i32
    %9 = arith.cmpi eq, %arg2, %c0_i32_8 : i32
    %10 = arith.extui %9 : i1 to i32
    %c0_i32_9 = arith.constant 0 : i32
    %11 = arith.cmpi ne, %10, %c0_i32_9 : i32
    scf.if %11 {
      %c0_10 = arith.constant 0 : index
      %c0_11 = arith.constant 0 : index
      %12 = vector.load %arg7[%c0_10, %c0_11] : memref<32x128xf32, #tpu.memory_space<vmem>>, vector<32x128xf32>
      %cst_12 = arith.constant 0.000000e+00 : f32
      %13 = vector.broadcast %cst_12 : f32 to vector<32x128xf32>
      %14 = arith.maximumf %12, %13 : vector<32x128xf32>
      %15 = arith.truncf %14 : vector<32x128xf32> to vector<32x128xbf16>
      %c0_13 = arith.constant 0 : index
      %c0_14 = arith.constant 0 : index
      %16 = vector.load %arg6[%c0_13, %c0_14] : memref<32x128xbf16, #tpu.memory_space<vmem>>, vector<32x128xbf16>
      tpu.vector_store %arg6[%c0_13, %c0_14], %15 {strides = array<i32>} : memref<32x128xbf16, #tpu.memory_space<vmem>>, vector<32x128xbf16>,
    } else {
    }
    return
  }
  func.func @transform_0(%arg0: i32, %arg1: i32, %arg2: i32) -> (i32, i32) {
    %c0_i32 = arith.constant 0 : i32
    return %arg0, %arg2 : i32, i32
  }
  func.func @transform_1(%arg0: i32, %arg1: i32, %arg2: i32) -> (i32, i32) {
    %c0_i32 = arith.constant 0 : i32
    return %arg2, %arg1 : i32, i32
  }
  func.func @transform_2(%arg0: i32, %arg1: i32, %arg2: i32) -> (i32, i32) {
    %c0_i32 = arith.constant 0 : i32
    %c0_i32_0 = arith.constant 0 : i32
    return %c0_i32, %arg1 : i32, i32
  }
  func.func @transform_3(%arg0: i32, %arg1: i32, %arg2: i32) -> (i32, i32) {
    %c0_i32 = arith.constant 0 : i32
    return %arg0, %arg1 : i32, i32
  }
}

module attributes {stable_mosaic.version = 11 : i64} {
  func.func @_mm_kernel(%arg0: i32, %arg1: i32, %arg2: i32, %arg3: memref<16x1152xbf16, #tpu.memory_space<vmem>>, %arg4: memref<1152x256xbf16, #tpu.memory_space<vmem>>, %arg5: memref<1x256xf32, #tpu.memory_space<vmem>>, %arg6: memref<16x256xbf16, #tpu.memory_space<vmem>>, %arg7: memref<16x256xf32, #tpu.memory_space<vmem>>) attributes {dimension_semantics = [#tpu.dimension_semantics<parallel>, #tpu.dimension_semantics<parallel>, #tpu.dimension_semantics<arbitrary>], iteration_bounds = array<i64: 1, 1, 1>, scalar_prefetch = 0 : i64, scratch_operands = 1 : i64, tpu.core_type = #tpu.core_type<tc>, window_params = [{transform_indices = @transform_0, window_bounds = array<i64: 16, 1152>}, {transform_indices = @transform_1, window_bounds = array<i64: 1152, 256>}, {transform_indices = @transform_2, window_bounds = array<i64: 1, 256>}, {transform_indices = @transform_3, window_bounds = array<i64: 16, 256>}]} {
    %c0_i32 = arith.constant 0 : i32
    %0 = arith.cmpi eq, %arg2, %c0_i32 : i32
    %1 = arith.extui %0 : i1 to i32
    %c0_i32_0 = arith.constant 0 : i32
    %2 = arith.cmpi ne, %1, %c0_i32_0 : i32
    scf.if %2 {
      %c0_10 = arith.constant 0 : index
      %c0_11 = arith.constant 0 : index
      %12 = vector.load %arg5[%c0_10, %c0_11] : memref<1x256xf32, #tpu.memory_space<vmem>>, vector<1x256xf32>
      %13 = vector.shape_cast %12 : vector<1x256xf32> to vector<1x256xf32>
      %14 = vector.broadcast %13 : vector<1x256xf32> to vector<16x256xf32>
      %c0_12 = arith.constant 0 : index
      %c0_13 = arith.constant 0 : index
      %15 = vector.load %arg7[%c0_12, %c0_13] : memref<16x256xf32, #tpu.memory_space<vmem>>, vector<16x256xf32>
      tpu.vector_store %arg7[%c0_12, %c0_13], %14 {strides = array<i32>} : memref<16x256xf32, #tpu.memory_space<vmem>>, vector<16x256xf32>,
    } else {
    }
    %c0 = arith.constant 0 : index
    %c0_1 = arith.constant 0 : index
    %3 = vector.load %arg7[%c0, %c0_1] : memref<16x256xf32, #tpu.memory_space<vmem>>, vector<16x256xf32>
    %c0_2 = arith.constant 0 : index
    %c0_3 = arith.constant 0 : index
    %4 = vector.load %arg3[%c0_2, %c0_3] : memref<16x1152xbf16, #tpu.memory_space<vmem>>, vector<16x1152xbf16>
    %c0_4 = arith.constant 0 : index
    %c0_5 = arith.constant 0 : index
    %5 = vector.load %arg4[%c0_4, %c0_5] : memref<1152x256xbf16, #tpu.memory_space<vmem>>, vector<1152x256xbf16>
    %cst = arith.constant dense<0.000000e+00> : vector<16x256xf32>
    %6 = tpu.matmul %4, %5, %cst {dimension_numbers = #tpu.dot_dimension_numbers<[1], [0], [0], [1], [0, 0, 1, 1], [], []>} : vector<16x1152xbf16>, vector<1152x256xbf16>, vector<16x256xf32> -> vector<16x256xf32>
    %7 = arith.addf %3, %6 : vector<16x256xf32>
    %c0_6 = arith.constant 0 : index
    %c0_7 = arith.constant 0 : index
    %8 = vector.load %arg7[%c0_6, %c0_7] : memref<16x256xf32, #tpu.memory_space<vmem>>, vector<16x256xf32>
    tpu.vector_store %arg7[%c0_6, %c0_7], %7 {strides = array<i32>} : memref<16x256xf32, #tpu.memory_space<vmem>>, vector<16x256xf32>,
    %c0_i32_8 = arith.constant 0 : i32
    %9 = arith.cmpi eq, %arg2, %c0_i32_8 : i32
    %10 = arith.extui %9 : i1 to i32
    %c0_i32_9 = arith.constant 0 : i32
    %11 = arith.cmpi ne, %10, %c0_i32_9 : i32
    scf.if %11 {
      %c0_10 = arith.constant 0 : index
      %c0_11 = arith.constant 0 : index
      %12 = vector.load %arg7[%c0_10, %c0_11] : memref<16x256xf32, #tpu.memory_space<vmem>>, vector<16x256xf32>
      %cst_12 = arith.constant 0.000000e+00 : f32
      %13 = vector.broadcast %cst_12 : f32 to vector<16x256xf32>
      %14 = arith.maximumf %12, %13 : vector<16x256xf32>
      %15 = arith.truncf %14 : vector<16x256xf32> to vector<16x256xbf16>
      %c0_13 = arith.constant 0 : index
      %c0_14 = arith.constant 0 : index
      %16 = vector.load %arg6[%c0_13, %c0_14] : memref<16x256xbf16, #tpu.memory_space<vmem>>, vector<16x256xbf16>
      tpu.vector_store %arg6[%c0_13, %c0_14], %15 {strides = array<i32>} : memref<16x256xbf16, #tpu.memory_space<vmem>>, vector<16x256xbf16>,
    } else {
    }
    return
  }
  func.func @transform_0(%arg0: i32, %arg1: i32, %arg2: i32) -> (i32, i32) {
    %c0_i32 = arith.constant 0 : i32
    return %arg0, %arg2 : i32, i32
  }
  func.func @transform_1(%arg0: i32, %arg1: i32, %arg2: i32) -> (i32, i32) {
    %c0_i32 = arith.constant 0 : i32
    return %arg2, %arg1 : i32, i32
  }
  func.func @transform_2(%arg0: i32, %arg1: i32, %arg2: i32) -> (i32, i32) {
    %c0_i32 = arith.constant 0 : i32
    %c0_i32_0 = arith.constant 0 : i32
    return %c0_i32, %arg1 : i32, i32
  }
  func.func @transform_3(%arg0: i32, %arg1: i32, %arg2: i32) -> (i32, i32) {
    %c0_i32 = arith.constant 0 : i32
    return %arg0, %arg1 : i32, i32
  }
}

module attributes {stable_mosaic.version = 11 : i64} {
  func.func @_mm_kernel(%arg0: i32, %arg1: i32, %arg2: i32, %arg3: memref<16x128xbf16, #tpu.memory_space<vmem>>, %arg4: memref<128x256xbf16, #tpu.memory_space<vmem>>, %arg5: memref<1x256xf32, #tpu.memory_space<vmem>>, %arg6: memref<16x256xbf16, #tpu.memory_space<vmem>>, %arg7: memref<16x256xf32, #tpu.memory_space<vmem>>) attributes {dimension_semantics = [#tpu.dimension_semantics<parallel>, #tpu.dimension_semantics<parallel>, #tpu.dimension_semantics<arbitrary>], iteration_bounds = array<i64: 1, 1, 1>, scalar_prefetch = 0 : i64, scratch_operands = 1 : i64, tpu.core_type = #tpu.core_type<tc>, window_params = [{transform_indices = @transform_0, window_bounds = array<i64: 16, 128>}, {transform_indices = @transform_1, window_bounds = array<i64: 128, 256>}, {transform_indices = @transform_2, window_bounds = array<i64: 1, 256>}, {transform_indices = @transform_3, window_bounds = array<i64: 16, 256>}]} {
    %c0_i32 = arith.constant 0 : i32
    %0 = arith.cmpi eq, %arg2, %c0_i32 : i32
    %1 = arith.extui %0 : i1 to i32
    %c0_i32_0 = arith.constant 0 : i32
    %2 = arith.cmpi ne, %1, %c0_i32_0 : i32
    scf.if %2 {
      %c0_10 = arith.constant 0 : index
      %c0_11 = arith.constant 0 : index
      %12 = vector.load %arg5[%c0_10, %c0_11] : memref<1x256xf32, #tpu.memory_space<vmem>>, vector<1x256xf32>
      %13 = vector.shape_cast %12 : vector<1x256xf32> to vector<1x256xf32>
      %14 = vector.broadcast %13 : vector<1x256xf32> to vector<16x256xf32>
      %c0_12 = arith.constant 0 : index
      %c0_13 = arith.constant 0 : index
      %15 = vector.load %arg7[%c0_12, %c0_13] : memref<16x256xf32, #tpu.memory_space<vmem>>, vector<16x256xf32>
      tpu.vector_store %arg7[%c0_12, %c0_13], %14 {strides = array<i32>} : memref<16x256xf32, #tpu.memory_space<vmem>>, vector<16x256xf32>,
    } else {
    }
    %c0 = arith.constant 0 : index
    %c0_1 = arith.constant 0 : index
    %3 = vector.load %arg7[%c0, %c0_1] : memref<16x256xf32, #tpu.memory_space<vmem>>, vector<16x256xf32>
    %c0_2 = arith.constant 0 : index
    %c0_3 = arith.constant 0 : index
    %4 = vector.load %arg3[%c0_2, %c0_3] : memref<16x128xbf16, #tpu.memory_space<vmem>>, vector<16x128xbf16>
    %c0_4 = arith.constant 0 : index
    %c0_5 = arith.constant 0 : index
    %5 = vector.load %arg4[%c0_4, %c0_5] : memref<128x256xbf16, #tpu.memory_space<vmem>>, vector<128x256xbf16>
    %cst = arith.constant dense<0.000000e+00> : vector<16x256xf32>
    %6 = tpu.matmul %4, %5, %cst {dimension_numbers = #tpu.dot_dimension_numbers<[1], [0], [0], [1], [0, 0, 1, 1], [], []>} : vector<16x128xbf16>, vector<128x256xbf16>, vector<16x256xf32> -> vector<16x256xf32>
    %7 = arith.addf %3, %6 : vector<16x256xf32>
    %c0_6 = arith.constant 0 : index
    %c0_7 = arith.constant 0 : index
    %8 = vector.load %arg7[%c0_6, %c0_7] : memref<16x256xf32, #tpu.memory_space<vmem>>, vector<16x256xf32>
    tpu.vector_store %arg7[%c0_6, %c0_7], %7 {strides = array<i32>} : memref<16x256xf32, #tpu.memory_space<vmem>>, vector<16x256xf32>,
    %c0_i32_8 = arith.constant 0 : i32
    %9 = arith.cmpi eq, %arg2, %c0_i32_8 : i32
    %10 = arith.extui %9 : i1 to i32
    %c0_i32_9 = arith.constant 0 : i32
    %11 = arith.cmpi ne, %10, %c0_i32_9 : i32
    scf.if %11 {
      %c0_10 = arith.constant 0 : index
      %c0_11 = arith.constant 0 : index
      %12 = vector.load %arg7[%c0_10, %c0_11] : memref<16x256xf32, #tpu.memory_space<vmem>>, vector<16x256xf32>
      %13 = arith.truncf %12 : vector<16x256xf32> to vector<16x256xbf16>
      %c0_12 = arith.constant 0 : index
      %c0_13 = arith.constant 0 : index
      %14 = vector.load %arg6[%c0_12, %c0_13] : memref<16x256xbf16, #tpu.memory_space<vmem>>, vector<16x256xbf16>
      tpu.vector_store %arg6[%c0_12, %c0_13], %13 {strides = array<i32>} : memref<16x256xbf16, #tpu.memory_space<vmem>>, vector<16x256xbf16>,
    } else {
    }
    return
  }
  func.func @transform_0(%arg0: i32, %arg1: i32, %arg2: i32) -> (i32, i32) {
    %c0_i32 = arith.constant 0 : i32
    return %arg0, %arg2 : i32, i32
  }
  func.func @transform_1(%arg0: i32, %arg1: i32, %arg2: i32) -> (i32, i32) {
    %c0_i32 = arith.constant 0 : i32
    return %arg2, %arg1 : i32, i32
  }
  func.func @transform_2(%arg0: i32, %arg1: i32, %arg2: i32) -> (i32, i32) {
    %c0_i32 = arith.constant 0 : i32
    %c0_i32_0 = arith.constant 0 : i32
    return %c0_i32, %arg1 : i32, i32
  }
  func.func @transform_3(%arg0: i32, %arg1: i32, %arg2: i32) -> (i32, i32) {
    %c0_i32 = arith.constant 0 : i32
    return %arg0, %arg1 : i32, i32
  }
}

module attributes {stable_mosaic.version = 11 : i64} {
  func.func @_mm_res_kernel(%arg0: i32, %arg1: i32, %arg2: i32, %arg3: memref<16x1152xbf16, #tpu.memory_space<vmem>>, %arg4: memref<1152x256xbf16, #tpu.memory_space<vmem>>, %arg5: memref<1x256xf32, #tpu.memory_space<vmem>>, %arg6: memref<16x256xbf16, #tpu.memory_space<vmem>>, %arg7: memref<16x256xbf16, #tpu.memory_space<vmem>>, %arg8: memref<16x256xf32, #tpu.memory_space<vmem>>) attributes {dimension_semantics = [#tpu.dimension_semantics<parallel>, #tpu.dimension_semantics<parallel>, #tpu.dimension_semantics<arbitrary>], iteration_bounds = array<i64: 1, 1, 2>, scalar_prefetch = 0 : i64, scratch_operands = 1 : i64, tpu.core_type = #tpu.core_type<tc>, window_params = [{transform_indices = @transform_0, window_bounds = array<i64: 16, 1152>}, {transform_indices = @transform_1, window_bounds = array<i64: 1152, 256>}, {transform_indices = @transform_2, window_bounds = array<i64: 1, 256>}, {transform_indices = @transform_3, window_bounds = array<i64: 16, 256>}, {transform_indices = @transform_4, window_bounds = array<i64: 16, 256>}]} {
    %c0_i32 = arith.constant 0 : i32
    %0 = arith.cmpi eq, %arg2, %c0_i32 : i32
    %1 = arith.extui %0 : i1 to i32
    %c0_i32_0 = arith.constant 0 : i32
    %2 = arith.cmpi ne, %1, %c0_i32_0 : i32
    scf.if %2 {
      %c0_9 = arith.constant 0 : index
      %c0_10 = arith.constant 0 : index
      %12 = vector.load %arg5[%c0_9, %c0_10] : memref<1x256xf32, #tpu.memory_space<vmem>>, vector<1x256xf32>
      %13 = vector.shape_cast %12 : vector<1x256xf32> to vector<1x256xf32>
      %14 = vector.broadcast %13 : vector<1x256xf32> to vector<16x256xf32>
      %c0_11 = arith.constant 0 : index
      %c0_12 = arith.constant 0 : index
      %15 = vector.load %arg8[%c0_11, %c0_12] : memref<16x256xf32, #tpu.memory_space<vmem>>, vector<16x256xf32>
      tpu.vector_store %arg8[%c0_11, %c0_12], %14 {strides = array<i32>} : memref<16x256xf32, #tpu.memory_space<vmem>>, vector<16x256xf32>,
    } else {
    }
    %c0 = arith.constant 0 : index
    %c0_1 = arith.constant 0 : index
    %3 = vector.load %arg8[%c0, %c0_1] : memref<16x256xf32, #tpu.memory_space<vmem>>, vector<16x256xf32>
    %c0_2 = arith.constant 0 : index
    %c0_3 = arith.constant 0 : index
    %4 = vector.load %arg3[%c0_2, %c0_3] : memref<16x1152xbf16, #tpu.memory_space<vmem>>, vector<16x1152xbf16>
    %c0_4 = arith.constant 0 : index
    %c0_5 = arith.constant 0 : index
    %5 = vector.load %arg4[%c0_4, %c0_5] : memref<1152x256xbf16, #tpu.memory_space<vmem>>, vector<1152x256xbf16>
    %cst = arith.constant dense<0.000000e+00> : vector<16x256xf32>
    %6 = tpu.matmul %4, %5, %cst {dimension_numbers = #tpu.dot_dimension_numbers<[1], [0], [0], [1], [0, 0, 1, 1], [], []>} : vector<16x1152xbf16>, vector<1152x256xbf16>, vector<16x256xf32> -> vector<16x256xf32>
    %7 = arith.addf %3, %6 : vector<16x256xf32>
    %c0_6 = arith.constant 0 : index
    %c0_7 = arith.constant 0 : index
    %8 = vector.load %arg8[%c0_6, %c0_7] : memref<16x256xf32, #tpu.memory_space<vmem>>, vector<16x256xf32>
    tpu.vector_store %arg8[%c0_6, %c0_7], %7 {strides = array<i32>} : memref<16x256xf32, #tpu.memory_space<vmem>>, vector<16x256xf32>,
    %c1_i32 = arith.constant 1 : i32
    %9 = arith.cmpi eq, %arg2, %c1_i32 : i32
    %10 = arith.extui %9 : i1 to i32
    %c0_i32_8 = arith.constant 0 : i32
    %11 = arith.cmpi ne, %10, %c0_i32_8 : i32
    scf.if %11 {
      %c0_9 = arith.constant 0 : index
      %c0_10 = arith.constant 0 : index
      %12 = vector.load %arg8[%c0_9, %c0_10] : memref<16x256xf32, #tpu.memory_space<vmem>>, vector<16x256xf32>
      %c0_11 = arith.constant 0 : index
      %c0_12 = arith.constant 0 : index
      %13 = vector.load %arg6[%c0_11, %c0_12] : memref<16x256xbf16, #tpu.memory_space<vmem>>, vector<16x256xbf16>
      %14 = arith.extf %13 : vector<16x256xbf16> to vector<16x256xf32>
      %15 = arith.addf %12, %14 : vector<16x256xf32>
      %cst_13 = arith.constant 0.000000e+00 : f32
      %16 = vector.broadcast %cst_13 : f32 to vector<16x256xf32>
      %17 = arith.maximumf %15, %16 : vector<16x256xf32>
      %18 = arith.truncf %17 : vector<16x256xf32> to vector<16x256xbf16>
      %c0_14 = arith.constant 0 : index
      %c0_15 = arith.constant 0 : index
      %19 = vector.load %arg7[%c0_14, %c0_15] : memref<16x256xbf16, #tpu.memory_space<vmem>>, vector<16x256xbf16>
      tpu.vector_store %arg7[%c0_14, %c0_15], %18 {strides = array<i32>} : memref<16x256xbf16, #tpu.memory_space<vmem>>, vector<16x256xbf16>,
    } else {
    }
    return
  }
  func.func @transform_0(%arg0: i32, %arg1: i32, %arg2: i32) -> (i32, i32) {
    %c0_i32 = arith.constant 0 : i32
    return %arg0, %arg2 : i32, i32
  }
  func.func @transform_1(%arg0: i32, %arg1: i32, %arg2: i32) -> (i32, i32) {
    %c0_i32 = arith.constant 0 : i32
    return %arg2, %arg1 : i32, i32
  }
  func.func @transform_2(%arg0: i32, %arg1: i32, %arg2: i32) -> (i32, i32) {
    %c0_i32 = arith.constant 0 : i32
    %c0_i32_0 = arith.constant 0 : i32
    return %c0_i32, %arg1 : i32, i32
  }
  func.func @transform_3(%arg0: i32, %arg1: i32, %arg2: i32) -> (i32, i32) {
    %c0_i32 = arith.constant 0 : i32
    return %arg0, %arg1 : i32, i32
  }
  func.func @transform_4(%arg0: i32, %arg1: i32, %arg2: i32) -> (i32, i32) {
    %c0_i32 = arith.constant 0 : i32
    return %arg0, %arg1 : i32, i32
  }
}

module attributes {stable_mosaic.version = 11 : i64} {
  func.func @_mm_kernel(%arg0: i32, %arg1: i32, %arg2: i32, %arg3: memref<16x1152xbf16, #tpu.memory_space<vmem>>, %arg4: memref<1152x256xbf16, #tpu.memory_space<vmem>>, %arg5: memref<1x256xf32, #tpu.memory_space<vmem>>, %arg6: memref<16x256xbf16, #tpu.memory_space<vmem>>, %arg7: memref<16x256xf32, #tpu.memory_space<vmem>>) attributes {dimension_semantics = [#tpu.dimension_semantics<parallel>, #tpu.dimension_semantics<parallel>, #tpu.dimension_semantics<arbitrary>], iteration_bounds = array<i64: 1, 1, 2>, scalar_prefetch = 0 : i64, scratch_operands = 1 : i64, tpu.core_type = #tpu.core_type<tc>, window_params = [{transform_indices = @transform_0, window_bounds = array<i64: 16, 1152>}, {transform_indices = @transform_1, window_bounds = array<i64: 1152, 256>}, {transform_indices = @transform_2, window_bounds = array<i64: 1, 256>}, {transform_indices = @transform_3, window_bounds = array<i64: 16, 256>}]} {
    %c0_i32 = arith.constant 0 : i32
    %0 = arith.cmpi eq, %arg2, %c0_i32 : i32
    %1 = arith.extui %0 : i1 to i32
    %c0_i32_0 = arith.constant 0 : i32
    %2 = arith.cmpi ne, %1, %c0_i32_0 : i32
    scf.if %2 {
      %c0_9 = arith.constant 0 : index
      %c0_10 = arith.constant 0 : index
      %12 = vector.load %arg5[%c0_9, %c0_10] : memref<1x256xf32, #tpu.memory_space<vmem>>, vector<1x256xf32>
      %13 = vector.shape_cast %12 : vector<1x256xf32> to vector<1x256xf32>
      %14 = vector.broadcast %13 : vector<1x256xf32> to vector<16x256xf32>
      %c0_11 = arith.constant 0 : index
      %c0_12 = arith.constant 0 : index
      %15 = vector.load %arg7[%c0_11, %c0_12] : memref<16x256xf32, #tpu.memory_space<vmem>>, vector<16x256xf32>
      tpu.vector_store %arg7[%c0_11, %c0_12], %14 {strides = array<i32>} : memref<16x256xf32, #tpu.memory_space<vmem>>, vector<16x256xf32>,
    } else {
    }
    %c0 = arith.constant 0 : index
    %c0_1 = arith.constant 0 : index
    %3 = vector.load %arg7[%c0, %c0_1] : memref<16x256xf32, #tpu.memory_space<vmem>>, vector<16x256xf32>
    %c0_2 = arith.constant 0 : index
    %c0_3 = arith.constant 0 : index
    %4 = vector.load %arg3[%c0_2, %c0_3] : memref<16x1152xbf16, #tpu.memory_space<vmem>>, vector<16x1152xbf16>
    %c0_4 = arith.constant 0 : index
    %c0_5 = arith.constant 0 : index
    %5 = vector.load %arg4[%c0_4, %c0_5] : memref<1152x256xbf16, #tpu.memory_space<vmem>>, vector<1152x256xbf16>
    %cst = arith.constant dense<0.000000e+00> : vector<16x256xf32>
    %6 = tpu.matmul %4, %5, %cst {dimension_numbers = #tpu.dot_dimension_numbers<[1], [0], [0], [1], [0, 0, 1, 1], [], []>} : vector<16x1152xbf16>, vector<1152x256xbf16>, vector<16x256xf32> -> vector<16x256xf32>
    %7 = arith.addf %3, %6 : vector<16x256xf32>
    %c0_6 = arith.constant 0 : index
    %c0_7 = arith.constant 0 : index
    %8 = vector.load %arg7[%c0_6, %c0_7] : memref<16x256xf32, #tpu.memory_space<vmem>>, vector<16x256xf32>
    tpu.vector_store %arg7[%c0_6, %c0_7], %7 {strides = array<i32>} : memref<16x256xf32, #tpu.memory_space<vmem>>, vector<16x256xf32>,
    %c1_i32 = arith.constant 1 : i32
    %9 = arith.cmpi eq, %arg2, %c1_i32 : i32
    %10 = arith.extui %9 : i1 to i32
    %c0_i32_8 = arith.constant 0 : i32
    %11 = arith.cmpi ne, %10, %c0_i32_8 : i32
    scf.if %11 {
      %c0_9 = arith.constant 0 : index
      %c0_10 = arith.constant 0 : index
      %12 = vector.load %arg7[%c0_9, %c0_10] : memref<16x256xf32, #tpu.memory_space<vmem>>, vector<16x256xf32>
      %cst_11 = arith.constant 0.000000e+00 : f32
      %13 = vector.broadcast %cst_11 : f32 to vector<16x256xf32>
      %14 = arith.maximumf %12, %13 : vector<16x256xf32>
      %15 = arith.truncf %14 : vector<16x256xf32> to vector<16x256xbf16>
      %c0_12 = arith.constant 0 : index
      %c0_13 = arith.constant 0 : index
      %16 = vector.load %arg6[%c0_12, %c0_13] : memref<16x256xbf16, #tpu.memory_space<vmem>>, vector<16x256xbf16>
      tpu.vector_store %arg6[%c0_12, %c0_13], %15 {strides = array<i32>} : memref<16x256xbf16, #tpu.memory_space<vmem>>, vector<16x256xbf16>,
    } else {
    }
    return
  }
  func.func @transform_0(%arg0: i32, %arg1: i32, %arg2: i32) -> (i32, i32) {
    %c0_i32 = arith.constant 0 : i32
    return %arg0, %arg2 : i32, i32
  }
  func.func @transform_1(%arg0: i32, %arg1: i32, %arg2: i32) -> (i32, i32) {
    %c0_i32 = arith.constant 0 : i32
    return %arg2, %arg1 : i32, i32
  }
  func.func @transform_2(%arg0: i32, %arg1: i32, %arg2: i32) -> (i32, i32) {
    %c0_i32 = arith.constant 0 : i32
    %c0_i32_0 = arith.constant 0 : i32
    return %c0_i32, %arg1 : i32, i32
  }
  func.func @transform_3(%arg0: i32, %arg1: i32, %arg2: i32) -> (i32, i32) {
    %c0_i32 = arith.constant 0 : i32
    return %arg0, %arg1 : i32, i32
  }
}

module attributes {stable_mosaic.version = 11 : i64} {
  func.func @_mm_kernel(%arg0: i32, %arg1: i32, %arg2: i32, %arg3: memref<16x1152xbf16, #tpu.memory_space<vmem>>, %arg4: memref<1152x512xbf16, #tpu.memory_space<vmem>>, %arg5: memref<1x512xf32, #tpu.memory_space<vmem>>, %arg6: memref<16x512xbf16, #tpu.memory_space<vmem>>, %arg7: memref<16x512xf32, #tpu.memory_space<vmem>>) attributes {dimension_semantics = [#tpu.dimension_semantics<parallel>, #tpu.dimension_semantics<parallel>, #tpu.dimension_semantics<arbitrary>], iteration_bounds = array<i64: 1, 1, 2>, scalar_prefetch = 0 : i64, scratch_operands = 1 : i64, tpu.core_type = #tpu.core_type<tc>, window_params = [{transform_indices = @transform_0, window_bounds = array<i64: 16, 1152>}, {transform_indices = @transform_1, window_bounds = array<i64: 1152, 512>}, {transform_indices = @transform_2, window_bounds = array<i64: 1, 512>}, {transform_indices = @transform_3, window_bounds = array<i64: 16, 512>}]} {
    %c0_i32 = arith.constant 0 : i32
    %0 = arith.cmpi eq, %arg2, %c0_i32 : i32
    %1 = arith.extui %0 : i1 to i32
    %c0_i32_0 = arith.constant 0 : i32
    %2 = arith.cmpi ne, %1, %c0_i32_0 : i32
    scf.if %2 {
      %c0_9 = arith.constant 0 : index
      %c0_10 = arith.constant 0 : index
      %12 = vector.load %arg5[%c0_9, %c0_10] : memref<1x512xf32, #tpu.memory_space<vmem>>, vector<1x512xf32>
      %13 = vector.shape_cast %12 : vector<1x512xf32> to vector<1x512xf32>
      %14 = vector.broadcast %13 : vector<1x512xf32> to vector<16x512xf32>
      %c0_11 = arith.constant 0 : index
      %c0_12 = arith.constant 0 : index
      %15 = vector.load %arg7[%c0_11, %c0_12] : memref<16x512xf32, #tpu.memory_space<vmem>>, vector<16x512xf32>
      tpu.vector_store %arg7[%c0_11, %c0_12], %14 {strides = array<i32>} : memref<16x512xf32, #tpu.memory_space<vmem>>, vector<16x512xf32>,
    } else {
    }
    %c0 = arith.constant 0 : index
    %c0_1 = arith.constant 0 : index
    %3 = vector.load %arg7[%c0, %c0_1] : memref<16x512xf32, #tpu.memory_space<vmem>>, vector<16x512xf32>
    %c0_2 = arith.constant 0 : index
    %c0_3 = arith.constant 0 : index
    %4 = vector.load %arg3[%c0_2, %c0_3] : memref<16x1152xbf16, #tpu.memory_space<vmem>>, vector<16x1152xbf16>
    %c0_4 = arith.constant 0 : index
    %c0_5 = arith.constant 0 : index
    %5 = vector.load %arg4[%c0_4, %c0_5] : memref<1152x512xbf16, #tpu.memory_space<vmem>>, vector<1152x512xbf16>
    %cst = arith.constant dense<0.000000e+00> : vector<16x512xf32>
    %6 = tpu.matmul %4, %5, %cst {dimension_numbers = #tpu.dot_dimension_numbers<[1], [0], [0], [1], [0, 0, 1, 1], [], []>} : vector<16x1152xbf16>, vector<1152x512xbf16>, vector<16x512xf32> -> vector<16x512xf32>
    %7 = arith.addf %3, %6 : vector<16x512xf32>
    %c0_6 = arith.constant 0 : index
    %c0_7 = arith.constant 0 : index
    %8 = vector.load %arg7[%c0_6, %c0_7] : memref<16x512xf32, #tpu.memory_space<vmem>>, vector<16x512xf32>
    tpu.vector_store %arg7[%c0_6, %c0_7], %7 {strides = array<i32>} : memref<16x512xf32, #tpu.memory_space<vmem>>, vector<16x512xf32>,
    %c1_i32 = arith.constant 1 : i32
    %9 = arith.cmpi eq, %arg2, %c1_i32 : i32
    %10 = arith.extui %9 : i1 to i32
    %c0_i32_8 = arith.constant 0 : i32
    %11 = arith.cmpi ne, %10, %c0_i32_8 : i32
    scf.if %11 {
      %c0_9 = arith.constant 0 : index
      %c0_10 = arith.constant 0 : index
      %12 = vector.load %arg7[%c0_9, %c0_10] : memref<16x512xf32, #tpu.memory_space<vmem>>, vector<16x512xf32>
      %cst_11 = arith.constant 0.000000e+00 : f32
      %13 = vector.broadcast %cst_11 : f32 to vector<16x512xf32>
      %14 = arith.maximumf %12, %13 : vector<16x512xf32>
      %15 = arith.truncf %14 : vector<16x512xf32> to vector<16x512xbf16>
      %c0_12 = arith.constant 0 : index
      %c0_13 = arith.constant 0 : index
      %16 = vector.load %arg6[%c0_12, %c0_13] : memref<16x512xbf16, #tpu.memory_space<vmem>>, vector<16x512xbf16>
      tpu.vector_store %arg6[%c0_12, %c0_13], %15 {strides = array<i32>} : memref<16x512xbf16, #tpu.memory_space<vmem>>, vector<16x512xbf16>,
    } else {
    }
    return
  }
  func.func @transform_0(%arg0: i32, %arg1: i32, %arg2: i32) -> (i32, i32) {
    %c0_i32 = arith.constant 0 : i32
    return %arg0, %arg2 : i32, i32
  }
  func.func @transform_1(%arg0: i32, %arg1: i32, %arg2: i32) -> (i32, i32) {
    %c0_i32 = arith.constant 0 : i32
    return %arg2, %arg1 : i32, i32
  }
  func.func @transform_2(%arg0: i32, %arg1: i32, %arg2: i32) -> (i32, i32) {
    %c0_i32 = arith.constant 0 : i32
    %c0_i32_0 = arith.constant 0 : i32
    return %c0_i32, %arg1 : i32, i32
  }
  func.func @transform_3(%arg0: i32, %arg1: i32, %arg2: i32) -> (i32, i32) {
    %c0_i32 = arith.constant 0 : i32
    return %arg0, %arg1 : i32, i32
  }
}

module attributes {stable_mosaic.version = 11 : i64} {
  func.func @_mm_kernel(%arg0: i32, %arg1: i32, %arg2: i32, %arg3: memref<16x256xbf16, #tpu.memory_space<vmem>>, %arg4: memref<256x512xbf16, #tpu.memory_space<vmem>>, %arg5: memref<1x512xf32, #tpu.memory_space<vmem>>, %arg6: memref<16x512xbf16, #tpu.memory_space<vmem>>, %arg7: memref<16x512xf32, #tpu.memory_space<vmem>>) attributes {dimension_semantics = [#tpu.dimension_semantics<parallel>, #tpu.dimension_semantics<parallel>, #tpu.dimension_semantics<arbitrary>], iteration_bounds = array<i64: 1, 1, 1>, scalar_prefetch = 0 : i64, scratch_operands = 1 : i64, tpu.core_type = #tpu.core_type<tc>, window_params = [{transform_indices = @transform_0, window_bounds = array<i64: 16, 256>}, {transform_indices = @transform_1, window_bounds = array<i64: 256, 512>}, {transform_indices = @transform_2, window_bounds = array<i64: 1, 512>}, {transform_indices = @transform_3, window_bounds = array<i64: 16, 512>}]} {
    %c0_i32 = arith.constant 0 : i32
    %0 = arith.cmpi eq, %arg2, %c0_i32 : i32
    %1 = arith.extui %0 : i1 to i32
    %c0_i32_0 = arith.constant 0 : i32
    %2 = arith.cmpi ne, %1, %c0_i32_0 : i32
    scf.if %2 {
      %c0_10 = arith.constant 0 : index
      %c0_11 = arith.constant 0 : index
      %12 = vector.load %arg5[%c0_10, %c0_11] : memref<1x512xf32, #tpu.memory_space<vmem>>, vector<1x512xf32>
      %13 = vector.shape_cast %12 : vector<1x512xf32> to vector<1x512xf32>
      %14 = vector.broadcast %13 : vector<1x512xf32> to vector<16x512xf32>
      %c0_12 = arith.constant 0 : index
      %c0_13 = arith.constant 0 : index
      %15 = vector.load %arg7[%c0_12, %c0_13] : memref<16x512xf32, #tpu.memory_space<vmem>>, vector<16x512xf32>
      tpu.vector_store %arg7[%c0_12, %c0_13], %14 {strides = array<i32>} : memref<16x512xf32, #tpu.memory_space<vmem>>, vector<16x512xf32>,
    } else {
    }
    %c0 = arith.constant 0 : index
    %c0_1 = arith.constant 0 : index
    %3 = vector.load %arg7[%c0, %c0_1] : memref<16x512xf32, #tpu.memory_space<vmem>>, vector<16x512xf32>
    %c0_2 = arith.constant 0 : index
    %c0_3 = arith.constant 0 : index
    %4 = vector.load %arg3[%c0_2, %c0_3] : memref<16x256xbf16, #tpu.memory_space<vmem>>, vector<16x256xbf16>
    %c0_4 = arith.constant 0 : index
    %c0_5 = arith.constant 0 : index
    %5 = vector.load %arg4[%c0_4, %c0_5] : memref<256x512xbf16, #tpu.memory_space<vmem>>, vector<256x512xbf16>
    %cst = arith.constant dense<0.000000e+00> : vector<16x512xf32>
    %6 = tpu.matmul %4, %5, %cst {dimension_numbers = #tpu.dot_dimension_numbers<[1], [0], [0], [1], [0, 0, 1, 1], [], []>} : vector<16x256xbf16>, vector<256x512xbf16>, vector<16x512xf32> -> vector<16x512xf32>
    %7 = arith.addf %3, %6 : vector<16x512xf32>
    %c0_6 = arith.constant 0 : index
    %c0_7 = arith.constant 0 : index
    %8 = vector.load %arg7[%c0_6, %c0_7] : memref<16x512xf32, #tpu.memory_space<vmem>>, vector<16x512xf32>
    tpu.vector_store %arg7[%c0_6, %c0_7], %7 {strides = array<i32>} : memref<16x512xf32, #tpu.memory_space<vmem>>, vector<16x512xf32>,
    %c0_i32_8 = arith.constant 0 : i32
    %9 = arith.cmpi eq, %arg2, %c0_i32_8 : i32
    %10 = arith.extui %9 : i1 to i32
    %c0_i32_9 = arith.constant 0 : i32
    %11 = arith.cmpi ne, %10, %c0_i32_9 : i32
    scf.if %11 {
      %c0_10 = arith.constant 0 : index
      %c0_11 = arith.constant 0 : index
      %12 = vector.load %arg7[%c0_10, %c0_11] : memref<16x512xf32, #tpu.memory_space<vmem>>, vector<16x512xf32>
      %13 = arith.truncf %12 : vector<16x512xf32> to vector<16x512xbf16>
      %c0_12 = arith.constant 0 : index
      %c0_13 = arith.constant 0 : index
      %14 = vector.load %arg6[%c0_12, %c0_13] : memref<16x512xbf16, #tpu.memory_space<vmem>>, vector<16x512xbf16>
      tpu.vector_store %arg6[%c0_12, %c0_13], %13 {strides = array<i32>} : memref<16x512xbf16, #tpu.memory_space<vmem>>, vector<16x512xbf16>,
    } else {
    }
    return
  }
  func.func @transform_0(%arg0: i32, %arg1: i32, %arg2: i32) -> (i32, i32) {
    %c0_i32 = arith.constant 0 : i32
    return %arg0, %arg2 : i32, i32
  }
  func.func @transform_1(%arg0: i32, %arg1: i32, %arg2: i32) -> (i32, i32) {
    %c0_i32 = arith.constant 0 : i32
    return %arg2, %arg1 : i32, i32
  }
  func.func @transform_2(%arg0: i32, %arg1: i32, %arg2: i32) -> (i32, i32) {
    %c0_i32 = arith.constant 0 : i32
    %c0_i32_0 = arith.constant 0 : i32
    return %c0_i32, %arg1 : i32, i32
  }
  func.func @transform_3(%arg0: i32, %arg1: i32, %arg2: i32) -> (i32, i32) {
    %c0_i32 = arith.constant 0 : i32
    return %arg0, %arg1 : i32, i32
  }
}

module attributes {stable_mosaic.version = 11 : i64} {
  func.func @_mm_res_kernel(%arg0: i32, %arg1: i32, %arg2: i32, %arg3: memref<16x1536xbf16, #tpu.memory_space<vmem>>, %arg4: memref<1536x512xbf16, #tpu.memory_space<vmem>>, %arg5: memref<1x512xf32, #tpu.memory_space<vmem>>, %arg6: memref<16x512xbf16, #tpu.memory_space<vmem>>, %arg7: memref<16x512xbf16, #tpu.memory_space<vmem>>, %arg8: memref<16x512xf32, #tpu.memory_space<vmem>>) attributes {dimension_semantics = [#tpu.dimension_semantics<parallel>, #tpu.dimension_semantics<parallel>, #tpu.dimension_semantics<arbitrary>], iteration_bounds = array<i64: 1, 1, 3>, scalar_prefetch = 0 : i64, scratch_operands = 1 : i64, tpu.core_type = #tpu.core_type<tc>, window_params = [{transform_indices = @transform_0, window_bounds = array<i64: 16, 1536>}, {transform_indices = @transform_1, window_bounds = array<i64: 1536, 512>}, {transform_indices = @transform_2, window_bounds = array<i64: 1, 512>}, {transform_indices = @transform_3, window_bounds = array<i64: 16, 512>}, {transform_indices = @transform_4, window_bounds = array<i64: 16, 512>}]} {
    %c0_i32 = arith.constant 0 : i32
    %0 = arith.cmpi eq, %arg2, %c0_i32 : i32
    %1 = arith.extui %0 : i1 to i32
    %c0_i32_0 = arith.constant 0 : i32
    %2 = arith.cmpi ne, %1, %c0_i32_0 : i32
    scf.if %2 {
      %c0_9 = arith.constant 0 : index
      %c0_10 = arith.constant 0 : index
      %12 = vector.load %arg5[%c0_9, %c0_10] : memref<1x512xf32, #tpu.memory_space<vmem>>, vector<1x512xf32>
      %13 = vector.shape_cast %12 : vector<1x512xf32> to vector<1x512xf32>
      %14 = vector.broadcast %13 : vector<1x512xf32> to vector<16x512xf32>
      %c0_11 = arith.constant 0 : index
      %c0_12 = arith.constant 0 : index
      %15 = vector.load %arg8[%c0_11, %c0_12] : memref<16x512xf32, #tpu.memory_space<vmem>>, vector<16x512xf32>
      tpu.vector_store %arg8[%c0_11, %c0_12], %14 {strides = array<i32>} : memref<16x512xf32, #tpu.memory_space<vmem>>, vector<16x512xf32>,
    } else {
    }
    %c0 = arith.constant 0 : index
    %c0_1 = arith.constant 0 : index
    %3 = vector.load %arg8[%c0, %c0_1] : memref<16x512xf32, #tpu.memory_space<vmem>>, vector<16x512xf32>
    %c0_2 = arith.constant 0 : index
    %c0_3 = arith.constant 0 : index
    %4 = vector.load %arg3[%c0_2, %c0_3] : memref<16x1536xbf16, #tpu.memory_space<vmem>>, vector<16x1536xbf16>
    %c0_4 = arith.constant 0 : index
    %c0_5 = arith.constant 0 : index
    %5 = vector.load %arg4[%c0_4, %c0_5] : memref<1536x512xbf16, #tpu.memory_space<vmem>>, vector<1536x512xbf16>
    %cst = arith.constant dense<0.000000e+00> : vector<16x512xf32>
    %6 = tpu.matmul %4, %5, %cst {dimension_numbers = #tpu.dot_dimension_numbers<[1], [0], [0], [1], [0, 0, 1, 1], [], []>} : vector<16x1536xbf16>, vector<1536x512xbf16>, vector<16x512xf32> -> vector<16x512xf32>
    %7 = arith.addf %3, %6 : vector<16x512xf32>
    %c0_6 = arith.constant 0 : index
    %c0_7 = arith.constant 0 : index
    %8 = vector.load %arg8[%c0_6, %c0_7] : memref<16x512xf32, #tpu.memory_space<vmem>>, vector<16x512xf32>
    tpu.vector_store %arg8[%c0_6, %c0_7], %7 {strides = array<i32>} : memref<16x512xf32, #tpu.memory_space<vmem>>, vector<16x512xf32>,
    %c2_i32 = arith.constant 2 : i32
    %9 = arith.cmpi eq, %arg2, %c2_i32 : i32
    %10 = arith.extui %9 : i1 to i32
    %c0_i32_8 = arith.constant 0 : i32
    %11 = arith.cmpi ne, %10, %c0_i32_8 : i32
    scf.if %11 {
      %c0_9 = arith.constant 0 : index
      %c0_10 = arith.constant 0 : index
      %12 = vector.load %arg8[%c0_9, %c0_10] : memref<16x512xf32, #tpu.memory_space<vmem>>, vector<16x512xf32>
      %c0_11 = arith.constant 0 : index
      %c0_12 = arith.constant 0 : index
      %13 = vector.load %arg6[%c0_11, %c0_12] : memref<16x512xbf16, #tpu.memory_space<vmem>>, vector<16x512xbf16>
      %14 = arith.extf %13 : vector<16x512xbf16> to vector<16x512xf32>
      %15 = arith.addf %12, %14 : vector<16x512xf32>
      %cst_13 = arith.constant 0.000000e+00 : f32
      %16 = vector.broadcast %cst_13 : f32 to vector<16x512xf32>
      %17 = arith.maximumf %15, %16 : vector<16x512xf32>
      %18 = arith.truncf %17 : vector<16x512xf32> to vector<16x512xbf16>
      %c0_14 = arith.constant 0 : index
      %c0_15 = arith.constant 0 : index
      %19 = vector.load %arg7[%c0_14, %c0_15] : memref<16x512xbf16, #tpu.memory_space<vmem>>, vector<16x512xbf16>
      tpu.vector_store %arg7[%c0_14, %c0_15], %18 {strides = array<i32>} : memref<16x512xbf16, #tpu.memory_space<vmem>>, vector<16x512xbf16>,
    } else {
    }
    return
  }
  func.func @transform_0(%arg0: i32, %arg1: i32, %arg2: i32) -> (i32, i32) {
    %c0_i32 = arith.constant 0 : i32
    return %arg0, %arg2 : i32, i32
  }
  func.func @transform_1(%arg0: i32, %arg1: i32, %arg2: i32) -> (i32, i32) {
    %c0_i32 = arith.constant 0 : i32
    return %arg2, %arg1 : i32, i32
  }
  func.func @transform_2(%arg0: i32, %arg1: i32, %arg2: i32) -> (i32, i32) {
    %c0_i32 = arith.constant 0 : i32
    %c0_i32_0 = arith.constant 0 : i32
    return %c0_i32, %arg1 : i32, i32
  }
  func.func @transform_3(%arg0: i32, %arg1: i32, %arg2: i32) -> (i32, i32) {
    %c0_i32 = arith.constant 0 : i32
    return %arg0, %arg1 : i32, i32
  }
  func.func @transform_4(%arg0: i32, %arg1: i32, %arg2: i32) -> (i32, i32) {
    %c0_i32 = arith.constant 0 : i32
    return %arg0, %arg1 : i32, i32
  }
}

module attributes {stable_mosaic.version = 11 : i64} {
  func.func @_mm_kernel(%arg0: i32, %arg1: i32, %arg2: i32, %arg3: memref<16x1536xbf16, #tpu.memory_space<vmem>>, %arg4: memref<1536x512xbf16, #tpu.memory_space<vmem>>, %arg5: memref<1x512xf32, #tpu.memory_space<vmem>>, %arg6: memref<16x512xbf16, #tpu.memory_space<vmem>>, %arg7: memref<16x512xf32, #tpu.memory_space<vmem>>) attributes {dimension_semantics = [#tpu.dimension_semantics<parallel>, #tpu.dimension_semantics<parallel>, #tpu.dimension_semantics<arbitrary>], iteration_bounds = array<i64: 1, 1, 3>, scalar_prefetch = 0 : i64, scratch_operands = 1 : i64, tpu.core_type = #tpu.core_type<tc>, window_params = [{transform_indices = @transform_0, window_bounds = array<i64: 16, 1536>}, {transform_indices = @transform_1, window_bounds = array<i64: 1536, 512>}, {transform_indices = @transform_2, window_bounds = array<i64: 1, 512>}, {transform_indices = @transform_3, window_bounds = array<i64: 16, 512>}]} {
    %c0_i32 = arith.constant 0 : i32
    %0 = arith.cmpi eq, %arg2, %c0_i32 : i32
    %1 = arith.extui %0 : i1 to i32
    %c0_i32_0 = arith.constant 0 : i32
    %2 = arith.cmpi ne, %1, %c0_i32_0 : i32
    scf.if %2 {
      %c0_9 = arith.constant 0 : index
      %c0_10 = arith.constant 0 : index
      %12 = vector.load %arg5[%c0_9, %c0_10] : memref<1x512xf32, #tpu.memory_space<vmem>>, vector<1x512xf32>
      %13 = vector.shape_cast %12 : vector<1x512xf32> to vector<1x512xf32>
      %14 = vector.broadcast %13 : vector<1x512xf32> to vector<16x512xf32>
      %c0_11 = arith.constant 0 : index
      %c0_12 = arith.constant 0 : index
      %15 = vector.load %arg7[%c0_11, %c0_12] : memref<16x512xf32, #tpu.memory_space<vmem>>, vector<16x512xf32>
      tpu.vector_store %arg7[%c0_11, %c0_12], %14 {strides = array<i32>} : memref<16x512xf32, #tpu.memory_space<vmem>>, vector<16x512xf32>,
    } else {
    }
    %c0 = arith.constant 0 : index
    %c0_1 = arith.constant 0 : index
    %3 = vector.load %arg7[%c0, %c0_1] : memref<16x512xf32, #tpu.memory_space<vmem>>, vector<16x512xf32>
    %c0_2 = arith.constant 0 : index
    %c0_3 = arith.constant 0 : index
    %4 = vector.load %arg3[%c0_2, %c0_3] : memref<16x1536xbf16, #tpu.memory_space<vmem>>, vector<16x1536xbf16>
    %c0_4 = arith.constant 0 : index
    %c0_5 = arith.constant 0 : index
    %5 = vector.load %arg4[%c0_4, %c0_5] : memref<1536x512xbf16, #tpu.memory_space<vmem>>, vector<1536x512xbf16>
    %cst = arith.constant dense<0.000000e+00> : vector<16x512xf32>
    %6 = tpu.matmul %4, %5, %cst {dimension_numbers = #tpu.dot_dimension_numbers<[1], [0], [0], [1], [0, 0, 1, 1], [], []>} : vector<16x1536xbf16>, vector<1536x512xbf16>, vector<16x512xf32> -> vector<16x512xf32>
    %7 = arith.addf %3, %6 : vector<16x512xf32>
    %c0_6 = arith.constant 0 : index
    %c0_7 = arith.constant 0 : index
    %8 = vector.load %arg7[%c0_6, %c0_7] : memref<16x512xf32, #tpu.memory_space<vmem>>, vector<16x512xf32>
    tpu.vector_store %arg7[%c0_6, %c0_7], %7 {strides = array<i32>} : memref<16x512xf32, #tpu.memory_space<vmem>>, vector<16x512xf32>,
    %c2_i32 = arith.constant 2 : i32
    %9 = arith.cmpi eq, %arg2, %c2_i32 : i32
    %10 = arith.extui %9 : i1 to i32
    %c0_i32_8 = arith.constant 0 : i32
    %11 = arith.cmpi ne, %10, %c0_i32_8 : i32
    scf.if %11 {
      %c0_9 = arith.constant 0 : index
      %c0_10 = arith.constant 0 : index
      %12 = vector.load %arg7[%c0_9, %c0_10] : memref<16x512xf32, #tpu.memory_space<vmem>>, vector<16x512xf32>
      %cst_11 = arith.constant 0.000000e+00 : f32
      %13 = vector.broadcast %cst_11 : f32 to vector<16x512xf32>
      %14 = arith.maximumf %12, %13 : vector<16x512xf32>
      %15 = arith.truncf %14 : vector<16x512xf32> to vector<16x512xbf16>
      %c0_12 = arith.constant 0 : index
      %c0_13 = arith.constant 0 : index
      %16 = vector.load %arg6[%c0_12, %c0_13] : memref<16x512xbf16, #tpu.memory_space<vmem>>, vector<16x512xbf16>
      tpu.vector_store %arg6[%c0_12, %c0_13], %15 {strides = array<i32>} : memref<16x512xbf16, #tpu.memory_space<vmem>>, vector<16x512xbf16>,
    } else {
    }
    return
  }
  func.func @transform_0(%arg0: i32, %arg1: i32, %arg2: i32) -> (i32, i32) {
    %c0_i32 = arith.constant 0 : i32
    return %arg0, %arg2 : i32, i32
  }
  func.func @transform_1(%arg0: i32, %arg1: i32, %arg2: i32) -> (i32, i32) {
    %c0_i32 = arith.constant 0 : i32
    return %arg2, %arg1 : i32, i32
  }
  func.func @transform_2(%arg0: i32, %arg1: i32, %arg2: i32) -> (i32, i32) {
    %c0_i32 = arith.constant 0 : i32
    %c0_i32_0 = arith.constant 0 : i32
    return %c0_i32, %arg1 : i32, i32
  }
  func.func @transform_3(%arg0: i32, %arg1: i32, %arg2: i32) -> (i32, i32) {
    %c0_i32 = arith.constant 0 : i32
    return %arg0, %arg1 : i32, i32
  }
}

</mosaic_0001>

<bundles_post_ra>
// kernel: _lambda_.20
= control target key start
LH: loop header
LB: loop body
LE: loop exit
PB: predicated region body
PF: predicated region fallthrough
CT: control target
= control target key end

     0   :  { %s831_s12 = smov 0   ;;  %s833_s13 = smov 0   ;;  %s904_s0 = inlined_call_operand.vmem [shape: bf16[128,128], index: 0, kind: input, shape index: {}]   ;;  %s905_s1 = inlined_call_operand.vmem [shape: bf16[128,128], index: 1, kind: input, shape index: {}]   ;;  %s906_s2 = inlined_call_operand.vmem [shape: f32[1,128], index: 2, kind: input, shape index: {}]   ;;  %s907_s3 = inlined_call_operand.vmem [shape: bf16[128,128], index: 3, kind: output, shape index: {}]  }
   0x1   :  { %s835_s14 = smov 0  }
   0x2 LB: > { %s32_s15 = sadd.s32 1, %s805_s13  ;;  %p640_p0 = scmp.ge.s32.totalorder %s809_s14, 1  ;;  %s809_s14 = sphi %s835_s14, %s13_s14   ;;  %s805_s13 = sphi %s833_s13, %s909_s13   ;;  %s801_s12 = sphi %s831_s12, %s908_s12  }
   0x3   : > { %p34_p1 = scmp.ge.s32.totalorder %s32_s15, 2  ;;  %p188_p2 = scmp.lt.s32.totalorder %s809_s14, 3 }
   0x5   : > { %s911_s15 = smov (%p34_p1, %s32_s15), 0  ;;  %p189_p3 = pnand %p640_p0, %p188_p2 }
   0x6   : > { %v775_v0 = vld [vmem:[%s905_s1] sm:$0xff] (!%p189_p3)   ;;  %s641_s18 = sshll.u32 (!%p189_p3), %s801_s12, 3  ;;  %v776_v1 = vld [vmem:[%s905_s1 + $0x8] sm:$0xff] (!%p189_p3)   ;;  %v777_v2 = vld [vmem:[%s905_s1 + $0x10] sm:$0xff] (!%p189_p3)  }
   0x7   : > { %192 = sbr.rel (%p189_p3) target bundleno = 261 (0x105), region = 32  ;;  %p230_p4 = scmp.lt.s32.totalorder (!%p189_p3), %s641_s18, 15  ;;  %711 = vmatprep.subr.bf16.mxu0 (!%p189_p3), %v775_v0  ;;  %735 = vmatprep.subr.bf16.mxu1 (!%p189_p3), %v775_v0  ;;  %v778_v3 = vld [vmem:[%s905_s1 + $0x18] sm:$0xff] (!%p189_p3)   ;;  %v779_v6 = vld [vmem:[%s905_s1 + $0x20] sm:$0xff] (!%p189_p3)   ;;  %v780_v7 = vld [vmem:[%s905_s1 + $0x28] sm:$0xff] (!%p189_p3)  }
   0x8   : > { %712 = vmatpush3.bf16.msra.mxu0 (!%p189_p3), %v775_v0  ;;  %743 = vmatpush3.bf16.msra.mxu1 (!%p189_p3), %v775_v0  ;;  %v781_v8 = vld [vmem:[%s905_s1 + $0x30] sm:$0xff] (!%p189_p3)   ;;  %v782_v9 = vld [vmem:[%s905_s1 + $0x38] sm:$0xff] (!%p189_p3)   ;;  %v645_v12 = vld [vmem:[%s906_s2] ss:$0 sm:$0xff] (!%p189_p3) }
   0x9   : > { %713 = vmatprep.subr.bf16.mxu0 (!%p189_p3), %v776_v1  ;;  %736 = vmatprep.subr.bf16.mxu1 (!%p189_p3), %v776_v1 }
   0xc   : > { %714 = vmatpush3.bf16.msra.mxu0 (!%p189_p3), %v776_v1  ;;  %744 = vmatpush3.bf16.msra.mxu1 (!%p189_p3), %v776_v1 }
   0xd   : > { %715 = vmatprep.subr.bf16.mxu0 (!%p189_p3), %v777_v2  ;;  %737 = vmatprep.subr.bf16.mxu1 (!%p189_p3), %v777_v2 }
   0xe   : > { %s913_s18 = smov (!%p230_p4, %s641_s18), 15 }
   0xf   : > { %s642_s23 = sshll.u32 %s913_s18, 2 }
  0x10   : > { %s866_s26 = scalar_lea.vmem %s904_s0, %s642_s23  ;;  %716 = vmatpush3.bf16.msra.mxu0 %v777_v2  ;;  %745 = vmatpush3.bf16.msra.mxu1 %v777_v2  ;;  %s257_s17 = scalar_lea.vmem %s907_s3, %s642_s23 }
  0x11   : > { %v783_v4 = vld [vmem:[%s866_s26] sm:$0xff]   ;;  %v784_v5 = vld [vmem:[%s866_s26 + $0x10] sm:$0xff]   ;;  %717 = vmatprep.subr.bf16.mxu0 %v778_v3  ;;  %738 = vmatprep.subr.bf16.mxu1 %v778_v3  ;;  %v785_v10 = vld [vmem:[%s866_s26 + $0x8] sm:$0xff]  }
  0x12   : > { %727 = vmatprep.mubr.bf16.mxu0 %v783_v4  ;;  %731 = vmatprep.mubr.bf16.mxu1 %v784_v5  ;;  %v786_v11 = vld [vmem:[%s866_s26 + $0x18] sm:$0xff]  }
  0x14   : > { %718 = vmatpush3.bf16.msra.mxu0 %v778_v3  ;;  %746 = vmatpush3.bf16.msra.mxu1 %v778_v3 }
  0x15   : > { %719 = vmatprep.subr.bf16.mxu0 %v779_v6  ;;  %739 = vmatprep.subr.bf16.mxu1 %v779_v6 }
  0x18   : > { %720 = vmatpush3.bf16.msra.mxu0 %v779_v6  ;;  %747 = vmatpush3.bf16.msra.mxu1 %v779_v6 }
  0x19   : > { %721 = vmatprep.subr.bf16.mxu0 %v780_v7  ;;  %740 = vmatprep.subr.bf16.mxu1 %v780_v7 }
  0x1c   : > { %722 = vmatpush3.bf16.msra.mxu0 %v780_v7  ;;  %748 = vmatpush3.bf16.msra.mxu1 %v780_v7 }
  0x1d   : > { %723 = vmatprep.subr.bf16.mxu0 %v781_v8  ;;  %741 = vmatprep.subr.bf16.mxu1 %v781_v8 }
  0x20   : > { %724 = vmatpush3.bf16.msra.mxu0 %v781_v8  ;;  %749 = vmatpush3.bf16.msra.mxu1 %v781_v8 }
  0x21   : > { %725 = vmatprep.subr.bf16.mxu0 %v782_v9  ;;  %742 = vmatprep.subr.bf16.mxu1 %v782_v9 }
  0x24   : > { %726 = vmatpush3.bf16.msra.mxu0 %v782_v9  ;;  %750 = vmatpush3.bf16.msra.mxu1 %v782_v9 }
  0x27   : > { %728 = vmatmul.mubr.bf16.vlgmr.msra.gmra.mrb[0].mxu0 %v785_v10  ;;  %732 = vmatmul.mubr.bf16.vlgmr.msra.gmra.mrb[0].mxu1 %v786_v11 }
  0xfa   : > { %v729_v13 = vpop.f32.mrb[0].mxu0  ;;  %v733_v14 = vpop.f32.mrb[0].mxu1 }
  0xfb   : > { %v450_v15 = vadd.f32 %v729_v13, %v645_v12  ;;  %v454_v16 = vadd.f32 %v733_v14, %v645_v12  ;;  %v417_v17 = vpop.f32.mrb[1].mxu0  ;;  %v433_v18 = vpop.f32.mrb[1].mxu1 }
  0xfc   : > { %v448_v19 = vadd.f32 %v645_v12, %v417_v17  ;;  %v452_v20 = vadd.f32 %v645_v12, %v433_v18  ;;  %v730_v21 = vpop.f32.mrb[2].mxu0  ;;  %v734_v22 = vpop.f32.mrb[2].mxu1 }
  0xfd   : > { %v451_v23 = vadd.f32 %v730_v21, %v645_v12  ;;  %v455_v24 = vadd.f32 %v734_v22, %v645_v12  ;;  %v420_v25 = vpop.f32.mrb[3].mxu0  ;;  %v436_v26 = vpop.f32.mrb[3].mxu1  ;;  %v477_v29 = vmax.f32 %v450_v15, 0.0  ;;  %v481_v30 = vmax.f32 %v454_v16, 0.0 }
  0xfe   : > { %v449_v27 = vadd.f32 %v645_v12, %v420_v25  ;;  %v453_v28 = vadd.f32 %v645_v12, %v436_v26  ;;  %v475_v33 = vmax.f32 %v448_v19, 0.0  ;;  %v479_v34 = vmax.f32 %v452_v20, 0.0 }
  0xff   : > { %v478_v31 = vmax.f32 %v451_v23, 0.0  ;;  %v482_v32 = vmax.f32 %v455_v24, 0.0 }
 0x100   : > { %v476_v35 = vmax.f32 %v449_v27, 0.0  ;;  %v480_v36 = vmax.f32 %v453_v28, 0.0 }
 0x101   : > { %v684_v37 = vpack.c.bf16 %v478_v31, %v477_v29  ;;  %v694_v38 = vpack.c.bf16 %v482_v32, %v481_v30 }
 0x102   : > { %v679_v39 = vpack.c.bf16 %v476_v35, %v475_v33  ;;  %v689_v40 = vpack.c.bf16 %v480_v36, %v479_v34 }
 0x103   : > { %696 = vst [vmem:[%s257_s17 + $0x8] sm:$0xff] %v684_v37   ;;  %698 = vst [vmem:[%s257_s17 + $0x18] sm:$0xff] %v694_v38  }
 0x104   : > { %680 = vst [vmem:[%s257_s17] sm:$0xff] %v679_v39   ;;  %697 = vst [vmem:[%s257_s17 + $0x10] sm:$0xff] %v689_v40  }
 0x105 PF: > { %s13_s14 = sadd.s32 1, %s809_s14   ;;  %s908_s12 = smov %s805_s13 }
 0x106   : > { %p10_p5 = scmp.ge.s32.totalorder %s13_s14, 4   ;;  %s909_s13 = smov %s911_s15 }
 0x108   :  { %12 = sbr.rel (!%p10_p5) target bundleno = 2 (0x2), region = 76 }

// kernel: _lambda_.21
= control target key start
LH: loop header
LB: loop body
LE: loop exit
PB: predicated region body
PF: predicated region fallthrough
CT: control target
= control target key end

     0   :  { %s1509_s12 = smov 0   ;;  %s1511_s13 = smov 0   ;;  %s1694_s0 = inlined_call_operand.vmem [shape: bf16[128,640], index: 0, kind: input, shape index: {}]   ;;  %s1695_s1 = inlined_call_operand.vmem [shape: bf16[640,128], index: 1, kind: input, shape index: {}]   ;;  %s1696_s2 = inlined_call_operand.vmem [shape: f32[1,128], index: 2, kind: input, shape index: {}]   ;;  %s1697_s3 = inlined_call_operand.vmem [shape: bf16[128,128], index: 3, kind: output, shape index: {}]  }
   0x1   :  { %s1513_s14 = smov 0  }
   0x2 LB: > { %s32_s15 = sadd.s32 1, %s1483_s13  ;;  %p1133_p0 = scmp.ge.s32.totalorder %s1487_s14, 1  ;;  %s1487_s14 = sphi %s1513_s14, %s13_s14   ;;  %s1483_s13 = sphi %s1511_s13, %s1699_s13   ;;  %s1479_s12 = sphi %s1509_s12, %s1698_s12  }
   0x3   : > { %p34_p1 = scmp.ge.s32.totalorder %s32_s15, 2  ;;  %p191_p2 = scmp.lt.s32.totalorder %s1487_s14, 3 }
   0x5   : > { %s1701_s15 = smov (%p34_p1, %s32_s15), 0  ;;  %p192_p3 = pnand %p1133_p0, %p191_p2 }
   0x6   : > { %v1397_v0 = vld [vmem:[%s1695_s1 + $0x40] sm:$0xff] (!%p192_p3)   ;;  %v1401_v4 = vld [vmem:[%s1695_s1 + $0x48] sm:$0xff] (!%p192_p3)   ;;  %v1405_v8 = vld [vmem:[%s1695_s1 + $0x50] sm:$0xff] (!%p192_p3)   ;;  %s1134_s23 = sshll.u32 (!%p192_p3), %s1479_s12, 3 }
   0x7   : > { %195 = sbr.rel (%p192_p3) target bundleno = 298 (0x12a), region = 32  ;;  %v1398_v1 = vld [vmem:[%s1695_s1 + $0xc0] sm:$0xff] (!%p192_p3)   ;;  %1240 = vmatprep.subr.bf16.mxu0 (!%p192_p3), %v1397_v0  ;;  %v1402_v5 = vld [vmem:[%s1695_s1 + $0xc8] sm:$0xff] (!%p192_p3)   ;;  %v1406_v9 = vld [vmem:[%s1695_s1 + $0xd0] sm:$0xff] (!%p192_p3)   ;;  %p236_p4 = scmp.lt.s32.totalorder (!%p192_p3), %s1134_s23, 15 }
   0x8   : > { %v1399_v2 = vld [vmem:[%s1695_s1] sm:$0xff] (!%p192_p3)   ;;  %1280 = vmatprep.subr.bf16.mxu1 (!%p192_p3), %v1398_v1  ;;  %v1403_v6 = vld [vmem:[%s1695_s1 + $0x8] sm:$0xff] (!%p192_p3)   ;;  %v1407_v10 = vld [vmem:[%s1695_s1 + $0x10] sm:$0xff] (!%p192_p3)  }
   0x9   : > { %v1400_v3 = vld [vmem:[%s1695_s1 + $0x80] sm:$0xff] (!%p192_p3)   ;;  %1241 = vmatpush3.bf16.msra.mxu0 (!%p192_p3), %v1399_v2  ;;  %v1404_v7 = vld [vmem:[%s1695_s1 + $0x88] sm:$0xff] (!%p192_p3)   ;;  %v1408_v11 = vld [vmem:[%s1695_s1 + $0x90] sm:$0xff] (!%p192_p3)  }
   0xa   : > { %1281 = vmatpush3.bf16.msra.mxu1 (!%p192_p3), %v1400_v3  ;;  %1242 = vmatprep.subr.bf16.mxu0 (!%p192_p3), %v1401_v4  ;;  %v1409_v12 = vld [vmem:[%s1695_s1 + $0x58] sm:$0xff] (!%p192_p3)   ;;  %v1413_v16 = vld [vmem:[%s1695_s1 + $0x60] sm:$0xff] (!%p192_p3)   ;;  %v1417_v20 = vld [vmem:[%s1695_s1 + $0x68] sm:$0xff] (!%p192_p3)  }
   0xb   : > { %1282 = vmatprep.subr.bf16.mxu1 (!%p192_p3), %v1402_v5  ;;  %v1410_v13 = vld [vmem:[%s1695_s1 + $0xd8] sm:$0xff] (!%p192_p3)   ;;  %v1414_v17 = vld [vmem:[%s1695_s1 + $0xe0] sm:$0xff] (!%p192_p3)   ;;  %v1418_v21 = vld [vmem:[%s1695_s1 + $0xe8] sm:$0xff] (!%p192_p3)  }
   0xc   : > { %v1411_v14 = vld [vmem:[%s1695_s1 + $0x18] sm:$0xff] (!%p192_p3)   ;;  %v1415_v18 = vld [vmem:[%s1695_s1 + $0x20] sm:$0xff] (!%p192_p3)   ;;  %v1419_v22 = vld [vmem:[%s1695_s1 + $0x28] sm:$0xff] (!%p192_p3)  }
   0xd   : > { %1243 = vmatpush3.bf16.msra.mxu0 (!%p192_p3), %v1403_v6  ;;  %v1412_v15 = vld [vmem:[%s1695_s1 + $0x98] sm:$0xff] (!%p192_p3)   ;;  %v1416_v19 = vld [vmem:[%s1695_s1 + $0xa0] sm:$0xff] (!%p192_p3)   ;;  %v1420_v23 = vld [vmem:[%s1695_s1 + $0xa8] sm:$0xff] (!%p192_p3)  }
   0xe   : > { %1283 = vmatpush3.bf16.msra.mxu1 %v1404_v7  ;;  %1244 = vmatprep.subr.bf16.mxu0 %v1405_v8  ;;  %s1703_s23 = smov (!%p236_p4, %s1134_s23), 15  ;;  %v1421_v24 = vld [vmem:[%s1695_s1 + $0x70] sm:$0xff]   ;;  %v1425_v28 = vld [vmem:[%s1695_s1 + $0x78] sm:$0xff]   ;;  %v1435_v36 = vld [vmem:[%s1695_s1 + $0x100] sm:$0xff]  }
   0xf   : > { %1284 = vmatprep.subr.bf16.mxu1 %v1406_v9  ;;  %v1422_v25 = vld [vmem:[%s1695_s1 + $0xf0] sm:$0xff]   ;;  %s1372_s22 = smul.u32 20, %s1703_s23  ;;  %v1426_v29 = vld [vmem:[%s1695_s1 + $0xf8] sm:$0xff]   ;;  %v1436_v37 = vld [vmem:[%s1695_s1 + $0x108] sm:$0xff]  }
  0x10   : > { %v1423_v26 = vld [vmem:[%s1695_s1 + $0x30] sm:$0xff]   ;;  %v1427_v30 = vld [vmem:[%s1695_s1 + $0x38] sm:$0xff]   ;;  %v1451_v46 = vld [vmem:[%s1695_s1 + $0x120] sm:$0xff]  }
  0x11   : > { %1245 = vmatpush3.bf16.msra.mxu0 %v1407_v10  ;;  %v1424_v27 = vld [vmem:[%s1695_s1 + $0xb0] sm:$0xff]   ;;  %s1626_s6 = scalar_lea.vmem %s1694_s0, %s1372_s22  ;;  %v1428_v31 = vld [vmem:[%s1695_s1 + $0xb8] sm:$0xff]   ;;  %v1452_v51 = vld [vmem:[%s1695_s1 + $0x128] sm:$0xff]  }
  0x12   : > { %1285 = vmatpush3.bf16.msra.mxu1 %v1408_v11  ;;  %1246 = vmatprep.subr.bf16.mxu0 %v1409_v12  ;;  %v1429_v32 = vld [vmem:[%s1626_s6] ss:$20 sps:$4 sm:$0xff]   ;;  %v1431_v33 = vld [vmem:[%s1626_s6 + $0x4] ss:$20 sps:$4 sm:$0xff]   ;;  %v1432_v34 = vld [vmem:[%s1626_s6 + $0x8] ss:$20 sps:$4 sm:$0xff]  }
  0x13   : > { %1286 = vmatprep.subr.bf16.mxu1 %v1410_v13  ;;  %v1434_v35 = vld [vmem:[%s1626_s6 + $0xc] ss:$20 sps:$4 sm:$0xff]   ;;  %775 = vmatprep.mubr.bf16.mxu0 %v1431_v33  ;;  %v1439_v39 = vld [vmem:[%s1626_s6 + $0x34] ss:$20 sps:$4 sm:$0xff]   ;;  %v1442_v42 = vld [vmem:[%s1626_s6 + $0x30] ss:$20 sps:$4 sm:$0xff]  }
  0x14   : > { %840 = vmatprep.mubr.bf16.mxu1 %v1434_v35  ;;  %v1437_v38 = vld [vmem:[%s1626_s6 + $0x2c] ss:$20 sps:$4 sm:$0xff]   ;;  %v1441_v40 = vld [vmem:[%s1626_s6 + $0x28] ss:$20 sps:$4 sm:$0xff]   ;;  %v1443_v41 = vld [vmem:[%s1695_s1 + $0x110] sm:$0xff]  }
  0x15   : > { %1247 = vmatpush3.bf16.msra.mxu0 %v1411_v14  ;;  %v1445_v43 = vld [vmem:[%s1626_s6 + $0x54] ss:$20 sps:$4 sm:$0xff]   ;;  %v1444_v44 = vld [vmem:[%s1695_s1 + $0x118] sm:$0xff]   ;;  %v1449_v47 = vld [vmem:[%s1626_s6 + $0x50] ss:$20 sps:$4 sm:$0xff]  }
  0x16   : > { %1287 = vmatpush3.bf16.msra.mxu1 %v1412_v15  ;;  %1248 = vmatprep.subr.bf16.mxu0 %v1413_v16  ;;  %v1447_v45 = vld [vmem:[%s1626_s6 + $0x5c] ss:$20 sps:$4 sm:$0xff]   ;;  %v1450_v48 = vld [vmem:[%s1626_s6 + $0x58] ss:$20 sps:$4 sm:$0xff]   ;;  %v1458_v54 = vld [vmem:[%s1626_s6 + $0x80] ss:$20 sps:$4 sm:$0xff]  }
  0x17   : > { %1288 = vmatprep.subr.bf16.mxu1 %v1414_v17  ;;  %v1453_v49 = vld [vmem:[%s1626_s6 + $0x7c] ss:$20 sps:$4 sm:$0xff]   ;;  %v1455_v50 = vld [vmem:[%s1626_s6 + $0x84] ss:$20 sps:$4 sm:$0xff]   ;;  %v1462_v56 = vld [vmem:[%s1626_s6 + $0x60] ss:$20 sps:$4 sm:$0xff]  }
  0x18   : > { %v1459_v52 = vld [vmem:[%s1695_s1 + $0x130] sm:$0xff]   ;;  %v1457_v53 = vld [vmem:[%s1626_s6 + $0x78] ss:$20 sps:$4 sm:$0xff]   ;;  %v1464_v59 = vld [vmem:[%s1626_s6 + $0x88] ss:$20 sps:$4 sm:$0xff]  }
  0x19   : > { %1249 = vmatpush3.bf16.msra.mxu0 %v1415_v18  ;;  %v1461_v55 = vld [vmem:[%s1626_s6 + $0x10] ss:$20 sps:$4 sm:$0xff]   ;;  %v1460_v57 = vld [vmem:[%s1695_s1 + $0x138] sm:$0xff]  }
  0x1a   : > { %1289 = vmatpush3.bf16.msra.mxu1 %v1416_v19  ;;  %1250 = vmatprep.subr.bf16.mxu0 %v1417_v20  ;;  %v1463_v58 = vld [vmem:[%s1626_s6 + $0x38] ss:$20 sps:$4 sm:$0xff]   ;;  %s1137_s6 = sshll.u32 %s1703_s23, 2 }
  0x1b   : > { %1290 = vmatprep.subr.bf16.mxu1 %v1418_v21  ;;  %s265_s9 = scalar_lea.vmem %s1697_s3, %s1137_s6 }
  0x1d   : > { %1251 = vmatpush3.bf16.msra.mxu0 %v1419_v22 }
  0x1e   : > { %1291 = vmatpush3.bf16.msra.mxu1 %v1420_v23  ;;  %1252 = vmatprep.subr.bf16.mxu0 %v1421_v24 }
  0x1f   : > { %1292 = vmatprep.subr.bf16.mxu1 %v1422_v25 }
  0x21   : > { %1253 = vmatpush3.bf16.msra.mxu0 %v1423_v26 }
  0x22   : > { %1293 = vmatpush3.bf16.msra.mxu1 %v1424_v27  ;;  %1254 = vmatprep.subr.bf16.mxu0 %v1425_v28 }
  0x23   : > { %1294 = vmatprep.subr.bf16.mxu1 %v1426_v29 }
  0x25   : > { %1255 = vmatpush3.bf16.msra.mxu0 %v1427_v30 }
  0x26   : > { %1295 = vmatpush3.bf16.msra.mxu1 %v1428_v31  ;;  %1332 = vmatprep.subr.bf16.mxu0 %v1435_v36 }
  0x27   : > { %1356 = vmatprep.subr.bf16.mxu1 %v1435_v36 }
  0x28   : > { %776 = vmatmul.mubr.bf16.vlgmr.msra.gmra.mrb[0].mxu0 %v1429_v32 }
  0x29   : > { %841 = vmatmul.mubr.bf16.vlgmr.msra.gmra.mrb[0].mxu1 %v1432_v34  ;;  %1333 = vmatpush3.bf16.msra.mxu0 %v1435_v36 }
  0x2a   : > { %1364 = vmatpush3.bf16.msra.mxu1 %v1435_v36  ;;  %1334 = vmatprep.subr.bf16.mxu0 %v1436_v37 }
  0x2b   : > { %1357 = vmatprep.subr.bf16.mxu1 %v1436_v37  ;;  %783 = vmatprep.mubr.bf16.mxu0 %v1437_v38 }
  0x2c   : > { %848 = vmatprep.mubr.bf16.mxu1 %v1439_v39 }
  0x2d   : > { %1335 = vmatpush3.bf16.msra.mxu0 %v1436_v37 }
  0x2e   : > { %1365 = vmatpush3.bf16.msra.mxu1 %v1436_v37  ;;  %1336 = vmatprep.subr.bf16.mxu0 %v1443_v41 }
  0x2f   : > { %1358 = vmatprep.subr.bf16.mxu1 %v1443_v41 }
  0x30   : > { %784 = vmatmul.mubr.bf16.gmra.mrb[4].mxu0 %v1441_v40 }
  0x31   : > { %849 = vmatmul.mubr.bf16.gmra.mrb[4].mxu1 %v1442_v42  ;;  %791 = vmatprep.mubr.bf16.mxu0 %v1445_v43 }
  0x32   : > { %1337 = vmatpush3.bf16.msra.mxu0 %v1443_v41  ;;  %856 = vmatprep.mubr.bf16.mxu1 %v1447_v45 }
  0x33   : > { %1366 = vmatpush3.bf16.msra.mxu1 %v1443_v41  ;;  %1338 = vmatprep.subr.bf16.mxu0 %v1444_v44 }
  0x34   : > { %1359 = vmatprep.subr.bf16.mxu1 %v1444_v44 }
  0x36   : > { %1339 = vmatpush3.bf16.msra.mxu0 %v1444_v44 }
  0x37   : > { %1367 = vmatpush3.bf16.msra.mxu1 %v1444_v44  ;;  %1340 = vmatprep.subr.bf16.mxu0 %v1451_v46 }
  0x38   : > { %792 = vmatmul.mubr.bf16.gmra.mrb[8].mxu0 %v1449_v47  ;;  %1360 = vmatprep.subr.bf16.mxu1 %v1451_v46 }
  0x39   : > { %857 = vmatmul.mubr.bf16.gmra.mrb[8].mxu1 %v1450_v48  ;;  %799 = vmatprep.mubr.bf16.mxu0 %v1453_v49 }
  0x3a   : > { %1341 = vmatpush3.bf16.msra.mxu0 %v1451_v46  ;;  %864 = vmatprep.mubr.bf16.mxu1 %v1455_v50 }
  0x3b   : > { %1368 = vmatpush3.bf16.msra.mxu1 %v1451_v46  ;;  %1342 = vmatprep.subr.bf16.mxu0 %v1452_v51 }
  0x3c   : > { %1361 = vmatprep.subr.bf16.mxu1 %v1452_v51 }
  0x3e   : > { %1343 = vmatpush3.bf16.msra.mxu0 %v1452_v51 }
  0x3f   : > { %1369 = vmatpush3.bf16.msra.mxu1 %v1452_v51  ;;  %1344 = vmatprep.subr.bf16.mxu0 %v1459_v52 }
  0x40   : > { %800 = vmatmul.mubr.bf16.gmra.mrb[12].mxu0 %v1457_v53  ;;  %1362 = vmatprep.subr.bf16.mxu1 %v1459_v52 }
  0x41   : > { %865 = vmatmul.mubr.bf16.gmra.mrb[12].mxu1 %v1458_v54  ;;  %1348 = vmatprep.mubr.bf16.mxu0 %v1461_v55 }
  0x42   : > { %1345 = vmatpush3.bf16.msra.mxu0 %v1459_v52  ;;  %1352 = vmatprep.mubr.bf16.mxu1 %v1462_v56 }
  0x43   : > { %1370 = vmatpush3.bf16.msra.mxu1 %v1459_v52  ;;  %1346 = vmatprep.subr.bf16.mxu0 %v1460_v57  ;;  %v1138_v52 = vld [vmem:[%s1696_s2] ss:$0 sm:$0xff] }
  0x44   : > { %1363 = vmatprep.subr.bf16.mxu1 %v1460_v57 }
  0x46   : > { %1347 = vmatpush3.bf16.msra.mxu0 %v1460_v57 }
  0x47   : > { %1371 = vmatpush3.bf16.msra.mxu1 %v1460_v57 }
  0x49   : > { %1349 = vmatmul.mubr.bf16.vlgmr.msra.gmra.mrb[16].mxu0 %v1463_v58 }
  0x4a   : > { %1353 = vmatmul.mubr.bf16.vlgmr.msra.gmra.mrb[16].mxu1 %v1464_v59 }
  0xfb   : > { %v1256_v60 = vpop.f32.mrb[0].mxu0 }
  0xfc   : > { %v1296_v61 = vpop.f32.mrb[0].mxu1  ;;  %v1257_v62 = vpop.f32.mrb[1].mxu0 }
  0xfd   : > { %v1258_v63 = vadd.f32 %v1257_v62, %v1256_v60  ;;  %v1297_v0 = vpop.f32.mrb[1].mxu1  ;;  %v1259_v1 = vpop.f32.mrb[2].mxu0 }
  0xfe   : > { %v1298_v2 = vadd.f32 %v1297_v0, %v1296_v61  ;;  %v1299_v3 = vpop.f32.mrb[2].mxu1  ;;  %v1260_v4 = vpop.f32.mrb[3].mxu0 }
  0xff   : > { %v1261_v5 = vadd.f32 %v1260_v4, %v1259_v1  ;;  %v1300_v6 = vpop.f32.mrb[3].mxu1 }
 0x100   : > { %v1301_v7 = vadd.f32 %v1300_v6, %v1299_v3  ;;  %v843_v8 = vadd.f32 %v1298_v2, %v1258_v63 }
 0x102   : > { %v846_v9 = vadd.f32 %v1301_v7, %v1261_v5 }
 0x103   : > { %v1262_v10 = vpop.f32.mrb[4].mxu0 }
 0x104   : > { %v1302_v11 = vpop.f32.mrb[4].mxu1  ;;  %v1263_v12 = vpop.f32.mrb[5].mxu0 }
 0x105   : > { %v1264_v13 = vadd.f32 %v1263_v12, %v1262_v10  ;;  %v1303_v14 = vpop.f32.mrb[5].mxu1  ;;  %v1265_v15 = vpop.f32.mrb[6].mxu0 }
 0x106   : > { %v1304_v16 = vadd.f32 %v1303_v14, %v1302_v11  ;;  %v1305_v17 = vpop.f32.mrb[6].mxu1  ;;  %v1266_v18 = vpop.f32.mrb[7].mxu0 }
 0x107   : > { %v1267_v19 = vadd.f32 %v1266_v18, %v1265_v15  ;;  %v1306_v20 = vpop.f32.mrb[7].mxu1 }
 0x108   : > { %v1307_v21 = vadd.f32 %v1306_v20, %v1305_v17  ;;  %v851_v22 = vadd.f32 %v1304_v16, %v1264_v13 }
 0x10a   : > { %v854_v23 = vadd.f32 %v1307_v21, %v1267_v19 }
 0x10b   : > { %v1268_v24 = vpop.f32.mrb[8].mxu0 }
 0x10c   : > { %v1308_v25 = vpop.f32.mrb[8].mxu1  ;;  %v1269_v26 = vpop.f32.mrb[9].mxu0 }
 0x10d   : > { %v1270_v27 = vadd.f32 %v1269_v26, %v1268_v24  ;;  %v1309_v28 = vpop.f32.mrb[9].mxu1  ;;  %v1271_v29 = vpop.f32.mrb[10].mxu0 }
 0x10e   : > { %v1310_v30 = vadd.f32 %v1309_v28, %v1308_v25  ;;  %v1311_v31 = vpop.f32.mrb[10].mxu1  ;;  %v1272_v32 = vpop.f32.mrb[11].mxu0 }
 0x10f   : > { %v1273_v33 = vadd.f32 %v1272_v32, %v1271_v29  ;;  %v1312_v34 = vpop.f32.mrb[11].mxu1 }
 0x110   : > { %v1313_v35 = vadd.f32 %v1312_v34, %v1311_v31  ;;  %v859_v36 = vadd.f32 %v1310_v30, %v1270_v27 }
 0x112   : > { %v862_v37 = vadd.f32 %v1313_v35, %v1273_v33 }
 0x113   : > { %v1274_v38 = vpop.f32.mrb[12].mxu0 }
 0x114   : > { %v1314_v39 = vpop.f32.mrb[12].mxu1  ;;  %v1275_v40 = vpop.f32.mrb[13].mxu0 }
 0x115   : > { %v1276_v41 = vadd.f32 %v1275_v40, %v1274_v38  ;;  %v1315_v42 = vpop.f32.mrb[13].mxu1  ;;  %v1277_v43 = vpop.f32.mrb[14].mxu0 }
 0x116   : > { %v1316_v44 = vadd.f32 %v1315_v42, %v1314_v39  ;;  %v1317_v45 = vpop.f32.mrb[14].mxu1  ;;  %v1278_v46 = vpop.f32.mrb[15].mxu0 }
 0x117   : > { %v1279_v47 = vadd.f32 %v1278_v46, %v1277_v43  ;;  %v1318_v48 = vpop.f32.mrb[15].mxu1 }
 0x118   : > { %v1319_v49 = vadd.f32 %v1318_v48, %v1317_v45  ;;  %v867_v50 = vadd.f32 %v1316_v44, %v1276_v41 }
 0x11a   : > { %v870_v51 = vadd.f32 %v1319_v49, %v1279_v47 }
 0x11c   : > { %v1350_v53 = vpop.f32.mrb[16].mxu0 }
 0x11d   : > { %v916_v54 = vadd.f32 %v1350_v53, %v851_v22  ;;  %v1354_v55 = vpop.f32.mrb[16].mxu1  ;;  %v907_v56 = vpop.f32.mrb[17].mxu0 }
 0x11e   : > { %v932_v57 = vadd.f32 %v1354_v55, %v867_v50  ;;  %v908_v58 = vadd.f32 %v907_v56, %v843_v8  ;;  %v923_v59 = vpop.f32.mrb[17].mxu1  ;;  %v1351_v60 = vpop.f32.mrb[18].mxu0 }
 0x11f   : > { %v940_v61 = vadd.f32 %v1138_v52, %v916_v54  ;;  %v924_v62 = vadd.f32 %v923_v59, %v859_v36  ;;  %v919_v63 = vadd.f32 %v1351_v60, %v854_v23  ;;  %v1355_v0 = vpop.f32.mrb[18].mxu1  ;;  %v910_v1 = vpop.f32.mrb[19].mxu0 }
 0x120   : > { %v944_v2 = vadd.f32 %v1138_v52, %v932_v57  ;;  %v938_v3 = vadd.f32 %v1138_v52, %v908_v58  ;;  %v935_v4 = vadd.f32 %v1355_v0, %v870_v51  ;;  %v911_v5 = vadd.f32 %v910_v1, %v846_v9  ;;  %v926_v6 = vpop.f32.mrb[19].mxu1 }
 0x121   : > { %v942_v7 = vadd.f32 %v1138_v52, %v924_v62  ;;  %v941_v10 = vadd.f32 %v1138_v52, %v919_v63  ;;  %v927_v11 = vadd.f32 %v926_v6, %v862_v37  ;;  %v967_v14 = vmax.f32 %v940_v61, 0.0 }
 0x122   : > { %v945_v12 = vadd.f32 %v1138_v52, %v935_v4  ;;  %v939_v13 = vadd.f32 %v1138_v52, %v911_v5  ;;  %v971_v16 = vmax.f32 %v944_v2, 0.0  ;;  %v965_v17 = vmax.f32 %v938_v3, 0.0 }
 0x123   : > { %v968_v8 = vmax.f32 %v941_v10, 0.0  ;;  %v943_v15 = vadd.f32 %v1138_v52, %v927_v11  ;;  %v969_v20 = vmax.f32 %v942_v7, 0.0 }
 0x124   : > { %v972_v18 = vmax.f32 %v945_v12, 0.0  ;;  %v966_v19 = vmax.f32 %v939_v13, 0.0 }
 0x125   : > { %v1225_v9 = vpack.c.bf16 %v968_v8, %v967_v14  ;;  %v970_v21 = vmax.f32 %v943_v15, 0.0 }
 0x126   : > { %v1235_v22 = vpack.c.bf16 %v972_v18, %v971_v16  ;;  %v1220_v23 = vpack.c.bf16 %v966_v19, %v965_v17 }
 0x127   : > { %1237 = vst [vmem:[%s265_s9 + $0x8] sm:$0xff] %v1225_v9   ;;  %v1230_v24 = vpack.c.bf16 %v970_v21, %v969_v20 }
 0x128   : > { %1239 = vst [vmem:[%s265_s9 + $0x18] sm:$0xff] %v1235_v22   ;;  %1221 = vst [vmem:[%s265_s9] sm:$0xff] %v1220_v23  }
 0x129   : > { %1238 = vst [vmem:[%s265_s9 + $0x10] sm:$0xff] %v1230_v24  }
 0x12a PF: > { %s13_s14 = sadd.s32 1, %s1487_s14   ;;  %s1698_s12 = smov %s1483_s13 }
 0x12b   : > { %p10_p5 = scmp.ge.s32.totalorder %s13_s14, 4   ;;  %s1699_s13 = smov %s1701_s15 }
 0x12d   :  { %12 = sbr.rel (!%p10_p5) target bundleno = 2 (0x2), region = 76 }

// kernel: _lambda_.22
= control target key start
LH: loop header
LB: loop body
LE: loop exit
PB: predicated region body
PF: predicated region fallthrough
CT: control target
= control target key end

     0   :  { %s1634_s15 = smov 0   ;;  %s1636_s16 = smov 0   ;;  %s1829_s0 = inlined_call_operand.vmem [shape: bf16[128,640], index: 0, kind: input, shape index: {}]   ;;  %s1830_s1 = inlined_call_operand.vmem [shape: bf16[640,128], index: 1, kind: input, shape index: {}]   ;;  %s1831_s2 = inlined_call_operand.vmem [shape: f32[1,128], index: 2, kind: input, shape index: {}]   ;;  %s1832_s3 = inlined_call_operand.vmem [shape: bf16[128,128], index: 3, kind: input, shape index: {}]   ;;  %s1833_s4 = inlined_call_operand.vmem [shape: bf16[128,128], index: 4, kind: output, shape index: {}]  }
   0x1   :  { %s1638_s17 = smov 0  }
   0x2 LB: > { %s33_s18 = sadd.s32 1, %s1603_s16  ;;  %p1232_p0 = scmp.ge.s32.totalorder %s1607_s17, 1  ;;  %s1607_s17 = sphi %s1638_s17, %s14_s17   ;;  %s1603_s16 = sphi %s1636_s16, %s1835_s16   ;;  %s1599_s15 = sphi %s1634_s15, %s1834_s15  }
   0x3   : > { %p35_p1 = scmp.ge.s32.totalorder %s33_s18, 2  ;;  %p232_p2 = scmp.lt.s32.totalorder %s1607_s17, 3 }
   0x5   : > { %s1837_s18 = smov (%p35_p1, %s33_s18), 0  ;;  %p233_p3 = pnand %p1232_p0, %p232_p2 }
   0x6   : > { %v1517_v0 = vld [vmem:[%s1830_s1 + $0x40] sm:$0xff] (!%p233_p3)   ;;  %v1521_v4 = vld [vmem:[%s1830_s1 + $0x48] sm:$0xff] (!%p233_p3)   ;;  %v1525_v8 = vld [vmem:[%s1830_s1 + $0x50] sm:$0xff] (!%p233_p3)   ;;  %s1233_s27 = sshll.u32 (!%p233_p3), %s1599_s15, 3 }
   0x7   : > { %236 = sbr.rel (%p233_p3) target bundleno = 300 (0x12c), region = 36  ;;  %v1518_v1 = vld [vmem:[%s1830_s1 + $0xc0] sm:$0xff] (!%p233_p3)   ;;  %1360 = vmatprep.subr.bf16.mxu0 (!%p233_p3), %v1517_v0  ;;  %v1522_v5 = vld [vmem:[%s1830_s1 + $0xc8] sm:$0xff] (!%p233_p3)   ;;  %v1526_v9 = vld [vmem:[%s1830_s1 + $0xd0] sm:$0xff] (!%p233_p3)   ;;  %p287_p4 = scmp.lt.s32.totalorder (!%p233_p3), %s1233_s27, 15 }
   0x8   : > { %v1519_v2 = vld [vmem:[%s1830_s1] sm:$0xff] (!%p233_p3)   ;;  %1400 = vmatprep.subr.bf16.mxu1 (!%p233_p3), %v1518_v1  ;;  %v1523_v6 = vld [vmem:[%s1830_s1 + $0x8] sm:$0xff] (!%p233_p3)   ;;  %v1527_v10 = vld [vmem:[%s1830_s1 + $0x10] sm:$0xff] (!%p233_p3)  }
   0x9   : > { %v1520_v3 = vld [vmem:[%s1830_s1 + $0x80] sm:$0xff] (!%p233_p3)   ;;  %1361 = vmatpush3.bf16.msra.mxu0 (!%p233_p3), %v1519_v2  ;;  %v1524_v7 = vld [vmem:[%s1830_s1 + $0x88] sm:$0xff] (!%p233_p3)   ;;  %v1528_v11 = vld [vmem:[%s1830_s1 + $0x90] sm:$0xff] (!%p233_p3)  }
   0xa   : > { %1401 = vmatpush3.bf16.msra.mxu1 (!%p233_p3), %v1520_v3  ;;  %1362 = vmatprep.subr.bf16.mxu0 (!%p233_p3), %v1521_v4  ;;  %v1529_v12 = vld [vmem:[%s1830_s1 + $0x58] sm:$0xff] (!%p233_p3)   ;;  %v1533_v16 = vld [vmem:[%s1830_s1 + $0x60] sm:$0xff] (!%p233_p3)   ;;  %v1537_v20 = vld [vmem:[%s1830_s1 + $0x68] sm:$0xff] (!%p233_p3)  }
   0xb   : > { %1402 = vmatprep.subr.bf16.mxu1 (!%p233_p3), %v1522_v5  ;;  %v1530_v13 = vld [vmem:[%s1830_s1 + $0xd8] sm:$0xff] (!%p233_p3)   ;;  %v1534_v17 = vld [vmem:[%s1830_s1 + $0xe0] sm:$0xff] (!%p233_p3)   ;;  %v1538_v21 = vld [vmem:[%s1830_s1 + $0xe8] sm:$0xff] (!%p233_p3)  }
   0xc   : > { %v1531_v14 = vld [vmem:[%s1830_s1 + $0x18] sm:$0xff] (!%p233_p3)   ;;  %v1535_v18 = vld [vmem:[%s1830_s1 + $0x20] sm:$0xff] (!%p233_p3)   ;;  %v1539_v22 = vld [vmem:[%s1830_s1 + $0x28] sm:$0xff] (!%p233_p3)  }
   0xd   : > { %1363 = vmatpush3.bf16.msra.mxu0 (!%p233_p3), %v1523_v6  ;;  %v1532_v15 = vld [vmem:[%s1830_s1 + $0x98] sm:$0xff] (!%p233_p3)   ;;  %v1536_v19 = vld [vmem:[%s1830_s1 + $0xa0] sm:$0xff] (!%p233_p3)   ;;  %v1540_v23 = vld [vmem:[%s1830_s1 + $0xa8] sm:$0xff] (!%p233_p3)  }
   0xe   : > { %1403 = vmatpush3.bf16.msra.mxu1 %v1524_v7  ;;  %1364 = vmatprep.subr.bf16.mxu0 %v1525_v8  ;;  %s1839_s27 = smov (!%p287_p4, %s1233_s27), 15  ;;  %v1541_v24 = vld [vmem:[%s1830_s1 + $0x70] sm:$0xff]   ;;  %v1545_v28 = vld [vmem:[%s1830_s1 + $0x78] sm:$0xff]   ;;  %v1555_v36 = vld [vmem:[%s1830_s1 + $0x100] sm:$0xff]  }
   0xf   : > { %1404 = vmatprep.subr.bf16.mxu1 %v1526_v9  ;;  %v1542_v25 = vld [vmem:[%s1830_s1 + $0xf0] sm:$0xff]   ;;  %s1492_s28 = smul.u32 20, %s1839_s27  ;;  %v1546_v29 = vld [vmem:[%s1830_s1 + $0xf8] sm:$0xff]   ;;  %v1556_v37 = vld [vmem:[%s1830_s1 + $0x108] sm:$0xff]   ;;  %s1236_s11 = sshll.u32 %s1839_s27, 2 }
  0x10   : > { %v1543_v26 = vld [vmem:[%s1830_s1 + $0x30] sm:$0xff]   ;;  %v1547_v30 = vld [vmem:[%s1830_s1 + $0x38] sm:$0xff]   ;;  %v1571_v46 = vld [vmem:[%s1830_s1 + $0x120] sm:$0xff]   ;;  %s316_s14 = scalar_lea.vmem %s1832_s3, %s1236_s11  ;;  %s325_s23 = scalar_lea.vmem %s1833_s4, %s1236_s11 }
  0x11   : > { %1365 = vmatpush3.bf16.msra.mxu0 %v1527_v10  ;;  %v1544_v27 = vld [vmem:[%s1830_s1 + $0xb0] sm:$0xff]   ;;  %s1751_s12 = scalar_lea.vmem %s1829_s0, %s1492_s28  ;;  %v1548_v31 = vld [vmem:[%s1830_s1 + $0xb8] sm:$0xff]   ;;  %v1572_v51 = vld [vmem:[%s1830_s1 + $0x128] sm:$0xff]  }
  0x12   : > { %1405 = vmatpush3.bf16.msra.mxu1 %v1528_v11  ;;  %1366 = vmatprep.subr.bf16.mxu0 %v1529_v12  ;;  %v1549_v32 = vld [vmem:[%s1751_s12] ss:$20 sps:$4 sm:$0xff]   ;;  %v1551_v33 = vld [vmem:[%s1751_s12 + $0x4] ss:$20 sps:$4 sm:$0xff]   ;;  %v1552_v34 = vld [vmem:[%s1751_s12 + $0x8] ss:$20 sps:$4 sm:$0xff]  }
  0x13   : > { %1406 = vmatprep.subr.bf16.mxu1 %v1530_v13  ;;  %v1554_v35 = vld [vmem:[%s1751_s12 + $0xc] ss:$20 sps:$4 sm:$0xff]   ;;  %835 = vmatprep.mubr.bf16.mxu0 %v1551_v33  ;;  %v1559_v39 = vld [vmem:[%s1751_s12 + $0x34] ss:$20 sps:$4 sm:$0xff]   ;;  %v1562_v42 = vld [vmem:[%s1751_s12 + $0x30] ss:$20 sps:$4 sm:$0xff]  }
  0x14   : > { %900 = vmatprep.mubr.bf16.mxu1 %v1554_v35  ;;  %v1557_v38 = vld [vmem:[%s1751_s12 + $0x2c] ss:$20 sps:$4 sm:$0xff]   ;;  %v1561_v40 = vld [vmem:[%s1751_s12 + $0x28] ss:$20 sps:$4 sm:$0xff]   ;;  %v1563_v41 = vld [vmem:[%s1830_s1 + $0x110] sm:$0xff]  }
  0x15   : > { %1367 = vmatpush3.bf16.msra.mxu0 %v1531_v14  ;;  %v1565_v43 = vld [vmem:[%s1751_s12 + $0x54] ss:$20 sps:$4 sm:$0xff]   ;;  %v1564_v44 = vld [vmem:[%s1830_s1 + $0x118] sm:$0xff]   ;;  %v1569_v47 = vld [vmem:[%s1751_s12 + $0x50] ss:$20 sps:$4 sm:$0xff]  }
  0x16   : > { %1407 = vmatpush3.bf16.msra.mxu1 %v1532_v15  ;;  %1368 = vmatprep.subr.bf16.mxu0 %v1533_v16  ;;  %v1567_v45 = vld [vmem:[%s1751_s12 + $0x5c] ss:$20 sps:$4 sm:$0xff]   ;;  %v1570_v48 = vld [vmem:[%s1751_s12 + $0x58] ss:$20 sps:$4 sm:$0xff]   ;;  %v1578_v54 = vld [vmem:[%s1751_s12 + $0x80] ss:$20 sps:$4 sm:$0xff]  }
  0x17   : > { %1408 = vmatprep.subr.bf16.mxu1 %v1534_v17  ;;  %v1573_v49 = vld [vmem:[%s1751_s12 + $0x7c] ss:$20 sps:$4 sm:$0xff]   ;;  %v1575_v50 = vld [vmem:[%s1751_s12 + $0x84] ss:$20 sps:$4 sm:$0xff]   ;;  %v1582_v56 = vld [vmem:[%s1751_s12 + $0x60] ss:$20 sps:$4 sm:$0xff]  }
  0x18   : > { %v1579_v52 = vld [vmem:[%s1830_s1 + $0x130] sm:$0xff]   ;;  %v1577_v53 = vld [vmem:[%s1751_s12 + $0x78] ss:$20 sps:$4 sm:$0xff]   ;;  %v1584_v59 = vld [vmem:[%s1751_s12 + $0x88] ss:$20 sps:$4 sm:$0xff]  }
  0x19   : > { %1369 = vmatpush3.bf16.msra.mxu0 %v1535_v18  ;;  %v1581_v55 = vld [vmem:[%s1751_s12 + $0x10] ss:$20 sps:$4 sm:$0xff]   ;;  %v1580_v57 = vld [vmem:[%s1830_s1 + $0x138] sm:$0xff]  }
  0x1a   : > { %1409 = vmatpush3.bf16.msra.mxu1 %v1536_v19  ;;  %1370 = vmatprep.subr.bf16.mxu0 %v1537_v20  ;;  %v1583_v58 = vld [vmem:[%s1751_s12 + $0x38] ss:$20 sps:$4 sm:$0xff]  }
  0x1b   : > { %1410 = vmatprep.subr.bf16.mxu1 %v1538_v21 }
  0x1d   : > { %1371 = vmatpush3.bf16.msra.mxu0 %v1539_v22 }
  0x1e   : > { %1411 = vmatpush3.bf16.msra.mxu1 %v1540_v23  ;;  %1372 = vmatprep.subr.bf16.mxu0 %v1541_v24 }
  0x1f   : > { %1412 = vmatprep.subr.bf16.mxu1 %v1542_v25 }
  0x21   : > { %1373 = vmatpush3.bf16.msra.mxu0 %v1543_v26 }
  0x22   : > { %1413 = vmatpush3.bf16.msra.mxu1 %v1544_v27  ;;  %1374 = vmatprep.subr.bf16.mxu0 %v1545_v28 }
  0x23   : > { %1414 = vmatprep.subr.bf16.mxu1 %v1546_v29 }
  0x25   : > { %1375 = vmatpush3.bf16.msra.mxu0 %v1547_v30 }
  0x26   : > { %1415 = vmatpush3.bf16.msra.mxu1 %v1548_v31  ;;  %1452 = vmatprep.subr.bf16.mxu0 %v1555_v36 }
  0x27   : > { %1476 = vmatprep.subr.bf16.mxu1 %v1555_v36 }
  0x28   : > { %836 = vmatmul.mubr.bf16.vlgmr.msra.gmra.mrb[0].mxu0 %v1549_v32 }
  0x29   : > { %901 = vmatmul.mubr.bf16.vlgmr.msra.gmra.mrb[0].mxu1 %v1552_v34  ;;  %1453 = vmatpush3.bf16.msra.mxu0 %v1555_v36 }
  0x2a   : > { %1484 = vmatpush3.bf16.msra.mxu1 %v1555_v36  ;;  %1454 = vmatprep.subr.bf16.mxu0 %v1556_v37 }
  0x2b   : > { %1477 = vmatprep.subr.bf16.mxu1 %v1556_v37  ;;  %843 = vmatprep.mubr.bf16.mxu0 %v1557_v38 }
  0x2c   : > { %908 = vmatprep.mubr.bf16.mxu1 %v1559_v39 }
  0x2d   : > { %1455 = vmatpush3.bf16.msra.mxu0 %v1556_v37 }
  0x2e   : > { %1485 = vmatpush3.bf16.msra.mxu1 %v1556_v37  ;;  %1456 = vmatprep.subr.bf16.mxu0 %v1563_v41 }
  0x2f   : > { %1478 = vmatprep.subr.bf16.mxu1 %v1563_v41 }
  0x30   : > { %844 = vmatmul.mubr.bf16.gmra.mrb[4].mxu0 %v1561_v40 }
  0x31   : > { %909 = vmatmul.mubr.bf16.gmra.mrb[4].mxu1 %v1562_v42  ;;  %851 = vmatprep.mubr.bf16.mxu0 %v1565_v43 }
  0x32   : > { %1457 = vmatpush3.bf16.msra.mxu0 %v1563_v41  ;;  %916 = vmatprep.mubr.bf16.mxu1 %v1567_v45 }
  0x33   : > { %1486 = vmatpush3.bf16.msra.mxu1 %v1563_v41  ;;  %1458 = vmatprep.subr.bf16.mxu0 %v1564_v44 }
  0x34   : > { %1479 = vmatprep.subr.bf16.mxu1 %v1564_v44 }
  0x36   : > { %1459 = vmatpush3.bf16.msra.mxu0 %v1564_v44 }
  0x37   : > { %1487 = vmatpush3.bf16.msra.mxu1 %v1564_v44  ;;  %1460 = vmatprep.subr.bf16.mxu0 %v1571_v46 }
  0x38   : > { %852 = vmatmul.mubr.bf16.gmra.mrb[8].mxu0 %v1569_v47  ;;  %1480 = vmatprep.subr.bf16.mxu1 %v1571_v46 }
  0x39   : > { %917 = vmatmul.mubr.bf16.gmra.mrb[8].mxu1 %v1570_v48  ;;  %859 = vmatprep.mubr.bf16.mxu0 %v1573_v49 }
  0x3a   : > { %1461 = vmatpush3.bf16.msra.mxu0 %v1571_v46  ;;  %924 = vmatprep.mubr.bf16.mxu1 %v1575_v50 }
  0x3b   : > { %1488 = vmatpush3.bf16.msra.mxu1 %v1571_v46  ;;  %1462 = vmatprep.subr.bf16.mxu0 %v1572_v51 }
  0x3c   : > { %1481 = vmatprep.subr.bf16.mxu1 %v1572_v51 }
  0x3e   : > { %1463 = vmatpush3.bf16.msra.mxu0 %v1572_v51 }
  0x3f   : > { %1489 = vmatpush3.bf16.msra.mxu1 %v1572_v51  ;;  %1464 = vmatprep.subr.bf16.mxu0 %v1579_v52  ;;  %v1354_v51 = vld [vmem:[%s316_s14 + $0x8] sm:$0xff]  }
  0x40   : > { %860 = vmatmul.mubr.bf16.gmra.mrb[12].mxu0 %v1577_v53  ;;  %1482 = vmatprep.subr.bf16.mxu1 %v1579_v52  ;;  %v1319_v53 = vld [vmem:[%s316_s14] sm:$0xff]  }
  0x41   : > { %925 = vmatmul.mubr.bf16.gmra.mrb[12].mxu1 %v1578_v54  ;;  %1468 = vmatprep.mubr.bf16.mxu0 %v1581_v55  ;;  %v1355_v54 = vld [vmem:[%s316_s14 + $0x10] sm:$0xff]  }
  0x42   : > { %1465 = vmatpush3.bf16.msra.mxu0 %v1579_v52  ;;  %1472 = vmatprep.mubr.bf16.mxu1 %v1582_v56  ;;  %v1239_v56 = vld [vmem:[%s1831_s2] ss:$0 sm:$0xff] }
  0x43   : > { %1490 = vmatpush3.bf16.msra.mxu1 %v1579_v52  ;;  %1466 = vmatprep.subr.bf16.mxu0 %v1580_v57  ;;  %v1356_v52 = vld [vmem:[%s316_s14 + $0x18] sm:$0xff]  }
  0x44   : > { %1483 = vmatprep.subr.bf16.mxu1 %v1580_v57 }
  0x46   : > { %1467 = vmatpush3.bf16.msra.mxu0 %v1580_v57 }
  0x47   : > { %1491 = vmatpush3.bf16.msra.mxu1 %v1580_v57 }
  0x49   : > { %1469 = vmatmul.mubr.bf16.vlgmr.msra.gmra.mrb[16].mxu0 %v1583_v58  ;;  %v1324_v58 = vunpack.c.l.bf16 %v1354_v51 }
  0x4a   : > { %1473 = vmatmul.mubr.bf16.vlgmr.msra.gmra.mrb[16].mxu1 %v1584_v59  ;;  %v1332_v59 = vunpack.c.l.bf16 %v1356_v52 }
  0xfb   : > { %v1376_v60 = vpop.f32.mrb[0].mxu0 }
  0xfc   : > { %v1416_v61 = vpop.f32.mrb[0].mxu1  ;;  %v1377_v62 = vpop.f32.mrb[1].mxu0 }
  0xfd   : > { %v1378_v63 = vadd.f32 %v1377_v62, %v1376_v60  ;;  %v1417_v0 = vpop.f32.mrb[1].mxu1  ;;  %v1379_v1 = vpop.f32.mrb[2].mxu0 }
  0xfe   : > { %v1418_v2 = vadd.f32 %v1417_v0, %v1416_v61  ;;  %v1419_v3 = vpop.f32.mrb[2].mxu1  ;;  %v1380_v4 = vpop.f32.mrb[3].mxu0  ;;  %v1328_v0 = vunpack.c.l.bf16 %v1355_v54 }
  0xff   : > { %v1381_v5 = vadd.f32 %v1380_v4, %v1379_v1  ;;  %v1420_v6 = vpop.f32.mrb[3].mxu1  ;;  %v1325_v1 = vunpack.c.h.bf16 %v1354_v51 }
 0x100   : > { %v1421_v7 = vadd.f32 %v1420_v6, %v1419_v3  ;;  %v903_v8 = vadd.f32 %v1418_v2, %v1378_v63  ;;  %v1320_v63 = vunpack.c.l.bf16 %v1319_v53  ;;  %v1333_v6 = vunpack.c.h.bf16 %v1356_v52 }
 0x102   : > { %v1803_v9 = vadd.f32 %v1421_v7, %v1381_v5  ;;  %v1321_v7 = vunpack.c.h.bf16 %v1319_v53 }
 0x103   : > { %v1382_v10 = vpop.f32.mrb[4].mxu0 }
 0x104   : > { %v1422_v11 = vpop.f32.mrb[4].mxu1  ;;  %v1383_v12 = vpop.f32.mrb[5].mxu0 }
 0x105   : > { %v1384_v13 = vadd.f32 %v1383_v12, %v1382_v10  ;;  %v1423_v14 = vpop.f32.mrb[5].mxu1  ;;  %v1385_v15 = vpop.f32.mrb[6].mxu0 }
 0x106   : > { %v1424_v16 = vadd.f32 %v1423_v14, %v1422_v11  ;;  %v1425_v17 = vpop.f32.mrb[6].mxu1  ;;  %v1386_v18 = vpop.f32.mrb[7].mxu0 }
 0x107   : > { %v1387_v19 = vadd.f32 %v1386_v18, %v1385_v15  ;;  %v1426_v20 = vpop.f32.mrb[7].mxu1  ;;  %v1329_v15 = vunpack.c.h.bf16 %v1355_v54 }
 0x108   : > { %v1427_v21 = vadd.f32 %v1426_v20, %v1425_v17  ;;  %v911_v22 = vadd.f32 %v1424_v16, %v1384_v13 }
 0x10a   : > { %v914_v23 = vadd.f32 %v1427_v21, %v1387_v19 }
 0x10b   : > { %v1388_v24 = vpop.f32.mrb[8].mxu0 }
 0x10c   : > { %v1428_v25 = vpop.f32.mrb[8].mxu1  ;;  %v1389_v26 = vpop.f32.mrb[9].mxu0 }
 0x10d   : > { %v1390_v27 = vadd.f32 %v1389_v26, %v1388_v24  ;;  %v1429_v28 = vpop.f32.mrb[9].mxu1  ;;  %v1391_v29 = vpop.f32.mrb[10].mxu0 }
 0x10e   : > { %v1430_v30 = vadd.f32 %v1429_v28, %v1428_v25  ;;  %v1431_v31 = vpop.f32.mrb[10].mxu1  ;;  %v1392_v32 = vpop.f32.mrb[11].mxu0 }
 0x10f   : > { %v1393_v33 = vadd.f32 %v1392_v32, %v1391_v29  ;;  %v1432_v34 = vpop.f32.mrb[11].mxu1 }
 0x110   : > { %v1433_v35 = vadd.f32 %v1432_v34, %v1431_v31  ;;  %v919_v36 = vadd.f32 %v1430_v30, %v1390_v27 }
 0x112   : > { %v922_v37 = vadd.f32 %v1433_v35, %v1393_v33 }
 0x113   : > { %v1394_v38 = vpop.f32.mrb[12].mxu0 }
 0x114   : > { %v1434_v39 = vpop.f32.mrb[12].mxu1  ;;  %v1395_v40 = vpop.f32.mrb[13].mxu0 }
 0x115   : > { %v1396_v41 = vadd.f32 %v1395_v40, %v1394_v38  ;;  %v1435_v42 = vpop.f32.mrb[13].mxu1  ;;  %v1397_v43 = vpop.f32.mrb[14].mxu0 }
 0x116   : > { %v1436_v44 = vadd.f32 %v1435_v42, %v1434_v39  ;;  %v1437_v45 = vpop.f32.mrb[14].mxu1  ;;  %v1398_v46 = vpop.f32.mrb[15].mxu0 }
 0x117   : > { %v1399_v47 = vadd.f32 %v1398_v46, %v1397_v43  ;;  %v1438_v48 = vpop.f32.mrb[15].mxu1 }
 0x118   : > { %v1439_v49 = vadd.f32 %v1438_v48, %v1437_v45  ;;  %v927_v50 = vadd.f32 %v1436_v44, %v1396_v41 }
 0x11a   : > { %v930_v55 = vadd.f32 %v1439_v49, %v1399_v47 }
 0x11c   : > { %v1470_v57 = vpop.f32.mrb[16].mxu0 }
 0x11d   : > { %v976_v60 = vadd.f32 %v1470_v57, %v911_v22  ;;  %v1474_v61 = vpop.f32.mrb[16].mxu1  ;;  %v967_v62 = vpop.f32.mrb[17].mxu0 }
 0x11e   : > { %v992_v2 = vadd.f32 %v1474_v61, %v927_v50  ;;  %v968_v3 = vadd.f32 %v967_v62, %v903_v8  ;;  %v983_v4 = vpop.f32.mrb[17].mxu1  ;;  %v1471_v5 = vpop.f32.mrb[18].mxu0 }
 0x11f   : > { %v1000_v10 = vadd.f32 %v1239_v56, %v976_v60  ;;  %v984_v11 = vadd.f32 %v983_v4, %v919_v36  ;;  %v979_v12 = vadd.f32 %v1471_v5, %v914_v23  ;;  %v1475_v13 = vpop.f32.mrb[18].mxu1  ;;  %v970_v14 = vpop.f32.mrb[19].mxu0 }
 0x120   : > { %v1004_v16 = vadd.f32 %v1239_v56, %v992_v2  ;;  %v998_v17 = vadd.f32 %v1239_v56, %v968_v3  ;;  %v995_v18 = vadd.f32 %v1475_v13, %v930_v55  ;;  %v971_v19 = vadd.f32 %v970_v14, %v1803_v9  ;;  %v986_v20 = vpop.f32.mrb[19].mxu1 }
 0x121   : > { %v1043_v21 = vadd.f32 %v1324_v58, %v1000_v10  ;;  %v1002_v22 = vadd.f32 %v1239_v56, %v984_v11  ;;  %v1001_v24 = vadd.f32 %v1239_v56, %v979_v12  ;;  %v987_v8 = vadd.f32 %v986_v20, %v922_v37 }
 0x122   : > { %v1047_v25 = vadd.f32 %v1332_v59, %v1004_v16  ;;  %v1041_v26 = vadd.f32 %v1320_v63, %v998_v17  ;;  %v1005_v27 = vadd.f32 %v1239_v56, %v995_v18  ;;  %v999_v28 = vadd.f32 %v1239_v56, %v971_v19 }
 0x123   : > { %v1045_v29 = vadd.f32 %v1328_v0, %v1002_v22  ;;  %v1044_v23 = vadd.f32 %v1325_v1, %v1001_v24  ;;  %v1003_v30 = vadd.f32 %v1239_v56, %v987_v8  ;;  %v1051_v33 = vmax.f32 %v1043_v21, 0.0 }
 0x124   : > { %v1048_v31 = vadd.f32 %v1333_v6, %v1005_v27  ;;  %v1042_v32 = vadd.f32 %v1321_v7, %v999_v28  ;;  %v1055_v36 = vmax.f32 %v1047_v25, 0.0  ;;  %v1049_v9 = vmax.f32 %v1041_v26, 0.0 }
 0x125   : > { %v1052_v34 = vmax.f32 %v1044_v23, 0.0  ;;  %v1046_v35 = vadd.f32 %v1329_v15, %v1003_v30  ;;  %v1053_v39 = vmax.f32 %v1045_v29, 0.0 }
 0x126   : > { %v1056_v37 = vmax.f32 %v1048_v31, 0.0  ;;  %v1050_v38 = vmax.f32 %v1042_v32, 0.0 }
 0x127   : > { %v1342_v40 = vpack.c.bf16 %v1052_v34, %v1051_v33  ;;  %v1054_v41 = vmax.f32 %v1046_v35, 0.0 }
 0x128   : > { %v1352_v42 = vpack.c.bf16 %v1056_v37, %v1055_v36  ;;  %v1337_v43 = vpack.c.bf16 %v1050_v38, %v1049_v9 }
 0x129   : > { %1357 = vst [vmem:[%s325_s23 + $0x8] sm:$0xff] %v1342_v40   ;;  %v1347_v44 = vpack.c.bf16 %v1054_v41, %v1053_v39 }
 0x12a   : > { %1359 = vst [vmem:[%s325_s23 + $0x18] sm:$0xff] %v1352_v42   ;;  %1338 = vst [vmem:[%s325_s23] sm:$0xff] %v1337_v43  }
 0x12b   : > { %1358 = vst [vmem:[%s325_s23 + $0x10] sm:$0xff] %v1347_v44  }
 0x12c PF: > { %s14_s17 = sadd.s32 1, %s1607_s17   ;;  %s1834_s15 = smov %s1603_s16 }
 0x12d   : > { %p11_p5 = scmp.ge.s32.totalorder %s14_s17, 4   ;;  %s1835_s16 = smov %s1837_s18 }
 0x12f   :  { %13 = sbr.rel (!%p11_p5) target bundleno = 2 (0x2), region = 83 }

// kernel: _lambda_.25
= control target key start
LH: loop header
LB: loop body
LE: loop exit
PB: predicated region body
PF: predicated region fallthrough
CT: control target
= control target key end

     0   :  { %s997_s1 = inlined_call_operand.vmem [shape: bf16[640,128], index: 1, kind: input, shape index: {}]   ;;  %s998_s0 = inlined_call_operand.vmem [shape: bf16[32,640], index: 0, kind: input, shape index: {}]   ;;  %s999_s2 = inlined_call_operand.vmem [shape: f32[1,128], index: 2, kind: input, shape index: {}]   ;;  %s1000_s3 = inlined_call_operand.vmem [shape: bf16[32,128], index: 3, kind: output, shape index: {}]  }
   0x1   :  { %v764_v0 = vld [vmem:[%s997_s1 + $0x40] sm:$0xff]   ;;  %v768_v4 = vld [vmem:[%s997_s1 + $0x48] sm:$0xff]   ;;  %v772_v8 = vld [vmem:[%s997_s1 + $0x50] sm:$0xff]  }
   0x2   :  { %v765_v1 = vld [vmem:[%s997_s1 + $0xc0] sm:$0xff]   ;;  %678 = vmatprep.subr.bf16.mxu0 %v764_v0  ;;  %v769_v5 = vld [vmem:[%s997_s1 + $0xc8] sm:$0xff]   ;;  %v773_v9 = vld [vmem:[%s997_s1 + $0xd0] sm:$0xff]  }
   0x3   :  { %v766_v2 = vld [vmem:[%s997_s1] sm:$0xff]   ;;  %706 = vmatprep.subr.bf16.mxu1 %v765_v1  ;;  %v770_v6 = vld [vmem:[%s997_s1 + $0x8] sm:$0xff]   ;;  %v774_v10 = vld [vmem:[%s997_s1 + $0x10] sm:$0xff]  }
   0x4   :  { %v767_v3 = vld [vmem:[%s997_s1 + $0x80] sm:$0xff]   ;;  %679 = vmatpush3.bf16.msra.mxu0 %v766_v2  ;;  %v771_v7 = vld [vmem:[%s997_s1 + $0x88] sm:$0xff]   ;;  %v775_v11 = vld [vmem:[%s997_s1 + $0x90] sm:$0xff]  }
   0x5   :  { %707 = vmatpush3.bf16.msra.mxu1 %v767_v3  ;;  %680 = vmatprep.subr.bf16.mxu0 %v768_v4  ;;  %v776_v12 = vld [vmem:[%s997_s1 + $0x58] sm:$0xff]   ;;  %v780_v16 = vld [vmem:[%s997_s1 + $0x60] sm:$0xff]   ;;  %v784_v20 = vld [vmem:[%s997_s1 + $0x68] sm:$0xff]  }
   0x6   :  { %708 = vmatprep.subr.bf16.mxu1 %v769_v5  ;;  %v777_v13 = vld [vmem:[%s997_s1 + $0xd8] sm:$0xff]   ;;  %v781_v17 = vld [vmem:[%s997_s1 + $0xe0] sm:$0xff]   ;;  %v785_v21 = vld [vmem:[%s997_s1 + $0xe8] sm:$0xff]  }
   0x7   :  { %v778_v14 = vld [vmem:[%s997_s1 + $0x18] sm:$0xff]   ;;  %v782_v18 = vld [vmem:[%s997_s1 + $0x20] sm:$0xff]   ;;  %v786_v22 = vld [vmem:[%s997_s1 + $0x28] sm:$0xff]  }
   0x8   :  { %681 = vmatpush3.bf16.msra.mxu0 %v770_v6  ;;  %v779_v15 = vld [vmem:[%s997_s1 + $0x98] sm:$0xff]   ;;  %v783_v19 = vld [vmem:[%s997_s1 + $0xa0] sm:$0xff]   ;;  %v787_v23 = vld [vmem:[%s997_s1 + $0xa8] sm:$0xff]  }
   0x9   :  { %709 = vmatpush3.bf16.msra.mxu1 %v771_v7  ;;  %682 = vmatprep.subr.bf16.mxu0 %v772_v8  ;;  %v788_v24 = vld [vmem:[%s997_s1 + $0x70] sm:$0xff]   ;;  %v792_v28 = vld [vmem:[%s997_s1 + $0x78] sm:$0xff]   ;;  %v801_v35 = vld [vmem:[%s998_s0 + $0xc] ss:$20 sps:$4 sm:$0xff]  }
   0xa   :  { %710 = vmatprep.subr.bf16.mxu1 %v773_v9  ;;  %v789_v25 = vld [vmem:[%s997_s1 + $0xf0] sm:$0xff]   ;;  %v793_v29 = vld [vmem:[%s997_s1 + $0xf8] sm:$0xff]   ;;  %v802_v36 = vld [vmem:[%s997_s1 + $0x100] sm:$0xff]   ;;  %499 = vmatprep.mubr.bf16.mxu1 %v801_v35 }
   0xb   :  { %v790_v26 = vld [vmem:[%s997_s1 + $0x30] sm:$0xff]   ;;  %v794_v30 = vld [vmem:[%s997_s1 + $0x38] sm:$0xff]   ;;  %v803_v37 = vld [vmem:[%s997_s1 + $0x108] sm:$0xff]  }
   0xc   :  { %683 = vmatpush3.bf16.msra.mxu0 %v774_v10  ;;  %v791_v27 = vld [vmem:[%s997_s1 + $0xb0] sm:$0xff]   ;;  %v795_v31 = vld [vmem:[%s997_s1 + $0xb8] sm:$0xff]   ;;  %v807_v39 = vld [vmem:[%s998_s0 + $0x2c] ss:$20 sps:$4 sm:$0xff]  }
   0xd   :  { %711 = vmatpush3.bf16.msra.mxu1 %v775_v11  ;;  %684 = vmatprep.subr.bf16.mxu0 %v776_v12  ;;  %v796_v32 = vld [vmem:[%s998_s0] ss:$20 sps:$4 sm:$0xff]   ;;  %v798_v33 = vld [vmem:[%s998_s0 + $0x4] ss:$20 sps:$4 sm:$0xff]   ;;  %v799_v34 = vld [vmem:[%s998_s0 + $0x8] ss:$20 sps:$4 sm:$0xff]  }
   0xe   :  { %712 = vmatprep.subr.bf16.mxu1 %v777_v13  ;;  %450 = vmatprep.mubr.bf16.mxu0 %v798_v33  ;;  %v804_v38 = vld [vmem:[%s997_s1 + $0x110] sm:$0xff]   ;;  %v805_v41 = vld [vmem:[%s997_s1 + $0x118] sm:$0xff]   ;;  %v806_v45 = vld [vmem:[%s997_s1 + $0x120] sm:$0xff]  }
   0xf   :  { %v809_v40 = vld [vmem:[%s998_s0 + $0x34] ss:$20 sps:$4 sm:$0xff]   ;;  %v813_v43 = vld [vmem:[%s998_s0 + $0x30] ss:$20 sps:$4 sm:$0xff]   ;;  %v815_v48 = vld [vmem:[%s997_s1 + $0x138] sm:$0xff]  }
  0x10   :  { %685 = vmatpush3.bf16.msra.mxu0 %v778_v14  ;;  %v812_v42 = vld [vmem:[%s998_s0 + $0x28] ss:$20 sps:$4 sm:$0xff]   ;;  %v816_v44 = vld [vmem:[%s998_s0 + $0x10] ss:$20 sps:$4 sm:$0xff]   ;;  %v817_v49 = vld [vmem:[%s998_s0 + $0x38] ss:$20 sps:$4 sm:$0xff]  }
  0x11   :  { %713 = vmatpush3.bf16.msra.mxu1 %v779_v15  ;;  %686 = vmatprep.subr.bf16.mxu0 %v780_v16  ;;  %v811_v46 = vld [vmem:[%s997_s1 + $0x128] sm:$0xff]   ;;  %v814_v47 = vld [vmem:[%s997_s1 + $0x130] sm:$0xff]   ;;  %v608_v14 = vld [vmem:[%s999_s2] ss:$0 sm:$0xff] }
  0x12   :  { %714 = vmatprep.subr.bf16.mxu1 %v781_v17 }
  0x14   :  { %687 = vmatpush3.bf16.msra.mxu0 %v782_v18 }
  0x15   :  { %715 = vmatpush3.bf16.msra.mxu1 %v783_v19  ;;  %688 = vmatprep.subr.bf16.mxu0 %v784_v20 }
  0x16   :  { %716 = vmatprep.subr.bf16.mxu1 %v785_v21 }
  0x18   :  { %689 = vmatpush3.bf16.msra.mxu0 %v786_v22 }
  0x19   :  { %717 = vmatpush3.bf16.msra.mxu1 %v787_v23  ;;  %690 = vmatprep.subr.bf16.mxu0 %v788_v24 }
  0x1a   :  { %718 = vmatprep.subr.bf16.mxu1 %v789_v25 }
  0x1c   :  { %691 = vmatpush3.bf16.msra.mxu0 %v790_v26 }
  0x1d   :  { %719 = vmatpush3.bf16.msra.mxu1 %v791_v27  ;;  %692 = vmatprep.subr.bf16.mxu0 %v792_v28 }
  0x1e   :  { %720 = vmatprep.subr.bf16.mxu1 %v793_v29 }
  0x20   :  { %693 = vmatpush3.bf16.msra.mxu0 %v794_v30 }
  0x21   :  { %721 = vmatpush3.bf16.msra.mxu1 %v795_v31  ;;  %744 = vmatprep.subr.bf16.mxu0 %v802_v36 }
  0x23   :  { %451 = vmatmul.mubr.bf16.vlgmr.msra.gmra.mrb[0].mxu0 %v796_v32 }
  0x24   :  { %500 = vmatmul.mubr.bf16.vlgmr.msra.gmra.mrb[0].mxu1 %v799_v34  ;;  %745 = vmatpush3.bf16.msra.mxu0 %v802_v36 }
  0x25   :  { %746 = vmatprep.subr.bf16.mxu0 %v803_v37  ;;  %458 = vmatprep.mubr.bf16.mxu0 %v807_v39 }
  0x26   :  { %507 = vmatprep.mubr.bf16.mxu1 %v809_v40 }
  0x28   :  { %747 = vmatpush3.bf16.msra.mxu0 %v803_v37 }
  0x29   :  { %748 = vmatprep.subr.bf16.mxu0 %v804_v38 }
  0x2b   :  { %459 = vmatmul.mubr.bf16.gmra.mrb[4].mxu0 %v812_v42 }
  0x2c   :  { %508 = vmatmul.mubr.bf16.gmra.mrb[4].mxu1 %v813_v43  ;;  %749 = vmatpush3.bf16.msra.mxu0 %v804_v38 }
  0x2d   :  { %750 = vmatprep.subr.bf16.mxu0 %v805_v41  ;;  %760 = vmatprep.mubr.bf16.mxu0 %v816_v44 }
  0x30   :  { %751 = vmatpush3.bf16.msra.mxu0 %v805_v41 }
  0x31   :  { %752 = vmatprep.subr.bf16.mxu0 %v806_v45 }
  0x34   :  { %753 = vmatpush3.bf16.msra.mxu0 %v806_v45 }
  0x35   :  { %754 = vmatprep.subr.bf16.mxu0 %v811_v46 }
  0x38   :  { %755 = vmatpush3.bf16.msra.mxu0 %v811_v46 }
  0x39   :  { %756 = vmatprep.subr.bf16.mxu0 %v814_v47 }
  0x3c   :  { %757 = vmatpush3.bf16.msra.mxu0 %v814_v47 }
  0x3d   :  { %758 = vmatprep.subr.bf16.mxu0 %v815_v48 }
  0x40   :  { %759 = vmatpush3.bf16.msra.mxu0 %v815_v48 }
  0x43   :  { %761 = vmatmul.mubr.bf16.vlgmr.msra.gmra.mrb[8].mxu0 %v817_v49 }
  0xf6   :  { %v694_v50 = vpop.f32.mrb[0].mxu0 }
  0xf7   :  { %v722_v51 = vpop.f32.mrb[0].mxu1  ;;  %v695_v52 = vpop.f32.mrb[1].mxu0 }
  0xf8   :  { %v696_v53 = vadd.f32 %v695_v52, %v694_v50  ;;  %v723_v54 = vpop.f32.mrb[1].mxu1  ;;  %v697_v55 = vpop.f32.mrb[2].mxu0 }
  0xf9   :  { %v724_v56 = vadd.f32 %v723_v54, %v722_v51  ;;  %v725_v57 = vpop.f32.mrb[2].mxu1  ;;  %v698_v58 = vpop.f32.mrb[3].mxu0 }
  0xfa   :  { %v699_v59 = vadd.f32 %v698_v58, %v697_v55  ;;  %v726_v60 = vpop.f32.mrb[3].mxu1 }
  0xfb   :  { %v727_v61 = vadd.f32 %v726_v60, %v725_v57  ;;  %v502_v62 = vadd.f32 %v724_v56, %v696_v53 }
  0xfd   :  { %v505_v63 = vadd.f32 %v727_v61, %v699_v59 }
  0xfe   :  { %v700_v0 = vpop.f32.mrb[4].mxu0 }
  0xff   :  { %v728_v1 = vpop.f32.mrb[4].mxu1  ;;  %v701_v2 = vpop.f32.mrb[5].mxu0 }
 0x100   :  { %v702_v3 = vadd.f32 %v701_v2, %v700_v0  ;;  %v729_v4 = vpop.f32.mrb[5].mxu1  ;;  %v703_v5 = vpop.f32.mrb[6].mxu0 }
 0x101   :  { %v730_v6 = vadd.f32 %v729_v4, %v728_v1  ;;  %v731_v7 = vpop.f32.mrb[6].mxu1  ;;  %v704_v8 = vpop.f32.mrb[7].mxu0 }
 0x102   :  { %v705_v9 = vadd.f32 %v704_v8, %v703_v5  ;;  %v732_v10 = vpop.f32.mrb[7].mxu1 }
 0x103   :  { %v733_v11 = vadd.f32 %v732_v10, %v731_v7  ;;  %v510_v12 = vadd.f32 %v730_v6, %v702_v3 }
 0x105   :  { %v513_v13 = vadd.f32 %v733_v11, %v705_v9 }
 0x116   :  { %v762_v15 = vpop.f32.mrb[8].mxu0 }
 0x117   :  { %v559_v16 = vadd.f32 %v762_v15, %v510_v12  ;;  %v550_v17 = vpop.f32.mrb[9].mxu0 }
 0x118   :  { %v551_v18 = vadd.f32 %v550_v17, %v502_v62  ;;  %v763_v19 = vpop.f32.mrb[10].mxu0 }
 0x119   :  { %v567_v20 = vadd.f32 %v608_v14, %v559_v16  ;;  %v562_v21 = vadd.f32 %v763_v19, %v513_v13  ;;  %v553_v22 = vpop.f32.mrb[11].mxu0 }
 0x11a   :  { %v565_v23 = vadd.f32 %v608_v14, %v551_v18  ;;  %v554_v24 = vadd.f32 %v553_v22, %v505_v63 }
 0x11b   :  { %v568_v25 = vadd.f32 %v608_v14, %v562_v21  ;;  %v582_v27 = vmax.f32 %v567_v20, 0.0 }
 0x11c   :  { %v566_v26 = vadd.f32 %v608_v14, %v554_v24  ;;  %v580_v29 = vmax.f32 %v565_v23, 0.0 }
 0x11d   :  { %v583_v28 = vmax.f32 %v568_v25, 0.0 }
 0x11e   :  { %v581_v30 = vmax.f32 %v566_v26, 0.0 }
 0x11f   :  { %v675_v31 = vpack.c.bf16 %v583_v28, %v582_v27 }
 0x120   :  { %v670_v32 = vpack.c.bf16 %v581_v30, %v580_v29 }
 0x121   :  { %677 = vst [vmem:[%s1000_s3 + $0x8] sm:$0xff] %v675_v31  }
 0x122   :  { %671 = vst [vmem:[%s1000_s3] sm:$0xff] %v670_v32  }

// kernel: _lambda_.26
= control target key start
LH: loop header
LB: loop body
LE: loop exit
PB: predicated region body
PF: predicated region fallthrough
CT: control target
= control target key end

     0   :  { %s331_s1 = inlined_call_operand.vmem [shape: bf16[128,128], index: 1, kind: input, shape index: {}]   ;;  %s332_s0 = inlined_call_operand.vmem [shape: bf16[32,128], index: 0, kind: input, shape index: {}]   ;;  %s333_s2 = inlined_call_operand.vmem [shape: f32[1,128], index: 2, kind: input, shape index: {}]   ;;  %s334_s3 = inlined_call_operand.vmem [shape: bf16[32,128], index: 3, kind: output, shape index: {}]  }
   0x1   :  { %v262_v0 = vld [vmem:[%s331_s1] sm:$0xff]   ;;  %v263_v1 = vld [vmem:[%s331_s1 + $0x8] sm:$0xff]   ;;  %v264_v2 = vld [vmem:[%s331_s1 + $0x10] sm:$0xff]  }
   0x2   :  { %242 = vmatprep.subr.bf16.mxu0 %v262_v0  ;;  %v265_v3 = vld [vmem:[%s331_s1 + $0x18] sm:$0xff]   ;;  %v270_v4 = vld [vmem:[%s332_s0] sm:$0xff]   ;;  %v267_v6 = vld [vmem:[%s331_s1 + $0x28] sm:$0xff]  }
   0x3   :  { %243 = vmatpush3.bf16.msra.mxu0 %v262_v0  ;;  %258 = vmatprep.mubr.bf16.mxu0 %v270_v4  ;;  %v266_v5 = vld [vmem:[%s331_s1 + $0x20] sm:$0xff]   ;;  %v268_v7 = vld [vmem:[%s331_s1 + $0x30] sm:$0xff]   ;;  %v269_v8 = vld [vmem:[%s331_s1 + $0x38] sm:$0xff]  }
   0x4   :  { %244 = vmatprep.subr.bf16.mxu0 %v263_v1  ;;  %v271_v9 = vld [vmem:[%s332_s0 + $0x8] sm:$0xff]   ;;  %v202_v10 = vld [vmem:[%s333_s2] ss:$0 sm:$0xff] }
   0x7   :  { %245 = vmatpush3.bf16.msra.mxu0 %v263_v1 }
   0x8   :  { %246 = vmatprep.subr.bf16.mxu0 %v264_v2 }
   0xb   :  { %247 = vmatpush3.bf16.msra.mxu0 %v264_v2 }
   0xc   :  { %248 = vmatprep.subr.bf16.mxu0 %v265_v3 }
   0xf   :  { %249 = vmatpush3.bf16.msra.mxu0 %v265_v3 }
  0x10   :  { %250 = vmatprep.subr.bf16.mxu0 %v266_v5 }
  0x13   :  { %251 = vmatpush3.bf16.msra.mxu0 %v266_v5 }
  0x14   :  { %252 = vmatprep.subr.bf16.mxu0 %v267_v6 }
  0x17   :  { %253 = vmatpush3.bf16.msra.mxu0 %v267_v6 }
  0x18   :  { %254 = vmatprep.subr.bf16.mxu0 %v268_v7 }
  0x1b   :  { %255 = vmatpush3.bf16.msra.mxu0 %v268_v7 }
  0x1c   :  { %256 = vmatprep.subr.bf16.mxu0 %v269_v8 }
  0x1f   :  { %257 = vmatpush3.bf16.msra.mxu0 %v269_v8 }
  0x22   :  { %259 = vmatmul.mubr.bf16.vlgmr.msra.gmra.mrb[0].mxu0 %v271_v9 }
  0xf5   :  { %v260_v11 = vpop.f32.mrb[0].mxu0 }
  0xf6   :  { %v148_v12 = vpop.f32.mrb[1].mxu0  ;;  %v165_v14 = vadd.f32 %v260_v11, %v202_v10 }
  0xf7   :  { %v261_v13 = vpop.f32.mrb[2].mxu0  ;;  %v163_v17 = vadd.f32 %v202_v10, %v148_v12 }
  0xf8   :  { %v166_v15 = vadd.f32 %v261_v13, %v202_v10  ;;  %v151_v16 = vpop.f32.mrb[3].mxu0 }
  0xf9   :  { %v164_v18 = vadd.f32 %v202_v10, %v151_v16 }
  0xfa   :  { %v229_v19 = vpack.c.bf16 %v166_v15, %v165_v14 }
  0xfb   :  { %v224_v20 = vpack.c.bf16 %v164_v18, %v163_v17 }
  0xfc   :  { %231 = vst [vmem:[%s334_s3 + $0x8] sm:$0xff] %v229_v19  }
  0xfd   :  { %225 = vst [vmem:[%s334_s3] sm:$0xff] %v224_v20  }

// kernel: _lambda_.27
= control target key start
LH: loop header
LB: loop body
LE: loop exit
PB: predicated region body
PF: predicated region fallthrough
CT: control target
= control target key end

     0   :  { %s1694_s1 = inlined_call_operand.vmem [shape: bf16[1152,128], index: 1, kind: input, shape index: {}]   ;;  %s1695_s0 = inlined_call_operand.vmem [shape: bf16[32,1152], index: 0, kind: input, shape index: {}]   ;;  %s1696_s3 = inlined_call_operand.vmem [shape: bf16[32,128], index: 3, kind: input, shape index: {}]   ;;  %s1697_s2 = inlined_call_operand.vmem [shape: f32[1,128], index: 2, kind: input, shape index: {}]   ;;  %s1698_s4 = inlined_call_operand.vmem [shape: bf16[32,128], index: 4, kind: output, shape index: {}]  }
   0x1   :  { %v1286_v0 = vld [vmem:[%s1694_s1 + $0x40] sm:$0xff]   ;;  %v1290_v4 = vld [vmem:[%s1694_s1 + $0x48] sm:$0xff]   ;;  %v1294_v8 = vld [vmem:[%s1694_s1 + $0x50] sm:$0xff]  }
   0x2   :  { %v1287_v1 = vld [vmem:[%s1694_s1 + $0xc0] sm:$0xff]   ;;  %1144 = vmatprep.subr.bf16.mxu0 %v1286_v0  ;;  %v1291_v5 = vld [vmem:[%s1694_s1 + $0xc8] sm:$0xff]   ;;  %v1295_v9 = vld [vmem:[%s1694_s1 + $0xd0] sm:$0xff]  }
   0x3   :  { %v1288_v2 = vld [vmem:[%s1694_s1] sm:$0xff]   ;;  %1172 = vmatprep.subr.bf16.mxu1 %v1287_v1  ;;  %v1292_v6 = vld [vmem:[%s1694_s1 + $0x8] sm:$0xff]   ;;  %v1296_v10 = vld [vmem:[%s1694_s1 + $0x10] sm:$0xff]  }
   0x4   :  { %v1289_v3 = vld [vmem:[%s1694_s1 + $0x80] sm:$0xff]   ;;  %1145 = vmatpush3.bf16.msra.mxu0 %v1288_v2  ;;  %v1293_v7 = vld [vmem:[%s1694_s1 + $0x88] sm:$0xff]   ;;  %v1297_v11 = vld [vmem:[%s1694_s1 + $0x90] sm:$0xff]  }
   0x5   :  { %1173 = vmatpush3.bf16.msra.mxu1 %v1289_v3  ;;  %1146 = vmatprep.subr.bf16.mxu0 %v1290_v4  ;;  %v1298_v12 = vld [vmem:[%s1694_s1 + $0x58] sm:$0xff]   ;;  %v1302_v16 = vld [vmem:[%s1694_s1 + $0x60] sm:$0xff]   ;;  %v1306_v20 = vld [vmem:[%s1694_s1 + $0x68] sm:$0xff]  }
   0x6   :  { %1174 = vmatprep.subr.bf16.mxu1 %v1291_v5  ;;  %v1299_v13 = vld [vmem:[%s1694_s1 + $0xd8] sm:$0xff]   ;;  %v1303_v17 = vld [vmem:[%s1694_s1 + $0xe0] sm:$0xff]   ;;  %v1307_v21 = vld [vmem:[%s1694_s1 + $0xe8] sm:$0xff]  }
   0x7   :  { %v1300_v14 = vld [vmem:[%s1694_s1 + $0x18] sm:$0xff]   ;;  %v1304_v18 = vld [vmem:[%s1694_s1 + $0x20] sm:$0xff]   ;;  %v1308_v22 = vld [vmem:[%s1694_s1 + $0x28] sm:$0xff]  }
   0x8   :  { %1147 = vmatpush3.bf16.msra.mxu0 %v1292_v6  ;;  %v1301_v15 = vld [vmem:[%s1694_s1 + $0x98] sm:$0xff]   ;;  %v1305_v19 = vld [vmem:[%s1694_s1 + $0xa0] sm:$0xff]   ;;  %v1309_v23 = vld [vmem:[%s1694_s1 + $0xa8] sm:$0xff]  }
   0x9   :  { %1175 = vmatpush3.bf16.msra.mxu1 %v1293_v7  ;;  %1148 = vmatprep.subr.bf16.mxu0 %v1294_v8  ;;  %v1310_v24 = vld [vmem:[%s1694_s1 + $0x70] sm:$0xff]   ;;  %v1314_v28 = vld [vmem:[%s1694_s1 + $0x78] sm:$0xff]   ;;  %v1318_v32 = vld [vmem:[%s1695_s0] ss:$36 sps:$4 sm:$0xff]  }
   0xa   :  { %1176 = vmatprep.subr.bf16.mxu1 %v1295_v9  ;;  %v1311_v25 = vld [vmem:[%s1694_s1 + $0xf0] sm:$0xff]   ;;  %v1315_v29 = vld [vmem:[%s1694_s1 + $0xf8] sm:$0xff]   ;;  %v1320_v33 = vld [vmem:[%s1695_s0 + $0x4] ss:$36 sps:$4 sm:$0xff]  }
   0xb   :  { %v1312_v26 = vld [vmem:[%s1694_s1 + $0x30] sm:$0xff]   ;;  %v1316_v30 = vld [vmem:[%s1694_s1 + $0x38] sm:$0xff]   ;;  %v1321_v34 = vld [vmem:[%s1695_s0 + $0x8] ss:$36 sps:$4 sm:$0xff]   ;;  %757 = vmatprep.mubr.bf16.mxu0 %v1320_v33 }
   0xc   :  { %1149 = vmatpush3.bf16.msra.mxu0 %v1296_v10  ;;  %v1313_v27 = vld [vmem:[%s1694_s1 + $0xb0] sm:$0xff]   ;;  %v1317_v31 = vld [vmem:[%s1694_s1 + $0xb8] sm:$0xff]   ;;  %v1324_v36 = vld [vmem:[%s1694_s1 + $0x140] sm:$0xff]  }
   0xd   :  { %1177 = vmatpush3.bf16.msra.mxu1 %v1297_v11  ;;  %1150 = vmatprep.subr.bf16.mxu0 %v1298_v12  ;;  %v1323_v35 = vld [vmem:[%s1695_s0 + $0xc] ss:$36 sps:$4 sm:$0xff]   ;;  %v1325_v37 = vld [vmem:[%s1694_s1 + $0x100] sm:$0xff]   ;;  %v1336_v48 = vld [vmem:[%s1694_s1 + $0x158] sm:$0xff]  }
   0xe   :  { %1178 = vmatprep.subr.bf16.mxu1 %v1299_v13  ;;  %806 = vmatprep.mubr.bf16.mxu1 %v1323_v35  ;;  %v1326_v38 = vld [vmem:[%s1694_s1 + $0x1c0] sm:$0xff]   ;;  %v1328_v40 = vld [vmem:[%s1694_s1 + $0x148] sm:$0xff]   ;;  %v1332_v44 = vld [vmem:[%s1694_s1 + $0x150] sm:$0xff]  }
   0xf   :  { %v1327_v39 = vld [vmem:[%s1694_s1 + $0x180] sm:$0xff]   ;;  %v1329_v41 = vld [vmem:[%s1694_s1 + $0x108] sm:$0xff]   ;;  %v1333_v45 = vld [vmem:[%s1694_s1 + $0x110] sm:$0xff]  }
  0x10   :  { %1151 = vmatpush3.bf16.msra.mxu0 %v1300_v14  ;;  %v1330_v42 = vld [vmem:[%s1694_s1 + $0x1c8] sm:$0xff]   ;;  %v1334_v46 = vld [vmem:[%s1694_s1 + $0x1d0] sm:$0xff]   ;;  %v1337_v49 = vld [vmem:[%s1694_s1 + $0x118] sm:$0xff]  }
  0x11   :  { %1179 = vmatpush3.bf16.msra.mxu1 %v1301_v15  ;;  %1152 = vmatprep.subr.bf16.mxu0 %v1302_v16  ;;  %v1331_v43 = vld [vmem:[%s1694_s1 + $0x188] sm:$0xff]   ;;  %v1335_v47 = vld [vmem:[%s1694_s1 + $0x190] sm:$0xff]   ;;  %v1338_v50 = vld [vmem:[%s1694_s1 + $0x1d8] sm:$0xff]  }
  0x12   :  { %1180 = vmatprep.subr.bf16.mxu1 %v1303_v17  ;;  %v1339_v51 = vld [vmem:[%s1694_s1 + $0x198] sm:$0xff]   ;;  %v1340_v52 = vld [vmem:[%s1694_s1 + $0x160] sm:$0xff]   ;;  %v1344_v56 = vld [vmem:[%s1694_s1 + $0x168] sm:$0xff]  }
  0x13   :  { %v1341_v53 = vld [vmem:[%s1694_s1 + $0x120] sm:$0xff]   ;;  %v1345_v57 = vld [vmem:[%s1695_s0 + $0x4c] ss:$36 sps:$4 sm:$0xff]   ;;  %v1347_v58 = vld [vmem:[%s1695_s0 + $0x54] ss:$36 sps:$4 sm:$0xff]  }
  0x14   :  { %1153 = vmatpush3.bf16.msra.mxu0 %v1304_v18  ;;  %v1342_v54 = vld [vmem:[%s1694_s1 + $0x1e0] sm:$0xff]   ;;  %v1349_v59 = vld [vmem:[%s1694_s1 + $0x128] sm:$0xff]   ;;  %v1351_v61 = vld [vmem:[%s1695_s0 + $0x50] ss:$36 sps:$4 sm:$0xff]  }
  0x15   :  { %1181 = vmatpush3.bf16.msra.mxu1 %v1305_v19  ;;  %1154 = vmatprep.subr.bf16.mxu0 %v1306_v20  ;;  %v1343_v55 = vld [vmem:[%s1694_s1 + $0x1a0] sm:$0xff]   ;;  %v1350_v60 = vld [vmem:[%s1695_s0 + $0x48] ss:$36 sps:$4 sm:$0xff]   ;;  %v1354_v0 = vld [vmem:[%s1694_s1 + $0x170] sm:$0xff]  }
  0x16   :  { %1182 = vmatprep.subr.bf16.mxu1 %v1307_v21  ;;  %v1352_v62 = vld [vmem:[%s1694_s1 + $0x1e8] sm:$0xff]   ;;  %v1355_v1 = vld [vmem:[%s1694_s1 + $0x130] sm:$0xff]   ;;  %v1358_v4 = vld [vmem:[%s1694_s1 + $0x178] sm:$0xff]  }
  0x17   :  { %v1353_v63 = vld [vmem:[%s1694_s1 + $0x1a8] sm:$0xff]   ;;  %v1356_v2 = vld [vmem:[%s1694_s1 + $0x1f0] sm:$0xff]   ;;  %v1359_v5 = vld [vmem:[%s1694_s1 + $0x138] sm:$0xff]  }
  0x18   :  { %1155 = vmatpush3.bf16.msra.mxu0 %v1308_v22  ;;  %v1357_v3 = vld [vmem:[%s1694_s1 + $0x1b0] sm:$0xff]   ;;  %v1360_v6 = vld [vmem:[%s1694_s1 + $0x1f8] sm:$0xff]   ;;  %v1365_v10 = vld [vmem:[%s1694_s1 + $0x200] sm:$0xff]  }
  0x19   :  { %1183 = vmatpush3.bf16.msra.mxu1 %v1309_v23  ;;  %1156 = vmatprep.subr.bf16.mxu0 %v1310_v24  ;;  %v1361_v7 = vld [vmem:[%s1695_s0 + $0x10] ss:$36 sps:$4 sm:$0xff]   ;;  %v1364_v9 = vld [vmem:[%s1694_s1 + $0x1b8] sm:$0xff]   ;;  %v1369_v13 = vld [vmem:[%s1694_s1 + $0x208] sm:$0xff]  }
  0x1a   :  { %1184 = vmatprep.subr.bf16.mxu1 %v1311_v25  ;;  %v1363_v8 = vld [vmem:[%s1695_s0 + $0x14] ss:$36 sps:$4 sm:$0xff]   ;;  %v1368_v12 = vld [vmem:[%s1695_s0 + $0x1c] ss:$36 sps:$4 sm:$0xff]   ;;  %v1374_v17 = vld [vmem:[%s1695_s0 + $0x64] ss:$36 sps:$4 sm:$0xff]  }
  0x1b   :  { %v1366_v11 = vld [vmem:[%s1695_s0 + $0x18] ss:$36 sps:$4 sm:$0xff]   ;;  %v1373_v16 = vld [vmem:[%s1694_s1 + $0x210] sm:$0xff]   ;;  %v1376_v18 = vld [vmem:[%s1695_s0 + $0x60] ss:$36 sps:$4 sm:$0xff]  }
  0x1c   :  { %1157 = vmatpush3.bf16.msra.mxu0 %v1312_v26  ;;  %v1370_v14 = vld [vmem:[%s1695_s0 + $0x5c] ss:$36 sps:$4 sm:$0xff]   ;;  %v1379_v22 = vld [vmem:[%s1694_s1 + $0x228] sm:$0xff]   ;;  %v1380_v23 = vld [vmem:[%s1694_s1 + $0x230] sm:$0xff]  }
  0x1d   :  { %1185 = vmatpush3.bf16.msra.mxu1 %v1313_v27  ;;  %1158 = vmatprep.subr.bf16.mxu0 %v1314_v28  ;;  %v1372_v15 = vld [vmem:[%s1695_s0 + $0x58] ss:$36 sps:$4 sm:$0xff]   ;;  %v1378_v20 = vld [vmem:[%s1694_s1 + $0x220] sm:$0xff]   ;;  %v1383_v25 = vld [vmem:[%s1695_s0 + $0x68] ss:$36 sps:$4 sm:$0xff]  }
  0x1e   :  { %1186 = vmatprep.subr.bf16.mxu1 %v1315_v29  ;;  %v1377_v19 = vld [vmem:[%s1694_s1 + $0x218] sm:$0xff]   ;;  %v1382_v21 = vld [vmem:[%s1695_s0 + $0x20] ss:$36 sps:$4 sm:$0xff]  }
  0x1f   :  { %v1381_v24 = vld [vmem:[%s1694_s1 + $0x238] sm:$0xff]  }
  0x20   :  { %1159 = vmatpush3.bf16.msra.mxu0 %v1316_v30 }
  0x21   :  { %1187 = vmatpush3.bf16.msra.mxu1 %v1317_v31  ;;  %1200 = vmatprep.subr.bf16.mxu0 %v1324_v36 }
  0x22   :  { %1228 = vmatprep.subr.bf16.mxu1 %v1326_v38 }
  0x23   :  { %758 = vmatmul.mubr.bf16.vlgmr.msra.gmra.mrb[0].mxu0 %v1318_v32 }
  0x24   :  { %807 = vmatmul.mubr.bf16.vlgmr.msra.gmra.mrb[0].mxu1 %v1321_v34  ;;  %1201 = vmatpush3.bf16.msra.mxu0 %v1325_v37 }
  0x25   :  { %1229 = vmatpush3.bf16.msra.mxu1 %v1327_v39  ;;  %1202 = vmatprep.subr.bf16.mxu0 %v1328_v40 }
  0x26   :  { %1230 = vmatprep.subr.bf16.mxu1 %v1330_v42  ;;  %765 = vmatprep.mubr.bf16.mxu0 %v1345_v57 }
  0x27   :  { %814 = vmatprep.mubr.bf16.mxu1 %v1347_v58 }
  0x28   :  { %1203 = vmatpush3.bf16.msra.mxu0 %v1329_v41 }
  0x29   :  { %1231 = vmatpush3.bf16.msra.mxu1 %v1331_v43  ;;  %1204 = vmatprep.subr.bf16.mxu0 %v1332_v44 }
  0x2a   :  { %1232 = vmatprep.subr.bf16.mxu1 %v1334_v46 }
  0x2b   :  { %766 = vmatmul.mubr.bf16.gmra.mrb[4].mxu0 %v1350_v60 }
  0x2c   :  { %1205 = vmatpush3.bf16.msra.mxu0 %v1333_v45  ;;  %815 = vmatmul.mubr.bf16.gmra.mrb[4].mxu1 %v1351_v61 }
  0x2d   :  { %1233 = vmatpush3.bf16.msra.mxu1 %v1335_v47  ;;  %1206 = vmatprep.subr.bf16.mxu0 %v1336_v48 }
  0x2e   :  { %1234 = vmatprep.subr.bf16.mxu1 %v1338_v50  ;;  %855 = vmatprep.mubr.bf16.mxu0 %v1363_v8 }
  0x2f   :  { %904 = vmatprep.mubr.bf16.mxu1 %v1368_v12 }
  0x30   :  { %1207 = vmatpush3.bf16.msra.mxu0 %v1337_v49 }
  0x31   :  { %1235 = vmatpush3.bf16.msra.mxu1 %v1339_v51  ;;  %1208 = vmatprep.subr.bf16.mxu0 %v1340_v52 }
  0x32   :  { %1236 = vmatprep.subr.bf16.mxu1 %v1342_v54 }
  0x34   :  { %1209 = vmatpush3.bf16.msra.mxu0 %v1341_v53 }
  0x35   :  { %1237 = vmatpush3.bf16.msra.mxu1 %v1343_v55  ;;  %1210 = vmatprep.subr.bf16.mxu0 %v1344_v56 }
  0x36   :  { %1238 = vmatprep.subr.bf16.mxu1 %v1352_v62 }
  0x38   :  { %1211 = vmatpush3.bf16.msra.mxu0 %v1349_v59 }
  0x39   :  { %1239 = vmatpush3.bf16.msra.mxu1 %v1353_v63  ;;  %1212 = vmatprep.subr.bf16.mxu0 %v1354_v0 }
  0x3a   :  { %1240 = vmatprep.subr.bf16.mxu1 %v1356_v2 }
  0x3c   :  { %1213 = vmatpush3.bf16.msra.mxu0 %v1355_v1 }
  0x3d   :  { %1241 = vmatpush3.bf16.msra.mxu1 %v1357_v3  ;;  %1214 = vmatprep.subr.bf16.mxu0 %v1358_v4 }
  0x3e   :  { %1242 = vmatprep.subr.bf16.mxu1 %v1360_v6 }
  0x40   :  { %1215 = vmatpush3.bf16.msra.mxu0 %v1359_v5 }
  0x41   :  { %1243 = vmatpush3.bf16.msra.mxu1 %v1364_v9  ;;  %1266 = vmatprep.subr.bf16.mxu0 %v1365_v10 }
  0x43   :  { %856 = vmatmul.mubr.bf16.vlgmr.msra.gmra.mrb[8].mxu0 %v1361_v7 }
  0x44   :  { %1267 = vmatpush3.bf16.msra.mxu0 %v1365_v10  ;;  %905 = vmatmul.mubr.bf16.vlgmr.msra.gmra.mrb[8].mxu1 %v1366_v11 }
  0x45   :  { %1268 = vmatprep.subr.bf16.mxu0 %v1369_v13  ;;  %863 = vmatprep.mubr.bf16.mxu0 %v1370_v14 }
  0x46   :  { %912 = vmatprep.mubr.bf16.mxu1 %v1374_v17 }
  0x48   :  { %1269 = vmatpush3.bf16.msra.mxu0 %v1369_v13 }
  0x49   :  { %1270 = vmatprep.subr.bf16.mxu0 %v1373_v16 }
  0x4b   :  { %864 = vmatmul.mubr.bf16.gmra.mrb[12].mxu0 %v1372_v15 }
  0x4c   :  { %1271 = vmatpush3.bf16.msra.mxu0 %v1373_v16  ;;  %913 = vmatmul.mubr.bf16.gmra.mrb[12].mxu1 %v1376_v18 }
  0x4d   :  { %1272 = vmatprep.subr.bf16.mxu0 %v1377_v19  ;;  %1282 = vmatprep.mubr.bf16.mxu0 %v1382_v21 }
  0x50   :  { %1273 = vmatpush3.bf16.msra.mxu0 %v1377_v19 }
  0x51   :  { %1274 = vmatprep.subr.bf16.mxu0 %v1378_v20 }
  0x54   :  { %1275 = vmatpush3.bf16.msra.mxu0 %v1378_v20 }
  0x55   :  { %1276 = vmatprep.subr.bf16.mxu0 %v1379_v22 }
  0x58   :  { %1277 = vmatpush3.bf16.msra.mxu0 %v1379_v22  ;;  %v1142_v22 = vld [vmem:[%s1696_s3 + $0x8] sm:$0xff]  }
  0x59   :  { %1278 = vmatprep.subr.bf16.mxu0 %v1380_v23 }
  0x5c   :  { %1279 = vmatpush3.bf16.msra.mxu0 %v1380_v23  ;;  %v1125_v23 = vld [vmem:[%s1696_s3] sm:$0xff]  }
  0x5d   :  { %1280 = vmatprep.subr.bf16.mxu0 %v1381_v24 }
  0x60   :  { %1281 = vmatpush3.bf16.msra.mxu0 %v1381_v24  ;;  %v1025_v24 = vld [vmem:[%s1697_s2] ss:$0 sm:$0xff] }
  0x63   :  { %1283 = vmatmul.mubr.bf16.vlgmr.msra.gmra.mrb[16].mxu0 %v1383_v25 }
  0xf6   :  { %v1160_v26 = vpop.f32.mrb[0].mxu0 }
  0xf7   :  { %v1188_v27 = vpop.f32.mrb[0].mxu1  ;;  %v1161_v28 = vpop.f32.mrb[1].mxu0 }
  0xf8   :  { %v1162_v29 = vadd.f32 %v1161_v28, %v1160_v26  ;;  %v1189_v30 = vpop.f32.mrb[1].mxu1  ;;  %v1163_v31 = vpop.f32.mrb[2].mxu0 }
  0xf9   :  { %v1190_v32 = vadd.f32 %v1189_v30, %v1188_v27  ;;  %v1191_v33 = vpop.f32.mrb[2].mxu1  ;;  %v1164_v34 = vpop.f32.mrb[3].mxu0  ;;  %v1130_v27 = vunpack.c.l.bf16 %v1142_v22  ;;  %v1126_v30 = vunpack.c.l.bf16 %v1125_v23 }
  0xfa   :  { %v1165_v35 = vadd.f32 %v1164_v34, %v1163_v31  ;;  %v1192_v36 = vpop.f32.mrb[3].mxu1  ;;  %v1131_v34 = vunpack.c.h.bf16 %v1142_v22 }
  0xfb   :  { %v809_v37 = vadd.f32 %v1190_v32, %v1162_v29  ;;  %v1193_v38 = vadd.f32 %v1192_v36, %v1191_v33 }
  0xfd   :  { %v812_v39 = vadd.f32 %v1193_v38, %v1165_v35  ;;  %v1127_v38 = vunpack.c.h.bf16 %v1125_v23 }
  0xfe   :  { %v1166_v40 = vpop.f32.mrb[4].mxu0 }
  0xff   :  { %v1194_v41 = vpop.f32.mrb[4].mxu1  ;;  %v1167_v42 = vpop.f32.mrb[5].mxu0 }
 0x100   :  { %v1195_v43 = vpop.f32.mrb[5].mxu1  ;;  %v1168_v44 = vadd.f32 %v1167_v42, %v1166_v40  ;;  %v1169_v46 = vpop.f32.mrb[6].mxu0 }
 0x101   :  { %v1196_v45 = vadd.f32 %v1195_v43, %v1194_v41  ;;  %v1197_v47 = vpop.f32.mrb[6].mxu1  ;;  %v1170_v48 = vpop.f32.mrb[7].mxu0 }
 0x102   :  { %v1198_v49 = vpop.f32.mrb[7].mxu1  ;;  %v1171_v51 = vadd.f32 %v1170_v48, %v1169_v46 }
 0x103   :  { %v817_v50 = vadd.f32 %v1196_v45, %v1168_v44  ;;  %v1199_v52 = vadd.f32 %v1198_v49, %v1197_v47 }
 0x105   :  { %v820_v53 = vadd.f32 %v1199_v52, %v1171_v51 }
 0x116   :  { %v1216_v54 = vpop.f32.mrb[8].mxu0 }
 0x117   :  { %v1217_v55 = vpop.f32.mrb[9].mxu0  ;;  %v1244_v58 = vpop.f32.mrb[8].mxu1 }
 0x118   :  { %v1218_v56 = vadd.f32 %v1217_v55, %v1216_v54  ;;  %v1219_v57 = vpop.f32.mrb[10].mxu0  ;;  %v1245_v62 = vpop.f32.mrb[9].mxu1 }
 0x119   :  { %v1220_v59 = vpop.f32.mrb[11].mxu0  ;;  %v1246_v63 = vadd.f32 %v1245_v62, %v1244_v58  ;;  %v1247_v0 = vpop.f32.mrb[10].mxu1 }
 0x11a   :  { %v858_v60 = vadd.f32 %v1218_v56, %v809_v37  ;;  %v1221_v61 = vadd.f32 %v1220_v59, %v1219_v57  ;;  %v1248_v2 = vpop.f32.mrb[11].mxu1 }
 0x11b   :  { %v1249_v3 = vadd.f32 %v1248_v2, %v1247_v0 }
 0x11c   :  { %v861_v1 = vadd.f32 %v1221_v61, %v812_v39  ;;  %v907_v4 = vadd.f32 %v1246_v63, %v858_v60 }
 0x11e   :  { %v1222_v5 = vpop.f32.mrb[12].mxu0  ;;  %v910_v7 = vadd.f32 %v1249_v3, %v861_v1 }
 0x11f   :  { %v1223_v6 = vpop.f32.mrb[13].mxu0  ;;  %v1250_v10 = vpop.f32.mrb[12].mxu1 }
 0x120   :  { %v1224_v8 = vadd.f32 %v1223_v6, %v1222_v5  ;;  %v1225_v9 = vpop.f32.mrb[14].mxu0  ;;  %v1251_v14 = vpop.f32.mrb[13].mxu1 }
 0x121   :  { %v1226_v11 = vpop.f32.mrb[15].mxu0  ;;  %v1252_v15 = vadd.f32 %v1251_v14, %v1250_v10  ;;  %v1253_v16 = vpop.f32.mrb[14].mxu1 }
 0x122   :  { %v866_v12 = vadd.f32 %v1224_v8, %v817_v50  ;;  %v1227_v13 = vadd.f32 %v1226_v11, %v1225_v9  ;;  %v1254_v18 = vpop.f32.mrb[15].mxu1 }
 0x123   :  { %v1255_v19 = vadd.f32 %v1254_v18, %v1253_v16 }
 0x124   :  { %v869_v17 = vadd.f32 %v1227_v13, %v820_v53  ;;  %v915_v20 = vadd.f32 %v1252_v15, %v866_v12 }
 0x126   :  { %v918_v21 = vadd.f32 %v1255_v19, %v869_v17 }
 0x136   :  { %v1284_v25 = vpop.f32.mrb[16].mxu0 }
 0x137   :  { %v964_v26 = vadd.f32 %v1284_v25, %v915_v20  ;;  %v955_v28 = vpop.f32.mrb[17].mxu0 }
 0x138   :  { %v956_v29 = vadd.f32 %v955_v28, %v907_v4  ;;  %v1285_v31 = vpop.f32.mrb[18].mxu0 }
 0x139   :  { %v972_v32 = vadd.f32 %v1025_v24, %v964_v26  ;;  %v967_v33 = vadd.f32 %v1285_v31, %v918_v21  ;;  %v958_v35 = vpop.f32.mrb[19].mxu0 }
 0x13a   :  { %v970_v36 = vadd.f32 %v1025_v24, %v956_v29  ;;  %v959_v37 = vadd.f32 %v958_v35, %v910_v7 }
 0x13b   :  { %v995_v39 = vadd.f32 %v1130_v27, %v972_v32  ;;  %v973_v40 = vadd.f32 %v1025_v24, %v967_v33 }
 0x13c   :  { %v993_v41 = vadd.f32 %v1126_v30, %v970_v36  ;;  %v971_v42 = vadd.f32 %v1025_v24, %v959_v37 }
 0x13d   :  { %v996_v43 = vadd.f32 %v1131_v34, %v973_v40  ;;  %v999_v45 = vmax.f32 %v995_v39, 0.0 }
 0x13e   :  { %v994_v44 = vadd.f32 %v1127_v38, %v971_v42  ;;  %v997_v47 = vmax.f32 %v993_v41, 0.0 }
 0x13f   :  { %v1000_v46 = vmax.f32 %v996_v43, 0.0 }
 0x140   :  { %v998_v48 = vmax.f32 %v994_v44, 0.0 }
 0x141   :  { %v1140_v49 = vpack.c.bf16 %v1000_v46, %v999_v45 }
 0x142   :  { %v1135_v50 = vpack.c.bf16 %v998_v48, %v997_v47 }
 0x143   :  { %1143 = vst [vmem:[%s1698_s4 + $0x8] sm:$0xff] %v1140_v49  }
 0x144   :  { %1136 = vst [vmem:[%s1698_s4] sm:$0xff] %v1135_v50  }

// kernel: _lambda_.28
= control target key start
LH: loop header
LB: loop body
LE: loop exit
PB: predicated region body
PF: predicated region fallthrough
CT: control target
= control target key end

     0   :  { %s1659_s1 = inlined_call_operand.vmem [shape: bf16[1152,128], index: 1, kind: input, shape index: {}]   ;;  %s1660_s0 = inlined_call_operand.vmem [shape: bf16[32,1152], index: 0, kind: input, shape index: {}]   ;;  %s1661_s2 = inlined_call_operand.vmem [shape: f32[1,128], index: 2, kind: input, shape index: {}]   ;;  %s1662_s3 = inlined_call_operand.vmem [shape: bf16[32,128], index: 3, kind: output, shape index: {}]  }
   0x1   :  { %v1262_v0 = vld [vmem:[%s1659_s1 + $0x40] sm:$0xff]   ;;  %v1266_v4 = vld [vmem:[%s1659_s1 + $0x48] sm:$0xff]   ;;  %v1270_v8 = vld [vmem:[%s1659_s1 + $0x50] sm:$0xff]  }
   0x2   :  { %v1263_v1 = vld [vmem:[%s1659_s1 + $0xc0] sm:$0xff]   ;;  %1120 = vmatprep.subr.bf16.mxu0 %v1262_v0  ;;  %v1267_v5 = vld [vmem:[%s1659_s1 + $0xc8] sm:$0xff]   ;;  %v1271_v9 = vld [vmem:[%s1659_s1 + $0xd0] sm:$0xff]  }
   0x3   :  { %v1264_v2 = vld [vmem:[%s1659_s1] sm:$0xff]   ;;  %1148 = vmatprep.subr.bf16.mxu1 %v1263_v1  ;;  %v1268_v6 = vld [vmem:[%s1659_s1 + $0x8] sm:$0xff]   ;;  %v1272_v10 = vld [vmem:[%s1659_s1 + $0x10] sm:$0xff]  }
   0x4   :  { %v1265_v3 = vld [vmem:[%s1659_s1 + $0x80] sm:$0xff]   ;;  %1121 = vmatpush3.bf16.msra.mxu0 %v1264_v2  ;;  %v1269_v7 = vld [vmem:[%s1659_s1 + $0x88] sm:$0xff]   ;;  %v1273_v11 = vld [vmem:[%s1659_s1 + $0x90] sm:$0xff]  }
   0x5   :  { %1149 = vmatpush3.bf16.msra.mxu1 %v1265_v3  ;;  %1122 = vmatprep.subr.bf16.mxu0 %v1266_v4  ;;  %v1274_v12 = vld [vmem:[%s1659_s1 + $0x58] sm:$0xff]   ;;  %v1278_v16 = vld [vmem:[%s1659_s1 + $0x60] sm:$0xff]   ;;  %v1282_v20 = vld [vmem:[%s1659_s1 + $0x68] sm:$0xff]  }
   0x6   :  { %1150 = vmatprep.subr.bf16.mxu1 %v1267_v5  ;;  %v1275_v13 = vld [vmem:[%s1659_s1 + $0xd8] sm:$0xff]   ;;  %v1279_v17 = vld [vmem:[%s1659_s1 + $0xe0] sm:$0xff]   ;;  %v1283_v21 = vld [vmem:[%s1659_s1 + $0xe8] sm:$0xff]  }
   0x7   :  { %v1276_v14 = vld [vmem:[%s1659_s1 + $0x18] sm:$0xff]   ;;  %v1280_v18 = vld [vmem:[%s1659_s1 + $0x20] sm:$0xff]   ;;  %v1284_v22 = vld [vmem:[%s1659_s1 + $0x28] sm:$0xff]  }
   0x8   :  { %1123 = vmatpush3.bf16.msra.mxu0 %v1268_v6  ;;  %v1277_v15 = vld [vmem:[%s1659_s1 + $0x98] sm:$0xff]   ;;  %v1281_v19 = vld [vmem:[%s1659_s1 + $0xa0] sm:$0xff]   ;;  %v1285_v23 = vld [vmem:[%s1659_s1 + $0xa8] sm:$0xff]  }
   0x9   :  { %1151 = vmatpush3.bf16.msra.mxu1 %v1269_v7  ;;  %1124 = vmatprep.subr.bf16.mxu0 %v1270_v8  ;;  %v1286_v24 = vld [vmem:[%s1659_s1 + $0x70] sm:$0xff]   ;;  %v1290_v28 = vld [vmem:[%s1659_s1 + $0x78] sm:$0xff]   ;;  %v1294_v32 = vld [vmem:[%s1660_s0] ss:$36 sps:$4 sm:$0xff]  }
   0xa   :  { %1152 = vmatprep.subr.bf16.mxu1 %v1271_v9  ;;  %v1287_v25 = vld [vmem:[%s1659_s1 + $0xf0] sm:$0xff]   ;;  %v1291_v29 = vld [vmem:[%s1659_s1 + $0xf8] sm:$0xff]   ;;  %v1296_v33 = vld [vmem:[%s1660_s0 + $0x4] ss:$36 sps:$4 sm:$0xff]  }
   0xb   :  { %v1288_v26 = vld [vmem:[%s1659_s1 + $0x30] sm:$0xff]   ;;  %v1292_v30 = vld [vmem:[%s1659_s1 + $0x38] sm:$0xff]   ;;  %v1297_v34 = vld [vmem:[%s1660_s0 + $0x8] ss:$36 sps:$4 sm:$0xff]   ;;  %754 = vmatprep.mubr.bf16.mxu0 %v1296_v33 }
   0xc   :  { %1125 = vmatpush3.bf16.msra.mxu0 %v1272_v10  ;;  %v1289_v27 = vld [vmem:[%s1659_s1 + $0xb0] sm:$0xff]   ;;  %v1293_v31 = vld [vmem:[%s1659_s1 + $0xb8] sm:$0xff]   ;;  %v1300_v36 = vld [vmem:[%s1659_s1 + $0x140] sm:$0xff]  }
   0xd   :  { %1153 = vmatpush3.bf16.msra.mxu1 %v1273_v11  ;;  %1126 = vmatprep.subr.bf16.mxu0 %v1274_v12  ;;  %v1299_v35 = vld [vmem:[%s1660_s0 + $0xc] ss:$36 sps:$4 sm:$0xff]   ;;  %v1301_v37 = vld [vmem:[%s1659_s1 + $0x100] sm:$0xff]   ;;  %v1312_v48 = vld [vmem:[%s1659_s1 + $0x158] sm:$0xff]  }
   0xe   :  { %1154 = vmatprep.subr.bf16.mxu1 %v1275_v13  ;;  %803 = vmatprep.mubr.bf16.mxu1 %v1299_v35  ;;  %v1302_v38 = vld [vmem:[%s1659_s1 + $0x1c0] sm:$0xff]   ;;  %v1304_v40 = vld [vmem:[%s1659_s1 + $0x148] sm:$0xff]   ;;  %v1308_v44 = vld [vmem:[%s1659_s1 + $0x150] sm:$0xff]  }
   0xf   :  { %v1303_v39 = vld [vmem:[%s1659_s1 + $0x180] sm:$0xff]   ;;  %v1305_v41 = vld [vmem:[%s1659_s1 + $0x108] sm:$0xff]   ;;  %v1309_v45 = vld [vmem:[%s1659_s1 + $0x110] sm:$0xff]  }
  0x10   :  { %1127 = vmatpush3.bf16.msra.mxu0 %v1276_v14  ;;  %v1306_v42 = vld [vmem:[%s1659_s1 + $0x1c8] sm:$0xff]   ;;  %v1310_v46 = vld [vmem:[%s1659_s1 + $0x1d0] sm:$0xff]   ;;  %v1313_v49 = vld [vmem:[%s1659_s1 + $0x118] sm:$0xff]  }
  0x11   :  { %1155 = vmatpush3.bf16.msra.mxu1 %v1277_v15  ;;  %1128 = vmatprep.subr.bf16.mxu0 %v1278_v16  ;;  %v1307_v43 = vld [vmem:[%s1659_s1 + $0x188] sm:$0xff]   ;;  %v1311_v47 = vld [vmem:[%s1659_s1 + $0x190] sm:$0xff]   ;;  %v1314_v50 = vld [vmem:[%s1659_s1 + $0x1d8] sm:$0xff]  }
  0x12   :  { %1156 = vmatprep.subr.bf16.mxu1 %v1279_v17  ;;  %v1315_v51 = vld [vmem:[%s1659_s1 + $0x198] sm:$0xff]   ;;  %v1316_v52 = vld [vmem:[%s1659_s1 + $0x160] sm:$0xff]   ;;  %v1320_v56 = vld [vmem:[%s1659_s1 + $0x168] sm:$0xff]  }
  0x13   :  { %v1317_v53 = vld [vmem:[%s1659_s1 + $0x120] sm:$0xff]   ;;  %v1321_v57 = vld [vmem:[%s1660_s0 + $0x4c] ss:$36 sps:$4 sm:$0xff]   ;;  %v1323_v58 = vld [vmem:[%s1660_s0 + $0x54] ss:$36 sps:$4 sm:$0xff]  }
  0x14   :  { %1129 = vmatpush3.bf16.msra.mxu0 %v1280_v18  ;;  %v1318_v54 = vld [vmem:[%s1659_s1 + $0x1e0] sm:$0xff]   ;;  %v1325_v59 = vld [vmem:[%s1659_s1 + $0x128] sm:$0xff]   ;;  %v1327_v61 = vld [vmem:[%s1660_s0 + $0x50] ss:$36 sps:$4 sm:$0xff]  }
  0x15   :  { %1157 = vmatpush3.bf16.msra.mxu1 %v1281_v19  ;;  %1130 = vmatprep.subr.bf16.mxu0 %v1282_v20  ;;  %v1319_v55 = vld [vmem:[%s1659_s1 + $0x1a0] sm:$0xff]   ;;  %v1326_v60 = vld [vmem:[%s1660_s0 + $0x48] ss:$36 sps:$4 sm:$0xff]   ;;  %v1330_v0 = vld [vmem:[%s1659_s1 + $0x170] sm:$0xff]  }
  0x16   :  { %1158 = vmatprep.subr.bf16.mxu1 %v1283_v21  ;;  %v1328_v62 = vld [vmem:[%s1659_s1 + $0x1e8] sm:$0xff]   ;;  %v1331_v1 = vld [vmem:[%s1659_s1 + $0x130] sm:$0xff]   ;;  %v1334_v4 = vld [vmem:[%s1659_s1 + $0x178] sm:$0xff]  }
  0x17   :  { %v1329_v63 = vld [vmem:[%s1659_s1 + $0x1a8] sm:$0xff]   ;;  %v1332_v2 = vld [vmem:[%s1659_s1 + $0x1f0] sm:$0xff]   ;;  %v1335_v5 = vld [vmem:[%s1659_s1 + $0x138] sm:$0xff]  }
  0x18   :  { %1131 = vmatpush3.bf16.msra.mxu0 %v1284_v22  ;;  %v1333_v3 = vld [vmem:[%s1659_s1 + $0x1b0] sm:$0xff]   ;;  %v1336_v6 = vld [vmem:[%s1659_s1 + $0x1f8] sm:$0xff]   ;;  %v1341_v10 = vld [vmem:[%s1659_s1 + $0x200] sm:$0xff]  }
  0x19   :  { %1159 = vmatpush3.bf16.msra.mxu1 %v1285_v23  ;;  %1132 = vmatprep.subr.bf16.mxu0 %v1286_v24  ;;  %v1337_v7 = vld [vmem:[%s1660_s0 + $0x10] ss:$36 sps:$4 sm:$0xff]   ;;  %v1340_v9 = vld [vmem:[%s1659_s1 + $0x1b8] sm:$0xff]   ;;  %v1345_v13 = vld [vmem:[%s1659_s1 + $0x208] sm:$0xff]  }
  0x1a   :  { %1160 = vmatprep.subr.bf16.mxu1 %v1287_v25  ;;  %v1339_v8 = vld [vmem:[%s1660_s0 + $0x14] ss:$36 sps:$4 sm:$0xff]   ;;  %v1344_v12 = vld [vmem:[%s1660_s0 + $0x1c] ss:$36 sps:$4 sm:$0xff]   ;;  %v1350_v17 = vld [vmem:[%s1660_s0 + $0x64] ss:$36 sps:$4 sm:$0xff]  }
  0x1b   :  { %v1342_v11 = vld [vmem:[%s1660_s0 + $0x18] ss:$36 sps:$4 sm:$0xff]   ;;  %v1349_v16 = vld [vmem:[%s1659_s1 + $0x210] sm:$0xff]   ;;  %v1352_v18 = vld [vmem:[%s1660_s0 + $0x60] ss:$36 sps:$4 sm:$0xff]  }
  0x1c   :  { %1133 = vmatpush3.bf16.msra.mxu0 %v1288_v26  ;;  %v1346_v14 = vld [vmem:[%s1660_s0 + $0x5c] ss:$36 sps:$4 sm:$0xff]   ;;  %v1355_v22 = vld [vmem:[%s1659_s1 + $0x228] sm:$0xff]   ;;  %v1356_v23 = vld [vmem:[%s1659_s1 + $0x230] sm:$0xff]  }
  0x1d   :  { %1161 = vmatpush3.bf16.msra.mxu1 %v1289_v27  ;;  %1134 = vmatprep.subr.bf16.mxu0 %v1290_v28  ;;  %v1348_v15 = vld [vmem:[%s1660_s0 + $0x58] ss:$36 sps:$4 sm:$0xff]   ;;  %v1354_v20 = vld [vmem:[%s1659_s1 + $0x220] sm:$0xff]   ;;  %v1359_v25 = vld [vmem:[%s1660_s0 + $0x68] ss:$36 sps:$4 sm:$0xff]  }
  0x1e   :  { %1162 = vmatprep.subr.bf16.mxu1 %v1291_v29  ;;  %v1353_v19 = vld [vmem:[%s1659_s1 + $0x218] sm:$0xff]   ;;  %v1358_v21 = vld [vmem:[%s1660_s0 + $0x20] ss:$36 sps:$4 sm:$0xff]  }
  0x1f   :  { %v1357_v24 = vld [vmem:[%s1659_s1 + $0x238] sm:$0xff]  }
  0x20   :  { %1135 = vmatpush3.bf16.msra.mxu0 %v1292_v30 }
  0x21   :  { %1163 = vmatpush3.bf16.msra.mxu1 %v1293_v31  ;;  %1176 = vmatprep.subr.bf16.mxu0 %v1300_v36 }
  0x22   :  { %1204 = vmatprep.subr.bf16.mxu1 %v1302_v38 }
  0x23   :  { %755 = vmatmul.mubr.bf16.vlgmr.msra.gmra.mrb[0].mxu0 %v1294_v32 }
  0x24   :  { %804 = vmatmul.mubr.bf16.vlgmr.msra.gmra.mrb[0].mxu1 %v1297_v34  ;;  %1177 = vmatpush3.bf16.msra.mxu0 %v1301_v37 }
  0x25   :  { %1205 = vmatpush3.bf16.msra.mxu1 %v1303_v39  ;;  %1178 = vmatprep.subr.bf16.mxu0 %v1304_v40 }
  0x26   :  { %1206 = vmatprep.subr.bf16.mxu1 %v1306_v42  ;;  %762 = vmatprep.mubr.bf16.mxu0 %v1321_v57 }
  0x27   :  { %811 = vmatprep.mubr.bf16.mxu1 %v1323_v58 }
  0x28   :  { %1179 = vmatpush3.bf16.msra.mxu0 %v1305_v41 }
  0x29   :  { %1207 = vmatpush3.bf16.msra.mxu1 %v1307_v43  ;;  %1180 = vmatprep.subr.bf16.mxu0 %v1308_v44 }
  0x2a   :  { %1208 = vmatprep.subr.bf16.mxu1 %v1310_v46 }
  0x2b   :  { %763 = vmatmul.mubr.bf16.gmra.mrb[4].mxu0 %v1326_v60 }
  0x2c   :  { %1181 = vmatpush3.bf16.msra.mxu0 %v1309_v45  ;;  %812 = vmatmul.mubr.bf16.gmra.mrb[4].mxu1 %v1327_v61 }
  0x2d   :  { %1209 = vmatpush3.bf16.msra.mxu1 %v1311_v47  ;;  %1182 = vmatprep.subr.bf16.mxu0 %v1312_v48 }
  0x2e   :  { %1210 = vmatprep.subr.bf16.mxu1 %v1314_v50  ;;  %852 = vmatprep.mubr.bf16.mxu0 %v1339_v8 }
  0x2f   :  { %901 = vmatprep.mubr.bf16.mxu1 %v1344_v12 }
  0x30   :  { %1183 = vmatpush3.bf16.msra.mxu0 %v1313_v49 }
  0x31   :  { %1211 = vmatpush3.bf16.msra.mxu1 %v1315_v51  ;;  %1184 = vmatprep.subr.bf16.mxu0 %v1316_v52 }
  0x32   :  { %1212 = vmatprep.subr.bf16.mxu1 %v1318_v54 }
  0x34   :  { %1185 = vmatpush3.bf16.msra.mxu0 %v1317_v53 }
  0x35   :  { %1213 = vmatpush3.bf16.msra.mxu1 %v1319_v55  ;;  %1186 = vmatprep.subr.bf16.mxu0 %v1320_v56 }
  0x36   :  { %1214 = vmatprep.subr.bf16.mxu1 %v1328_v62 }
  0x38   :  { %1187 = vmatpush3.bf16.msra.mxu0 %v1325_v59 }
  0x39   :  { %1215 = vmatpush3.bf16.msra.mxu1 %v1329_v63  ;;  %1188 = vmatprep.subr.bf16.mxu0 %v1330_v0 }
  0x3a   :  { %1216 = vmatprep.subr.bf16.mxu1 %v1332_v2 }
  0x3c   :  { %1189 = vmatpush3.bf16.msra.mxu0 %v1331_v1 }
  0x3d   :  { %1217 = vmatpush3.bf16.msra.mxu1 %v1333_v3  ;;  %1190 = vmatprep.subr.bf16.mxu0 %v1334_v4 }
  0x3e   :  { %1218 = vmatprep.subr.bf16.mxu1 %v1336_v6 }
  0x40   :  { %1191 = vmatpush3.bf16.msra.mxu0 %v1335_v5 }
  0x41   :  { %1219 = vmatpush3.bf16.msra.mxu1 %v1340_v9  ;;  %1242 = vmatprep.subr.bf16.mxu0 %v1341_v10 }
  0x43   :  { %853 = vmatmul.mubr.bf16.vlgmr.msra.gmra.mrb[8].mxu0 %v1337_v7 }
  0x44   :  { %1243 = vmatpush3.bf16.msra.mxu0 %v1341_v10  ;;  %902 = vmatmul.mubr.bf16.vlgmr.msra.gmra.mrb[8].mxu1 %v1342_v11 }
  0x45   :  { %1244 = vmatprep.subr.bf16.mxu0 %v1345_v13  ;;  %860 = vmatprep.mubr.bf16.mxu0 %v1346_v14 }
  0x46   :  { %909 = vmatprep.mubr.bf16.mxu1 %v1350_v17 }
  0x48   :  { %1245 = vmatpush3.bf16.msra.mxu0 %v1345_v13 }
  0x49   :  { %1246 = vmatprep.subr.bf16.mxu0 %v1349_v16 }
  0x4b   :  { %861 = vmatmul.mubr.bf16.gmra.mrb[12].mxu0 %v1348_v15 }
  0x4c   :  { %1247 = vmatpush3.bf16.msra.mxu0 %v1349_v16  ;;  %910 = vmatmul.mubr.bf16.gmra.mrb[12].mxu1 %v1352_v18 }
  0x4d   :  { %1248 = vmatprep.subr.bf16.mxu0 %v1353_v19  ;;  %1258 = vmatprep.mubr.bf16.mxu0 %v1358_v21 }
  0x50   :  { %1249 = vmatpush3.bf16.msra.mxu0 %v1353_v19 }
  0x51   :  { %1250 = vmatprep.subr.bf16.mxu0 %v1354_v20 }
  0x54   :  { %1251 = vmatpush3.bf16.msra.mxu0 %v1354_v20 }
  0x55   :  { %1252 = vmatprep.subr.bf16.mxu0 %v1355_v22 }
  0x58   :  { %1253 = vmatpush3.bf16.msra.mxu0 %v1355_v22  ;;  %v1010_v22 = vld [vmem:[%s1661_s2] ss:$0 sm:$0xff] }
  0x59   :  { %1254 = vmatprep.subr.bf16.mxu0 %v1356_v23 }
  0x5c   :  { %1255 = vmatpush3.bf16.msra.mxu0 %v1356_v23 }
  0x5d   :  { %1256 = vmatprep.subr.bf16.mxu0 %v1357_v24 }
  0x60   :  { %1257 = vmatpush3.bf16.msra.mxu0 %v1357_v24 }
  0x63   :  { %1259 = vmatmul.mubr.bf16.vlgmr.msra.gmra.mrb[16].mxu0 %v1359_v25 }
  0xf6   :  { %v1136_v26 = vpop.f32.mrb[0].mxu0 }
  0xf7   :  { %v1164_v27 = vpop.f32.mrb[0].mxu1  ;;  %v1137_v28 = vpop.f32.mrb[1].mxu0 }
  0xf8   :  { %v1138_v29 = vadd.f32 %v1137_v28, %v1136_v26  ;;  %v1165_v30 = vpop.f32.mrb[1].mxu1  ;;  %v1139_v31 = vpop.f32.mrb[2].mxu0 }
  0xf9   :  { %v1166_v32 = vadd.f32 %v1165_v30, %v1164_v27  ;;  %v1167_v33 = vpop.f32.mrb[2].mxu1  ;;  %v1140_v34 = vpop.f32.mrb[3].mxu0 }
  0xfa   :  { %v1141_v35 = vadd.f32 %v1140_v34, %v1139_v31  ;;  %v1168_v36 = vpop.f32.mrb[3].mxu1 }
  0xfb   :  { %v806_v37 = vadd.f32 %v1166_v32, %v1138_v29  ;;  %v1169_v38 = vadd.f32 %v1168_v36, %v1167_v33 }
  0xfd   :  { %v809_v39 = vadd.f32 %v1169_v38, %v1141_v35 }
  0xfe   :  { %v1142_v40 = vpop.f32.mrb[4].mxu0 }
  0xff   :  { %v1170_v41 = vpop.f32.mrb[4].mxu1  ;;  %v1143_v42 = vpop.f32.mrb[5].mxu0 }
 0x100   :  { %v1171_v43 = vpop.f32.mrb[5].mxu1  ;;  %v1144_v44 = vadd.f32 %v1143_v42, %v1142_v40  ;;  %v1145_v46 = vpop.f32.mrb[6].mxu0 }
 0x101   :  { %v1172_v45 = vadd.f32 %v1171_v43, %v1170_v41  ;;  %v1173_v47 = vpop.f32.mrb[6].mxu1  ;;  %v1146_v48 = vpop.f32.mrb[7].mxu0 }
 0x102   :  { %v1174_v49 = vpop.f32.mrb[7].mxu1  ;;  %v1147_v51 = vadd.f32 %v1146_v48, %v1145_v46 }
 0x103   :  { %v814_v50 = vadd.f32 %v1172_v45, %v1144_v44  ;;  %v1175_v52 = vadd.f32 %v1174_v49, %v1173_v47 }
 0x105   :  { %v817_v53 = vadd.f32 %v1175_v52, %v1147_v51 }
 0x116   :  { %v1192_v54 = vpop.f32.mrb[8].mxu0 }
 0x117   :  { %v1193_v55 = vpop.f32.mrb[9].mxu0  ;;  %v1220_v58 = vpop.f32.mrb[8].mxu1 }
 0x118   :  { %v1194_v56 = vadd.f32 %v1193_v55, %v1192_v54  ;;  %v1195_v57 = vpop.f32.mrb[10].mxu0  ;;  %v1221_v62 = vpop.f32.mrb[9].mxu1 }
 0x119   :  { %v1196_v59 = vpop.f32.mrb[11].mxu0  ;;  %v1222_v63 = vadd.f32 %v1221_v62, %v1220_v58  ;;  %v1223_v0 = vpop.f32.mrb[10].mxu1 }
 0x11a   :  { %v855_v60 = vadd.f32 %v1194_v56, %v806_v37  ;;  %v1197_v61 = vadd.f32 %v1196_v59, %v1195_v57  ;;  %v1224_v2 = vpop.f32.mrb[11].mxu1 }
 0x11b   :  { %v1225_v3 = vadd.f32 %v1224_v2, %v1223_v0 }
 0x11c   :  { %v858_v1 = vadd.f32 %v1197_v61, %v809_v39  ;;  %v904_v4 = vadd.f32 %v1222_v63, %v855_v60 }
 0x11e   :  { %v1198_v5 = vpop.f32.mrb[12].mxu0  ;;  %v907_v7 = vadd.f32 %v1225_v3, %v858_v1 }
 0x11f   :  { %v1199_v6 = vpop.f32.mrb[13].mxu0  ;;  %v1226_v10 = vpop.f32.mrb[12].mxu1 }
 0x120   :  { %v1200_v8 = vadd.f32 %v1199_v6, %v1198_v5  ;;  %v1201_v9 = vpop.f32.mrb[14].mxu0  ;;  %v1227_v14 = vpop.f32.mrb[13].mxu1 }
 0x121   :  { %v1202_v11 = vpop.f32.mrb[15].mxu0  ;;  %v1228_v15 = vadd.f32 %v1227_v14, %v1226_v10  ;;  %v1229_v16 = vpop.f32.mrb[14].mxu1 }
 0x122   :  { %v863_v12 = vadd.f32 %v1200_v8, %v814_v50  ;;  %v1203_v13 = vadd.f32 %v1202_v11, %v1201_v9  ;;  %v1230_v18 = vpop.f32.mrb[15].mxu1 }
 0x123   :  { %v1231_v19 = vadd.f32 %v1230_v18, %v1229_v16 }
 0x124   :  { %v866_v17 = vadd.f32 %v1203_v13, %v817_v53  ;;  %v912_v20 = vadd.f32 %v1228_v15, %v863_v12 }
 0x126   :  { %v915_v21 = vadd.f32 %v1231_v19, %v866_v17 }
 0x136   :  { %v1260_v23 = vpop.f32.mrb[16].mxu0 }
 0x137   :  { %v961_v24 = vadd.f32 %v1260_v23, %v912_v20  ;;  %v952_v25 = vpop.f32.mrb[17].mxu0 }
 0x138   :  { %v953_v26 = vadd.f32 %v952_v25, %v904_v4  ;;  %v1261_v27 = vpop.f32.mrb[18].mxu0 }
 0x139   :  { %v969_v28 = vadd.f32 %v1010_v22, %v961_v24  ;;  %v964_v29 = vadd.f32 %v1261_v27, %v915_v21  ;;  %v955_v30 = vpop.f32.mrb[19].mxu0 }
 0x13a   :  { %v967_v31 = vadd.f32 %v1010_v22, %v953_v26  ;;  %v956_v32 = vadd.f32 %v955_v30, %v907_v7 }
 0x13b   :  { %v970_v33 = vadd.f32 %v1010_v22, %v964_v29  ;;  %v984_v35 = vmax.f32 %v969_v28, 0.0 }
 0x13c   :  { %v968_v34 = vadd.f32 %v1010_v22, %v956_v32  ;;  %v982_v37 = vmax.f32 %v967_v31, 0.0 }
 0x13d   :  { %v985_v36 = vmax.f32 %v970_v33, 0.0 }
 0x13e   :  { %v983_v38 = vmax.f32 %v968_v34, 0.0 }
 0x13f   :  { %v1117_v39 = vpack.c.bf16 %v985_v36, %v984_v35 }
 0x140   :  { %v1112_v40 = vpack.c.bf16 %v983_v38, %v982_v37 }
 0x141   :  { %1119 = vst [vmem:[%s1662_s3 + $0x8] sm:$0xff] %v1117_v39  }
 0x142   :  { %1113 = vst [vmem:[%s1662_s3] sm:$0xff] %v1112_v40  }

// kernel: _lambda_.30
= control target key start
LH: loop header
LB: loop body
LE: loop exit
PB: predicated region body
PF: predicated region fallthrough
CT: control target
= control target key end

     0   :  { %s2103_s1 = inlined_call_operand.vmem [shape: bf16[1152,256], index: 1, kind: input, shape index: {}]   ;;  %s2104_s0 = inlined_call_operand.vmem [shape: bf16[16,1152], index: 0, kind: input, shape index: {}]   ;;  %s2105_s2 = inlined_call_operand.vmem [shape: f32[1,256], index: 2, kind: input, shape index: {}]   ;;  %s2106_s3 = inlined_call_operand.vmem [shape: bf16[16,256], index: 3, kind: output, shape index: {}]  }
   0x1   :  { %v1385_v0 = vld [vmem:[%s2103_s1 + $0x4] ss:$8 sps:$4 sm:$0xff]   ;;  %v1389_v2 = vld [vmem:[%s2103_s1] ss:$8 sps:$4 sm:$0xff]   ;;  %v1391_v4 = vld [vmem:[%s2103_s1 + $0x14] ss:$8 sps:$4 sm:$0xff]  }
   0x2   :  { %v1387_v1 = vld [vmem:[%s2103_s1 + $0x204] ss:$8 sps:$4 sm:$0xff]   ;;  %959 = vmatprep.subr.bf16.mxu1 %v1385_v0  ;;  %v1390_v3 = vld [vmem:[%s2103_s1 + $0x200] ss:$8 sps:$4 sm:$0xff]   ;;  %v1393_v5 = vld [vmem:[%s2103_s1 + $0x214] ss:$8 sps:$4 sm:$0xff]  }
   0x3   :  { %1045 = vmatprep.subr.bf16.mxu0 %v1387_v1  ;;  %960 = vmatpush1.bf16.msra.mxu1 %v1389_v2  ;;  %v1395_v6 = vld [vmem:[%s2103_s1 + $0x10] ss:$8 sps:$4 sm:$0xff]   ;;  %v1397_v8 = vld [vmem:[%s2103_s1 + $0x24] ss:$8 sps:$4 sm:$0xff]   ;;  %v1401_v10 = vld [vmem:[%s2103_s1 + $0x20] ss:$8 sps:$4 sm:$0xff]  }
   0x4   :  { %1046 = vmatpush1.bf16.msra.mxu0 %v1390_v3  ;;  %961 = vmatprep.subr.bf16.mxu1 %v1391_v4  ;;  %v1396_v7 = vld [vmem:[%s2103_s1 + $0x210] ss:$8 sps:$4 sm:$0xff]   ;;  %v1399_v9 = vld [vmem:[%s2103_s1 + $0x224] ss:$8 sps:$4 sm:$0xff]   ;;  %v1402_v11 = vld [vmem:[%s2103_s1 + $0x220] ss:$8 sps:$4 sm:$0xff]  }
   0x5   :  { %1047 = vmatprep.subr.bf16.mxu0 %v1393_v5  ;;  %v1403_v12 = vld [vmem:[%s2103_s1 + $0x34] ss:$8 sps:$4 sm:$0xff]   ;;  %v1407_v14 = vld [vmem:[%s2103_s1 + $0x30] ss:$8 sps:$4 sm:$0xff]   ;;  %v1409_v16 = vld [vmem:[%s2103_s1 + $0x44] ss:$8 sps:$4 sm:$0xff]  }
   0x6   :  { %v1405_v13 = vld [vmem:[%s2103_s1 + $0x234] ss:$8 sps:$4 sm:$0xff]   ;;  %v1408_v15 = vld [vmem:[%s2103_s1 + $0x230] ss:$8 sps:$4 sm:$0xff]   ;;  %v1411_v17 = vld [vmem:[%s2103_s1 + $0x244] ss:$8 sps:$4 sm:$0xff]  }
   0x7   :  { %962 = vmatpush1.bf16.msra.mxu1 %v1395_v6  ;;  %v1413_v18 = vld [vmem:[%s2103_s1 + $0x40] ss:$8 sps:$4 sm:$0xff]   ;;  %v1415_v20 = vld [vmem:[%s2103_s1 + $0x54] ss:$8 sps:$4 sm:$0xff]   ;;  %v1419_v22 = vld [vmem:[%s2103_s1 + $0x50] ss:$8 sps:$4 sm:$0xff]  }
   0x8   :  { %1048 = vmatpush1.bf16.msra.mxu0 %v1396_v7  ;;  %963 = vmatprep.subr.bf16.mxu1 %v1397_v8  ;;  %v1414_v19 = vld [vmem:[%s2103_s1 + $0x240] ss:$8 sps:$4 sm:$0xff]   ;;  %v1417_v21 = vld [vmem:[%s2103_s1 + $0x254] ss:$8 sps:$4 sm:$0xff]   ;;  %v1420_v23 = vld [vmem:[%s2103_s1 + $0x250] ss:$8 sps:$4 sm:$0xff]  }
   0x9   :  { %1049 = vmatprep.subr.bf16.mxu0 %v1399_v9  ;;  %v1421_v24 = vld [vmem:[%s2103_s1 + $0x64] ss:$8 sps:$4 sm:$0xff]   ;;  %v1425_v26 = vld [vmem:[%s2103_s1 + $0x60] ss:$8 sps:$4 sm:$0xff]   ;;  %v1427_v28 = vld [vmem:[%s2103_s1 + $0x74] ss:$8 sps:$4 sm:$0xff]  }
   0xa   :  { %v1423_v25 = vld [vmem:[%s2103_s1 + $0x264] ss:$8 sps:$4 sm:$0xff]   ;;  %v1426_v27 = vld [vmem:[%s2103_s1 + $0x260] ss:$8 sps:$4 sm:$0xff]   ;;  %v1429_v29 = vld [vmem:[%s2103_s1 + $0x274] ss:$8 sps:$4 sm:$0xff]  }
   0xb   :  { %964 = vmatpush1.bf16.msra.mxu1 %v1401_v10  ;;  %v1431_v30 = vld [vmem:[%s2103_s1 + $0x70] ss:$8 sps:$4 sm:$0xff]   ;;  %v1433_v32 = vld [vmem:[%s2103_s1 + $0x84] ss:$8 sps:$4 sm:$0xff]   ;;  %v1437_v34 = vld [vmem:[%s2103_s1 + $0x80] ss:$8 sps:$4 sm:$0xff]  }
   0xc   :  { %1050 = vmatpush1.bf16.msra.mxu0 %v1402_v11  ;;  %965 = vmatprep.subr.bf16.mxu1 %v1403_v12  ;;  %v1432_v31 = vld [vmem:[%s2103_s1 + $0x270] ss:$8 sps:$4 sm:$0xff]   ;;  %v1435_v33 = vld [vmem:[%s2103_s1 + $0x284] ss:$8 sps:$4 sm:$0xff]   ;;  %v1438_v35 = vld [vmem:[%s2103_s1 + $0x280] ss:$8 sps:$4 sm:$0xff]  }
   0xd   :  { %1051 = vmatprep.subr.bf16.mxu0 %v1405_v13  ;;  %v1439_v36 = vld [vmem:[%s2103_s1 + $0x94] ss:$8 sps:$4 sm:$0xff]   ;;  %v1443_v38 = vld [vmem:[%s2103_s1 + $0x90] ss:$8 sps:$4 sm:$0xff]   ;;  %v1445_v40 = vld [vmem:[%s2103_s1 + $0xa4] ss:$8 sps:$4 sm:$0xff]  }
   0xe   :  { %v1441_v37 = vld [vmem:[%s2103_s1 + $0x294] ss:$8 sps:$4 sm:$0xff]   ;;  %v1444_v39 = vld [vmem:[%s2103_s1 + $0x290] ss:$8 sps:$4 sm:$0xff]   ;;  %v1447_v41 = vld [vmem:[%s2103_s1 + $0x2a4] ss:$8 sps:$4 sm:$0xff]  }
   0xf   :  { %966 = vmatpush1.bf16.msra.mxu1 %v1407_v14  ;;  %v1449_v42 = vld [vmem:[%s2103_s1 + $0xa0] ss:$8 sps:$4 sm:$0xff]   ;;  %v1451_v44 = vld [vmem:[%s2103_s1 + $0xb4] ss:$8 sps:$4 sm:$0xff]   ;;  %v1455_v46 = vld [vmem:[%s2103_s1 + $0xb0] ss:$8 sps:$4 sm:$0xff]  }
  0x10   :  { %1052 = vmatpush1.bf16.msra.mxu0 %v1408_v15  ;;  %967 = vmatprep.subr.bf16.mxu1 %v1409_v16  ;;  %v1450_v43 = vld [vmem:[%s2103_s1 + $0x2a0] ss:$8 sps:$4 sm:$0xff]   ;;  %v1453_v45 = vld [vmem:[%s2103_s1 + $0x2b4] ss:$8 sps:$4 sm:$0xff]   ;;  %v1456_v47 = vld [vmem:[%s2103_s1 + $0x2b0] ss:$8 sps:$4 sm:$0xff]  }
  0x11   :  { %1053 = vmatprep.subr.bf16.mxu0 %v1411_v17  ;;  %v1483_v48 = vld [vmem:[%s2104_s0 + $0x4] ss:$36 sps:$4 sm:$0xff]   ;;  %v1489_v51 = vld [vmem:[%s2104_s0 + $0x14] ss:$36 sps:$4 sm:$0xff]  }
  0x12   :  { %v1457_v49 = vld [vmem:[%s2103_s1 + $0xc4] ss:$8 sps:$4 sm:$0xff]   ;;  %991 = vmatprep.mubr.bf16.mxu1 %v1483_v48  ;;  %v1461_v52 = vld [vmem:[%s2103_s1 + $0xc0] ss:$8 sps:$4 sm:$0xff]   ;;  %v1463_v54 = vld [vmem:[%s2103_s1 + $0xd4] ss:$8 sps:$4 sm:$0xff]   ;;  %1077 = vmatprep.mubr.bf16.mxu0 %v1489_v51 }
  0x13   :  { %968 = vmatpush1.bf16.msra.mxu1 %v1413_v18  ;;  %v1459_v50 = vld [vmem:[%s2103_s1 + $0x2c4] ss:$8 sps:$4 sm:$0xff]   ;;  %v1462_v53 = vld [vmem:[%s2103_s1 + $0x2c0] ss:$8 sps:$4 sm:$0xff]   ;;  %v1465_v55 = vld [vmem:[%s2103_s1 + $0x2d4] ss:$8 sps:$4 sm:$0xff]  }
  0x14   :  { %1054 = vmatpush1.bf16.msra.mxu0 %v1414_v19  ;;  %969 = vmatprep.subr.bf16.mxu1 %v1415_v20  ;;  %v1467_v56 = vld [vmem:[%s2103_s1 + $0xd0] ss:$8 sps:$4 sm:$0xff]   ;;  %v1469_v58 = vld [vmem:[%s2103_s1 + $0xe4] ss:$8 sps:$4 sm:$0xff]   ;;  %v1473_v60 = vld [vmem:[%s2103_s1 + $0xe0] ss:$8 sps:$4 sm:$0xff]  }
  0x15   :  { %1055 = vmatprep.subr.bf16.mxu0 %v1417_v21  ;;  %v1468_v57 = vld [vmem:[%s2103_s1 + $0x2d0] ss:$8 sps:$4 sm:$0xff]   ;;  %v1471_v59 = vld [vmem:[%s2103_s1 + $0x2e4] ss:$8 sps:$4 sm:$0xff]   ;;  %v1474_v61 = vld [vmem:[%s2103_s1 + $0x2e0] ss:$8 sps:$4 sm:$0xff]  }
  0x16   :  { %v1475_v62 = vld [vmem:[%s2103_s1 + $0xf4] ss:$8 sps:$4 sm:$0xff]   ;;  %v1479_v0 = vld [vmem:[%s2103_s1 + $0xf0] ss:$8 sps:$4 sm:$0xff]   ;;  %v1486_v2 = vld [vmem:[%s2103_s1 + $0x104] ss:$8 sps:$4 sm:$0xff]  }
  0x17   :  { %970 = vmatpush1.bf16.msra.mxu1 %v1419_v22  ;;  %v1477_v63 = vld [vmem:[%s2103_s1 + $0x2f4] ss:$8 sps:$4 sm:$0xff]   ;;  %v1480_v1 = vld [vmem:[%s2103_s1 + $0x2f0] ss:$8 sps:$4 sm:$0xff]   ;;  %v1492_v3 = vld [vmem:[%s2103_s1 + $0x304] ss:$8 sps:$4 sm:$0xff]  }
  0x18   :  { %1056 = vmatpush1.bf16.msra.mxu0 %v1420_v23  ;;  %971 = vmatprep.subr.bf16.mxu1 %v1421_v24  ;;  %v1481_v4 = vld [vmem:[%s2104_s0] ss:$36 sps:$4 sm:$0xff]   ;;  %v1487_v6 = vld [vmem:[%s2104_s0 + $0x10] ss:$36 sps:$4 sm:$0xff]  }
  0x19   :  { %1057 = vmatprep.subr.bf16.mxu0 %v1423_v25  ;;  %v1484_v5 = vld [vmem:[%s2103_s1 + $0x100] ss:$8 sps:$4 sm:$0xff]   ;;  %v1495_v8 = vld [vmem:[%s2103_s1 + $0x114] ss:$8 sps:$4 sm:$0xff]   ;;  %v1493_v10 = vld [vmem:[%s2103_s1 + $0x110] ss:$8 sps:$4 sm:$0xff]  }
  0x1a   :  { %v1490_v7 = vld [vmem:[%s2103_s1 + $0x300] ss:$8 sps:$4 sm:$0xff]   ;;  %v1498_v9 = vld [vmem:[%s2103_s1 + $0x314] ss:$8 sps:$4 sm:$0xff]   ;;  %v1496_v11 = vld [vmem:[%s2103_s1 + $0x310] ss:$8 sps:$4 sm:$0xff]  }
  0x1b   :  { %972 = vmatpush1.bf16.msra.mxu1 %v1425_v26  ;;  %v1501_v12 = vld [vmem:[%s2103_s1 + $0x124] ss:$8 sps:$4 sm:$0xff]   ;;  %v1499_v14 = vld [vmem:[%s2103_s1 + $0x120] ss:$8 sps:$4 sm:$0xff]   ;;  %v1507_v16 = vld [vmem:[%s2103_s1 + $0x134] ss:$8 sps:$4 sm:$0xff]  }
  0x1c   :  { %1058 = vmatpush1.bf16.msra.mxu0 %v1426_v27  ;;  %973 = vmatprep.subr.bf16.mxu1 %v1427_v28  ;;  %v1504_v13 = vld [vmem:[%s2103_s1 + $0x324] ss:$8 sps:$4 sm:$0xff]   ;;  %v1502_v15 = vld [vmem:[%s2103_s1 + $0x320] ss:$8 sps:$4 sm:$0xff]   ;;  %v1510_v17 = vld [vmem:[%s2103_s1 + $0x334] ss:$8 sps:$4 sm:$0xff]  }
  0x1d   :  { %1059 = vmatprep.subr.bf16.mxu0 %v1429_v29  ;;  %v1505_v18 = vld [vmem:[%s2103_s1 + $0x130] ss:$8 sps:$4 sm:$0xff]   ;;  %v1513_v20 = vld [vmem:[%s2103_s1 + $0x144] ss:$8 sps:$4 sm:$0xff]   ;;  %v1511_v22 = vld [vmem:[%s2103_s1 + $0x140] ss:$8 sps:$4 sm:$0xff]  }
  0x1e   :  { %v1508_v19 = vld [vmem:[%s2103_s1 + $0x330] ss:$8 sps:$4 sm:$0xff]   ;;  %v1516_v21 = vld [vmem:[%s2103_s1 + $0x344] ss:$8 sps:$4 sm:$0xff]   ;;  %v1514_v23 = vld [vmem:[%s2103_s1 + $0x340] ss:$8 sps:$4 sm:$0xff]  }
  0x1f   :  { %974 = vmatpush1.bf16.msra.mxu1 %v1431_v30  ;;  %v1519_v24 = vld [vmem:[%s2103_s1 + $0x154] ss:$8 sps:$4 sm:$0xff]   ;;  %v1517_v26 = vld [vmem:[%s2103_s1 + $0x150] ss:$8 sps:$4 sm:$0xff]   ;;  %v1525_v28 = vld [vmem:[%s2103_s1 + $0x164] ss:$8 sps:$4 sm:$0xff]  }
  0x20   :  { %1060 = vmatpush1.bf16.msra.mxu0 %v1432_v31  ;;  %975 = vmatprep.subr.bf16.mxu1 %v1433_v32  ;;  %v1522_v25 = vld [vmem:[%s2103_s1 + $0x354] ss:$8 sps:$4 sm:$0xff]   ;;  %v1520_v27 = vld [vmem:[%s2103_s1 + $0x350] ss:$8 sps:$4 sm:$0xff]   ;;  %v1528_v29 = vld [vmem:[%s2103_s1 + $0x364] ss:$8 sps:$4 sm:$0xff]  }
  0x21   :  { %1061 = vmatprep.subr.bf16.mxu0 %v1435_v33  ;;  %v1523_v30 = vld [vmem:[%s2103_s1 + $0x160] ss:$8 sps:$4 sm:$0xff]   ;;  %v1531_v32 = vld [vmem:[%s2103_s1 + $0x174] ss:$8 sps:$4 sm:$0xff]  }
  0x22   :  { %v1526_v31 = vld [vmem:[%s2103_s1 + $0x360] ss:$8 sps:$4 sm:$0xff]   ;;  %v1534_v33 = vld [vmem:[%s2103_s1 + $0x374] ss:$8 sps:$4 sm:$0xff]  }
  0x23   :  { %976 = vmatpush1.bf16.msra.mxu1 %v1437_v34  ;;  %v1585_v34 = vld [vmem:[%s2104_s0 + $0xc] ss:$36 sps:$4 sm:$0xff]   ;;  %v1547_v48 = vld [vmem:[%s2103_s1 + $0x1a0] ss:$8 sps:$4 sm:$0xff]   ;;  %v1558_v51 = vld [vmem:[%s2103_s1 + $0x3b4] ss:$8 sps:$4 sm:$0xff]  }
  0x24   :  { %1062 = vmatpush1.bf16.msra.mxu0 %v1438_v35  ;;  %977 = vmatprep.subr.bf16.mxu1 %v1439_v36  ;;  %v1588_v35 = vld [vmem:[%s2104_s0 + $0x1c] ss:$36 sps:$4 sm:$0xff]   ;;  %v1529_v36 = vld [vmem:[%s2103_s1 + $0x170] ss:$8 sps:$4 sm:$0xff]  }
  0x25   :  { %1063 = vmatprep.subr.bf16.mxu0 %v1441_v37  ;;  %v1532_v37 = vld [vmem:[%s2103_s1 + $0x370] ss:$8 sps:$4 sm:$0xff]  }
  0x27   :  { %978 = vmatpush1.bf16.msra.mxu1 %v1443_v38  ;;  %v1537_v38 = vld [vmem:[%s2103_s1 + $0x184] ss:$8 sps:$4 sm:$0xff]  }
  0x28   :  { %1064 = vmatpush1.bf16.msra.mxu0 %v1444_v39  ;;  %979 = vmatprep.subr.bf16.mxu1 %v1445_v40  ;;  %v1540_v39 = vld [vmem:[%s2103_s1 + $0x384] ss:$8 sps:$4 sm:$0xff]   ;;  %v1535_v40 = vld [vmem:[%s2103_s1 + $0x180] ss:$8 sps:$4 sm:$0xff]  }
  0x29   :  { %1065 = vmatprep.subr.bf16.mxu0 %v1447_v41  ;;  %v1538_v41 = vld [vmem:[%s2103_s1 + $0x380] ss:$8 sps:$4 sm:$0xff]  }
  0x2b   :  { %980 = vmatpush1.bf16.msra.mxu1 %v1449_v42  ;;  %v1543_v42 = vld [vmem:[%s2103_s1 + $0x194] ss:$8 sps:$4 sm:$0xff]  }
  0x2c   :  { %1066 = vmatpush1.bf16.msra.mxu0 %v1450_v43  ;;  %981 = vmatprep.subr.bf16.mxu1 %v1451_v44  ;;  %v1546_v43 = vld [vmem:[%s2103_s1 + $0x394] ss:$8 sps:$4 sm:$0xff]   ;;  %v1541_v44 = vld [vmem:[%s2103_s1 + $0x190] ss:$8 sps:$4 sm:$0xff]  }
  0x2d   :  { %1067 = vmatprep.subr.bf16.mxu0 %v1453_v45  ;;  %v1544_v45 = vld [vmem:[%s2103_s1 + $0x390] ss:$8 sps:$4 sm:$0xff]  }
  0x2f   :  { %982 = vmatpush1.bf16.msra.mxu1 %v1455_v46  ;;  %v1549_v46 = vld [vmem:[%s2103_s1 + $0x1a4] ss:$8 sps:$4 sm:$0xff]  }
  0x30   :  { %1068 = vmatpush1.bf16.msra.mxu0 %v1456_v47  ;;  %983 = vmatprep.subr.bf16.mxu1 %v1457_v49  ;;  %v1552_v47 = vld [vmem:[%s2103_s1 + $0x3a4] ss:$8 sps:$4 sm:$0xff]   ;;  %v1550_v49 = vld [vmem:[%s2103_s1 + $0x3a0] ss:$8 sps:$4 sm:$0xff]  }
  0x31   :  { %1069 = vmatprep.subr.bf16.mxu0 %v1459_v50  ;;  %v1555_v50 = vld [vmem:[%s2103_s1 + $0x1b4] ss:$8 sps:$4 sm:$0xff]  }
  0x33   :  { %984 = vmatpush1.bf16.msra.mxu1 %v1461_v52  ;;  %v1553_v52 = vld [vmem:[%s2103_s1 + $0x1b0] ss:$8 sps:$4 sm:$0xff]  }
  0x34   :  { %1070 = vmatpush1.bf16.msra.mxu0 %v1462_v53  ;;  %985 = vmatprep.subr.bf16.mxu1 %v1463_v54  ;;  %v1556_v53 = vld [vmem:[%s2103_s1 + $0x3b0] ss:$8 sps:$4 sm:$0xff]   ;;  %v1561_v54 = vld [vmem:[%s2103_s1 + $0x1c4] ss:$8 sps:$4 sm:$0xff]  }
  0x35   :  { %1071 = vmatprep.subr.bf16.mxu0 %v1465_v55  ;;  %v1564_v55 = vld [vmem:[%s2103_s1 + $0x3c4] ss:$8 sps:$4 sm:$0xff]  }
  0x37   :  { %986 = vmatpush1.bf16.msra.mxu1 %v1467_v56  ;;  %v1559_v56 = vld [vmem:[%s2103_s1 + $0x1c0] ss:$8 sps:$4 sm:$0xff]  }
  0x38   :  { %1072 = vmatpush1.bf16.msra.mxu0 %v1468_v57  ;;  %987 = vmatprep.subr.bf16.mxu1 %v1469_v58  ;;  %v1562_v57 = vld [vmem:[%s2103_s1 + $0x3c0] ss:$8 sps:$4 sm:$0xff]   ;;  %v1567_v58 = vld [vmem:[%s2103_s1 + $0x1d4] ss:$8 sps:$4 sm:$0xff]  }
  0x39   :  { %1073 = vmatprep.subr.bf16.mxu0 %v1471_v59  ;;  %v1570_v59 = vld [vmem:[%s2103_s1 + $0x3d4] ss:$8 sps:$4 sm:$0xff]  }
  0x3b   :  { %988 = vmatpush1.bf16.msra.mxu1 %v1473_v60  ;;  %v1565_v60 = vld [vmem:[%s2103_s1 + $0x1d0] ss:$8 sps:$4 sm:$0xff]  }
  0x3c   :  { %1074 = vmatpush1.bf16.msra.mxu0 %v1474_v61  ;;  %989 = vmatprep.subr.bf16.mxu1 %v1475_v62  ;;  %v1568_v61 = vld [vmem:[%s2103_s1 + $0x3d0] ss:$8 sps:$4 sm:$0xff]   ;;  %v1573_v62 = vld [vmem:[%s2103_s1 + $0x1e4] ss:$8 sps:$4 sm:$0xff]  }
  0x3d   :  { %1075 = vmatprep.subr.bf16.mxu0 %v1477_v63  ;;  %v1576_v63 = vld [vmem:[%s2103_s1 + $0x3e4] ss:$8 sps:$4 sm:$0xff]  }
  0x3f   :  { %990 = vmatpush1.bf16.msra.mxu1 %v1479_v0  ;;  %v1571_v0 = vld [vmem:[%s2103_s1 + $0x1e0] ss:$8 sps:$4 sm:$0xff]  }
  0x40   :  { %1076 = vmatpush1.bf16.msra.mxu0 %v1480_v1  ;;  %1002 = vmatprep.subr.bf16.mxu1 %v1486_v2  ;;  %v1574_v1 = vld [vmem:[%s2103_s1 + $0x3e0] ss:$8 sps:$4 sm:$0xff]   ;;  %v1579_v2 = vld [vmem:[%s2103_s1 + $0x1f4] ss:$8 sps:$4 sm:$0xff]  }
  0x41   :  { %1088 = vmatprep.subr.bf16.mxu0 %v1492_v3  ;;  %v1582_v3 = vld [vmem:[%s2103_s1 + $0x3f4] ss:$8 sps:$4 sm:$0xff]  }
  0x42   :  { %992 = vmatmul.mubr.bf16.vlgmr.msra.gmra.mrb[0].mxu1 %v1481_v4  ;;  %v1577_v4 = vld [vmem:[%s2103_s1 + $0x1f0] ss:$8 sps:$4 sm:$0xff]  }
  0x43   :  { %1078 = vmatmul.mubr.bf16.vlgmr.msra.gmra.mrb[0].mxu0 %v1487_v6  ;;  %1003 = vmatpush1.bf16.msra.mxu1 %v1484_v5  ;;  %v1580_v5 = vld [vmem:[%s2103_s1 + $0x3f0] ss:$8 sps:$4 sm:$0xff]   ;;  %v1591_v6 = vld [vmem:[%s2103_s1 + $0x404] ss:$8 sps:$4 sm:$0xff]  }
  0x44   :  { %1089 = vmatpush1.bf16.msra.mxu0 %v1490_v7  ;;  %1004 = vmatprep.subr.bf16.mxu1 %v1495_v8  ;;  %v1583_v7 = vld [vmem:[%s2104_s0 + $0x8] ss:$36 sps:$4 sm:$0xff]   ;;  %v1586_v8 = vld [vmem:[%s2104_s0 + $0x18] ss:$36 sps:$4 sm:$0xff]  }
  0x45   :  { %1090 = vmatprep.subr.bf16.mxu0 %v1498_v9  ;;  %1034 = vmatprep.mubr.bf16.mxu1 %v1585_v34  ;;  %v1589_v9 = vld [vmem:[%s2103_s1 + $0x400] ss:$8 sps:$4 sm:$0xff]  }
  0x46   :  { %1120 = vmatprep.mubr.bf16.mxu0 %v1588_v35 }
  0x47   :  { %1005 = vmatpush1.bf16.msra.mxu1 %v1493_v10  ;;  %v1594_v10 = vld [vmem:[%s2103_s1 + $0x414] ss:$8 sps:$4 sm:$0xff]  }
  0x48   :  { %1091 = vmatpush1.bf16.msra.mxu0 %v1496_v11  ;;  %1006 = vmatprep.subr.bf16.mxu1 %v1501_v12  ;;  %v1592_v11 = vld [vmem:[%s2103_s1 + $0x410] ss:$8 sps:$4 sm:$0xff]   ;;  %v1614_v12 = vmov 0  }
  0x49   :  { %1092 = vmatprep.subr.bf16.mxu0 %v1504_v13  ;;  %v1597_v13 = vld [vmem:[%s2103_s1 + $0x424] ss:$8 sps:$4 sm:$0xff]  }
  0x4b   :  { %1007 = vmatpush1.bf16.msra.mxu1 %v1499_v14  ;;  %v1595_v14 = vld [vmem:[%s2103_s1 + $0x420] ss:$8 sps:$4 sm:$0xff]  }
  0x4c   :  { %1093 = vmatpush1.bf16.msra.mxu0 %v1502_v15  ;;  %1008 = vmatprep.subr.bf16.mxu1 %v1507_v16  ;;  %v1600_v15 = vld [vmem:[%s2103_s1 + $0x434] ss:$8 sps:$4 sm:$0xff]   ;;  %v1598_v16 = vld [vmem:[%s2103_s1 + $0x430] ss:$8 sps:$4 sm:$0xff]  }
  0x4d   :  { %1094 = vmatprep.subr.bf16.mxu0 %v1510_v17  ;;  %v1603_v17 = vld [vmem:[%s2103_s1 + $0x444] ss:$8 sps:$4 sm:$0xff]  }
  0x4f   :  { %1009 = vmatpush1.bf16.msra.mxu1 %v1505_v18  ;;  %v1601_v18 = vld [vmem:[%s2103_s1 + $0x440] ss:$8 sps:$4 sm:$0xff]  }
  0x50   :  { %1095 = vmatpush1.bf16.msra.mxu0 %v1508_v19  ;;  %1010 = vmatprep.subr.bf16.mxu1 %v1513_v20  ;;  %v1606_v19 = vld [vmem:[%s2103_s1 + $0x454] ss:$8 sps:$4 sm:$0xff]   ;;  %v1604_v20 = vld [vmem:[%s2103_s1 + $0x450] ss:$8 sps:$4 sm:$0xff]  }
  0x51   :  { %1096 = vmatprep.subr.bf16.mxu0 %v1516_v21  ;;  %v1609_v21 = vld [vmem:[%s2103_s1 + $0x464] ss:$8 sps:$4 sm:$0xff]  }
  0x53   :  { %1011 = vmatpush1.bf16.msra.mxu1 %v1511_v22  ;;  %v1607_v22 = vld [vmem:[%s2103_s1 + $0x460] ss:$8 sps:$4 sm:$0xff]  }
  0x54   :  { %1097 = vmatpush1.bf16.msra.mxu0 %v1514_v23  ;;  %1012 = vmatprep.subr.bf16.mxu1 %v1519_v24  ;;  %v1612_v23 = vld [vmem:[%s2103_s1 + $0x474] ss:$8 sps:$4 sm:$0xff]   ;;  %v1610_v24 = vld [vmem:[%s2103_s1 + $0x470] ss:$8 sps:$4 sm:$0xff]  }
  0x55   :  { %1098 = vmatprep.subr.bf16.mxu0 %v1522_v25  ;;  %v1613_v25 = vld [vmem:[%s2104_s0 + $0x20] ss:$36 sps:$4 sm:$0xff]  }
  0x57   :  { %1013 = vmatpush1.bf16.msra.mxu1 %v1517_v26 }
  0x58   :  { %1099 = vmatpush1.bf16.msra.mxu0 %v1520_v27  ;;  %1014 = vmatprep.subr.bf16.mxu1 %v1525_v28 }
  0x59   :  { %1100 = vmatprep.subr.bf16.mxu0 %v1528_v29 }
  0x5b   :  { %1015 = vmatpush1.bf16.msra.mxu1 %v1523_v30  ;;  %v21_v30 = vlaneseq }
  0x5c   :  { %1101 = vmatpush1.bf16.msra.mxu0 %v1526_v31  ;;  %1016 = vmatprep.subr.bf16.mxu1 %v1531_v32 }
  0x5d   :  { %1102 = vmatprep.subr.bf16.mxu0 %v1534_v33  ;;  %v22_v31 = vshrl.u32 %v21_v30, 7  ;;  %v19_v33 = vld [vmem:[%s2105_s2] sm:$0x3] }
  0x5f   :  { %1017 = vmatpush1.bf16.msra.mxu1 %v1529_v36  ;;  %v23_v32 = vsub.s32 0, %v22_v31  ;;  %v27_v34 = vsub.s32 1, %v22_v31 }
  0x60   :  { %1103 = vmatpush1.bf16.msra.mxu0 %v1532_v37  ;;  %1018 = vmatprep.subr.bf16.mxu1 %v1537_v38 }
  0x61   :  { %1104 = vmatprep.subr.bf16.mxu0 %v1540_v39  ;;  %v24_v35 = vrot.slane %v19_v33, %v23_v32  ;;  %v28_v37 = vrot.slane %v19_v33, %v27_v34 }
  0x63   :  { %1019 = vmatpush1.bf16.msra.mxu1 %v1535_v40 }
  0x64   :  { %1105 = vmatpush1.bf16.msra.mxu0 %v1538_v41  ;;  %1020 = vmatprep.subr.bf16.mxu1 %v1543_v42 }
  0x65   :  { %1106 = vmatprep.subr.bf16.mxu0 %v1546_v43 }
  0x67   :  { %1021 = vmatpush1.bf16.msra.mxu1 %v1541_v44 }
  0x68   :  { %1107 = vmatpush1.bf16.msra.mxu0 %v1544_v45  ;;  %1022 = vmatprep.subr.bf16.mxu1 %v1549_v46 }
  0x69   :  { %1108 = vmatprep.subr.bf16.mxu0 %v1552_v47 }
  0x6b   :  { %1023 = vmatpush1.bf16.msra.mxu1 %v1547_v48 }
  0x6c   :  { %1109 = vmatpush1.bf16.msra.mxu0 %v1550_v49  ;;  %1024 = vmatprep.subr.bf16.mxu1 %v1555_v50 }
  0x6d   :  { %1110 = vmatprep.subr.bf16.mxu0 %v1558_v51 }
  0x6f   :  { %1025 = vmatpush1.bf16.msra.mxu1 %v1553_v52 }
  0x70   :  { %1111 = vmatpush1.bf16.msra.mxu0 %v1556_v53  ;;  %1026 = vmatprep.subr.bf16.mxu1 %v1561_v54 }
  0x71   :  { %1112 = vmatprep.subr.bf16.mxu0 %v1564_v55 }
  0x73   :  { %1027 = vmatpush1.bf16.msra.mxu1 %v1559_v56 }
  0x74   :  { %1113 = vmatpush1.bf16.msra.mxu0 %v1562_v57  ;;  %1028 = vmatprep.subr.bf16.mxu1 %v1567_v58 }
  0x75   :  { %1114 = vmatprep.subr.bf16.mxu0 %v1570_v59 }
  0x77   :  { %1029 = vmatpush1.bf16.msra.mxu1 %v1565_v60 }
  0x78   :  { %1115 = vmatpush1.bf16.msra.mxu0 %v1568_v61  ;;  %1030 = vmatprep.subr.bf16.mxu1 %v1573_v62 }
  0x79   :  { %1116 = vmatprep.subr.bf16.mxu0 %v1576_v63 }
  0x7b   :  { %1031 = vmatpush1.bf16.msra.mxu1 %v1571_v0 }
  0x7c   :  { %1117 = vmatpush1.bf16.msra.mxu0 %v1574_v1  ;;  %1032 = vmatprep.subr.bf16.mxu1 %v1579_v2 }
  0x7d   :  { %1118 = vmatprep.subr.bf16.mxu0 %v1582_v3 }
  0x7f   :  { %1033 = vmatpush1.bf16.msra.mxu1 %v1577_v4 }
  0x80   :  { %1119 = vmatpush1.bf16.msra.mxu0 %v1580_v5 }
  0x81   :  { %1131 = vmatprep.subr.bf16.mxu0 %v1591_v6 }
  0x82   :  { %1035 = vmatmul.mubr.bf16.vlgmr.msra.gmra.mrb[0].mxu1 %v1583_v7 }
  0x83   :  { %1121 = vmatmul.mubr.bf16.vlgmr.msra.gmra.mrb[0].mxu0 %v1586_v8 }
  0x84   :  { %1132 = vmatpush1.bf16.msra.mxu0 %v1589_v9  ;;  %1163 = vmatprep.mubr.bf16.mxu0 %v1614_v12 }
  0x85   :  { %1133 = vmatprep.subr.bf16.mxu0 %v1594_v10 }
  0x88   :  { %1134 = vmatpush1.bf16.msra.mxu0 %v1592_v11 }
  0x89   :  { %1135 = vmatprep.subr.bf16.mxu0 %v1597_v13 }
  0x8c   :  { %1136 = vmatpush1.bf16.msra.mxu0 %v1595_v14 }
  0x8d   :  { %1137 = vmatprep.subr.bf16.mxu0 %v1600_v15 }
  0x90   :  { %1138 = vmatpush1.bf16.msra.mxu0 %v1598_v16 }
  0x91   :  { %1139 = vmatprep.subr.bf16.mxu0 %v1603_v17 }
  0x94   :  { %1140 = vmatpush1.bf16.msra.mxu0 %v1601_v18 }
  0x95   :  { %1141 = vmatprep.subr.bf16.mxu0 %v1606_v19 }
  0x98   :  { %1142 = vmatpush1.bf16.msra.mxu0 %v1604_v20 }
  0x99   :  { %1143 = vmatprep.subr.bf16.mxu0 %v1609_v21 }
  0x9c   :  { %1144 = vmatpush1.bf16.msra.mxu0 %v1607_v22 }
  0x9d   :  { %1145 = vmatprep.subr.bf16.mxu0 %v1612_v23 }
  0xa0   :  { %1146 = vmatpush1.bf16.msra.mxu0 %v1610_v24 }
  0xa3   :  { %1164 = vmatmul.mubr.bf16.vlgmr.msra.gmra.mrb[0].mxu0 %v1613_v25 }
 0x155   :  { %v1036_v26 = vpop.f32.mrb[0].mxu1 }
 0x156   :  { %v1038_v27 = vpop.f32.mrb[1].mxu1 }
 0x157   :  { %v1040_v28 = vpop.f32.mrb[2].mxu1 }
 0x158   :  { %v1042_v29 = vpop.f32.mrb[3].mxu1 }
 0x176   :  { %v1165_v36 = vpop.f32.mrb[0].mxu0 }
 0x177   :  { %v1368_v38 = vadd.f32 %v1165_v36, %v1036_v26  ;;  %v1167_v39 = vpop.f32.mrb[1].mxu0 }
 0x178   :  { %v1369_v40 = vadd.f32 %v1167_v39, %v1038_v27  ;;  %v1169_v41 = vpop.f32.mrb[2].mxu0 }
 0x179   :  { %v1174_v42 = vadd.f32 %v1368_v38, %v24_v35  ;;  %v1370_v43 = vadd.f32 %v1169_v41, %v1040_v28  ;;  %v1171_v44 = vpop.f32.mrb[3].mxu0 }
 0x17a   :  { %v1175_v45 = vadd.f32 %v1369_v40, %v28_v37  ;;  %v1371_v46 = vadd.f32 %v1171_v44, %v1042_v29 }
 0x17b   :  { %v1189_v47 = vmax.f32 %v1174_v42, 0.0  ;;  %v1176_v48 = vadd.f32 %v1370_v43, %v24_v35 }
 0x17c   :  { %v1190_v49 = vmax.f32 %v1175_v45, 0.0  ;;  %v1177_v50 = vadd.f32 %v1371_v46, %v28_v37 }
 0x17d   :  { %v1191_v51 = vmax.f32 %v1176_v48, 0.0 }
 0x17e   :  { %v1366_v52 = vpack.c.bf16 %v1190_v49, %v1189_v47  ;;  %v1192_v53 = vmax.f32 %v1177_v50, 0.0 }
 0x180   :  { %1205 = vst [vmem:[%s2106_s3] sm:$0xff] %v1366_v52  ;;  %v1367_v54 = vpack.c.bf16 %v1192_v53, %v1191_v51 }
 0x182   :  { %1206 = vst [vmem:[%s2106_s3 + $0x8] sm:$0xff] %v1367_v54 }

// kernel: _lambda_.31
= control target key start
LH: loop header
LB: loop body
LE: loop exit
PB: predicated region body
PF: predicated region fallthrough
CT: control target
= control target key end

     0   :  { %v266_v1 = vmov 0   ;;  %v21_v18 = vlaneseq  ;;  %s347_s1 = inlined_call_operand.vmem [shape: bf16[128,256], index: 1, kind: input, shape index: {}]   ;;  %s348_s0 = inlined_call_operand.vmem [shape: bf16[16,128], index: 0, kind: input, shape index: {}]   ;;  %s349_s2 = inlined_call_operand.vmem [shape: f32[1,256], index: 2, kind: input, shape index: {}]   ;;  %s350_s3 = inlined_call_operand.vmem [shape: bf16[16,256], index: 3, kind: output, shape index: {}]  }
   0x1   :  { %v241_v0 = vld [vmem:[%s347_s1 + $0x4] ss:$8 sps:$4 sm:$0xff]   ;;  %175 = vmatprep.mubr.bf16.mxu0 %v266_v1  ;;  %v243_v2 = vld [vmem:[%s347_s1] ss:$8 sps:$4 sm:$0xff]   ;;  %v244_v3 = vld [vmem:[%s347_s1 + $0x14] ss:$8 sps:$4 sm:$0xff]  }
   0x2   :  { %143 = vmatprep.subr.bf16.mxu0 %v241_v0  ;;  %v246_v4 = vld [vmem:[%s347_s1 + $0x10] ss:$8 sps:$4 sm:$0xff]   ;;  %v247_v5 = vld [vmem:[%s347_s1 + $0x24] ss:$8 sps:$4 sm:$0xff]   ;;  %v249_v6 = vld [vmem:[%s347_s1 + $0x20] ss:$8 sps:$4 sm:$0xff]  }
   0x3   :  { %144 = vmatpush1.bf16.msra.mxu0 %v243_v2  ;;  %v250_v7 = vld [vmem:[%s347_s1 + $0x34] ss:$8 sps:$4 sm:$0xff]   ;;  %v252_v8 = vld [vmem:[%s347_s1 + $0x30] ss:$8 sps:$4 sm:$0xff]   ;;  %v253_v9 = vld [vmem:[%s347_s1 + $0x44] ss:$8 sps:$4 sm:$0xff]  }
   0x4   :  { %145 = vmatprep.subr.bf16.mxu0 %v244_v3  ;;  %v255_v10 = vld [vmem:[%s347_s1 + $0x40] ss:$8 sps:$4 sm:$0xff]   ;;  %v256_v11 = vld [vmem:[%s347_s1 + $0x54] ss:$8 sps:$4 sm:$0xff]   ;;  %v258_v12 = vld [vmem:[%s347_s1 + $0x50] ss:$8 sps:$4 sm:$0xff]  }
   0x5   :  { %v259_v13 = vld [vmem:[%s347_s1 + $0x64] ss:$8 sps:$4 sm:$0xff]   ;;  %v261_v14 = vld [vmem:[%s347_s1 + $0x60] ss:$8 sps:$4 sm:$0xff]   ;;  %v262_v15 = vld [vmem:[%s347_s1 + $0x74] ss:$8 sps:$4 sm:$0xff]  }
   0x6   :  { %v264_v16 = vld [vmem:[%s347_s1 + $0x70] ss:$8 sps:$4 sm:$0xff]   ;;  %v265_v17 = vld [vmem:[%s348_s0] sm:$0xff]   ;;  %v22_v19 = vshrl.u32 %v21_v18, 7 }
   0x7   :  { %146 = vmatpush1.bf16.msra.mxu0 %v246_v4  ;;  %v19_v21 = vld [vmem:[%s349_s2] sm:$0x3] }
   0x8   :  { %147 = vmatprep.subr.bf16.mxu0 %v247_v5  ;;  %v23_v20 = vsub.s32 0, %v22_v19  ;;  %v27_v22 = vsub.s32 1, %v22_v19 }
   0xa   :  { %v24_v23 = vrot.slane %v19_v21, %v23_v20  ;;  %v28_v24 = vrot.slane %v19_v21, %v27_v22 }
   0xb   :  { %148 = vmatpush1.bf16.msra.mxu0 %v249_v6 }
   0xc   :  { %149 = vmatprep.subr.bf16.mxu0 %v250_v7 }
   0xf   :  { %150 = vmatpush1.bf16.msra.mxu0 %v252_v8 }
  0x10   :  { %151 = vmatprep.subr.bf16.mxu0 %v253_v9 }
  0x13   :  { %152 = vmatpush1.bf16.msra.mxu0 %v255_v10 }
  0x14   :  { %153 = vmatprep.subr.bf16.mxu0 %v256_v11 }
  0x17   :  { %154 = vmatpush1.bf16.msra.mxu0 %v258_v12 }
  0x18   :  { %155 = vmatprep.subr.bf16.mxu0 %v259_v13 }
  0x1b   :  { %156 = vmatpush1.bf16.msra.mxu0 %v261_v14 }
  0x1c   :  { %157 = vmatprep.subr.bf16.mxu0 %v262_v15 }
  0x1f   :  { %158 = vmatpush1.bf16.msra.mxu0 %v264_v16 }
  0x22   :  { %176 = vmatmul.mubr.bf16.vlgmr.msra.gmra.mrb[0].mxu0 %v265_v17 }
  0xf5   :  { %v177_v25 = vpop.f32.mrb[0].mxu0 }
  0xf6   :  { %v186_v26 = vadd.f32 %v177_v25, %v24_v23  ;;  %v179_v27 = vpop.f32.mrb[1].mxu0 }
  0xf7   :  { %v187_v28 = vadd.f32 %v179_v27, %v28_v24  ;;  %v181_v29 = vpop.f32.mrb[2].mxu0 }
  0xf8   :  { %v188_v30 = vadd.f32 %v181_v29, %v24_v23  ;;  %v183_v31 = vpop.f32.mrb[3].mxu0 }
  0xf9   :  { %v238_v32 = vpack.c.bf16 %v187_v28, %v186_v26  ;;  %v189_v33 = vadd.f32 %v183_v31, %v28_v24 }
  0xfb   :  { %213 = vst [vmem:[%s350_s3] sm:$0xff] %v238_v32  ;;  %v239_v34 = vpack.c.bf16 %v189_v33, %v188_v30 }
  0xfd   :  { %214 = vst [vmem:[%s350_s3 + $0x8] sm:$0xff] %v239_v34 }

// kernel: _lambda_.32
= control target key start
LH: loop header
LB: loop body
LE: loop exit
PB: predicated region body
PF: predicated region fallthrough
CT: control target
= control target key end

     0   :  { %s2270_s15 = smov 0   ;;  %s2272_s16 = smov 0   ;;  %s2509_s0 = inlined_call_operand.vmem [shape: bf16[16,2304], index: 0, kind: input, shape index: {}]   ;;  %s2510_s1 = inlined_call_operand.vmem [shape: bf16[2304,256], index: 1, kind: input, shape index: {}]   ;;  %s2511_s2 = inlined_call_operand.vmem [shape: f32[1,256], index: 2, kind: input, shape index: {}]   ;;  %s2512_s3 = inlined_call_operand.vmem [shape: bf16[16,256], index: 3, kind: input, shape index: {}]   ;;  %s2513_s4 = inlined_call_operand.vmem [shape: bf16[16,256], index: 4, kind: output, shape index: {}]  }
   0x1   :  { %s2274_s17 = smov 0   ;;  %s2276_s18 = smov 0  }
   0x2   :  { %s2278_s19 = smov 0  }
   0x3 LB: > { %s26_s20 = sadd.s32 1, %s2238_s18  ;;  %p49_p1 = scmp.ne.s32.totalorder %s2230_s16, %s2226_s15  ;;  %s2242_s19 = sphi %s2278_s19, %s14_s19   ;;  %s2238_s18 = sphi %s2276_s18, %s2517_s18   ;;  %s2234_s17 = sphi %s2274_s17, %s2516_s17   ;;  %s2230_s16 = sphi %s2272_s16, %s2515_s16   ;;  %s2226_s15 = sphi %s2270_s15, %s2514_s15  }
   0x4   : > { %p27_p0 = scmp.ge.s32.totalorder %s26_s20, 2  ;;  %p50_p2 = scmp.eq.s32.totalorder %s2242_s19, 0 }
   0x5   : > { %s42_s22 = sadd.s32 1, %s2230_s16  ;;  %p1742_p5 = scmp.ge.s32.totalorder %s2242_s19, 2 }
   0x6   : > { %s2519_s20 = smov (%p27_p0, %s26_s20), 0  ;;  %p51_p3 = por %p50_p2, %p49_p1 }
   0x7   : > { %s38_s21 = ssub.s32 %s2238_s18, %s2519_s20  ;;  %208 = sbr.rel (%p1742_p5) target bundleno = 24 (0x18), region = 24 }
   0x8   : > { %p40_p4 = scmp.eq.s32.totalorder %s38_s21, 0 }
   0xa   : > { %s2305_s23 = scalar_select %p40_p4, %s2230_s16, %s42_s22  }
   0xe   : > { %211 = sbr.rel (!%p51_p3) target bundleno = 24 (0x18), region = 28  ;;  %s213_s24 = sand.u32 (%p51_p3), 1, %s2230_s16  }
   0xf   : > { %s1912_s25 = smul.u32 (%p51_p3), 36, %s2238_s18 }
  0x10   : > { %s1932_s26 = smul.u32 (%p51_p3), 72, %s213_s24 }
  0x11   : > { %s221_s29 = scalar_lea.vmem (%p51_p3), %s2509_s0, %s1912_s25 }
  0x12   : > { %v236_v0 = vld [vmem:[%s221_s29] sm:$0xff] (%p51_p3)  ;;  %v238_v1 = vld [vmem:[%s221_s29 + $0x8] sm:$0xff] (%p51_p3)  ;;  %v240_v2 = vld [vmem:[%s221_s29 + $0x10] sm:$0xff] (%p51_p3)  ;;  %s215_s30 = scalar_lea.vmem (%p51_p3), [#allocation3], %s1932_s26 }
  0x13   : > { %237 = vst [vmem:[%s215_s30] sm:$0xff] (%p51_p3), %v236_v0  ;;  %239 = vst [vmem:[%s215_s30 + $0x8] sm:$0xff] (%p51_p3), %v238_v1  ;;  %v242_v3 = vld [vmem:[%s221_s29 + $0x18] sm:$0xff] (%p51_p3)  ;;  %v244_v4 = vld [vmem:[%s221_s29 + $0x48] sm:$0xff] (%p51_p3) }
  0x14   : > { %241 = vst [vmem:[%s215_s30 + $0x10] sm:$0xff] (%p51_p3), %v240_v2  ;;  %v246_v5 = vld [vmem:[%s221_s29 + $0x50] sm:$0xff] (%p51_p3)  ;;  %243 = vst [vmem:[%s215_s30 + $0x18] sm:$0xff] (%p51_p3), %v242_v3  ;;  %v248_v6 = vld [vmem:[%s221_s29 + $0x58] sm:$0xff] (%p51_p3) }
  0x15   : > { %245 = vst [vmem:[%s215_s30 + $0x24] sm:$0xff] %v244_v4  ;;  %247 = vst [vmem:[%s215_s30 + $0x2c] sm:$0xff] %v246_v5  ;;  %v250_v7 = vld [vmem:[%s221_s29 + $0x60] sm:$0xff]  ;;  %v1746_v9 = vld [vmem:[%s221_s29 + $0x68] sm:$0xf] }
  0x16   : > { %v1744_v8 = vld [vmem:[%s221_s29 + $0x20] sm:$0xf]  ;;  %249 = vst [vmem:[%s215_s30 + $0x34] sm:$0xff] %v248_v6  ;;  %251 = vst [vmem:[%s215_s30 + $0x3c] sm:$0xff] %v250_v7 }
  0x17   : > { %1745 = vst [vmem:[%s215_s30 + $0x20] sm:$0xf] %v1744_v8  ;;  %1747 = vst [vmem:[%s215_s30 + $0x44] sm:$0xf] %v1746_v9 }
  0x18 PF: > { %p1748_p6 = scmp.ge.s32.totalorder %s2242_s19, 1  ;;  %p282_p7 = scmp.lt.s32.totalorder %s2242_s19, 3 }
  0x1a   : > { %p283_p8 = pnand %p1748_p6, %p282_p7 }
  0x1b   : > { %s289_s5 = sand.u32 (!%p283_p8), 1, %s2226_s15   ;;  %s345_s6 = smul.u32 (!%p283_p8), 144, %s2234_s17 }
  0x1c   : > { %286 = sbr.rel (%p283_p8) target bundleno = 442 (0x1ba), region = 58  ;;  %p1751_p10 = scmp.ne.s32.totalorder (!%p283_p8), %s2234_s17, 0 }
  0x1d   : > { %s1933_s7 = smul.u32 (!%p283_p8), 72, %s289_s5  ;;  %p347_p9 = scmp.lt.s32.totalorder (!%p283_p8), %s345_s6, 287 }
  0x1f   : > { %s2322_s12 = scalar_lea.vmem (!%p283_p8), [#allocation3], %s1933_s7 }
  0x23   : > { %s2521_s6 = smov (!%p347_p9, %s345_s6), 287  ;;  %390 = sbr.rel (%p1751_p10) target bundleno = 46 (0x2e), region = 66 }
  0x24   : > { %s1913_s8 = sshll.u32 %s2521_s6, 3  ;;  %v393_v10 = vlaneseq (!%p1751_p10)  ;;  %v391_v12 = vld [vmem:[%s2511_s2] sm:$0x3] (!%p1751_p10) }
  0x25   : > { %s2320_s11 = scalar_lea.vmem %s2510_s1, %s1913_s8 }
  0x26   : > { %v394_v11 = vshrl.u32 (!%p1751_p10), %v393_v10, 7 }
  0x28   : > { %v395_v13 = vsub.s32 (!%p1751_p10), 0, %v394_v11  ;;  %v399_v14 = vsub.s32 (!%p1751_p10), 1, %v394_v11 }
  0x2a   : > { %v396_v15 = vrot.slane %v391_v12, %v395_v13  ;;  %v400_v16 = vrot.slane %v391_v12, %v399_v14 }
  0x2c   : > { %403 = vst [vmem:[#allocation2] sm:$0xff] %v396_v15  ;;  %405 = vst [vmem:[#allocation2 + $0x10] sm:$0xff] %v396_v15 }
  0x2d   : > { %404 = vst [vmem:[#allocation2 + $0x8] sm:$0xff] %v400_v16  ;;  %406 = vst [vmem:[#allocation2 + $0x18] sm:$0xff] %v400_v16 }
  0x2e PF: > { %v1975_v17 = vld [vmem:[%s2320_s11 + $0x4] ss:$8 sps:$4 sm:$0xff]   ;;  %v1979_v19 = vld [vmem:[%s2320_s11] ss:$8 sps:$4 sm:$0xff]   ;;  %v1981_v21 = vld [vmem:[%s2320_s11 + $0x14] ss:$8 sps:$4 sm:$0xff]  }
  0x2f   : > { %v1977_v18 = vld [vmem:[%s2320_s11 + $0x204] ss:$8 sps:$4 sm:$0xff]   ;;  %1331 = vmatprep.subr.bf16.mxu1 %v1975_v17  ;;  %v1980_v20 = vld [vmem:[%s2320_s11 + $0x200] ss:$8 sps:$4 sm:$0xff]   ;;  %v1983_v22 = vld [vmem:[%s2320_s11 + $0x214] ss:$8 sps:$4 sm:$0xff]  }
  0x30   : > { %1417 = vmatprep.subr.bf16.mxu0 %v1977_v18  ;;  %1332 = vmatpush1.bf16.msra.mxu1 %v1979_v19  ;;  %v1985_v23 = vld [vmem:[%s2320_s11 + $0x10] ss:$8 sps:$4 sm:$0xff]   ;;  %v1987_v25 = vld [vmem:[%s2320_s11 + $0x24] ss:$8 sps:$4 sm:$0xff]   ;;  %v1991_v27 = vld [vmem:[%s2320_s11 + $0x20] ss:$8 sps:$4 sm:$0xff]  }
  0x31   : > { %1418 = vmatpush1.bf16.msra.mxu0 %v1980_v20  ;;  %1333 = vmatprep.subr.bf16.mxu1 %v1981_v21  ;;  %v1986_v24 = vld [vmem:[%s2320_s11 + $0x210] ss:$8 sps:$4 sm:$0xff]   ;;  %v1989_v26 = vld [vmem:[%s2320_s11 + $0x224] ss:$8 sps:$4 sm:$0xff]   ;;  %v1992_v28 = vld [vmem:[%s2320_s11 + $0x220] ss:$8 sps:$4 sm:$0xff]  }
  0x32   : > { %1419 = vmatprep.subr.bf16.mxu0 %v1983_v22  ;;  %v1993_v29 = vld [vmem:[%s2320_s11 + $0x34] ss:$8 sps:$4 sm:$0xff]   ;;  %v1997_v31 = vld [vmem:[%s2320_s11 + $0x30] ss:$8 sps:$4 sm:$0xff]   ;;  %v1999_v33 = vld [vmem:[%s2320_s11 + $0x44] ss:$8 sps:$4 sm:$0xff]  }
  0x33   : > { %v1995_v30 = vld [vmem:[%s2320_s11 + $0x234] ss:$8 sps:$4 sm:$0xff]   ;;  %v1998_v32 = vld [vmem:[%s2320_s11 + $0x230] ss:$8 sps:$4 sm:$0xff]   ;;  %v2001_v34 = vld [vmem:[%s2320_s11 + $0x244] ss:$8 sps:$4 sm:$0xff]  }
  0x34   : > { %1334 = vmatpush1.bf16.msra.mxu1 %v1985_v23  ;;  %v2003_v35 = vld [vmem:[%s2320_s11 + $0x40] ss:$8 sps:$4 sm:$0xff]   ;;  %v2005_v37 = vld [vmem:[%s2320_s11 + $0x54] ss:$8 sps:$4 sm:$0xff]   ;;  %v2009_v39 = vld [vmem:[%s2320_s11 + $0x50] ss:$8 sps:$4 sm:$0xff]  }
  0x35   : > { %1420 = vmatpush1.bf16.msra.mxu0 %v1986_v24  ;;  %1335 = vmatprep.subr.bf16.mxu1 %v1987_v25  ;;  %v2004_v36 = vld [vmem:[%s2320_s11 + $0x240] ss:$8 sps:$4 sm:$0xff]   ;;  %v2007_v38 = vld [vmem:[%s2320_s11 + $0x254] ss:$8 sps:$4 sm:$0xff]   ;;  %v2010_v40 = vld [vmem:[%s2320_s11 + $0x250] ss:$8 sps:$4 sm:$0xff]  }
  0x36   : > { %1421 = vmatprep.subr.bf16.mxu0 %v1989_v26  ;;  %v2011_v41 = vld [vmem:[%s2320_s11 + $0x64] ss:$8 sps:$4 sm:$0xff]   ;;  %v2015_v43 = vld [vmem:[%s2320_s11 + $0x60] ss:$8 sps:$4 sm:$0xff]   ;;  %v2017_v45 = vld [vmem:[%s2320_s11 + $0x74] ss:$8 sps:$4 sm:$0xff]  }
  0x37   : > { %v2013_v42 = vld [vmem:[%s2320_s11 + $0x264] ss:$8 sps:$4 sm:$0xff]   ;;  %v2016_v44 = vld [vmem:[%s2320_s11 + $0x260] ss:$8 sps:$4 sm:$0xff]   ;;  %v2019_v46 = vld [vmem:[%s2320_s11 + $0x274] ss:$8 sps:$4 sm:$0xff]  }
  0x38   : > { %1336 = vmatpush1.bf16.msra.mxu1 %v1991_v27  ;;  %v2021_v47 = vld [vmem:[%s2320_s11 + $0x70] ss:$8 sps:$4 sm:$0xff]   ;;  %v2023_v49 = vld [vmem:[%s2320_s11 + $0x84] ss:$8 sps:$4 sm:$0xff]   ;;  %v2027_v51 = vld [vmem:[%s2320_s11 + $0x80] ss:$8 sps:$4 sm:$0xff]  }
  0x39   : > { %1422 = vmatpush1.bf16.msra.mxu0 %v1992_v28  ;;  %1337 = vmatprep.subr.bf16.mxu1 %v1993_v29  ;;  %v2022_v48 = vld [vmem:[%s2320_s11 + $0x270] ss:$8 sps:$4 sm:$0xff]   ;;  %v2025_v50 = vld [vmem:[%s2320_s11 + $0x284] ss:$8 sps:$4 sm:$0xff]   ;;  %v2028_v52 = vld [vmem:[%s2320_s11 + $0x280] ss:$8 sps:$4 sm:$0xff]  }
  0x3a   : > { %1423 = vmatprep.subr.bf16.mxu0 %v1995_v30  ;;  %v2029_v53 = vld [vmem:[%s2320_s11 + $0x94] ss:$8 sps:$4 sm:$0xff]   ;;  %v2033_v55 = vld [vmem:[%s2320_s11 + $0x90] ss:$8 sps:$4 sm:$0xff]   ;;  %v2035_v57 = vld [vmem:[%s2320_s11 + $0xa4] ss:$8 sps:$4 sm:$0xff]  }
  0x3b   : > { %v2031_v54 = vld [vmem:[%s2320_s11 + $0x294] ss:$8 sps:$4 sm:$0xff]   ;;  %v2034_v56 = vld [vmem:[%s2320_s11 + $0x290] ss:$8 sps:$4 sm:$0xff]   ;;  %v2037_v58 = vld [vmem:[%s2320_s11 + $0x2a4] ss:$8 sps:$4 sm:$0xff]  }
  0x3c   : > { %1338 = vmatpush1.bf16.msra.mxu1 %v1997_v31  ;;  %v2039_v59 = vld [vmem:[%s2320_s11 + $0xa0] ss:$8 sps:$4 sm:$0xff]   ;;  %v2041_v61 = vld [vmem:[%s2320_s11 + $0xb4] ss:$8 sps:$4 sm:$0xff]   ;;  %v2045_v63 = vld [vmem:[%s2320_s11 + $0xb0] ss:$8 sps:$4 sm:$0xff]  }
  0x3d   : > { %1424 = vmatpush1.bf16.msra.mxu0 %v1998_v32  ;;  %1339 = vmatprep.subr.bf16.mxu1 %v1999_v33  ;;  %v2040_v60 = vld [vmem:[%s2320_s11 + $0x2a0] ss:$8 sps:$4 sm:$0xff]   ;;  %v2043_v62 = vld [vmem:[%s2320_s11 + $0x2b4] ss:$8 sps:$4 sm:$0xff]   ;;  %v2046_v0 = vld [vmem:[%s2320_s11 + $0x2b0] ss:$8 sps:$4 sm:$0xff]  }
  0x3e   : > { %1425 = vmatprep.subr.bf16.mxu0 %v2001_v34  ;;  %v2073_v1 = vld [vmem:[%s2322_s12 + $0x4] ss:$36 sps:$4 sm:$0xff]   ;;  %v2079_v4 = vld [vmem:[%s2322_s12 + $0x14] ss:$36 sps:$4 sm:$0xff]   ;;  %p1905_p11 = scmp.ne.s32.totalorder %s2234_s17, 1 }
  0x3f   : > { %v2047_v2 = vld [vmem:[%s2320_s11 + $0xc4] ss:$8 sps:$4 sm:$0xff]   ;;  %1363 = vmatprep.mubr.bf16.mxu1 %v2073_v1  ;;  %v2051_v5 = vld [vmem:[%s2320_s11 + $0xc0] ss:$8 sps:$4 sm:$0xff]   ;;  %v2053_v7 = vld [vmem:[%s2320_s11 + $0xd4] ss:$8 sps:$4 sm:$0xff]   ;;  %1449 = vmatprep.mubr.bf16.mxu0 %v2079_v4 }
  0x40   : > { %1340 = vmatpush1.bf16.msra.mxu1 %v2003_v35  ;;  %v2049_v3 = vld [vmem:[%s2320_s11 + $0x2c4] ss:$8 sps:$4 sm:$0xff]   ;;  %v2052_v6 = vld [vmem:[%s2320_s11 + $0x2c0] ss:$8 sps:$4 sm:$0xff]   ;;  %v2055_v8 = vld [vmem:[%s2320_s11 + $0x2d4] ss:$8 sps:$4 sm:$0xff]  }
  0x41   : > { %1426 = vmatpush1.bf16.msra.mxu0 %v2004_v36  ;;  %1341 = vmatprep.subr.bf16.mxu1 %v2005_v37  ;;  %v2057_v9 = vld [vmem:[%s2320_s11 + $0xd0] ss:$8 sps:$4 sm:$0xff]   ;;  %v2059_v11 = vld [vmem:[%s2320_s11 + $0xe4] ss:$8 sps:$4 sm:$0xff]   ;;  %v2063_v13 = vld [vmem:[%s2320_s11 + $0xe0] ss:$8 sps:$4 sm:$0xff]  }
  0x42   : > { %1427 = vmatprep.subr.bf16.mxu0 %v2007_v38  ;;  %v2058_v10 = vld [vmem:[%s2320_s11 + $0x2d0] ss:$8 sps:$4 sm:$0xff]   ;;  %v2061_v12 = vld [vmem:[%s2320_s11 + $0x2e4] ss:$8 sps:$4 sm:$0xff]   ;;  %v2064_v14 = vld [vmem:[%s2320_s11 + $0x2e0] ss:$8 sps:$4 sm:$0xff]  }
  0x43   : > { %v2065_v15 = vld [vmem:[%s2320_s11 + $0xf4] ss:$8 sps:$4 sm:$0xff]   ;;  %v2069_v17 = vld [vmem:[%s2320_s11 + $0xf0] ss:$8 sps:$4 sm:$0xff]   ;;  %v2076_v19 = vld [vmem:[%s2320_s11 + $0x104] ss:$8 sps:$4 sm:$0xff]  }
  0x44   : > { %1342 = vmatpush1.bf16.msra.mxu1 %v2009_v39  ;;  %v2067_v16 = vld [vmem:[%s2320_s11 + $0x2f4] ss:$8 sps:$4 sm:$0xff]   ;;  %v2070_v18 = vld [vmem:[%s2320_s11 + $0x2f0] ss:$8 sps:$4 sm:$0xff]   ;;  %v2082_v20 = vld [vmem:[%s2320_s11 + $0x304] ss:$8 sps:$4 sm:$0xff]  }
  0x45   : > { %1428 = vmatpush1.bf16.msra.mxu0 %v2010_v40  ;;  %1343 = vmatprep.subr.bf16.mxu1 %v2011_v41  ;;  %v2071_v21 = vld [vmem:[%s2322_s12] ss:$36 sps:$4 sm:$0xff]   ;;  %v2077_v23 = vld [vmem:[%s2322_s12 + $0x10] ss:$36 sps:$4 sm:$0xff]  }
  0x46   : > { %1429 = vmatprep.subr.bf16.mxu0 %v2013_v42  ;;  %v2074_v22 = vld [vmem:[%s2320_s11 + $0x100] ss:$8 sps:$4 sm:$0xff]   ;;  %v2085_v25 = vld [vmem:[%s2320_s11 + $0x114] ss:$8 sps:$4 sm:$0xff]   ;;  %v2083_v27 = vld [vmem:[%s2320_s11 + $0x110] ss:$8 sps:$4 sm:$0xff]  }
  0x47   : > { %v2080_v24 = vld [vmem:[%s2320_s11 + $0x300] ss:$8 sps:$4 sm:$0xff]   ;;  %v2088_v26 = vld [vmem:[%s2320_s11 + $0x314] ss:$8 sps:$4 sm:$0xff]   ;;  %v2086_v28 = vld [vmem:[%s2320_s11 + $0x310] ss:$8 sps:$4 sm:$0xff]  }
  0x48   : > { %1344 = vmatpush1.bf16.msra.mxu1 %v2015_v43  ;;  %v2091_v29 = vld [vmem:[%s2320_s11 + $0x124] ss:$8 sps:$4 sm:$0xff]   ;;  %v2089_v31 = vld [vmem:[%s2320_s11 + $0x120] ss:$8 sps:$4 sm:$0xff]   ;;  %v2097_v33 = vld [vmem:[%s2320_s11 + $0x134] ss:$8 sps:$4 sm:$0xff]  }
  0x49   : > { %1430 = vmatpush1.bf16.msra.mxu0 %v2016_v44  ;;  %1345 = vmatprep.subr.bf16.mxu1 %v2017_v45  ;;  %v2094_v30 = vld [vmem:[%s2320_s11 + $0x324] ss:$8 sps:$4 sm:$0xff]   ;;  %v2092_v32 = vld [vmem:[%s2320_s11 + $0x320] ss:$8 sps:$4 sm:$0xff]   ;;  %v2100_v34 = vld [vmem:[%s2320_s11 + $0x334] ss:$8 sps:$4 sm:$0xff]  }
  0x4a   : > { %1431 = vmatprep.subr.bf16.mxu0 %v2019_v46  ;;  %v2095_v35 = vld [vmem:[%s2320_s11 + $0x130] ss:$8 sps:$4 sm:$0xff]   ;;  %v2103_v37 = vld [vmem:[%s2320_s11 + $0x144] ss:$8 sps:$4 sm:$0xff]   ;;  %v2101_v39 = vld [vmem:[%s2320_s11 + $0x140] ss:$8 sps:$4 sm:$0xff]  }
  0x4b   : > { %v2098_v36 = vld [vmem:[%s2320_s11 + $0x330] ss:$8 sps:$4 sm:$0xff]   ;;  %v2106_v38 = vld [vmem:[%s2320_s11 + $0x344] ss:$8 sps:$4 sm:$0xff]   ;;  %v2104_v40 = vld [vmem:[%s2320_s11 + $0x340] ss:$8 sps:$4 sm:$0xff]  }
  0x4c   : > { %1346 = vmatpush1.bf16.msra.mxu1 %v2021_v47  ;;  %v2109_v41 = vld [vmem:[%s2320_s11 + $0x154] ss:$8 sps:$4 sm:$0xff]   ;;  %v2107_v43 = vld [vmem:[%s2320_s11 + $0x150] ss:$8 sps:$4 sm:$0xff]   ;;  %v2115_v45 = vld [vmem:[%s2320_s11 + $0x164] ss:$8 sps:$4 sm:$0xff]  }
  0x4d   : > { %1432 = vmatpush1.bf16.msra.mxu0 %v2022_v48  ;;  %1347 = vmatprep.subr.bf16.mxu1 %v2023_v49  ;;  %v2112_v42 = vld [vmem:[%s2320_s11 + $0x354] ss:$8 sps:$4 sm:$0xff]   ;;  %v2110_v44 = vld [vmem:[%s2320_s11 + $0x350] ss:$8 sps:$4 sm:$0xff]   ;;  %v2118_v46 = vld [vmem:[%s2320_s11 + $0x364] ss:$8 sps:$4 sm:$0xff]  }
  0x4e   : > { %1433 = vmatprep.subr.bf16.mxu0 %v2025_v50  ;;  %v2113_v47 = vld [vmem:[%s2320_s11 + $0x160] ss:$8 sps:$4 sm:$0xff]   ;;  %v2121_v49 = vld [vmem:[%s2320_s11 + $0x174] ss:$8 sps:$4 sm:$0xff]  }
  0x4f   : > { %v2116_v48 = vld [vmem:[%s2320_s11 + $0x360] ss:$8 sps:$4 sm:$0xff]   ;;  %v2124_v50 = vld [vmem:[%s2320_s11 + $0x374] ss:$8 sps:$4 sm:$0xff]  }
  0x50   : > { %1348 = vmatpush1.bf16.msra.mxu1 %v2027_v51  ;;  %v2175_v51 = vld [vmem:[%s2322_s12 + $0xc] ss:$36 sps:$4 sm:$0xff]   ;;  %v2137_v1 = vld [vmem:[%s2320_s11 + $0x1a0] ss:$8 sps:$4 sm:$0xff]  }
  0x51   : > { %1434 = vmatpush1.bf16.msra.mxu0 %v2028_v52  ;;  %1349 = vmatprep.subr.bf16.mxu1 %v2029_v53  ;;  %v2178_v52 = vld [vmem:[%s2322_s12 + $0x1c] ss:$36 sps:$4 sm:$0xff]   ;;  %v2119_v53 = vld [vmem:[%s2320_s11 + $0x170] ss:$8 sps:$4 sm:$0xff]  }
  0x52   : > { %1435 = vmatprep.subr.bf16.mxu0 %v2031_v54  ;;  %v2122_v54 = vld [vmem:[%s2320_s11 + $0x370] ss:$8 sps:$4 sm:$0xff]   ;;  %v2148_v4 = vld [vmem:[%s2320_s11 + $0x3b4] ss:$8 sps:$4 sm:$0xff]  }
  0x54   : > { %1350 = vmatpush1.bf16.msra.mxu1 %v2033_v55  ;;  %v2127_v55 = vld [vmem:[%s2320_s11 + $0x184] ss:$8 sps:$4 sm:$0xff]  }
  0x55   : > { %1436 = vmatpush1.bf16.msra.mxu0 %v2034_v56  ;;  %1351 = vmatprep.subr.bf16.mxu1 %v2035_v57  ;;  %v2130_v56 = vld [vmem:[%s2320_s11 + $0x384] ss:$8 sps:$4 sm:$0xff]   ;;  %v2125_v57 = vld [vmem:[%s2320_s11 + $0x180] ss:$8 sps:$4 sm:$0xff]  }
  0x56   : > { %1437 = vmatprep.subr.bf16.mxu0 %v2037_v58  ;;  %v2128_v58 = vld [vmem:[%s2320_s11 + $0x380] ss:$8 sps:$4 sm:$0xff]  }
  0x58   : > { %1352 = vmatpush1.bf16.msra.mxu1 %v2039_v59  ;;  %v2133_v59 = vld [vmem:[%s2320_s11 + $0x194] ss:$8 sps:$4 sm:$0xff]  }
  0x59   : > { %1438 = vmatpush1.bf16.msra.mxu0 %v2040_v60  ;;  %1353 = vmatprep.subr.bf16.mxu1 %v2041_v61  ;;  %v2136_v60 = vld [vmem:[%s2320_s11 + $0x394] ss:$8 sps:$4 sm:$0xff]   ;;  %v2131_v61 = vld [vmem:[%s2320_s11 + $0x190] ss:$8 sps:$4 sm:$0xff]  }
  0x5a   : > { %1439 = vmatprep.subr.bf16.mxu0 %v2043_v62  ;;  %v2134_v62 = vld [vmem:[%s2320_s11 + $0x390] ss:$8 sps:$4 sm:$0xff]  }
  0x5c   : > { %1354 = vmatpush1.bf16.msra.mxu1 %v2045_v63  ;;  %v2139_v63 = vld [vmem:[%s2320_s11 + $0x1a4] ss:$8 sps:$4 sm:$0xff]  }
  0x5d   : > { %1440 = vmatpush1.bf16.msra.mxu0 %v2046_v0  ;;  %1355 = vmatprep.subr.bf16.mxu1 %v2047_v2  ;;  %v2142_v0 = vld [vmem:[%s2320_s11 + $0x3a4] ss:$8 sps:$4 sm:$0xff]   ;;  %v2140_v2 = vld [vmem:[%s2320_s11 + $0x3a0] ss:$8 sps:$4 sm:$0xff]  }
  0x5e   : > { %1441 = vmatprep.subr.bf16.mxu0 %v2049_v3  ;;  %v2145_v3 = vld [vmem:[%s2320_s11 + $0x1b4] ss:$8 sps:$4 sm:$0xff]  }
  0x60   : > { %1356 = vmatpush1.bf16.msra.mxu1 %v2051_v5  ;;  %v2143_v5 = vld [vmem:[%s2320_s11 + $0x1b0] ss:$8 sps:$4 sm:$0xff]  }
  0x61   : > { %1442 = vmatpush1.bf16.msra.mxu0 %v2052_v6  ;;  %1357 = vmatprep.subr.bf16.mxu1 %v2053_v7  ;;  %v2146_v6 = vld [vmem:[%s2320_s11 + $0x3b0] ss:$8 sps:$4 sm:$0xff]   ;;  %v2151_v7 = vld [vmem:[%s2320_s11 + $0x1c4] ss:$8 sps:$4 sm:$0xff]  }
  0x62   : > { %1443 = vmatprep.subr.bf16.mxu0 %v2055_v8  ;;  %v2154_v8 = vld [vmem:[%s2320_s11 + $0x3c4] ss:$8 sps:$4 sm:$0xff]  }
  0x64   : > { %1358 = vmatpush1.bf16.msra.mxu1 %v2057_v9  ;;  %v2149_v9 = vld [vmem:[%s2320_s11 + $0x1c0] ss:$8 sps:$4 sm:$0xff]  }
  0x65   : > { %1444 = vmatpush1.bf16.msra.mxu0 %v2058_v10  ;;  %1359 = vmatprep.subr.bf16.mxu1 %v2059_v11  ;;  %v2152_v10 = vld [vmem:[%s2320_s11 + $0x3c0] ss:$8 sps:$4 sm:$0xff]   ;;  %v2157_v11 = vld [vmem:[%s2320_s11 + $0x1d4] ss:$8 sps:$4 sm:$0xff]  }
  0x66   : > { %1445 = vmatprep.subr.bf16.mxu0 %v2061_v12  ;;  %v2160_v12 = vld [vmem:[%s2320_s11 + $0x3d4] ss:$8 sps:$4 sm:$0xff]  }
  0x68   : > { %1360 = vmatpush1.bf16.msra.mxu1 %v2063_v13  ;;  %v2155_v13 = vld [vmem:[%s2320_s11 + $0x1d0] ss:$8 sps:$4 sm:$0xff]  }
  0x69   : > { %1446 = vmatpush1.bf16.msra.mxu0 %v2064_v14  ;;  %1361 = vmatprep.subr.bf16.mxu1 %v2065_v15  ;;  %v2158_v14 = vld [vmem:[%s2320_s11 + $0x3d0] ss:$8 sps:$4 sm:$0xff]   ;;  %v2163_v15 = vld [vmem:[%s2320_s11 + $0x1e4] ss:$8 sps:$4 sm:$0xff]  }
  0x6a   : > { %1447 = vmatprep.subr.bf16.mxu0 %v2067_v16  ;;  %v2166_v16 = vld [vmem:[%s2320_s11 + $0x3e4] ss:$8 sps:$4 sm:$0xff]  }
  0x6c   : > { %1362 = vmatpush1.bf16.msra.mxu1 %v2069_v17  ;;  %v2161_v17 = vld [vmem:[%s2320_s11 + $0x1e0] ss:$8 sps:$4 sm:$0xff]  }
  0x6d   : > { %1448 = vmatpush1.bf16.msra.mxu0 %v2070_v18  ;;  %1374 = vmatprep.subr.bf16.mxu1 %v2076_v19  ;;  %v2164_v18 = vld [vmem:[%s2320_s11 + $0x3e0] ss:$8 sps:$4 sm:$0xff]   ;;  %v2169_v19 = vld [vmem:[%s2320_s11 + $0x1f4] ss:$8 sps:$4 sm:$0xff]  }
  0x6e   : > { %1460 = vmatprep.subr.bf16.mxu0 %v2082_v20  ;;  %v2172_v20 = vld [vmem:[%s2320_s11 + $0x3f4] ss:$8 sps:$4 sm:$0xff]  }
  0x6f   : > { %1364 = vmatmul.mubr.bf16.vlgmr.msra.gmra.mrb[0].mxu1 %v2071_v21  ;;  %v2167_v21 = vld [vmem:[%s2320_s11 + $0x1f0] ss:$8 sps:$4 sm:$0xff]  }
  0x70   : > { %1450 = vmatmul.mubr.bf16.vlgmr.msra.gmra.mrb[0].mxu0 %v2077_v23  ;;  %1375 = vmatpush1.bf16.msra.mxu1 %v2074_v22  ;;  %v2170_v22 = vld [vmem:[%s2320_s11 + $0x3f0] ss:$8 sps:$4 sm:$0xff]   ;;  %v2181_v23 = vld [vmem:[%s2320_s11 + $0x404] ss:$8 sps:$4 sm:$0xff]  }
  0x71   : > { %1461 = vmatpush1.bf16.msra.mxu0 %v2080_v24  ;;  %1376 = vmatprep.subr.bf16.mxu1 %v2085_v25  ;;  %v2173_v24 = vld [vmem:[%s2322_s12 + $0x8] ss:$36 sps:$4 sm:$0xff]   ;;  %v2176_v25 = vld [vmem:[%s2322_s12 + $0x18] ss:$36 sps:$4 sm:$0xff]  }
  0x72   : > { %1462 = vmatprep.subr.bf16.mxu0 %v2088_v26  ;;  %1406 = vmatprep.mubr.bf16.mxu1 %v2175_v51  ;;  %v2179_v26 = vld [vmem:[%s2320_s11 + $0x400] ss:$8 sps:$4 sm:$0xff]  }
  0x73   : > { %1492 = vmatprep.mubr.bf16.mxu0 %v2178_v52 }
  0x74   : > { %1377 = vmatpush1.bf16.msra.mxu1 %v2083_v27  ;;  %v2184_v27 = vld [vmem:[%s2320_s11 + $0x414] ss:$8 sps:$4 sm:$0xff]  }
  0x75   : > { %1463 = vmatpush1.bf16.msra.mxu0 %v2086_v28  ;;  %1378 = vmatprep.subr.bf16.mxu1 %v2091_v29  ;;  %v2182_v28 = vld [vmem:[%s2320_s11 + $0x410] ss:$8 sps:$4 sm:$0xff]   ;;  %v2244_v29 = vmov 0  }
  0x76   : > { %1464 = vmatprep.subr.bf16.mxu0 %v2094_v30  ;;  %v2187_v30 = vld [vmem:[%s2320_s11 + $0x424] ss:$8 sps:$4 sm:$0xff]  }
  0x78   : > { %1379 = vmatpush1.bf16.msra.mxu1 %v2089_v31  ;;  %v2185_v31 = vld [vmem:[%s2320_s11 + $0x420] ss:$8 sps:$4 sm:$0xff]  }
  0x79   : > { %1465 = vmatpush1.bf16.msra.mxu0 %v2092_v32  ;;  %1380 = vmatprep.subr.bf16.mxu1 %v2097_v33  ;;  %v2190_v32 = vld [vmem:[%s2320_s11 + $0x434] ss:$8 sps:$4 sm:$0xff]   ;;  %v2188_v33 = vld [vmem:[%s2320_s11 + $0x430] ss:$8 sps:$4 sm:$0xff]  }
  0x7a   : > { %1466 = vmatprep.subr.bf16.mxu0 %v2100_v34  ;;  %v2193_v34 = vld [vmem:[%s2320_s11 + $0x444] ss:$8 sps:$4 sm:$0xff]  }
  0x7c   : > { %1381 = vmatpush1.bf16.msra.mxu1 %v2095_v35  ;;  %v2191_v35 = vld [vmem:[%s2320_s11 + $0x440] ss:$8 sps:$4 sm:$0xff]  }
  0x7d   : > { %1467 = vmatpush1.bf16.msra.mxu0 %v2098_v36  ;;  %1382 = vmatprep.subr.bf16.mxu1 %v2103_v37  ;;  %v2196_v36 = vld [vmem:[%s2320_s11 + $0x454] ss:$8 sps:$4 sm:$0xff]   ;;  %v2194_v37 = vld [vmem:[%s2320_s11 + $0x450] ss:$8 sps:$4 sm:$0xff]  }
  0x7e   : > { %1468 = vmatprep.subr.bf16.mxu0 %v2106_v38  ;;  %v2199_v38 = vld [vmem:[%s2320_s11 + $0x464] ss:$8 sps:$4 sm:$0xff]  }
  0x80   : > { %1383 = vmatpush1.bf16.msra.mxu1 %v2101_v39  ;;  %v2197_v39 = vld [vmem:[%s2320_s11 + $0x460] ss:$8 sps:$4 sm:$0xff]  }
  0x81   : > { %1469 = vmatpush1.bf16.msra.mxu0 %v2104_v40  ;;  %1384 = vmatprep.subr.bf16.mxu1 %v2109_v41  ;;  %v2202_v40 = vld [vmem:[%s2320_s11 + $0x474] ss:$8 sps:$4 sm:$0xff]   ;;  %v2200_v41 = vld [vmem:[%s2320_s11 + $0x470] ss:$8 sps:$4 sm:$0xff]  }
  0x82   : > { %1470 = vmatprep.subr.bf16.mxu0 %v2112_v42  ;;  %v2203_v42 = vld [vmem:[%s2322_s12 + $0x20] ss:$36 sps:$4 sm:$0xff]  }
  0x84   : > { %1385 = vmatpush1.bf16.msra.mxu1 %v2107_v43 }
  0x85   : > { %1471 = vmatpush1.bf16.msra.mxu0 %v2110_v44  ;;  %1386 = vmatprep.subr.bf16.mxu1 %v2115_v45 }
  0x86   : > { %1472 = vmatprep.subr.bf16.mxu0 %v2118_v46 }
  0x88   : > { %1387 = vmatpush1.bf16.msra.mxu1 %v2113_v47  ;;  %v407_v47 = vld [vmem:[#allocation2] sm:$0xff] }
  0x89   : > { %1473 = vmatpush1.bf16.msra.mxu0 %v2116_v48  ;;  %1388 = vmatprep.subr.bf16.mxu1 %v2121_v49 }
  0x8a   : > { %1474 = vmatprep.subr.bf16.mxu0 %v2124_v50  ;;  %v408_v50 = vld [vmem:[#allocation2 + $0x8] sm:$0xff] }
  0x8c   : > { %1389 = vmatpush1.bf16.msra.mxu1 %v2119_v53  ;;  %v409_v53 = vld [vmem:[#allocation2 + $0x10] sm:$0xff] }
  0x8d   : > { %1475 = vmatpush1.bf16.msra.mxu0 %v2122_v54  ;;  %1390 = vmatprep.subr.bf16.mxu1 %v2127_v55 }
  0x8e   : > { %1476 = vmatprep.subr.bf16.mxu0 %v2130_v56 }
  0x90   : > { %1391 = vmatpush1.bf16.msra.mxu1 %v2125_v57  ;;  %v410_v57 = vld [vmem:[#allocation2 + $0x18] sm:$0xff] }
  0x91   : > { %1477 = vmatpush1.bf16.msra.mxu0 %v2128_v58  ;;  %1392 = vmatprep.subr.bf16.mxu1 %v2133_v59 }
  0x92   : > { %1478 = vmatprep.subr.bf16.mxu0 %v2136_v60 }
  0x94   : > { %1393 = vmatpush1.bf16.msra.mxu1 %v2131_v61 }
  0x95   : > { %1479 = vmatpush1.bf16.msra.mxu0 %v2134_v62  ;;  %1394 = vmatprep.subr.bf16.mxu1 %v2139_v63 }
  0x96   : > { %1480 = vmatprep.subr.bf16.mxu0 %v2142_v0 }
  0x98   : > { %1395 = vmatpush1.bf16.msra.mxu1 %v2137_v1  ;;  %v1562_v1 = vld [vmem:[%s2512_s3] sm:$0xff] (!%p1905_p11) }
  0x99   : > { %1481 = vmatpush1.bf16.msra.mxu0 %v2140_v2  ;;  %1396 = vmatprep.subr.bf16.mxu1 %v2145_v3  ;;  %v1564_v2 = vunpack.c.l.bf16 (!%p1905_p11), %v1562_v1  ;;  %v1565_v3 = vunpack.c.h.bf16 (!%p1905_p11), %v1562_v1 }
  0x9a   : > { %1482 = vmatprep.subr.bf16.mxu0 %v2148_v4 }
  0x9c   : > { %1397 = vmatpush1.bf16.msra.mxu1 %v2143_v5 }
  0x9d   : > { %1483 = vmatpush1.bf16.msra.mxu0 %v2146_v6  ;;  %1398 = vmatprep.subr.bf16.mxu1 %v2151_v7  ;;  %v1563_v6 = vld [vmem:[%s2512_s3 + $0x8] sm:$0xff] (!%p1905_p11) }
  0x9e   : > { %1484 = vmatprep.subr.bf16.mxu0 %v2154_v8  ;;  %v1566_v7 = vunpack.c.l.bf16 (!%p1905_p11), %v1563_v6  ;;  %v1567_v8 = vunpack.c.h.bf16 (!%p1905_p11), %v1563_v6 }
  0xa0   : > { %1399 = vmatpush1.bf16.msra.mxu1 %v2149_v9 }
  0xa1   : > { %1485 = vmatpush1.bf16.msra.mxu0 %v2152_v10  ;;  %1400 = vmatprep.subr.bf16.mxu1 %v2157_v11 }
  0xa2   : > { %1486 = vmatprep.subr.bf16.mxu0 %v2160_v12 }
  0xa4   : > { %1401 = vmatpush1.bf16.msra.mxu1 %v2155_v13 }
  0xa5   : > { %1487 = vmatpush1.bf16.msra.mxu0 %v2158_v14  ;;  %1402 = vmatprep.subr.bf16.mxu1 %v2163_v15 }
  0xa6   : > { %1488 = vmatprep.subr.bf16.mxu0 %v2166_v16 }
  0xa8   : > { %1403 = vmatpush1.bf16.msra.mxu1 %v2161_v17 }
  0xa9   : > { %1489 = vmatpush1.bf16.msra.mxu0 %v2164_v18  ;;  %1404 = vmatprep.subr.bf16.mxu1 %v2169_v19 }
  0xaa   : > { %1490 = vmatprep.subr.bf16.mxu0 %v2172_v20 }
  0xac   : > { %1405 = vmatpush1.bf16.msra.mxu1 %v2167_v21 }
  0xad   : > { %1491 = vmatpush1.bf16.msra.mxu0 %v2170_v22 }
  0xae   : > { %1503 = vmatprep.subr.bf16.mxu0 %v2181_v23 }
  0xaf   : > { %1407 = vmatmul.mubr.bf16.vlgmr.msra.gmra.mrb[0].mxu1 %v2173_v24 }
  0xb0   : > { %1493 = vmatmul.mubr.bf16.vlgmr.msra.gmra.mrb[0].mxu0 %v2176_v25 }
  0xb1   : > { %1504 = vmatpush1.bf16.msra.mxu0 %v2179_v26  ;;  %1535 = vmatprep.mubr.bf16.mxu0 %v2244_v29 }
  0xb2   : > { %1505 = vmatprep.subr.bf16.mxu0 %v2184_v27 }
  0xb5   : > { %1506 = vmatpush1.bf16.msra.mxu0 %v2182_v28 }
  0xb6   : > { %1507 = vmatprep.subr.bf16.mxu0 %v2187_v30 }
  0xb9   : > { %1508 = vmatpush1.bf16.msra.mxu0 %v2185_v31 }
  0xba   : > { %1509 = vmatprep.subr.bf16.mxu0 %v2190_v32 }
  0xbd   : > { %1510 = vmatpush1.bf16.msra.mxu0 %v2188_v33 }
  0xbe   : > { %1511 = vmatprep.subr.bf16.mxu0 %v2193_v34 }
  0xc1   : > { %1512 = vmatpush1.bf16.msra.mxu0 %v2191_v35 }
  0xc2   : > { %1513 = vmatprep.subr.bf16.mxu0 %v2196_v36 }
  0xc5   : > { %1514 = vmatpush1.bf16.msra.mxu0 %v2194_v37 }
  0xc6   : > { %1515 = vmatprep.subr.bf16.mxu0 %v2199_v38 }
  0xc9   : > { %1516 = vmatpush1.bf16.msra.mxu0 %v2197_v39 }
  0xca   : > { %1517 = vmatprep.subr.bf16.mxu0 %v2202_v40 }
  0xcd   : > { %1518 = vmatpush1.bf16.msra.mxu0 %v2200_v41 }
  0xd0   : > { %1536 = vmatmul.mubr.bf16.vlgmr.msra.gmra.mrb[0].mxu0 %v2203_v42 }
 0x182   : > { %v1408_v43 = vpop.f32.mrb[0].mxu1 }
 0x183   : > { %v1410_v44 = vpop.f32.mrb[1].mxu1 }
 0x184   : > { %v1412_v45 = vpop.f32.mrb[2].mxu1 }
 0x185   : > { %v1414_v46 = vpop.f32.mrb[3].mxu1 }
 0x1a3   : > { %v1537_v48 = vpop.f32.mrb[0].mxu0 }
 0x1a4   : > { %v1916_v49 = vadd.f32 %v1537_v48, %v1408_v43  ;;  %v1539_v51 = vpop.f32.mrb[1].mxu0 }
 0x1a5   : > { %v1917_v52 = vadd.f32 %v1539_v51, %v1410_v44  ;;  %v1541_v54 = vpop.f32.mrb[2].mxu0  ;;  %1557 = sbr.rel (%p1905_p11) target bundleno = 442 (0x1ba), region = 70 }
 0x1a6   : > { %v1546_v55 = vadd.f32 %v1916_v49, %v407_v47  ;;  %v1918_v56 = vadd.f32 %v1541_v54, %v1412_v45  ;;  %v1543_v58 = vpop.f32.mrb[3].mxu0 }
 0x1a7   : > { %v1547_v59 = vadd.f32 %v1917_v52, %v408_v50  ;;  %v1919_v60 = vadd.f32 %v1543_v58, %v1414_v46 }
 0x1a8   : > { %1550 = vst [vmem:[#allocation2] sm:$0xff] %v1546_v55  ;;  %v1548_v61 = vadd.f32 %v1918_v56, %v409_v53 }
 0x1a9   : > { %1551 = vst [vmem:[#allocation2 + $0x8] sm:$0xff] %v1547_v59  ;;  %v1549_v62 = vadd.f32 %v1919_v60, %v410_v57 }
 0x1aa   : > { %1552 = vst [vmem:[#allocation2 + $0x10] sm:$0xff] %v1548_v61 }
 0x1ab   : > { %1553 = vst [vmem:[#allocation2 + $0x18] sm:$0xff] %v1549_v62 }
 0x1af   : > { %v1558_v63 = vld [vmem:[#allocation2] sm:$0xff] }
 0x1b0   : > { %v1559_v0 = vld [vmem:[#allocation2 + $0x8] sm:$0xff]  ;;  %v1568_v9 = vadd.f32 %v1564_v2, %v1558_v63 }
 0x1b1   : > { %v1560_v4 = vld [vmem:[#allocation2 + $0x10] sm:$0xff]  ;;  %v1569_v10 = vadd.f32 %v1565_v3, %v1559_v0 }
 0x1b2   : > { %v1561_v5 = vld [vmem:[#allocation2 + $0x18] sm:$0xff]  ;;  %v1570_v11 = vadd.f32 %v1566_v7, %v1560_v4  ;;  %v1572_v13 = vmax.f32 %v1568_v9, 0.0 }
 0x1b3   : > { %v1571_v12 = vadd.f32 %v1567_v8, %v1561_v5  ;;  %v1573_v14 = vmax.f32 %v1569_v10, 0.0 }
 0x1b4   : > { %v1574_v15 = vmax.f32 %v1570_v11, 0.0 }
 0x1b5   : > { %v1575_v16 = vmax.f32 %v1571_v12, 0.0  ;;  %v1914_v17 = vpack.c.bf16 %v1573_v14, %v1572_v13 }
 0x1b7   : > { %v1915_v18 = vpack.c.bf16 %v1575_v16, %v1574_v15  ;;  %1588 = vst [vmem:[%s2513_s4] sm:$0xff] %v1914_v17 }
 0x1b9   : > { %1589 = vst [vmem:[%s2513_s4 + $0x8] sm:$0xff] %v1915_v18 }
 0x1ba PF: > { %s14_s19 = sadd.s32 1, %s2242_s19   ;;  %s2514_s15 = smov %s2230_s16 }
 0x1bb   : > { %p11_p12 = scmp.ge.s32.totalorder %s14_s19, 4   ;;  %s2515_s16 = smov %s2305_s23 }
 0x1bc   : > { %s2516_s17 = smov %s2238_s18  ;;  %s2517_s18 = smov %s2519_s20 }
 0x1bd   :  { %13 = sbr.rel (!%p11_p12) target bundleno = 3 (0x3), region = 120 }

// kernel: _lambda_.33
= control target key start
LH: loop header
LB: loop body
LE: loop exit
PB: predicated region body
PF: predicated region fallthrough
CT: control target
= control target key end

     0   :  { %s2165_s12 = smov 0   ;;  %s2167_s13 = smov 0   ;;  %s2398_s0 = inlined_call_operand.vmem [shape: bf16[16,2304], index: 0, kind: input, shape index: {}]   ;;  %s2399_s1 = inlined_call_operand.vmem [shape: bf16[2304,256], index: 1, kind: input, shape index: {}]   ;;  %s2400_s2 = inlined_call_operand.vmem [shape: f32[1,256], index: 2, kind: input, shape index: {}]   ;;  %s2401_s3 = inlined_call_operand.vmem [shape: bf16[16,256], index: 3, kind: output, shape index: {}]  }
   0x1   :  { %s2169_s14 = smov 0   ;;  %s2171_s15 = smov 0  }
   0x2   :  { %s2173_s16 = smov 0  }
   0x3 LB: > { %s25_s17 = sadd.s32 1, %s2138_s15  ;;  %p48_p1 = scmp.ne.s32.totalorder %s2130_s13, %s2126_s12  ;;  %s2142_s16 = sphi %s2173_s16, %s13_s16   ;;  %s2138_s15 = sphi %s2171_s15, %s2405_s15   ;;  %s2134_s14 = sphi %s2169_s14, %s2404_s14   ;;  %s2130_s13 = sphi %s2167_s13, %s2403_s13   ;;  %s2126_s12 = sphi %s2165_s12, %s2402_s12  }
   0x4   : > { %p26_p0 = scmp.ge.s32.totalorder %s25_s17, 2  ;;  %p49_p2 = scmp.eq.s32.totalorder %s2142_s16, 0 }
   0x5   : > { %s41_s19 = sadd.s32 1, %s2130_s13  ;;  %p1642_p5 = scmp.ge.s32.totalorder %s2142_s16, 2 }
   0x6   : > { %s2407_s17 = smov (%p26_p0, %s25_s17), 0  ;;  %p50_p3 = por %p49_p2, %p48_p1 }
   0x7   : > { %s37_s18 = ssub.s32 %s2138_s15, %s2407_s17  ;;  %164 = sbr.rel (%p1642_p5) target bundleno = 24 (0x18), region = 20 }
   0x8   : > { %p39_p4 = scmp.eq.s32.totalorder %s37_s18, 0 }
   0xa   : > { %s2200_s20 = scalar_select %p39_p4, %s2130_s13, %s41_s19  }
   0xe   : > { %167 = sbr.rel (!%p50_p3) target bundleno = 24 (0x18), region = 24  ;;  %s169_s21 = sand.u32 (%p50_p3), 1, %s2130_s13  }
   0xf   : > { %s1812_s22 = smul.u32 (%p50_p3), 36, %s2138_s15 }
  0x10   : > { %s1832_s23 = smul.u32 (%p50_p3), 72, %s169_s21 }
  0x11   : > { %s177_s26 = scalar_lea.vmem (%p50_p3), %s2398_s0, %s1812_s22 }
  0x12   : > { %v192_v0 = vld [vmem:[%s177_s26] sm:$0xff] (%p50_p3)  ;;  %v194_v1 = vld [vmem:[%s177_s26 + $0x8] sm:$0xff] (%p50_p3)  ;;  %v196_v2 = vld [vmem:[%s177_s26 + $0x10] sm:$0xff] (%p50_p3)  ;;  %s171_s27 = scalar_lea.vmem (%p50_p3), [#allocation3], %s1832_s23 }
  0x13   : > { %193 = vst [vmem:[%s171_s27] sm:$0xff] (%p50_p3), %v192_v0  ;;  %195 = vst [vmem:[%s171_s27 + $0x8] sm:$0xff] (%p50_p3), %v194_v1  ;;  %v198_v3 = vld [vmem:[%s177_s26 + $0x18] sm:$0xff] (%p50_p3)  ;;  %v200_v4 = vld [vmem:[%s177_s26 + $0x48] sm:$0xff] (%p50_p3) }
  0x14   : > { %197 = vst [vmem:[%s171_s27 + $0x10] sm:$0xff] (%p50_p3), %v196_v2  ;;  %v202_v5 = vld [vmem:[%s177_s26 + $0x50] sm:$0xff] (%p50_p3)  ;;  %199 = vst [vmem:[%s171_s27 + $0x18] sm:$0xff] (%p50_p3), %v198_v3  ;;  %v204_v6 = vld [vmem:[%s177_s26 + $0x58] sm:$0xff] (%p50_p3) }
  0x15   : > { %201 = vst [vmem:[%s171_s27 + $0x24] sm:$0xff] %v200_v4  ;;  %203 = vst [vmem:[%s171_s27 + $0x2c] sm:$0xff] %v202_v5  ;;  %v206_v7 = vld [vmem:[%s177_s26 + $0x60] sm:$0xff]  ;;  %v1646_v9 = vld [vmem:[%s177_s26 + $0x68] sm:$0xf] }
  0x16   : > { %v1644_v8 = vld [vmem:[%s177_s26 + $0x20] sm:$0xf]  ;;  %205 = vst [vmem:[%s171_s27 + $0x34] sm:$0xff] %v204_v6  ;;  %207 = vst [vmem:[%s171_s27 + $0x3c] sm:$0xff] %v206_v7 }
  0x17   : > { %1645 = vst [vmem:[%s171_s27 + $0x20] sm:$0xf] %v1644_v8  ;;  %1647 = vst [vmem:[%s171_s27 + $0x44] sm:$0xf] %v1646_v9 }
  0x18 PF: > { %p1648_p6 = scmp.ge.s32.totalorder %s2142_s16, 1  ;;  %p238_p7 = scmp.lt.s32.totalorder %s2142_s16, 3 }
  0x1a   : > { %p239_p8 = pnand %p1648_p6, %p238_p7 }
  0x1b   : > { %s245_s28 = sand.u32 (!%p239_p8), 1, %s2126_s12   ;;  %s289_s29 = smul.u32 (!%p239_p8), 144, %s2134_s14 }
  0x1c   : > { %242 = sbr.rel (%p239_p8) target bundleno = 440 (0x1b8), region = 54  ;;  %p1651_p10 = scmp.ne.s32.totalorder (!%p239_p8), %s2134_s14, 0 }
  0x1d   : > { %s1833_s30 = smul.u32 (!%p239_p8), 72, %s245_s28  ;;  %p291_p9 = scmp.lt.s32.totalorder (!%p239_p8), %s289_s29, 287 }
  0x1f   : > { %s2217_s8 = scalar_lea.vmem (!%p239_p8), [#allocation3], %s1833_s30 }
  0x23   : > { %s2409_s29 = smov (!%p291_p9, %s289_s29), 287  ;;  %322 = sbr.rel (%p1651_p10) target bundleno = 46 (0x2e), region = 62 }
  0x24   : > { %s1813_s4 = sshll.u32 %s2409_s29, 3  ;;  %v325_v10 = vlaneseq (!%p1651_p10)  ;;  %v323_v12 = vld [vmem:[%s2400_s2] sm:$0x3] (!%p1651_p10) }
  0x25   : > { %s2215_s7 = scalar_lea.vmem %s2399_s1, %s1813_s4 }
  0x26   : > { %v326_v11 = vshrl.u32 (!%p1651_p10), %v325_v10, 7 }
  0x28   : > { %v327_v13 = vsub.s32 (!%p1651_p10), 0, %v326_v11  ;;  %v331_v14 = vsub.s32 (!%p1651_p10), 1, %v326_v11 }
  0x2a   : > { %v328_v15 = vrot.slane %v323_v12, %v327_v13  ;;  %v332_v16 = vrot.slane %v323_v12, %v331_v14 }
  0x2c   : > { %335 = vst [vmem:[#allocation2] sm:$0xff] %v328_v15  ;;  %337 = vst [vmem:[#allocation2 + $0x10] sm:$0xff] %v328_v15 }
  0x2d   : > { %336 = vst [vmem:[#allocation2 + $0x8] sm:$0xff] %v332_v16  ;;  %338 = vst [vmem:[#allocation2 + $0x18] sm:$0xff] %v332_v16 }
  0x2e PF: > { %v1875_v17 = vld [vmem:[%s2215_s7 + $0x4] ss:$8 sps:$4 sm:$0xff]   ;;  %v1879_v19 = vld [vmem:[%s2215_s7] ss:$8 sps:$4 sm:$0xff]   ;;  %v1881_v21 = vld [vmem:[%s2215_s7 + $0x14] ss:$8 sps:$4 sm:$0xff]  }
  0x2f   : > { %v1877_v18 = vld [vmem:[%s2215_s7 + $0x204] ss:$8 sps:$4 sm:$0xff]   ;;  %1263 = vmatprep.subr.bf16.mxu1 %v1875_v17  ;;  %v1880_v20 = vld [vmem:[%s2215_s7 + $0x200] ss:$8 sps:$4 sm:$0xff]   ;;  %v1883_v22 = vld [vmem:[%s2215_s7 + $0x214] ss:$8 sps:$4 sm:$0xff]  }
  0x30   : > { %1349 = vmatprep.subr.bf16.mxu0 %v1877_v18  ;;  %1264 = vmatpush1.bf16.msra.mxu1 %v1879_v19  ;;  %v1885_v23 = vld [vmem:[%s2215_s7 + $0x10] ss:$8 sps:$4 sm:$0xff]   ;;  %v1887_v25 = vld [vmem:[%s2215_s7 + $0x24] ss:$8 sps:$4 sm:$0xff]   ;;  %v1891_v27 = vld [vmem:[%s2215_s7 + $0x20] ss:$8 sps:$4 sm:$0xff]  }
  0x31   : > { %1350 = vmatpush1.bf16.msra.mxu0 %v1880_v20  ;;  %1265 = vmatprep.subr.bf16.mxu1 %v1881_v21  ;;  %v1886_v24 = vld [vmem:[%s2215_s7 + $0x210] ss:$8 sps:$4 sm:$0xff]   ;;  %v1889_v26 = vld [vmem:[%s2215_s7 + $0x224] ss:$8 sps:$4 sm:$0xff]   ;;  %v1892_v28 = vld [vmem:[%s2215_s7 + $0x220] ss:$8 sps:$4 sm:$0xff]  }
  0x32   : > { %1351 = vmatprep.subr.bf16.mxu0 %v1883_v22  ;;  %v1893_v29 = vld [vmem:[%s2215_s7 + $0x34] ss:$8 sps:$4 sm:$0xff]   ;;  %v1897_v31 = vld [vmem:[%s2215_s7 + $0x30] ss:$8 sps:$4 sm:$0xff]   ;;  %v1899_v33 = vld [vmem:[%s2215_s7 + $0x44] ss:$8 sps:$4 sm:$0xff]  }
  0x33   : > { %v1895_v30 = vld [vmem:[%s2215_s7 + $0x234] ss:$8 sps:$4 sm:$0xff]   ;;  %v1898_v32 = vld [vmem:[%s2215_s7 + $0x230] ss:$8 sps:$4 sm:$0xff]   ;;  %v1901_v34 = vld [vmem:[%s2215_s7 + $0x244] ss:$8 sps:$4 sm:$0xff]  }
  0x34   : > { %1266 = vmatpush1.bf16.msra.mxu1 %v1885_v23  ;;  %v1903_v35 = vld [vmem:[%s2215_s7 + $0x40] ss:$8 sps:$4 sm:$0xff]   ;;  %v1905_v37 = vld [vmem:[%s2215_s7 + $0x54] ss:$8 sps:$4 sm:$0xff]   ;;  %v1909_v39 = vld [vmem:[%s2215_s7 + $0x50] ss:$8 sps:$4 sm:$0xff]  }
  0x35   : > { %1352 = vmatpush1.bf16.msra.mxu0 %v1886_v24  ;;  %1267 = vmatprep.subr.bf16.mxu1 %v1887_v25  ;;  %v1904_v36 = vld [vmem:[%s2215_s7 + $0x240] ss:$8 sps:$4 sm:$0xff]   ;;  %v1907_v38 = vld [vmem:[%s2215_s7 + $0x254] ss:$8 sps:$4 sm:$0xff]   ;;  %v1910_v40 = vld [vmem:[%s2215_s7 + $0x250] ss:$8 sps:$4 sm:$0xff]  }
  0x36   : > { %1353 = vmatprep.subr.bf16.mxu0 %v1889_v26  ;;  %v1911_v41 = vld [vmem:[%s2215_s7 + $0x64] ss:$8 sps:$4 sm:$0xff]   ;;  %v1915_v43 = vld [vmem:[%s2215_s7 + $0x60] ss:$8 sps:$4 sm:$0xff]   ;;  %v1917_v45 = vld [vmem:[%s2215_s7 + $0x74] ss:$8 sps:$4 sm:$0xff]  }
  0x37   : > { %v1913_v42 = vld [vmem:[%s2215_s7 + $0x264] ss:$8 sps:$4 sm:$0xff]   ;;  %v1916_v44 = vld [vmem:[%s2215_s7 + $0x260] ss:$8 sps:$4 sm:$0xff]   ;;  %v1919_v46 = vld [vmem:[%s2215_s7 + $0x274] ss:$8 sps:$4 sm:$0xff]  }
  0x38   : > { %1268 = vmatpush1.bf16.msra.mxu1 %v1891_v27  ;;  %v1921_v47 = vld [vmem:[%s2215_s7 + $0x70] ss:$8 sps:$4 sm:$0xff]   ;;  %v1923_v49 = vld [vmem:[%s2215_s7 + $0x84] ss:$8 sps:$4 sm:$0xff]   ;;  %v1927_v51 = vld [vmem:[%s2215_s7 + $0x80] ss:$8 sps:$4 sm:$0xff]  }
  0x39   : > { %1354 = vmatpush1.bf16.msra.mxu0 %v1892_v28  ;;  %1269 = vmatprep.subr.bf16.mxu1 %v1893_v29  ;;  %v1922_v48 = vld [vmem:[%s2215_s7 + $0x270] ss:$8 sps:$4 sm:$0xff]   ;;  %v1925_v50 = vld [vmem:[%s2215_s7 + $0x284] ss:$8 sps:$4 sm:$0xff]   ;;  %v1928_v52 = vld [vmem:[%s2215_s7 + $0x280] ss:$8 sps:$4 sm:$0xff]  }
  0x3a   : > { %1355 = vmatprep.subr.bf16.mxu0 %v1895_v30  ;;  %v1929_v53 = vld [vmem:[%s2215_s7 + $0x94] ss:$8 sps:$4 sm:$0xff]   ;;  %v1933_v55 = vld [vmem:[%s2215_s7 + $0x90] ss:$8 sps:$4 sm:$0xff]   ;;  %v1935_v57 = vld [vmem:[%s2215_s7 + $0xa4] ss:$8 sps:$4 sm:$0xff]  }
  0x3b   : > { %v1931_v54 = vld [vmem:[%s2215_s7 + $0x294] ss:$8 sps:$4 sm:$0xff]   ;;  %v1934_v56 = vld [vmem:[%s2215_s7 + $0x290] ss:$8 sps:$4 sm:$0xff]   ;;  %v1937_v58 = vld [vmem:[%s2215_s7 + $0x2a4] ss:$8 sps:$4 sm:$0xff]  }
  0x3c   : > { %1270 = vmatpush1.bf16.msra.mxu1 %v1897_v31  ;;  %v1939_v59 = vld [vmem:[%s2215_s7 + $0xa0] ss:$8 sps:$4 sm:$0xff]   ;;  %v1941_v61 = vld [vmem:[%s2215_s7 + $0xb4] ss:$8 sps:$4 sm:$0xff]   ;;  %v1945_v63 = vld [vmem:[%s2215_s7 + $0xb0] ss:$8 sps:$4 sm:$0xff]  }
  0x3d   : > { %1356 = vmatpush1.bf16.msra.mxu0 %v1898_v32  ;;  %1271 = vmatprep.subr.bf16.mxu1 %v1899_v33  ;;  %v1940_v60 = vld [vmem:[%s2215_s7 + $0x2a0] ss:$8 sps:$4 sm:$0xff]   ;;  %v1943_v62 = vld [vmem:[%s2215_s7 + $0x2b4] ss:$8 sps:$4 sm:$0xff]   ;;  %v1946_v0 = vld [vmem:[%s2215_s7 + $0x2b0] ss:$8 sps:$4 sm:$0xff]  }
  0x3e   : > { %1357 = vmatprep.subr.bf16.mxu0 %v1901_v34  ;;  %v1973_v1 = vld [vmem:[%s2217_s8 + $0x4] ss:$36 sps:$4 sm:$0xff]   ;;  %v1979_v4 = vld [vmem:[%s2217_s8 + $0x14] ss:$36 sps:$4 sm:$0xff]   ;;  %p1805_p11 = scmp.ne.s32.totalorder %s2134_s14, 1 }
  0x3f   : > { %v1947_v2 = vld [vmem:[%s2215_s7 + $0xc4] ss:$8 sps:$4 sm:$0xff]   ;;  %1295 = vmatprep.mubr.bf16.mxu1 %v1973_v1  ;;  %v1951_v5 = vld [vmem:[%s2215_s7 + $0xc0] ss:$8 sps:$4 sm:$0xff]   ;;  %v1953_v7 = vld [vmem:[%s2215_s7 + $0xd4] ss:$8 sps:$4 sm:$0xff]   ;;  %1381 = vmatprep.mubr.bf16.mxu0 %v1979_v4 }
  0x40   : > { %1272 = vmatpush1.bf16.msra.mxu1 %v1903_v35  ;;  %v1949_v3 = vld [vmem:[%s2215_s7 + $0x2c4] ss:$8 sps:$4 sm:$0xff]   ;;  %v1952_v6 = vld [vmem:[%s2215_s7 + $0x2c0] ss:$8 sps:$4 sm:$0xff]   ;;  %v1955_v8 = vld [vmem:[%s2215_s7 + $0x2d4] ss:$8 sps:$4 sm:$0xff]  }
  0x41   : > { %1358 = vmatpush1.bf16.msra.mxu0 %v1904_v36  ;;  %1273 = vmatprep.subr.bf16.mxu1 %v1905_v37  ;;  %v1957_v9 = vld [vmem:[%s2215_s7 + $0xd0] ss:$8 sps:$4 sm:$0xff]   ;;  %v1959_v11 = vld [vmem:[%s2215_s7 + $0xe4] ss:$8 sps:$4 sm:$0xff]   ;;  %v1963_v13 = vld [vmem:[%s2215_s7 + $0xe0] ss:$8 sps:$4 sm:$0xff]  }
  0x42   : > { %1359 = vmatprep.subr.bf16.mxu0 %v1907_v38  ;;  %v1958_v10 = vld [vmem:[%s2215_s7 + $0x2d0] ss:$8 sps:$4 sm:$0xff]   ;;  %v1961_v12 = vld [vmem:[%s2215_s7 + $0x2e4] ss:$8 sps:$4 sm:$0xff]   ;;  %v1964_v14 = vld [vmem:[%s2215_s7 + $0x2e0] ss:$8 sps:$4 sm:$0xff]  }
  0x43   : > { %v1965_v15 = vld [vmem:[%s2215_s7 + $0xf4] ss:$8 sps:$4 sm:$0xff]   ;;  %v1969_v17 = vld [vmem:[%s2215_s7 + $0xf0] ss:$8 sps:$4 sm:$0xff]   ;;  %v1976_v19 = vld [vmem:[%s2215_s7 + $0x104] ss:$8 sps:$4 sm:$0xff]  }
  0x44   : > { %1274 = vmatpush1.bf16.msra.mxu1 %v1909_v39  ;;  %v1967_v16 = vld [vmem:[%s2215_s7 + $0x2f4] ss:$8 sps:$4 sm:$0xff]   ;;  %v1970_v18 = vld [vmem:[%s2215_s7 + $0x2f0] ss:$8 sps:$4 sm:$0xff]   ;;  %v1982_v20 = vld [vmem:[%s2215_s7 + $0x304] ss:$8 sps:$4 sm:$0xff]  }
  0x45   : > { %1360 = vmatpush1.bf16.msra.mxu0 %v1910_v40  ;;  %1275 = vmatprep.subr.bf16.mxu1 %v1911_v41  ;;  %v1971_v21 = vld [vmem:[%s2217_s8] ss:$36 sps:$4 sm:$0xff]   ;;  %v1977_v23 = vld [vmem:[%s2217_s8 + $0x10] ss:$36 sps:$4 sm:$0xff]  }
  0x46   : > { %1361 = vmatprep.subr.bf16.mxu0 %v1913_v42  ;;  %v1974_v22 = vld [vmem:[%s2215_s7 + $0x100] ss:$8 sps:$4 sm:$0xff]   ;;  %v1985_v25 = vld [vmem:[%s2215_s7 + $0x114] ss:$8 sps:$4 sm:$0xff]   ;;  %v1983_v27 = vld [vmem:[%s2215_s7 + $0x110] ss:$8 sps:$4 sm:$0xff]  }
  0x47   : > { %v1980_v24 = vld [vmem:[%s2215_s7 + $0x300] ss:$8 sps:$4 sm:$0xff]   ;;  %v1988_v26 = vld [vmem:[%s2215_s7 + $0x314] ss:$8 sps:$4 sm:$0xff]   ;;  %v1986_v28 = vld [vmem:[%s2215_s7 + $0x310] ss:$8 sps:$4 sm:$0xff]  }
  0x48   : > { %1276 = vmatpush1.bf16.msra.mxu1 %v1915_v43  ;;  %v1991_v29 = vld [vmem:[%s2215_s7 + $0x124] ss:$8 sps:$4 sm:$0xff]   ;;  %v1989_v31 = vld [vmem:[%s2215_s7 + $0x120] ss:$8 sps:$4 sm:$0xff]   ;;  %v1997_v33 = vld [vmem:[%s2215_s7 + $0x134] ss:$8 sps:$4 sm:$0xff]  }
  0x49   : > { %1362 = vmatpush1.bf16.msra.mxu0 %v1916_v44  ;;  %1277 = vmatprep.subr.bf16.mxu1 %v1917_v45  ;;  %v1994_v30 = vld [vmem:[%s2215_s7 + $0x324] ss:$8 sps:$4 sm:$0xff]   ;;  %v1992_v32 = vld [vmem:[%s2215_s7 + $0x320] ss:$8 sps:$4 sm:$0xff]   ;;  %v2000_v34 = vld [vmem:[%s2215_s7 + $0x334] ss:$8 sps:$4 sm:$0xff]  }
  0x4a   : > { %1363 = vmatprep.subr.bf16.mxu0 %v1919_v46  ;;  %v1995_v35 = vld [vmem:[%s2215_s7 + $0x130] ss:$8 sps:$4 sm:$0xff]   ;;  %v2003_v37 = vld [vmem:[%s2215_s7 + $0x144] ss:$8 sps:$4 sm:$0xff]   ;;  %v2001_v39 = vld [vmem:[%s2215_s7 + $0x140] ss:$8 sps:$4 sm:$0xff]  }
  0x4b   : > { %v1998_v36 = vld [vmem:[%s2215_s7 + $0x330] ss:$8 sps:$4 sm:$0xff]   ;;  %v2006_v38 = vld [vmem:[%s2215_s7 + $0x344] ss:$8 sps:$4 sm:$0xff]   ;;  %v2004_v40 = vld [vmem:[%s2215_s7 + $0x340] ss:$8 sps:$4 sm:$0xff]  }
  0x4c   : > { %1278 = vmatpush1.bf16.msra.mxu1 %v1921_v47  ;;  %v2009_v41 = vld [vmem:[%s2215_s7 + $0x154] ss:$8 sps:$4 sm:$0xff]   ;;  %v2007_v43 = vld [vmem:[%s2215_s7 + $0x150] ss:$8 sps:$4 sm:$0xff]   ;;  %v2015_v45 = vld [vmem:[%s2215_s7 + $0x164] ss:$8 sps:$4 sm:$0xff]  }
  0x4d   : > { %1364 = vmatpush1.bf16.msra.mxu0 %v1922_v48  ;;  %1279 = vmatprep.subr.bf16.mxu1 %v1923_v49  ;;  %v2012_v42 = vld [vmem:[%s2215_s7 + $0x354] ss:$8 sps:$4 sm:$0xff]   ;;  %v2010_v44 = vld [vmem:[%s2215_s7 + $0x350] ss:$8 sps:$4 sm:$0xff]   ;;  %v2018_v46 = vld [vmem:[%s2215_s7 + $0x364] ss:$8 sps:$4 sm:$0xff]  }
  0x4e   : > { %1365 = vmatprep.subr.bf16.mxu0 %v1925_v50  ;;  %v2013_v47 = vld [vmem:[%s2215_s7 + $0x160] ss:$8 sps:$4 sm:$0xff]   ;;  %v2021_v49 = vld [vmem:[%s2215_s7 + $0x174] ss:$8 sps:$4 sm:$0xff]  }
  0x4f   : > { %v2016_v48 = vld [vmem:[%s2215_s7 + $0x360] ss:$8 sps:$4 sm:$0xff]   ;;  %v2024_v50 = vld [vmem:[%s2215_s7 + $0x374] ss:$8 sps:$4 sm:$0xff]  }
  0x50   : > { %1280 = vmatpush1.bf16.msra.mxu1 %v1927_v51  ;;  %v2075_v51 = vld [vmem:[%s2217_s8 + $0xc] ss:$36 sps:$4 sm:$0xff]   ;;  %v2037_v1 = vld [vmem:[%s2215_s7 + $0x1a0] ss:$8 sps:$4 sm:$0xff]  }
  0x51   : > { %1366 = vmatpush1.bf16.msra.mxu0 %v1928_v52  ;;  %1281 = vmatprep.subr.bf16.mxu1 %v1929_v53  ;;  %v2078_v52 = vld [vmem:[%s2217_s8 + $0x1c] ss:$36 sps:$4 sm:$0xff]   ;;  %v2019_v53 = vld [vmem:[%s2215_s7 + $0x170] ss:$8 sps:$4 sm:$0xff]  }
  0x52   : > { %1367 = vmatprep.subr.bf16.mxu0 %v1931_v54  ;;  %v2022_v54 = vld [vmem:[%s2215_s7 + $0x370] ss:$8 sps:$4 sm:$0xff]   ;;  %v2048_v4 = vld [vmem:[%s2215_s7 + $0x3b4] ss:$8 sps:$4 sm:$0xff]  }
  0x54   : > { %1282 = vmatpush1.bf16.msra.mxu1 %v1933_v55  ;;  %v2027_v55 = vld [vmem:[%s2215_s7 + $0x184] ss:$8 sps:$4 sm:$0xff]  }
  0x55   : > { %1368 = vmatpush1.bf16.msra.mxu0 %v1934_v56  ;;  %1283 = vmatprep.subr.bf16.mxu1 %v1935_v57  ;;  %v2030_v56 = vld [vmem:[%s2215_s7 + $0x384] ss:$8 sps:$4 sm:$0xff]   ;;  %v2025_v57 = vld [vmem:[%s2215_s7 + $0x180] ss:$8 sps:$4 sm:$0xff]  }
  0x56   : > { %1369 = vmatprep.subr.bf16.mxu0 %v1937_v58  ;;  %v2028_v58 = vld [vmem:[%s2215_s7 + $0x380] ss:$8 sps:$4 sm:$0xff]  }
  0x58   : > { %1284 = vmatpush1.bf16.msra.mxu1 %v1939_v59  ;;  %v2033_v59 = vld [vmem:[%s2215_s7 + $0x194] ss:$8 sps:$4 sm:$0xff]  }
  0x59   : > { %1370 = vmatpush1.bf16.msra.mxu0 %v1940_v60  ;;  %1285 = vmatprep.subr.bf16.mxu1 %v1941_v61  ;;  %v2036_v60 = vld [vmem:[%s2215_s7 + $0x394] ss:$8 sps:$4 sm:$0xff]   ;;  %v2031_v61 = vld [vmem:[%s2215_s7 + $0x190] ss:$8 sps:$4 sm:$0xff]  }
  0x5a   : > { %1371 = vmatprep.subr.bf16.mxu0 %v1943_v62  ;;  %v2034_v62 = vld [vmem:[%s2215_s7 + $0x390] ss:$8 sps:$4 sm:$0xff]  }
  0x5c   : > { %1286 = vmatpush1.bf16.msra.mxu1 %v1945_v63  ;;  %v2039_v63 = vld [vmem:[%s2215_s7 + $0x1a4] ss:$8 sps:$4 sm:$0xff]  }
  0x5d   : > { %1372 = vmatpush1.bf16.msra.mxu0 %v1946_v0  ;;  %1287 = vmatprep.subr.bf16.mxu1 %v1947_v2  ;;  %v2042_v0 = vld [vmem:[%s2215_s7 + $0x3a4] ss:$8 sps:$4 sm:$0xff]   ;;  %v2040_v2 = vld [vmem:[%s2215_s7 + $0x3a0] ss:$8 sps:$4 sm:$0xff]  }
  0x5e   : > { %1373 = vmatprep.subr.bf16.mxu0 %v1949_v3  ;;  %v2045_v3 = vld [vmem:[%s2215_s7 + $0x1b4] ss:$8 sps:$4 sm:$0xff]  }
  0x60   : > { %1288 = vmatpush1.bf16.msra.mxu1 %v1951_v5  ;;  %v2043_v5 = vld [vmem:[%s2215_s7 + $0x1b0] ss:$8 sps:$4 sm:$0xff]  }
  0x61   : > { %1374 = vmatpush1.bf16.msra.mxu0 %v1952_v6  ;;  %1289 = vmatprep.subr.bf16.mxu1 %v1953_v7  ;;  %v2046_v6 = vld [vmem:[%s2215_s7 + $0x3b0] ss:$8 sps:$4 sm:$0xff]   ;;  %v2051_v7 = vld [vmem:[%s2215_s7 + $0x1c4] ss:$8 sps:$4 sm:$0xff]  }
  0x62   : > { %1375 = vmatprep.subr.bf16.mxu0 %v1955_v8  ;;  %v2054_v8 = vld [vmem:[%s2215_s7 + $0x3c4] ss:$8 sps:$4 sm:$0xff]  }
  0x64   : > { %1290 = vmatpush1.bf16.msra.mxu1 %v1957_v9  ;;  %v2049_v9 = vld [vmem:[%s2215_s7 + $0x1c0] ss:$8 sps:$4 sm:$0xff]  }
  0x65   : > { %1376 = vmatpush1.bf16.msra.mxu0 %v1958_v10  ;;  %1291 = vmatprep.subr.bf16.mxu1 %v1959_v11  ;;  %v2052_v10 = vld [vmem:[%s2215_s7 + $0x3c0] ss:$8 sps:$4 sm:$0xff]   ;;  %v2057_v11 = vld [vmem:[%s2215_s7 + $0x1d4] ss:$8 sps:$4 sm:$0xff]  }
  0x66   : > { %1377 = vmatprep.subr.bf16.mxu0 %v1961_v12  ;;  %v2060_v12 = vld [vmem:[%s2215_s7 + $0x3d4] ss:$8 sps:$4 sm:$0xff]  }
  0x68   : > { %1292 = vmatpush1.bf16.msra.mxu1 %v1963_v13  ;;  %v2055_v13 = vld [vmem:[%s2215_s7 + $0x1d0] ss:$8 sps:$4 sm:$0xff]  }
  0x69   : > { %1378 = vmatpush1.bf16.msra.mxu0 %v1964_v14  ;;  %1293 = vmatprep.subr.bf16.mxu1 %v1965_v15  ;;  %v2058_v14 = vld [vmem:[%s2215_s7 + $0x3d0] ss:$8 sps:$4 sm:$0xff]   ;;  %v2063_v15 = vld [vmem:[%s2215_s7 + $0x1e4] ss:$8 sps:$4 sm:$0xff]  }
  0x6a   : > { %1379 = vmatprep.subr.bf16.mxu0 %v1967_v16  ;;  %v2066_v16 = vld [vmem:[%s2215_s7 + $0x3e4] ss:$8 sps:$4 sm:$0xff]  }
  0x6c   : > { %1294 = vmatpush1.bf16.msra.mxu1 %v1969_v17  ;;  %v2061_v17 = vld [vmem:[%s2215_s7 + $0x1e0] ss:$8 sps:$4 sm:$0xff]  }
  0x6d   : > { %1380 = vmatpush1.bf16.msra.mxu0 %v1970_v18  ;;  %1306 = vmatprep.subr.bf16.mxu1 %v1976_v19  ;;  %v2064_v18 = vld [vmem:[%s2215_s7 + $0x3e0] ss:$8 sps:$4 sm:$0xff]   ;;  %v2069_v19 = vld [vmem:[%s2215_s7 + $0x1f4] ss:$8 sps:$4 sm:$0xff]  }
  0x6e   : > { %1392 = vmatprep.subr.bf16.mxu0 %v1982_v20  ;;  %v2072_v20 = vld [vmem:[%s2215_s7 + $0x3f4] ss:$8 sps:$4 sm:$0xff]  }
  0x6f   : > { %1296 = vmatmul.mubr.bf16.vlgmr.msra.gmra.mrb[0].mxu1 %v1971_v21  ;;  %v2067_v21 = vld [vmem:[%s2215_s7 + $0x1f0] ss:$8 sps:$4 sm:$0xff]  }
  0x70   : > { %1382 = vmatmul.mubr.bf16.vlgmr.msra.gmra.mrb[0].mxu0 %v1977_v23  ;;  %1307 = vmatpush1.bf16.msra.mxu1 %v1974_v22  ;;  %v2070_v22 = vld [vmem:[%s2215_s7 + $0x3f0] ss:$8 sps:$4 sm:$0xff]   ;;  %v2081_v23 = vld [vmem:[%s2215_s7 + $0x404] ss:$8 sps:$4 sm:$0xff]  }
  0x71   : > { %1393 = vmatpush1.bf16.msra.mxu0 %v1980_v24  ;;  %1308 = vmatprep.subr.bf16.mxu1 %v1985_v25  ;;  %v2073_v24 = vld [vmem:[%s2217_s8 + $0x8] ss:$36 sps:$4 sm:$0xff]   ;;  %v2076_v25 = vld [vmem:[%s2217_s8 + $0x18] ss:$36 sps:$4 sm:$0xff]  }
  0x72   : > { %1394 = vmatprep.subr.bf16.mxu0 %v1988_v26  ;;  %1338 = vmatprep.mubr.bf16.mxu1 %v2075_v51  ;;  %v2079_v26 = vld [vmem:[%s2215_s7 + $0x400] ss:$8 sps:$4 sm:$0xff]  }
  0x73   : > { %1424 = vmatprep.mubr.bf16.mxu0 %v2078_v52 }
  0x74   : > { %1309 = vmatpush1.bf16.msra.mxu1 %v1983_v27  ;;  %v2084_v27 = vld [vmem:[%s2215_s7 + $0x414] ss:$8 sps:$4 sm:$0xff]  }
  0x75   : > { %1395 = vmatpush1.bf16.msra.mxu0 %v1986_v28  ;;  %1310 = vmatprep.subr.bf16.mxu1 %v1991_v29  ;;  %v2082_v28 = vld [vmem:[%s2215_s7 + $0x410] ss:$8 sps:$4 sm:$0xff]   ;;  %v2144_v29 = vmov 0  }
  0x76   : > { %1396 = vmatprep.subr.bf16.mxu0 %v1994_v30  ;;  %v2087_v30 = vld [vmem:[%s2215_s7 + $0x424] ss:$8 sps:$4 sm:$0xff]  }
  0x78   : > { %1311 = vmatpush1.bf16.msra.mxu1 %v1989_v31  ;;  %v2085_v31 = vld [vmem:[%s2215_s7 + $0x420] ss:$8 sps:$4 sm:$0xff]  }
  0x79   : > { %1397 = vmatpush1.bf16.msra.mxu0 %v1992_v32  ;;  %1312 = vmatprep.subr.bf16.mxu1 %v1997_v33  ;;  %v2090_v32 = vld [vmem:[%s2215_s7 + $0x434] ss:$8 sps:$4 sm:$0xff]   ;;  %v2088_v33 = vld [vmem:[%s2215_s7 + $0x430] ss:$8 sps:$4 sm:$0xff]  }
  0x7a   : > { %1398 = vmatprep.subr.bf16.mxu0 %v2000_v34  ;;  %v2093_v34 = vld [vmem:[%s2215_s7 + $0x444] ss:$8 sps:$4 sm:$0xff]  }
  0x7c   : > { %1313 = vmatpush1.bf16.msra.mxu1 %v1995_v35  ;;  %v2091_v35 = vld [vmem:[%s2215_s7 + $0x440] ss:$8 sps:$4 sm:$0xff]  }
  0x7d   : > { %1399 = vmatpush1.bf16.msra.mxu0 %v1998_v36  ;;  %1314 = vmatprep.subr.bf16.mxu1 %v2003_v37  ;;  %v2096_v36 = vld [vmem:[%s2215_s7 + $0x454] ss:$8 sps:$4 sm:$0xff]   ;;  %v2094_v37 = vld [vmem:[%s2215_s7 + $0x450] ss:$8 sps:$4 sm:$0xff]  }
  0x7e   : > { %1400 = vmatprep.subr.bf16.mxu0 %v2006_v38  ;;  %v2099_v38 = vld [vmem:[%s2215_s7 + $0x464] ss:$8 sps:$4 sm:$0xff]  }
  0x80   : > { %1315 = vmatpush1.bf16.msra.mxu1 %v2001_v39  ;;  %v2097_v39 = vld [vmem:[%s2215_s7 + $0x460] ss:$8 sps:$4 sm:$0xff]  }
  0x81   : > { %1401 = vmatpush1.bf16.msra.mxu0 %v2004_v40  ;;  %1316 = vmatprep.subr.bf16.mxu1 %v2009_v41  ;;  %v2102_v40 = vld [vmem:[%s2215_s7 + $0x474] ss:$8 sps:$4 sm:$0xff]   ;;  %v2100_v41 = vld [vmem:[%s2215_s7 + $0x470] ss:$8 sps:$4 sm:$0xff]  }
  0x82   : > { %1402 = vmatprep.subr.bf16.mxu0 %v2012_v42  ;;  %v2103_v42 = vld [vmem:[%s2217_s8 + $0x20] ss:$36 sps:$4 sm:$0xff]  }
  0x84   : > { %1317 = vmatpush1.bf16.msra.mxu1 %v2007_v43 }
  0x85   : > { %1403 = vmatpush1.bf16.msra.mxu0 %v2010_v44  ;;  %1318 = vmatprep.subr.bf16.mxu1 %v2015_v45 }
  0x86   : > { %1404 = vmatprep.subr.bf16.mxu0 %v2018_v46 }
  0x88   : > { %1319 = vmatpush1.bf16.msra.mxu1 %v2013_v47  ;;  %v339_v47 = vld [vmem:[#allocation2] sm:$0xff] }
  0x89   : > { %1405 = vmatpush1.bf16.msra.mxu0 %v2016_v48  ;;  %1320 = vmatprep.subr.bf16.mxu1 %v2021_v49 }
  0x8a   : > { %1406 = vmatprep.subr.bf16.mxu0 %v2024_v50  ;;  %v340_v50 = vld [vmem:[#allocation2 + $0x8] sm:$0xff] }
  0x8c   : > { %1321 = vmatpush1.bf16.msra.mxu1 %v2019_v53  ;;  %v341_v53 = vld [vmem:[#allocation2 + $0x10] sm:$0xff] }
  0x8d   : > { %1407 = vmatpush1.bf16.msra.mxu0 %v2022_v54  ;;  %1322 = vmatprep.subr.bf16.mxu1 %v2027_v55 }
  0x8e   : > { %1408 = vmatprep.subr.bf16.mxu0 %v2030_v56 }
  0x90   : > { %1323 = vmatpush1.bf16.msra.mxu1 %v2025_v57  ;;  %v342_v57 = vld [vmem:[#allocation2 + $0x18] sm:$0xff] }
  0x91   : > { %1409 = vmatpush1.bf16.msra.mxu0 %v2028_v58  ;;  %1324 = vmatprep.subr.bf16.mxu1 %v2033_v59 }
  0x92   : > { %1410 = vmatprep.subr.bf16.mxu0 %v2036_v60 }
  0x94   : > { %1325 = vmatpush1.bf16.msra.mxu1 %v2031_v61 }
  0x95   : > { %1411 = vmatpush1.bf16.msra.mxu0 %v2034_v62  ;;  %1326 = vmatprep.subr.bf16.mxu1 %v2039_v63 }
  0x96   : > { %1412 = vmatprep.subr.bf16.mxu0 %v2042_v0 }
  0x98   : > { %1327 = vmatpush1.bf16.msra.mxu1 %v2037_v1 }
  0x99   : > { %1413 = vmatpush1.bf16.msra.mxu0 %v2040_v2  ;;  %1328 = vmatprep.subr.bf16.mxu1 %v2045_v3 }
  0x9a   : > { %1414 = vmatprep.subr.bf16.mxu0 %v2048_v4 }
  0x9c   : > { %1329 = vmatpush1.bf16.msra.mxu1 %v2043_v5 }
  0x9d   : > { %1415 = vmatpush1.bf16.msra.mxu0 %v2046_v6  ;;  %1330 = vmatprep.subr.bf16.mxu1 %v2051_v7 }
  0x9e   : > { %1416 = vmatprep.subr.bf16.mxu0 %v2054_v8 }
  0xa0   : > { %1331 = vmatpush1.bf16.msra.mxu1 %v2049_v9 }
  0xa1   : > { %1417 = vmatpush1.bf16.msra.mxu0 %v2052_v10  ;;  %1332 = vmatprep.subr.bf16.mxu1 %v2057_v11 }
  0xa2   : > { %1418 = vmatprep.subr.bf16.mxu0 %v2060_v12 }
  0xa4   : > { %1333 = vmatpush1.bf16.msra.mxu1 %v2055_v13 }
  0xa5   : > { %1419 = vmatpush1.bf16.msra.mxu0 %v2058_v14  ;;  %1334 = vmatprep.subr.bf16.mxu1 %v2063_v15 }
  0xa6   : > { %1420 = vmatprep.subr.bf16.mxu0 %v2066_v16 }
  0xa8   : > { %1335 = vmatpush1.bf16.msra.mxu1 %v2061_v17 }
  0xa9   : > { %1421 = vmatpush1.bf16.msra.mxu0 %v2064_v18  ;;  %1336 = vmatprep.subr.bf16.mxu1 %v2069_v19 }
  0xaa   : > { %1422 = vmatprep.subr.bf16.mxu0 %v2072_v20 }
  0xac   : > { %1337 = vmatpush1.bf16.msra.mxu1 %v2067_v21 }
  0xad   : > { %1423 = vmatpush1.bf16.msra.mxu0 %v2070_v22 }
  0xae   : > { %1435 = vmatprep.subr.bf16.mxu0 %v2081_v23 }
  0xaf   : > { %1339 = vmatmul.mubr.bf16.vlgmr.msra.gmra.mrb[0].mxu1 %v2073_v24 }
  0xb0   : > { %1425 = vmatmul.mubr.bf16.vlgmr.msra.gmra.mrb[0].mxu0 %v2076_v25 }
  0xb1   : > { %1436 = vmatpush1.bf16.msra.mxu0 %v2079_v26  ;;  %1467 = vmatprep.mubr.bf16.mxu0 %v2144_v29 }
  0xb2   : > { %1437 = vmatprep.subr.bf16.mxu0 %v2084_v27 }
  0xb5   : > { %1438 = vmatpush1.bf16.msra.mxu0 %v2082_v28 }
  0xb6   : > { %1439 = vmatprep.subr.bf16.mxu0 %v2087_v30 }
  0xb9   : > { %1440 = vmatpush1.bf16.msra.mxu0 %v2085_v31 }
  0xba   : > { %1441 = vmatprep.subr.bf16.mxu0 %v2090_v32 }
  0xbd   : > { %1442 = vmatpush1.bf16.msra.mxu0 %v2088_v33 }
  0xbe   : > { %1443 = vmatprep.subr.bf16.mxu0 %v2093_v34 }
  0xc1   : > { %1444 = vmatpush1.bf16.msra.mxu0 %v2091_v35 }
  0xc2   : > { %1445 = vmatprep.subr.bf16.mxu0 %v2096_v36 }
  0xc5   : > { %1446 = vmatpush1.bf16.msra.mxu0 %v2094_v37 }
  0xc6   : > { %1447 = vmatprep.subr.bf16.mxu0 %v2099_v38 }
  0xc9   : > { %1448 = vmatpush1.bf16.msra.mxu0 %v2097_v39 }
  0xca   : > { %1449 = vmatprep.subr.bf16.mxu0 %v2102_v40 }
  0xcd   : > { %1450 = vmatpush1.bf16.msra.mxu0 %v2100_v41 }
  0xd0   : > { %1468 = vmatmul.mubr.bf16.vlgmr.msra.gmra.mrb[0].mxu0 %v2103_v42 }
 0x182   : > { %v1340_v43 = vpop.f32.mrb[0].mxu1 }
 0x183   : > { %v1342_v44 = vpop.f32.mrb[1].mxu1 }
 0x184   : > { %v1344_v45 = vpop.f32.mrb[2].mxu1 }
 0x185   : > { %v1346_v46 = vpop.f32.mrb[3].mxu1 }
 0x1a3   : > { %v1469_v48 = vpop.f32.mrb[0].mxu0 }
 0x1a4   : > { %v1816_v49 = vadd.f32 %v1469_v48, %v1340_v43  ;;  %v1471_v51 = vpop.f32.mrb[1].mxu0 }
 0x1a5   : > { %v1817_v52 = vadd.f32 %v1471_v51, %v1342_v44  ;;  %v1473_v54 = vpop.f32.mrb[2].mxu0  ;;  %1489 = sbr.rel (%p1805_p11) target bundleno = 440 (0x1b8), region = 66 }
 0x1a6   : > { %v1478_v55 = vadd.f32 %v1816_v49, %v339_v47  ;;  %v1818_v56 = vadd.f32 %v1473_v54, %v1344_v45  ;;  %v1475_v58 = vpop.f32.mrb[3].mxu0 }
 0x1a7   : > { %v1479_v59 = vadd.f32 %v1817_v52, %v340_v50  ;;  %v1819_v60 = vadd.f32 %v1475_v58, %v1346_v46 }
 0x1a8   : > { %1482 = vst [vmem:[#allocation2] sm:$0xff] %v1478_v55  ;;  %v1480_v61 = vadd.f32 %v1818_v56, %v341_v53 }
 0x1a9   : > { %1483 = vst [vmem:[#allocation2 + $0x8] sm:$0xff] %v1479_v59  ;;  %v1481_v62 = vadd.f32 %v1819_v60, %v342_v57 }
 0x1aa   : > { %1484 = vst [vmem:[#allocation2 + $0x10] sm:$0xff] %v1480_v61 }
 0x1ab   : > { %1485 = vst [vmem:[#allocation2 + $0x18] sm:$0xff] %v1481_v62 }
 0x1af   : > { %v1490_v63 = vld [vmem:[#allocation2] sm:$0xff] }
 0x1b0   : > { %v1491_v0 = vld [vmem:[#allocation2 + $0x8] sm:$0xff]  ;;  %v1494_v2 = vmax.f32 %v1490_v63, 0.0 }
 0x1b1   : > { %v1492_v1 = vld [vmem:[#allocation2 + $0x10] sm:$0xff]  ;;  %v1495_v3 = vmax.f32 %v1491_v0, 0.0 }
 0x1b2   : > { %v1493_v4 = vld [vmem:[#allocation2 + $0x18] sm:$0xff]  ;;  %v1496_v5 = vmax.f32 %v1492_v1, 0.0 }
 0x1b3   : > { %v1497_v6 = vmax.f32 %v1493_v4, 0.0  ;;  %v1814_v7 = vpack.c.bf16 %v1495_v3, %v1494_v2 }
 0x1b5   : > { %v1815_v8 = vpack.c.bf16 %v1497_v6, %v1496_v5  ;;  %1510 = vst [vmem:[%s2401_s3] sm:$0xff] %v1814_v7 }
 0x1b7   : > { %1511 = vst [vmem:[%s2401_s3 + $0x8] sm:$0xff] %v1815_v8 }
 0x1b8 PF: > { %s13_s16 = sadd.s32 1, %s2142_s16   ;;  %s2402_s12 = smov %s2130_s13 }
 0x1b9   : > { %p10_p12 = scmp.ge.s32.totalorder %s13_s16, 4   ;;  %s2403_s13 = smov %s2200_s20 }
 0x1ba   : > { %s2404_s14 = smov %s2138_s15  ;;  %s2405_s15 = smov %s2407_s17 }
 0x1bb   :  { %12 = sbr.rel (!%p10_p12) target bundleno = 3 (0x3), region = 113 }

// kernel: _lambda_.36
= control target key start
LH: loop header
LB: loop body
LE: loop exit
PB: predicated region body
PF: predicated region fallthrough
CT: control target
= control target key end

     0   :  { %s1003_s1 = inlined_call_operand.vmem [shape: bf16[256,512], index: 1, kind: input, shape index: {}]   ;;  %s1004_s0 = inlined_call_operand.vmem [shape: bf16[16,256], index: 0, kind: input, shape index: {}]   ;;  %s1005_s2 = inlined_call_operand.vmem [shape: f32[1,512], index: 2, kind: input, shape index: {}]   ;;  %s1006_s3 = inlined_call_operand.vmem [shape: bf16[16,512], index: 3, kind: output, shape index: {}]  }
   0x1   :  { %v671_v0 = vld [vmem:[%s1003_s1 + $0x4] ss:$16 sps:$4 sm:$0xff]   ;;  %v673_v1 = vld [vmem:[%s1003_s1 + $0xc] ss:$16 sps:$4 sm:$0xff]   ;;  %v675_v2 = vld [vmem:[%s1003_s1] ss:$16 sps:$4 sm:$0xff]  }
   0x2   :  { %452 = vmatprep.subr.bf16.mxu0 %v671_v0  ;;  %v676_v3 = vld [vmem:[%s1003_s1 + $0x8] ss:$16 sps:$4 sm:$0xff]   ;;  %495 = vmatprep.subr.bf16.mxu1 %v673_v1  ;;  %v677_v4 = vld [vmem:[%s1003_s1 + $0x24] ss:$16 sps:$4 sm:$0xff]   ;;  %v679_v5 = vld [vmem:[%s1003_s1 + $0x2c] ss:$16 sps:$4 sm:$0xff]  }
   0x3   :  { %453 = vmatpush1.bf16.msra.mxu0 %v675_v2  ;;  %496 = vmatpush1.bf16.msra.mxu1 %v676_v3  ;;  %v681_v6 = vld [vmem:[%s1003_s1 + $0x20] ss:$16 sps:$4 sm:$0xff]   ;;  %v682_v7 = vld [vmem:[%s1003_s1 + $0x28] ss:$16 sps:$4 sm:$0xff]   ;;  %v683_v8 = vld [vmem:[%s1003_s1 + $0x44] ss:$16 sps:$4 sm:$0xff]   ;;  %v20_v2 = vlaneseq }
   0x4   :  { %454 = vmatprep.subr.bf16.mxu0 %v677_v4  ;;  %497 = vmatprep.subr.bf16.mxu1 %v679_v5  ;;  %v685_v9 = vld [vmem:[%s1003_s1 + $0x4c] ss:$16 sps:$4 sm:$0xff]   ;;  %v687_v10 = vld [vmem:[%s1003_s1 + $0x40] ss:$16 sps:$4 sm:$0xff]   ;;  %v688_v11 = vld [vmem:[%s1003_s1 + $0x48] ss:$16 sps:$4 sm:$0xff]  }
   0x5   :  { %v689_v12 = vld [vmem:[%s1003_s1 + $0x64] ss:$16 sps:$4 sm:$0xff]   ;;  %v691_v13 = vld [vmem:[%s1003_s1 + $0x6c] ss:$16 sps:$4 sm:$0xff]   ;;  %v693_v14 = vld [vmem:[%s1003_s1 + $0x60] ss:$16 sps:$4 sm:$0xff]  }
   0x6   :  { %v694_v15 = vld [vmem:[%s1003_s1 + $0x68] ss:$16 sps:$4 sm:$0xff]   ;;  %v695_v16 = vld [vmem:[%s1003_s1 + $0x84] ss:$16 sps:$4 sm:$0xff]   ;;  %v697_v17 = vld [vmem:[%s1003_s1 + $0x8c] ss:$16 sps:$4 sm:$0xff]  }
   0x7   :  { %455 = vmatpush1.bf16.msra.mxu0 %v681_v6  ;;  %498 = vmatpush1.bf16.msra.mxu1 %v682_v7  ;;  %v699_v18 = vld [vmem:[%s1003_s1 + $0x80] ss:$16 sps:$4 sm:$0xff]   ;;  %v700_v19 = vld [vmem:[%s1003_s1 + $0x88] ss:$16 sps:$4 sm:$0xff]   ;;  %v701_v20 = vld [vmem:[%s1003_s1 + $0xa4] ss:$16 sps:$4 sm:$0xff]  }
   0x8   :  { %456 = vmatprep.subr.bf16.mxu0 %v683_v8  ;;  %499 = vmatprep.subr.bf16.mxu1 %v685_v9  ;;  %v703_v21 = vld [vmem:[%s1003_s1 + $0xac] ss:$16 sps:$4 sm:$0xff]   ;;  %v705_v22 = vld [vmem:[%s1003_s1 + $0xa0] ss:$16 sps:$4 sm:$0xff]   ;;  %v706_v23 = vld [vmem:[%s1003_s1 + $0xa8] ss:$16 sps:$4 sm:$0xff]  }
   0x9   :  { %v707_v24 = vld [vmem:[%s1003_s1 + $0xc4] ss:$16 sps:$4 sm:$0xff]   ;;  %v709_v25 = vld [vmem:[%s1003_s1 + $0xcc] ss:$16 sps:$4 sm:$0xff]   ;;  %v711_v26 = vld [vmem:[%s1003_s1 + $0xc0] ss:$16 sps:$4 sm:$0xff]  }
   0xa   :  { %v712_v27 = vld [vmem:[%s1003_s1 + $0xc8] ss:$16 sps:$4 sm:$0xff]   ;;  %v713_v28 = vld [vmem:[%s1003_s1 + $0xe4] ss:$16 sps:$4 sm:$0xff]   ;;  %v715_v29 = vld [vmem:[%s1003_s1 + $0xec] ss:$16 sps:$4 sm:$0xff]  }
   0xb   :  { %457 = vmatpush1.bf16.msra.mxu0 %v687_v10  ;;  %500 = vmatpush1.bf16.msra.mxu1 %v688_v11  ;;  %v717_v30 = vld [vmem:[%s1003_s1 + $0xe0] ss:$16 sps:$4 sm:$0xff]   ;;  %v718_v31 = vld [vmem:[%s1003_s1 + $0xe8] ss:$16 sps:$4 sm:$0xff]   ;;  %v719_v32 = vld [vmem:[%s1003_s1 + $0x104] ss:$16 sps:$4 sm:$0xff]  }
   0xc   :  { %458 = vmatprep.subr.bf16.mxu0 %v689_v12  ;;  %501 = vmatprep.subr.bf16.mxu1 %v691_v13  ;;  %v721_v33 = vld [vmem:[%s1003_s1 + $0x10c] ss:$16 sps:$4 sm:$0xff]   ;;  %v723_v34 = vld [vmem:[%s1003_s1 + $0x100] ss:$16 sps:$4 sm:$0xff]   ;;  %v724_v35 = vld [vmem:[%s1003_s1 + $0x108] ss:$16 sps:$4 sm:$0xff]  }
   0xd   :  { %v725_v36 = vld [vmem:[%s1003_s1 + $0x124] ss:$16 sps:$4 sm:$0xff]   ;;  %v727_v37 = vld [vmem:[%s1003_s1 + $0x12c] ss:$16 sps:$4 sm:$0xff]   ;;  %v729_v38 = vld [vmem:[%s1003_s1 + $0x120] ss:$16 sps:$4 sm:$0xff]  }
   0xe   :  { %v730_v39 = vld [vmem:[%s1003_s1 + $0x128] ss:$16 sps:$4 sm:$0xff]   ;;  %v731_v40 = vld [vmem:[%s1003_s1 + $0x144] ss:$16 sps:$4 sm:$0xff]   ;;  %v733_v41 = vld [vmem:[%s1003_s1 + $0x14c] ss:$16 sps:$4 sm:$0xff]  }
   0xf   :  { %459 = vmatpush1.bf16.msra.mxu0 %v693_v14  ;;  %502 = vmatpush1.bf16.msra.mxu1 %v694_v15  ;;  %v735_v42 = vld [vmem:[%s1003_s1 + $0x140] ss:$16 sps:$4 sm:$0xff]   ;;  %v736_v43 = vld [vmem:[%s1003_s1 + $0x148] ss:$16 sps:$4 sm:$0xff]   ;;  %v737_v44 = vld [vmem:[%s1003_s1 + $0x164] ss:$16 sps:$4 sm:$0xff]  }
  0x10   :  { %460 = vmatprep.subr.bf16.mxu0 %v695_v16  ;;  %503 = vmatprep.subr.bf16.mxu1 %v697_v17  ;;  %v739_v45 = vld [vmem:[%s1003_s1 + $0x16c] ss:$16 sps:$4 sm:$0xff]   ;;  %v741_v47 = vld [vmem:[%s1003_s1 + $0x160] ss:$16 sps:$4 sm:$0xff]   ;;  %v742_v48 = vld [vmem:[%s1003_s1 + $0x168] ss:$16 sps:$4 sm:$0xff]  }
  0x11   :  { %v769_v46 = vld [vmem:[%s1004_s0 + $0x4] ss:$8 sps:$4 sm:$0xff]   ;;  %v747_v51 = vld [vmem:[%s1003_s1 + $0x180] ss:$16 sps:$4 sm:$0xff]   ;;  %v748_v52 = vld [vmem:[%s1003_s1 + $0x188] ss:$16 sps:$4 sm:$0xff]  }
  0x12   :  { %v743_v49 = vld [vmem:[%s1003_s1 + $0x184] ss:$16 sps:$4 sm:$0xff]   ;;  %v745_v50 = vld [vmem:[%s1003_s1 + $0x18c] ss:$16 sps:$4 sm:$0xff]   ;;  %484 = vmatprep.mubr.bf16.mxu0 %v769_v46  ;;  %527 = vmatprep.mubr.bf16.mxu1 %v769_v46  ;;  %v753_v55 = vld [vmem:[%s1003_s1 + $0x1a0] ss:$16 sps:$4 sm:$0xff]  }
  0x13   :  { %461 = vmatpush1.bf16.msra.mxu0 %v699_v18  ;;  %504 = vmatpush1.bf16.msra.mxu1 %v700_v19  ;;  %v749_v53 = vld [vmem:[%s1003_s1 + $0x1a4] ss:$16 sps:$4 sm:$0xff]   ;;  %v751_v54 = vld [vmem:[%s1003_s1 + $0x1ac] ss:$16 sps:$4 sm:$0xff]   ;;  %v754_v56 = vld [vmem:[%s1003_s1 + $0x1a8] ss:$16 sps:$4 sm:$0xff]  }
  0x14   :  { %462 = vmatprep.subr.bf16.mxu0 %v701_v20  ;;  %505 = vmatprep.subr.bf16.mxu1 %v703_v21  ;;  %v755_v57 = vld [vmem:[%s1003_s1 + $0x1c4] ss:$16 sps:$4 sm:$0xff]   ;;  %v757_v58 = vld [vmem:[%s1003_s1 + $0x1cc] ss:$16 sps:$4 sm:$0xff]   ;;  %v759_v59 = vld [vmem:[%s1003_s1 + $0x1c0] ss:$16 sps:$4 sm:$0xff]  }
  0x15   :  { %v760_v60 = vld [vmem:[%s1003_s1 + $0x1c8] ss:$16 sps:$4 sm:$0xff]   ;;  %v761_v61 = vld [vmem:[%s1003_s1 + $0x1e4] ss:$16 sps:$4 sm:$0xff]   ;;  %v763_v62 = vld [vmem:[%s1003_s1 + $0x1ec] ss:$16 sps:$4 sm:$0xff]  }
  0x16   :  { %v765_v63 = vld [vmem:[%s1003_s1 + $0x1e0] ss:$16 sps:$4 sm:$0xff]   ;;  %v766_v0 = vld [vmem:[%s1003_s1 + $0x1e8] ss:$16 sps:$4 sm:$0xff]   ;;  %v21_v3 = vshrl.u32 %v20_v2, 7 }
  0x17   :  { %463 = vmatpush1.bf16.msra.mxu0 %v705_v22  ;;  %506 = vmatpush1.bf16.msra.mxu1 %v706_v23  ;;  %v767_v1 = vld [vmem:[%s1004_s0] ss:$8 sps:$4 sm:$0xff]  }
  0x18   :  { %464 = vmatprep.subr.bf16.mxu0 %v707_v24  ;;  %507 = vmatprep.subr.bf16.mxu1 %v709_v25  ;;  %v22_v4 = vsub.s32 0, %v21_v3  ;;  %v30_v5 = vsub.s32 2, %v21_v3  ;;  %v18_v6 = vld [vmem:[%s1005_s2] sm:$0xf]  ;;  %v26_v7 = vsub.s32 1, %v21_v3  ;;  %v34_v8 = vsub.s32 3, %v21_v3 }
  0x1a   :  { %v23_v9 = vrot.slane %v18_v6, %v22_v4  ;;  %v31_v10 = vrot.slane %v18_v6, %v30_v5  ;;  %v27_v11 = vrot.slane %v18_v6, %v26_v7  ;;  %v35_v12 = vrot.slane %v18_v6, %v34_v8 }
  0x1b   :  { %465 = vmatpush1.bf16.msra.mxu0 %v711_v26  ;;  %508 = vmatpush1.bf16.msra.mxu1 %v712_v27 }
  0x1c   :  { %466 = vmatprep.subr.bf16.mxu0 %v713_v28  ;;  %509 = vmatprep.subr.bf16.mxu1 %v715_v29 }
  0x1f   :  { %467 = vmatpush1.bf16.msra.mxu0 %v717_v30  ;;  %510 = vmatpush1.bf16.msra.mxu1 %v718_v31 }
  0x20   :  { %468 = vmatprep.subr.bf16.mxu0 %v719_v32  ;;  %511 = vmatprep.subr.bf16.mxu1 %v721_v33 }
  0x23   :  { %469 = vmatpush1.bf16.msra.mxu0 %v723_v34  ;;  %512 = vmatpush1.bf16.msra.mxu1 %v724_v35 }
  0x24   :  { %470 = vmatprep.subr.bf16.mxu0 %v725_v36  ;;  %513 = vmatprep.subr.bf16.mxu1 %v727_v37 }
  0x27   :  { %471 = vmatpush1.bf16.msra.mxu0 %v729_v38  ;;  %514 = vmatpush1.bf16.msra.mxu1 %v730_v39 }
  0x28   :  { %472 = vmatprep.subr.bf16.mxu0 %v731_v40  ;;  %515 = vmatprep.subr.bf16.mxu1 %v733_v41 }
  0x2b   :  { %473 = vmatpush1.bf16.msra.mxu0 %v735_v42  ;;  %516 = vmatpush1.bf16.msra.mxu1 %v736_v43 }
  0x2c   :  { %474 = vmatprep.subr.bf16.mxu0 %v737_v44  ;;  %517 = vmatprep.subr.bf16.mxu1 %v739_v45 }
  0x2f   :  { %475 = vmatpush1.bf16.msra.mxu0 %v741_v47  ;;  %518 = vmatpush1.bf16.msra.mxu1 %v742_v48 }
  0x30   :  { %476 = vmatprep.subr.bf16.mxu0 %v743_v49  ;;  %519 = vmatprep.subr.bf16.mxu1 %v745_v50 }
  0x33   :  { %477 = vmatpush1.bf16.msra.mxu0 %v747_v51  ;;  %520 = vmatpush1.bf16.msra.mxu1 %v748_v52 }
  0x34   :  { %478 = vmatprep.subr.bf16.mxu0 %v749_v53  ;;  %521 = vmatprep.subr.bf16.mxu1 %v751_v54 }
  0x37   :  { %479 = vmatpush1.bf16.msra.mxu0 %v753_v55  ;;  %522 = vmatpush1.bf16.msra.mxu1 %v754_v56 }
  0x38   :  { %480 = vmatprep.subr.bf16.mxu0 %v755_v57  ;;  %523 = vmatprep.subr.bf16.mxu1 %v757_v58 }
  0x3b   :  { %481 = vmatpush1.bf16.msra.mxu0 %v759_v59  ;;  %524 = vmatpush1.bf16.msra.mxu1 %v760_v60 }
  0x3c   :  { %482 = vmatprep.subr.bf16.mxu0 %v761_v61  ;;  %525 = vmatprep.subr.bf16.mxu1 %v763_v62 }
  0x3f   :  { %483 = vmatpush1.bf16.msra.mxu0 %v765_v63  ;;  %526 = vmatpush1.bf16.msra.mxu1 %v766_v0 }
  0x42   :  { %485 = vmatmul.mubr.bf16.vlgmr.msra.gmra.mrb[0].mxu0 %v767_v1  ;;  %528 = vmatmul.mubr.bf16.vlgmr.msra.gmra.mrb[0].mxu1 %v767_v1 }
 0x115   :  { %v486_v13 = vpop.f32.mrb[0].mxu0  ;;  %v529_v14 = vpop.f32.mrb[0].mxu1 }
 0x116   :  { %v538_v15 = vadd.f32 %v486_v13, %v23_v9  ;;  %v540_v16 = vadd.f32 %v529_v14, %v31_v10  ;;  %v488_v17 = vpop.f32.mrb[1].mxu0  ;;  %v531_v18 = vpop.f32.mrb[1].mxu1 }
 0x117   :  { %v539_v19 = vadd.f32 %v488_v17, %v27_v11  ;;  %v541_v20 = vadd.f32 %v531_v18, %v35_v12  ;;  %v490_v21 = vpop.f32.mrb[2].mxu0  ;;  %v533_v22 = vpop.f32.mrb[2].mxu1 }
 0x118   :  { %v542_v23 = vadd.f32 %v490_v21, %v23_v9  ;;  %v544_v24 = vadd.f32 %v533_v22, %v31_v10  ;;  %v492_v25 = vpop.f32.mrb[3].mxu0  ;;  %v535_v26 = vpop.f32.mrb[3].mxu1 }
 0x119   :  { %v667_v27 = vpack.c.bf16 %v539_v19, %v538_v15  ;;  %v668_v28 = vpack.c.bf16 %v541_v20, %v540_v16  ;;  %v543_v29 = vadd.f32 %v492_v25, %v27_v11  ;;  %v545_v30 = vadd.f32 %v535_v26, %v35_v12 }
 0x11b   :  { %589 = vst [vmem:[%s1006_s3] sm:$0xff] %v667_v27  ;;  %590 = vst [vmem:[%s1006_s3 + $0x8] sm:$0xff] %v668_v28  ;;  %v669_v31 = vpack.c.bf16 %v543_v29, %v542_v23  ;;  %v670_v32 = vpack.c.bf16 %v545_v30, %v544_v24 }
 0x11d   :  { %591 = vst [vmem:[%s1006_s3 + $0x10] sm:$0xff] %v669_v31  ;;  %592 = vst [vmem:[%s1006_s3 + $0x18] sm:$0xff] %v670_v32 }

// kernel: _lambda_.35
= control target key start
LH: loop header
LB: loop body
LE: loop exit
PB: predicated region body
PF: predicated region fallthrough
CT: control target
= control target key end

     0   :  { %s3672_s12 = smov 0   ;;  %s3674_s13 = smov 0   ;;  %s4055_s0 = inlined_call_operand.vmem [shape: bf16[16,2304], index: 0, kind: input, shape index: {}]   ;;  %s4056_s1 = inlined_call_operand.vmem [shape: bf16[2304,512], index: 1, kind: input, shape index: {}]   ;;  %s4057_s2 = inlined_call_operand.vmem [shape: f32[1,512], index: 2, kind: input, shape index: {}]   ;;  %s4058_s3 = inlined_call_operand.vmem [shape: bf16[16,512], index: 3, kind: output, shape index: {}]  }
   0x1   :  { %s3676_s14 = smov 0   ;;  %s3678_s15 = smov 0  }
   0x2   :  { %s3680_s16 = smov 0  }
   0x3 LB: > { %s25_s17 = sadd.s32 1, %s3645_s15  ;;  %p48_p1 = scmp.ne.s32.totalorder %s3637_s13, %s3633_s12  ;;  %s3649_s16 = sphi %s3680_s16, %s13_s16   ;;  %s3645_s15 = sphi %s3678_s15, %s4062_s15   ;;  %s3641_s14 = sphi %s3676_s14, %s4061_s14   ;;  %s3637_s13 = sphi %s3674_s13, %s4060_s13   ;;  %s3633_s12 = sphi %s3672_s12, %s4059_s12  }
   0x4   : > { %p26_p0 = scmp.ge.s32.totalorder %s25_s17, 2  ;;  %p49_p2 = scmp.eq.s32.totalorder %s3649_s16, 0 }
   0x5   : > { %s41_s19 = sadd.s32 1, %s3637_s13  ;;  %p2769_p5 = scmp.ge.s32.totalorder %s3649_s16, 2 }
   0x6   : > { %s4064_s17 = smov (%p26_p0, %s25_s17), 0  ;;  %p50_p3 = por %p49_p2, %p48_p1 }
   0x7   : > { %s37_s18 = ssub.s32 %s3645_s15, %s4064_s17  ;;  %164 = sbr.rel (%p2769_p5) target bundleno = 24 (0x18), region = 20 }
   0x8   : > { %p39_p4 = scmp.eq.s32.totalorder %s37_s18, 0 }
   0xa   : > { %s3707_s20 = scalar_select %p39_p4, %s3637_s13, %s41_s19  }
   0xe   : > { %167 = sbr.rel (!%p50_p3) target bundleno = 24 (0x18), region = 24  ;;  %s169_s21 = sand.u32 (%p50_p3), 1, %s3637_s13  }
   0xf   : > { %s3085_s22 = smul.u32 (%p50_p3), 36, %s3645_s15 }
  0x10   : > { %s3123_s23 = smul.u32 (%p50_p3), 72, %s169_s21 }
  0x11   : > { %s177_s26 = scalar_lea.vmem (%p50_p3), %s4055_s0, %s3085_s22 }
  0x12   : > { %v192_v0 = vld [vmem:[%s177_s26] sm:$0xff] (%p50_p3)  ;;  %v194_v1 = vld [vmem:[%s177_s26 + $0x8] sm:$0xff] (%p50_p3)  ;;  %v196_v2 = vld [vmem:[%s177_s26 + $0x10] sm:$0xff] (%p50_p3)  ;;  %s171_s27 = scalar_lea.vmem (%p50_p3), [#allocation3], %s3123_s23 }
  0x13   : > { %193 = vst [vmem:[%s171_s27] sm:$0xff] (%p50_p3), %v192_v0  ;;  %195 = vst [vmem:[%s171_s27 + $0x8] sm:$0xff] (%p50_p3), %v194_v1  ;;  %v198_v3 = vld [vmem:[%s177_s26 + $0x18] sm:$0xff] (%p50_p3)  ;;  %v200_v4 = vld [vmem:[%s177_s26 + $0x48] sm:$0xff] (%p50_p3) }
  0x14   : > { %197 = vst [vmem:[%s171_s27 + $0x10] sm:$0xff] (%p50_p3), %v196_v2  ;;  %v202_v5 = vld [vmem:[%s177_s26 + $0x50] sm:$0xff] (%p50_p3)  ;;  %199 = vst [vmem:[%s171_s27 + $0x18] sm:$0xff] (%p50_p3), %v198_v3  ;;  %v204_v6 = vld [vmem:[%s177_s26 + $0x58] sm:$0xff] (%p50_p3) }
  0x15   : > { %201 = vst [vmem:[%s171_s27 + $0x24] sm:$0xff] %v200_v4  ;;  %203 = vst [vmem:[%s171_s27 + $0x2c] sm:$0xff] %v202_v5  ;;  %v206_v7 = vld [vmem:[%s177_s26 + $0x60] sm:$0xff]  ;;  %v2773_v9 = vld [vmem:[%s177_s26 + $0x68] sm:$0xf] }
  0x16   : > { %v2771_v8 = vld [vmem:[%s177_s26 + $0x20] sm:$0xf]  ;;  %205 = vst [vmem:[%s171_s27 + $0x34] sm:$0xff] %v204_v6  ;;  %207 = vst [vmem:[%s171_s27 + $0x3c] sm:$0xff] %v206_v7 }
  0x17   : > { %2772 = vst [vmem:[%s171_s27 + $0x20] sm:$0xf] %v2771_v8  ;;  %2774 = vst [vmem:[%s171_s27 + $0x44] sm:$0xf] %v2773_v9 }
  0x18 PF: > { %p2775_p6 = scmp.ge.s32.totalorder %s3649_s16, 1  ;;  %p238_p7 = scmp.lt.s32.totalorder %s3649_s16, 3 }
  0x1a   : > { %p239_p8 = pnand %p2775_p6, %p238_p7 }
  0x1b   : > { %s245_s28 = sand.u32 (!%p239_p8), 1, %s3633_s12   ;;  %s289_s29 = smul.u32 (!%p239_p8), 144, %s3641_s14 }
  0x1c   : > { %242 = sbr.rel (%p239_p8) target bundleno = 567 (0x237), region = 54  ;;  %p2778_p10 = scmp.ne.s32.totalorder (!%p239_p8), %s3641_s14, 0 }
  0x1d   : > { %s3124_s30 = smul.u32 (!%p239_p8), 72, %s245_s28  ;;  %p291_p9 = scmp.lt.s32.totalorder (!%p239_p8), %s289_s29, 287 }
  0x1f   : > { %s3724_s8 = scalar_lea.vmem (!%p239_p8), [#allocation3], %s3124_s30 }
  0x23   : > { %s4066_s29 = smov (!%p291_p9, %s289_s29), 287  ;;  %322 = sbr.rel (%p2778_p10) target bundleno = 48 (0x30), region = 62 }
  0x24   : > { %s3086_s4 = sshll.u32 %s4066_s29, 4  ;;  %v325_v10 = vlaneseq (!%p2778_p10)  ;;  %v323_v12 = vld [vmem:[%s4057_s2] sm:$0xf] (!%p2778_p10) }
  0x25   : > { %s3722_s7 = scalar_lea.vmem %s4056_s1, %s3086_s4 }
  0x26   : > { %v326_v11 = vshrl.u32 (!%p2778_p10), %v325_v10, 7 }
  0x28   : > { %v327_v13 = vsub.s32 (!%p2778_p10), 0, %v326_v11  ;;  %v331_v14 = vsub.s32 (!%p2778_p10), 1, %v326_v11  ;;  %v335_v15 = vsub.s32 (!%p2778_p10), 2, %v326_v11  ;;  %v339_v16 = vsub.s32 (!%p2778_p10), 3, %v326_v11 }
  0x2a   : > { %v328_v17 = vrot.slane %v323_v12, %v327_v13  ;;  %v332_v18 = vrot.slane %v323_v12, %v331_v14  ;;  %v336_v19 = vrot.slane %v323_v12, %v335_v15  ;;  %v340_v20 = vrot.slane %v323_v12, %v339_v16 }
  0x2c   : > { %345 = vst [vmem:[#allocation2] sm:$0xff] %v328_v17  ;;  %349 = vst [vmem:[#allocation2 + $0x20] sm:$0xff] %v328_v17 }
  0x2d   : > { %346 = vst [vmem:[#allocation2 + $0x8] sm:$0xff] %v332_v18  ;;  %350 = vst [vmem:[#allocation2 + $0x28] sm:$0xff] %v332_v18 }
  0x2e   : > { %347 = vst [vmem:[#allocation2 + $0x10] sm:$0xff] %v336_v19  ;;  %351 = vst [vmem:[#allocation2 + $0x30] sm:$0xff] %v336_v19 }
  0x2f   : > { %348 = vst [vmem:[#allocation2 + $0x18] sm:$0xff] %v340_v20  ;;  %352 = vst [vmem:[#allocation2 + $0x38] sm:$0xff] %v340_v20 }
  0x30 PF: > { %v3166_v21 = vld [vmem:[%s3722_s7 + $0x4] ss:$16 sps:$4 sm:$0xff]   ;;  %v3168_v22 = vld [vmem:[%s3722_s7 + $0xc] ss:$16 sps:$4 sm:$0xff]   ;;  %v3170_v23 = vld [vmem:[%s3722_s7] ss:$16 sps:$4 sm:$0xff]  }
  0x31   : > { %2145 = vmatprep.subr.bf16.mxu0 %v3166_v21  ;;  %v3171_v24 = vld [vmem:[%s3722_s7 + $0x8] ss:$16 sps:$4 sm:$0xff]   ;;  %2360 = vmatprep.subr.bf16.mxu1 %v3168_v22  ;;  %v3172_v25 = vld [vmem:[%s3722_s7 + $0x24] ss:$16 sps:$4 sm:$0xff]   ;;  %v3174_v26 = vld [vmem:[%s3722_s7 + $0x2c] ss:$16 sps:$4 sm:$0xff]  }
  0x32   : > { %2146 = vmatpush1.bf16.msra.mxu0 %v3170_v23  ;;  %2361 = vmatpush1.bf16.msra.mxu1 %v3171_v24  ;;  %v3176_v27 = vld [vmem:[%s3722_s7 + $0x20] ss:$16 sps:$4 sm:$0xff]   ;;  %v3177_v28 = vld [vmem:[%s3722_s7 + $0x28] ss:$16 sps:$4 sm:$0xff]   ;;  %v3178_v29 = vld [vmem:[%s3722_s7 + $0x44] ss:$16 sps:$4 sm:$0xff]  }
  0x33   : > { %2147 = vmatprep.subr.bf16.mxu0 %v3172_v25  ;;  %2362 = vmatprep.subr.bf16.mxu1 %v3174_v26  ;;  %v3180_v30 = vld [vmem:[%s3722_s7 + $0x4c] ss:$16 sps:$4 sm:$0xff]   ;;  %v3182_v31 = vld [vmem:[%s3722_s7 + $0x40] ss:$16 sps:$4 sm:$0xff]   ;;  %v3183_v32 = vld [vmem:[%s3722_s7 + $0x48] ss:$16 sps:$4 sm:$0xff]  }
  0x34   : > { %v3184_v33 = vld [vmem:[%s3722_s7 + $0x64] ss:$16 sps:$4 sm:$0xff]   ;;  %v3186_v34 = vld [vmem:[%s3722_s7 + $0x6c] ss:$16 sps:$4 sm:$0xff]   ;;  %v3188_v35 = vld [vmem:[%s3722_s7 + $0x60] ss:$16 sps:$4 sm:$0xff]  }
  0x35   : > { %v3189_v36 = vld [vmem:[%s3722_s7 + $0x68] ss:$16 sps:$4 sm:$0xff]   ;;  %v3190_v37 = vld [vmem:[%s3722_s7 + $0x84] ss:$16 sps:$4 sm:$0xff]   ;;  %v3192_v38 = vld [vmem:[%s3722_s7 + $0x8c] ss:$16 sps:$4 sm:$0xff]  }
  0x36   : > { %2148 = vmatpush1.bf16.msra.mxu0 %v3176_v27  ;;  %2363 = vmatpush1.bf16.msra.mxu1 %v3177_v28  ;;  %v3194_v39 = vld [vmem:[%s3722_s7 + $0x80] ss:$16 sps:$4 sm:$0xff]   ;;  %v3195_v40 = vld [vmem:[%s3722_s7 + $0x88] ss:$16 sps:$4 sm:$0xff]   ;;  %v3196_v41 = vld [vmem:[%s3722_s7 + $0xa4] ss:$16 sps:$4 sm:$0xff]  }
  0x37   : > { %2149 = vmatprep.subr.bf16.mxu0 %v3178_v29  ;;  %2364 = vmatprep.subr.bf16.mxu1 %v3180_v30  ;;  %v3198_v42 = vld [vmem:[%s3722_s7 + $0xac] ss:$16 sps:$4 sm:$0xff]   ;;  %v3200_v43 = vld [vmem:[%s3722_s7 + $0xa0] ss:$16 sps:$4 sm:$0xff]   ;;  %v3201_v44 = vld [vmem:[%s3722_s7 + $0xa8] ss:$16 sps:$4 sm:$0xff]  }
  0x38   : > { %v3202_v45 = vld [vmem:[%s3722_s7 + $0xc4] ss:$16 sps:$4 sm:$0xff]   ;;  %v3204_v46 = vld [vmem:[%s3722_s7 + $0xcc] ss:$16 sps:$4 sm:$0xff]   ;;  %v3206_v47 = vld [vmem:[%s3722_s7 + $0xc0] ss:$16 sps:$4 sm:$0xff]  }
  0x39   : > { %v3207_v48 = vld [vmem:[%s3722_s7 + $0xc8] ss:$16 sps:$4 sm:$0xff]   ;;  %v3208_v49 = vld [vmem:[%s3722_s7 + $0xe4] ss:$16 sps:$4 sm:$0xff]   ;;  %v3210_v50 = vld [vmem:[%s3722_s7 + $0xec] ss:$16 sps:$4 sm:$0xff]  }
  0x3a   : > { %2150 = vmatpush1.bf16.msra.mxu0 %v3182_v31  ;;  %2365 = vmatpush1.bf16.msra.mxu1 %v3183_v32  ;;  %v3212_v51 = vld [vmem:[%s3722_s7 + $0xe0] ss:$16 sps:$4 sm:$0xff]   ;;  %v3213_v52 = vld [vmem:[%s3722_s7 + $0xe8] ss:$16 sps:$4 sm:$0xff]   ;;  %v3214_v53 = vld [vmem:[%s3722_s7 + $0x104] ss:$16 sps:$4 sm:$0xff]  }
  0x3b   : > { %2151 = vmatprep.subr.bf16.mxu0 %v3184_v33  ;;  %2366 = vmatprep.subr.bf16.mxu1 %v3186_v34  ;;  %v3216_v54 = vld [vmem:[%s3722_s7 + $0x10c] ss:$16 sps:$4 sm:$0xff]   ;;  %v3218_v55 = vld [vmem:[%s3722_s7 + $0x100] ss:$16 sps:$4 sm:$0xff]   ;;  %v3219_v56 = vld [vmem:[%s3722_s7 + $0x108] ss:$16 sps:$4 sm:$0xff]  }
  0x3c   : > { %v3220_v57 = vld [vmem:[%s3722_s7 + $0x124] ss:$16 sps:$4 sm:$0xff]   ;;  %v3222_v58 = vld [vmem:[%s3722_s7 + $0x12c] ss:$16 sps:$4 sm:$0xff]   ;;  %v3224_v59 = vld [vmem:[%s3722_s7 + $0x120] ss:$16 sps:$4 sm:$0xff]  }
  0x3d   : > { %v3225_v60 = vld [vmem:[%s3722_s7 + $0x128] ss:$16 sps:$4 sm:$0xff]   ;;  %v3226_v61 = vld [vmem:[%s3722_s7 + $0x144] ss:$16 sps:$4 sm:$0xff]   ;;  %v3228_v62 = vld [vmem:[%s3722_s7 + $0x14c] ss:$16 sps:$4 sm:$0xff]  }
  0x3e   : > { %2152 = vmatpush1.bf16.msra.mxu0 %v3188_v35  ;;  %2367 = vmatpush1.bf16.msra.mxu1 %v3189_v36  ;;  %v3230_v63 = vld [vmem:[%s3722_s7 + $0x140] ss:$16 sps:$4 sm:$0xff]   ;;  %v3231_v0 = vld [vmem:[%s3722_s7 + $0x148] ss:$16 sps:$4 sm:$0xff]   ;;  %v3232_v1 = vld [vmem:[%s3722_s7 + $0x164] ss:$16 sps:$4 sm:$0xff]  }
  0x3f   : > { %2153 = vmatprep.subr.bf16.mxu0 %v3190_v37  ;;  %2368 = vmatprep.subr.bf16.mxu1 %v3192_v38  ;;  %v3234_v2 = vld [vmem:[%s3722_s7 + $0x16c] ss:$16 sps:$4 sm:$0xff]   ;;  %v3236_v3 = vld [vmem:[%s3722_s7 + $0x160] ss:$16 sps:$4 sm:$0xff]   ;;  %v3237_v4 = vld [vmem:[%s3722_s7 + $0x168] ss:$16 sps:$4 sm:$0xff]  }
  0x40   : > { %v3264_v5 = vld [vmem:[%s3724_s8 + $0x4] ss:$36 sps:$4 sm:$0xff]   ;;  %p3076_p11 = scmp.ne.s32.totalorder %s3641_s14, 1 }
  0x41   : > { %v3238_v6 = vld [vmem:[%s3722_s7 + $0x184] ss:$16 sps:$4 sm:$0xff]   ;;  %v3240_v7 = vld [vmem:[%s3722_s7 + $0x18c] ss:$16 sps:$4 sm:$0xff]   ;;  %2177 = vmatprep.mubr.bf16.mxu0 %v3264_v5  ;;  %2392 = vmatprep.mubr.bf16.mxu1 %v3264_v5  ;;  %v3242_v8 = vld [vmem:[%s3722_s7 + $0x180] ss:$16 sps:$4 sm:$0xff]  }
  0x42   : > { %2154 = vmatpush1.bf16.msra.mxu0 %v3194_v39  ;;  %2369 = vmatpush1.bf16.msra.mxu1 %v3195_v40  ;;  %v3243_v9 = vld [vmem:[%s3722_s7 + $0x188] ss:$16 sps:$4 sm:$0xff]   ;;  %v3244_v10 = vld [vmem:[%s3722_s7 + $0x1a4] ss:$16 sps:$4 sm:$0xff]   ;;  %v3246_v11 = vld [vmem:[%s3722_s7 + $0x1ac] ss:$16 sps:$4 sm:$0xff]  }
  0x43   : > { %2155 = vmatprep.subr.bf16.mxu0 %v3196_v41  ;;  %2370 = vmatprep.subr.bf16.mxu1 %v3198_v42  ;;  %v3248_v12 = vld [vmem:[%s3722_s7 + $0x1a0] ss:$16 sps:$4 sm:$0xff]   ;;  %v3249_v13 = vld [vmem:[%s3722_s7 + $0x1a8] ss:$16 sps:$4 sm:$0xff]   ;;  %v3250_v14 = vld [vmem:[%s3722_s7 + $0x1c4] ss:$16 sps:$4 sm:$0xff]  }
  0x44   : > { %v3252_v15 = vld [vmem:[%s3722_s7 + $0x1cc] ss:$16 sps:$4 sm:$0xff]   ;;  %v3254_v16 = vld [vmem:[%s3722_s7 + $0x1c0] ss:$16 sps:$4 sm:$0xff]   ;;  %v3255_v17 = vld [vmem:[%s3722_s7 + $0x1c8] ss:$16 sps:$4 sm:$0xff]  }
  0x45   : > { %v3256_v18 = vld [vmem:[%s3722_s7 + $0x1e4] ss:$16 sps:$4 sm:$0xff]   ;;  %v3258_v19 = vld [vmem:[%s3722_s7 + $0x1ec] ss:$16 sps:$4 sm:$0xff]   ;;  %v3260_v20 = vld [vmem:[%s3722_s7 + $0x1e0] ss:$16 sps:$4 sm:$0xff]  }
  0x46   : > { %2156 = vmatpush1.bf16.msra.mxu0 %v3200_v43  ;;  %2371 = vmatpush1.bf16.msra.mxu1 %v3201_v44  ;;  %v3261_v21 = vld [vmem:[%s3722_s7 + $0x1e8] ss:$16 sps:$4 sm:$0xff]   ;;  %v3267_v22 = vld [vmem:[%s3722_s7 + $0x204] ss:$16 sps:$4 sm:$0xff]   ;;  %v3270_v23 = vld [vmem:[%s3722_s7 + $0x20c] ss:$16 sps:$4 sm:$0xff]  }
  0x47   : > { %2157 = vmatprep.subr.bf16.mxu0 %v3202_v45  ;;  %2372 = vmatprep.subr.bf16.mxu1 %v3204_v46  ;;  %v3262_v24 = vld [vmem:[%s3724_s8] ss:$36 sps:$4 sm:$0xff]  }
  0x48   : > { %v3265_v25 = vld [vmem:[%s3722_s7 + $0x200] ss:$16 sps:$4 sm:$0xff]   ;;  %v3268_v26 = vld [vmem:[%s3722_s7 + $0x208] ss:$16 sps:$4 sm:$0xff]   ;;  %v3273_v27 = vld [vmem:[%s3722_s7 + $0x224] ss:$16 sps:$4 sm:$0xff]  }
  0x49   : > { %v3276_v28 = vld [vmem:[%s3722_s7 + $0x22c] ss:$16 sps:$4 sm:$0xff]   ;;  %v3271_v29 = vld [vmem:[%s3722_s7 + $0x220] ss:$16 sps:$4 sm:$0xff]   ;;  %v3274_v30 = vld [vmem:[%s3722_s7 + $0x228] ss:$16 sps:$4 sm:$0xff]  }
  0x4a   : > { %2158 = vmatpush1.bf16.msra.mxu0 %v3206_v47  ;;  %2373 = vmatpush1.bf16.msra.mxu1 %v3207_v48  ;;  %v3279_v31 = vld [vmem:[%s3722_s7 + $0x244] ss:$16 sps:$4 sm:$0xff]   ;;  %v3282_v32 = vld [vmem:[%s3722_s7 + $0x24c] ss:$16 sps:$4 sm:$0xff]   ;;  %v3277_v33 = vld [vmem:[%s3722_s7 + $0x240] ss:$16 sps:$4 sm:$0xff]  }
  0x4b   : > { %2159 = vmatprep.subr.bf16.mxu0 %v3208_v49  ;;  %2374 = vmatprep.subr.bf16.mxu1 %v3210_v50  ;;  %v3280_v34 = vld [vmem:[%s3722_s7 + $0x248] ss:$16 sps:$4 sm:$0xff]   ;;  %v3285_v35 = vld [vmem:[%s3722_s7 + $0x264] ss:$16 sps:$4 sm:$0xff]   ;;  %v3288_v36 = vld [vmem:[%s3722_s7 + $0x26c] ss:$16 sps:$4 sm:$0xff]  }
  0x4c   : > { %v3283_v37 = vld [vmem:[%s3722_s7 + $0x260] ss:$16 sps:$4 sm:$0xff]   ;;  %v3286_v38 = vld [vmem:[%s3722_s7 + $0x268] ss:$16 sps:$4 sm:$0xff]   ;;  %v3291_v39 = vld [vmem:[%s3722_s7 + $0x284] ss:$16 sps:$4 sm:$0xff]  }
  0x4d   : > { %v3294_v40 = vld [vmem:[%s3722_s7 + $0x28c] ss:$16 sps:$4 sm:$0xff]   ;;  %v3289_v41 = vld [vmem:[%s3722_s7 + $0x280] ss:$16 sps:$4 sm:$0xff]   ;;  %v3292_v42 = vld [vmem:[%s3722_s7 + $0x288] ss:$16 sps:$4 sm:$0xff]  }
  0x4e   : > { %2160 = vmatpush1.bf16.msra.mxu0 %v3212_v51  ;;  %2375 = vmatpush1.bf16.msra.mxu1 %v3213_v52  ;;  %v3297_v43 = vld [vmem:[%s3722_s7 + $0x2a4] ss:$16 sps:$4 sm:$0xff]   ;;  %v3300_v44 = vld [vmem:[%s3722_s7 + $0x2ac] ss:$16 sps:$4 sm:$0xff]   ;;  %v3295_v45 = vld [vmem:[%s3722_s7 + $0x2a0] ss:$16 sps:$4 sm:$0xff]  }
  0x4f   : > { %2161 = vmatprep.subr.bf16.mxu0 %v3214_v53  ;;  %2376 = vmatprep.subr.bf16.mxu1 %v3216_v54  ;;  %v3298_v46 = vld [vmem:[%s3722_s7 + $0x2a8] ss:$16 sps:$4 sm:$0xff]   ;;  %v3303_v47 = vld [vmem:[%s3722_s7 + $0x2c4] ss:$16 sps:$4 sm:$0xff]   ;;  %v3306_v48 = vld [vmem:[%s3722_s7 + $0x2cc] ss:$16 sps:$4 sm:$0xff]  }
  0x50   : > { %v3301_v49 = vld [vmem:[%s3722_s7 + $0x2c0] ss:$16 sps:$4 sm:$0xff]   ;;  %v3304_v50 = vld [vmem:[%s3722_s7 + $0x2c8] ss:$16 sps:$4 sm:$0xff]   ;;  %v3309_v52 = vld [vmem:[%s3722_s7 + $0x2e4] ss:$16 sps:$4 sm:$0xff]  }
  0x51   : > { %v3363_v51 = vld [vmem:[%s3724_s8 + $0xc] ss:$36 sps:$4 sm:$0xff]  }
  0x52   : > { %2162 = vmatpush1.bf16.msra.mxu0 %v3218_v55  ;;  %2377 = vmatpush1.bf16.msra.mxu1 %v3219_v56  ;;  %v3312_v53 = vld [vmem:[%s3722_s7 + $0x2ec] ss:$16 sps:$4 sm:$0xff]   ;;  %v3307_v54 = vld [vmem:[%s3722_s7 + $0x2e0] ss:$16 sps:$4 sm:$0xff]   ;;  %v3310_v55 = vld [vmem:[%s3722_s7 + $0x2e8] ss:$16 sps:$4 sm:$0xff]  }
  0x53   : > { %2163 = vmatprep.subr.bf16.mxu0 %v3220_v57  ;;  %2378 = vmatprep.subr.bf16.mxu1 %v3222_v58  ;;  %v3315_v56 = vld [vmem:[%s3722_s7 + $0x304] ss:$16 sps:$4 sm:$0xff]   ;;  %v3318_v57 = vld [vmem:[%s3722_s7 + $0x30c] ss:$16 sps:$4 sm:$0xff]   ;;  %v3313_v58 = vld [vmem:[%s3722_s7 + $0x300] ss:$16 sps:$4 sm:$0xff]  }
  0x54   : > { %v3336_v5 = vld [vmem:[%s3722_s7 + $0x36c] ss:$16 sps:$4 sm:$0xff]  }
  0x56   : > { %2164 = vmatpush1.bf16.msra.mxu0 %v3224_v59  ;;  %2379 = vmatpush1.bf16.msra.mxu1 %v3225_v60  ;;  %v3316_v59 = vld [vmem:[%s3722_s7 + $0x308] ss:$16 sps:$4 sm:$0xff]   ;;  %v3321_v60 = vld [vmem:[%s3722_s7 + $0x324] ss:$16 sps:$4 sm:$0xff]  }
  0x57   : > { %2165 = vmatprep.subr.bf16.mxu0 %v3226_v61  ;;  %2380 = vmatprep.subr.bf16.mxu1 %v3228_v62  ;;  %v3324_v61 = vld [vmem:[%s3722_s7 + $0x32c] ss:$16 sps:$4 sm:$0xff]   ;;  %v3319_v62 = vld [vmem:[%s3722_s7 + $0x320] ss:$16 sps:$4 sm:$0xff]  }
  0x5a   : > { %2166 = vmatpush1.bf16.msra.mxu0 %v3230_v63  ;;  %2381 = vmatpush1.bf16.msra.mxu1 %v3231_v0  ;;  %v3322_v63 = vld [vmem:[%s3722_s7 + $0x328] ss:$16 sps:$4 sm:$0xff]   ;;  %v3327_v0 = vld [vmem:[%s3722_s7 + $0x344] ss:$16 sps:$4 sm:$0xff]  }
  0x5b   : > { %2167 = vmatprep.subr.bf16.mxu0 %v3232_v1  ;;  %2382 = vmatprep.subr.bf16.mxu1 %v3234_v2  ;;  %v3330_v1 = vld [vmem:[%s3722_s7 + $0x34c] ss:$16 sps:$4 sm:$0xff]   ;;  %v3325_v2 = vld [vmem:[%s3722_s7 + $0x340] ss:$16 sps:$4 sm:$0xff]  }
  0x5e   : > { %2168 = vmatpush1.bf16.msra.mxu0 %v3236_v3  ;;  %2383 = vmatpush1.bf16.msra.mxu1 %v3237_v4  ;;  %v3328_v3 = vld [vmem:[%s3722_s7 + $0x348] ss:$16 sps:$4 sm:$0xff]   ;;  %v3333_v4 = vld [vmem:[%s3722_s7 + $0x364] ss:$16 sps:$4 sm:$0xff]  }
  0x5f   : > { %2169 = vmatprep.subr.bf16.mxu0 %v3238_v6  ;;  %2384 = vmatprep.subr.bf16.mxu1 %v3240_v7  ;;  %v3331_v6 = vld [vmem:[%s3722_s7 + $0x360] ss:$16 sps:$4 sm:$0xff]   ;;  %v3334_v7 = vld [vmem:[%s3722_s7 + $0x368] ss:$16 sps:$4 sm:$0xff]  }
  0x62   : > { %2170 = vmatpush1.bf16.msra.mxu0 %v3242_v8  ;;  %2385 = vmatpush1.bf16.msra.mxu1 %v3243_v9  ;;  %v3339_v8 = vld [vmem:[%s3722_s7 + $0x384] ss:$16 sps:$4 sm:$0xff]   ;;  %v3342_v9 = vld [vmem:[%s3722_s7 + $0x38c] ss:$16 sps:$4 sm:$0xff]  }
  0x63   : > { %2171 = vmatprep.subr.bf16.mxu0 %v3244_v10  ;;  %2386 = vmatprep.subr.bf16.mxu1 %v3246_v11  ;;  %v3337_v10 = vld [vmem:[%s3722_s7 + $0x380] ss:$16 sps:$4 sm:$0xff]   ;;  %v3340_v11 = vld [vmem:[%s3722_s7 + $0x388] ss:$16 sps:$4 sm:$0xff]  }
  0x66   : > { %2172 = vmatpush1.bf16.msra.mxu0 %v3248_v12  ;;  %2387 = vmatpush1.bf16.msra.mxu1 %v3249_v13  ;;  %v3345_v12 = vld [vmem:[%s3722_s7 + $0x3a4] ss:$16 sps:$4 sm:$0xff]   ;;  %v3348_v13 = vld [vmem:[%s3722_s7 + $0x3ac] ss:$16 sps:$4 sm:$0xff]  }
  0x67   : > { %2173 = vmatprep.subr.bf16.mxu0 %v3250_v14  ;;  %2388 = vmatprep.subr.bf16.mxu1 %v3252_v15  ;;  %v3343_v14 = vld [vmem:[%s3722_s7 + $0x3a0] ss:$16 sps:$4 sm:$0xff]   ;;  %v3346_v15 = vld [vmem:[%s3722_s7 + $0x3a8] ss:$16 sps:$4 sm:$0xff]  }
  0x6a   : > { %2174 = vmatpush1.bf16.msra.mxu0 %v3254_v16  ;;  %2389 = vmatpush1.bf16.msra.mxu1 %v3255_v17  ;;  %v3351_v16 = vld [vmem:[%s3722_s7 + $0x3c4] ss:$16 sps:$4 sm:$0xff]   ;;  %v3354_v17 = vld [vmem:[%s3722_s7 + $0x3cc] ss:$16 sps:$4 sm:$0xff]  }
  0x6b   : > { %2175 = vmatprep.subr.bf16.mxu0 %v3256_v18  ;;  %2390 = vmatprep.subr.bf16.mxu1 %v3258_v19  ;;  %v3349_v18 = vld [vmem:[%s3722_s7 + $0x3c0] ss:$16 sps:$4 sm:$0xff]   ;;  %v3352_v19 = vld [vmem:[%s3722_s7 + $0x3c8] ss:$16 sps:$4 sm:$0xff]  }
  0x6e   : > { %2176 = vmatpush1.bf16.msra.mxu0 %v3260_v20  ;;  %2391 = vmatpush1.bf16.msra.mxu1 %v3261_v21  ;;  %v3357_v20 = vld [vmem:[%s3722_s7 + $0x3e4] ss:$16 sps:$4 sm:$0xff]   ;;  %v3360_v21 = vld [vmem:[%s3722_s7 + $0x3ec] ss:$16 sps:$4 sm:$0xff]  }
  0x6f   : > { %2188 = vmatprep.subr.bf16.mxu0 %v3267_v22  ;;  %2403 = vmatprep.subr.bf16.mxu1 %v3270_v23  ;;  %v3355_v22 = vld [vmem:[%s3722_s7 + $0x3e0] ss:$16 sps:$4 sm:$0xff]   ;;  %v3358_v23 = vld [vmem:[%s3722_s7 + $0x3e8] ss:$16 sps:$4 sm:$0xff]  }
  0x71   : > { %2178 = vmatmul.mubr.bf16.vlgmr.msra.gmra.mrb[0].mxu0 %v3262_v24  ;;  %2393 = vmatmul.mubr.bf16.vlgmr.msra.gmra.mrb[0].mxu1 %v3262_v24  ;;  %v3366_v24 = vld [vmem:[%s3722_s7 + $0x404] ss:$16 sps:$4 sm:$0xff]  }
  0x72   : > { %2189 = vmatpush1.bf16.msra.mxu0 %v3265_v25  ;;  %2404 = vmatpush1.bf16.msra.mxu1 %v3268_v26  ;;  %v3369_v25 = vld [vmem:[%s3722_s7 + $0x40c] ss:$16 sps:$4 sm:$0xff]  }
  0x73   : > { %2190 = vmatprep.subr.bf16.mxu0 %v3273_v27  ;;  %2405 = vmatprep.subr.bf16.mxu1 %v3276_v28  ;;  %v3361_v26 = vld [vmem:[%s3724_s8 + $0x8] ss:$36 sps:$4 sm:$0xff]  }
  0x74   : > { %2220 = vmatprep.mubr.bf16.mxu0 %v3363_v51  ;;  %2435 = vmatprep.mubr.bf16.mxu1 %v3363_v51  ;;  %v3364_v27 = vld [vmem:[%s3722_s7 + $0x400] ss:$16 sps:$4 sm:$0xff]   ;;  %v3367_v28 = vld [vmem:[%s3722_s7 + $0x408] ss:$16 sps:$4 sm:$0xff]   ;;  %v3405_v51 = vld [vmem:[%s3722_s7 + $0x4cc] ss:$16 sps:$4 sm:$0xff]  }
  0x76   : > { %2191 = vmatpush1.bf16.msra.mxu0 %v3271_v29  ;;  %2406 = vmatpush1.bf16.msra.mxu1 %v3274_v30  ;;  %v3372_v29 = vld [vmem:[%s3722_s7 + $0x424] ss:$16 sps:$4 sm:$0xff]   ;;  %v3375_v30 = vld [vmem:[%s3722_s7 + $0x42c] ss:$16 sps:$4 sm:$0xff]  }
  0x77   : > { %2192 = vmatprep.subr.bf16.mxu0 %v3279_v31  ;;  %2407 = vmatprep.subr.bf16.mxu1 %v3282_v32  ;;  %v3370_v31 = vld [vmem:[%s3722_s7 + $0x420] ss:$16 sps:$4 sm:$0xff]   ;;  %v3373_v32 = vld [vmem:[%s3722_s7 + $0x428] ss:$16 sps:$4 sm:$0xff]  }
  0x7a   : > { %2193 = vmatpush1.bf16.msra.mxu0 %v3277_v33  ;;  %2408 = vmatpush1.bf16.msra.mxu1 %v3280_v34  ;;  %v3462_v33 = vld [vmem:[%s3724_s8 + $0x14] ss:$36 sps:$4 sm:$0xff]  }
  0x7b   : > { %2194 = vmatprep.subr.bf16.mxu0 %v3285_v35  ;;  %2409 = vmatprep.subr.bf16.mxu1 %v3288_v36  ;;  %v3378_v34 = vld [vmem:[%s3722_s7 + $0x444] ss:$16 sps:$4 sm:$0xff]   ;;  %v3381_v35 = vld [vmem:[%s3722_s7 + $0x44c] ss:$16 sps:$4 sm:$0xff]   ;;  %v3376_v36 = vld [vmem:[%s3722_s7 + $0x440] ss:$16 sps:$4 sm:$0xff]  }
  0x7e   : > { %2195 = vmatpush1.bf16.msra.mxu0 %v3283_v37  ;;  %2410 = vmatpush1.bf16.msra.mxu1 %v3286_v38  ;;  %v3379_v37 = vld [vmem:[%s3722_s7 + $0x448] ss:$16 sps:$4 sm:$0xff]   ;;  %v3384_v38 = vld [vmem:[%s3722_s7 + $0x464] ss:$16 sps:$4 sm:$0xff]  }
  0x7f   : > { %2196 = vmatprep.subr.bf16.mxu0 %v3291_v39  ;;  %2411 = vmatprep.subr.bf16.mxu1 %v3294_v40  ;;  %v3387_v39 = vld [vmem:[%s3722_s7 + $0x46c] ss:$16 sps:$4 sm:$0xff]   ;;  %v3382_v40 = vld [vmem:[%s3722_s7 + $0x460] ss:$16 sps:$4 sm:$0xff]  }
  0x82   : > { %2197 = vmatpush1.bf16.msra.mxu0 %v3289_v41  ;;  %2412 = vmatpush1.bf16.msra.mxu1 %v3292_v42  ;;  %v3385_v41 = vld [vmem:[%s3722_s7 + $0x468] ss:$16 sps:$4 sm:$0xff]   ;;  %v3390_v42 = vld [vmem:[%s3722_s7 + $0x484] ss:$16 sps:$4 sm:$0xff]  }
  0x83   : > { %2198 = vmatprep.subr.bf16.mxu0 %v3297_v43  ;;  %2413 = vmatprep.subr.bf16.mxu1 %v3300_v44  ;;  %v3393_v43 = vld [vmem:[%s3722_s7 + $0x48c] ss:$16 sps:$4 sm:$0xff]   ;;  %v3388_v44 = vld [vmem:[%s3722_s7 + $0x480] ss:$16 sps:$4 sm:$0xff]  }
  0x86   : > { %2199 = vmatpush1.bf16.msra.mxu0 %v3295_v45  ;;  %2414 = vmatpush1.bf16.msra.mxu1 %v3298_v46  ;;  %v3391_v45 = vld [vmem:[%s3722_s7 + $0x488] ss:$16 sps:$4 sm:$0xff]   ;;  %v3396_v46 = vld [vmem:[%s3722_s7 + $0x4a4] ss:$16 sps:$4 sm:$0xff]  }
  0x87   : > { %2200 = vmatprep.subr.bf16.mxu0 %v3303_v47  ;;  %2415 = vmatprep.subr.bf16.mxu1 %v3306_v48  ;;  %v3399_v47 = vld [vmem:[%s3722_s7 + $0x4ac] ss:$16 sps:$4 sm:$0xff]   ;;  %v3394_v48 = vld [vmem:[%s3722_s7 + $0x4a0] ss:$16 sps:$4 sm:$0xff]  }
  0x8a   : > { %2201 = vmatpush1.bf16.msra.mxu0 %v3301_v49  ;;  %2416 = vmatpush1.bf16.msra.mxu1 %v3304_v50  ;;  %v3397_v49 = vld [vmem:[%s3722_s7 + $0x4a8] ss:$16 sps:$4 sm:$0xff]   ;;  %v3402_v50 = vld [vmem:[%s3722_s7 + $0x4c4] ss:$16 sps:$4 sm:$0xff]  }
  0x8b   : > { %2202 = vmatprep.subr.bf16.mxu0 %v3309_v52  ;;  %2417 = vmatprep.subr.bf16.mxu1 %v3312_v53  ;;  %v3400_v52 = vld [vmem:[%s3722_s7 + $0x4c0] ss:$16 sps:$4 sm:$0xff]   ;;  %v3403_v53 = vld [vmem:[%s3722_s7 + $0x4c8] ss:$16 sps:$4 sm:$0xff]  }
  0x8e   : > { %2203 = vmatpush1.bf16.msra.mxu0 %v3307_v54  ;;  %2418 = vmatpush1.bf16.msra.mxu1 %v3310_v55  ;;  %v3408_v54 = vld [vmem:[%s3722_s7 + $0x4e4] ss:$16 sps:$4 sm:$0xff]   ;;  %v3411_v55 = vld [vmem:[%s3722_s7 + $0x4ec] ss:$16 sps:$4 sm:$0xff]  }
  0x8f   : > { %2204 = vmatprep.subr.bf16.mxu0 %v3315_v56  ;;  %2419 = vmatprep.subr.bf16.mxu1 %v3318_v57  ;;  %v3406_v56 = vld [vmem:[%s3722_s7 + $0x4e0] ss:$16 sps:$4 sm:$0xff]   ;;  %v3409_v57 = vld [vmem:[%s3722_s7 + $0x4e8] ss:$16 sps:$4 sm:$0xff]  }
  0x92   : > { %2205 = vmatpush1.bf16.msra.mxu0 %v3313_v58  ;;  %2420 = vmatpush1.bf16.msra.mxu1 %v3316_v59  ;;  %v3414_v58 = vld [vmem:[%s3722_s7 + $0x504] ss:$16 sps:$4 sm:$0xff]   ;;  %v3417_v59 = vld [vmem:[%s3722_s7 + $0x50c] ss:$16 sps:$4 sm:$0xff]  }
  0x93   : > { %2206 = vmatprep.subr.bf16.mxu0 %v3321_v60  ;;  %2421 = vmatprep.subr.bf16.mxu1 %v3324_v61  ;;  %v3412_v60 = vld [vmem:[%s3722_s7 + $0x500] ss:$16 sps:$4 sm:$0xff]   ;;  %v3415_v61 = vld [vmem:[%s3722_s7 + $0x508] ss:$16 sps:$4 sm:$0xff]  }
  0x96   : > { %2207 = vmatpush1.bf16.msra.mxu0 %v3319_v62  ;;  %2422 = vmatpush1.bf16.msra.mxu1 %v3322_v63  ;;  %v3420_v62 = vld [vmem:[%s3722_s7 + $0x524] ss:$16 sps:$4 sm:$0xff]   ;;  %v3423_v63 = vld [vmem:[%s3722_s7 + $0x52c] ss:$16 sps:$4 sm:$0xff]  }
  0x97   : > { %2208 = vmatprep.subr.bf16.mxu0 %v3327_v0  ;;  %2423 = vmatprep.subr.bf16.mxu1 %v3330_v1  ;;  %v3418_v0 = vld [vmem:[%s3722_s7 + $0x520] ss:$16 sps:$4 sm:$0xff]   ;;  %v3421_v1 = vld [vmem:[%s3722_s7 + $0x528] ss:$16 sps:$4 sm:$0xff]  }
  0x9a   : > { %2209 = vmatpush1.bf16.msra.mxu0 %v3325_v2  ;;  %2424 = vmatpush1.bf16.msra.mxu1 %v3328_v3  ;;  %v3426_v2 = vld [vmem:[%s3722_s7 + $0x544] ss:$16 sps:$4 sm:$0xff]   ;;  %v3429_v3 = vld [vmem:[%s3722_s7 + $0x54c] ss:$16 sps:$4 sm:$0xff]  }
  0x9b   : > { %2210 = vmatprep.subr.bf16.mxu0 %v3333_v4  ;;  %2425 = vmatprep.subr.bf16.mxu1 %v3336_v5  ;;  %v3424_v4 = vld [vmem:[%s3722_s7 + $0x540] ss:$16 sps:$4 sm:$0xff]   ;;  %v3427_v5 = vld [vmem:[%s3722_s7 + $0x548] ss:$16 sps:$4 sm:$0xff]  }
  0x9e   : > { %2211 = vmatpush1.bf16.msra.mxu0 %v3331_v6  ;;  %2426 = vmatpush1.bf16.msra.mxu1 %v3334_v7  ;;  %v3432_v6 = vld [vmem:[%s3722_s7 + $0x564] ss:$16 sps:$4 sm:$0xff]   ;;  %v3435_v7 = vld [vmem:[%s3722_s7 + $0x56c] ss:$16 sps:$4 sm:$0xff]  }
  0x9f   : > { %2212 = vmatprep.subr.bf16.mxu0 %v3339_v8  ;;  %2427 = vmatprep.subr.bf16.mxu1 %v3342_v9  ;;  %v3430_v8 = vld [vmem:[%s3722_s7 + $0x560] ss:$16 sps:$4 sm:$0xff]   ;;  %v3433_v9 = vld [vmem:[%s3722_s7 + $0x568] ss:$16 sps:$4 sm:$0xff]  }
  0xa2   : > { %2213 = vmatpush1.bf16.msra.mxu0 %v3337_v10  ;;  %2428 = vmatpush1.bf16.msra.mxu1 %v3340_v11  ;;  %v3438_v10 = vld [vmem:[%s3722_s7 + $0x584] ss:$16 sps:$4 sm:$0xff]   ;;  %v3441_v11 = vld [vmem:[%s3722_s7 + $0x58c] ss:$16 sps:$4 sm:$0xff]  }
  0xa3   : > { %2214 = vmatprep.subr.bf16.mxu0 %v3345_v12  ;;  %2429 = vmatprep.subr.bf16.mxu1 %v3348_v13  ;;  %v3436_v12 = vld [vmem:[%s3722_s7 + $0x580] ss:$16 sps:$4 sm:$0xff]   ;;  %v3439_v13 = vld [vmem:[%s3722_s7 + $0x588] ss:$16 sps:$4 sm:$0xff]  }
  0xa6   : > { %2215 = vmatpush1.bf16.msra.mxu0 %v3343_v14  ;;  %2430 = vmatpush1.bf16.msra.mxu1 %v3346_v15  ;;  %v3444_v14 = vld [vmem:[%s3722_s7 + $0x5a4] ss:$16 sps:$4 sm:$0xff]   ;;  %v3447_v15 = vld [vmem:[%s3722_s7 + $0x5ac] ss:$16 sps:$4 sm:$0xff]  }
  0xa7   : > { %2216 = vmatprep.subr.bf16.mxu0 %v3351_v16  ;;  %2431 = vmatprep.subr.bf16.mxu1 %v3354_v17  ;;  %v3442_v16 = vld [vmem:[%s3722_s7 + $0x5a0] ss:$16 sps:$4 sm:$0xff]   ;;  %v3445_v17 = vld [vmem:[%s3722_s7 + $0x5a8] ss:$16 sps:$4 sm:$0xff]  }
  0xaa   : > { %2217 = vmatpush1.bf16.msra.mxu0 %v3349_v18  ;;  %2432 = vmatpush1.bf16.msra.mxu1 %v3352_v19  ;;  %v3450_v18 = vld [vmem:[%s3722_s7 + $0x5c4] ss:$16 sps:$4 sm:$0xff]   ;;  %v3453_v19 = vld [vmem:[%s3722_s7 + $0x5cc] ss:$16 sps:$4 sm:$0xff]  }
  0xab   : > { %2218 = vmatprep.subr.bf16.mxu0 %v3357_v20  ;;  %2433 = vmatprep.subr.bf16.mxu1 %v3360_v21  ;;  %v3448_v20 = vld [vmem:[%s3722_s7 + $0x5c0] ss:$16 sps:$4 sm:$0xff]   ;;  %v3451_v21 = vld [vmem:[%s3722_s7 + $0x5c8] ss:$16 sps:$4 sm:$0xff]  }
  0xae   : > { %2219 = vmatpush1.bf16.msra.mxu0 %v3355_v22  ;;  %2434 = vmatpush1.bf16.msra.mxu1 %v3358_v23  ;;  %v3456_v22 = vld [vmem:[%s3722_s7 + $0x5e4] ss:$16 sps:$4 sm:$0xff]   ;;  %v3459_v23 = vld [vmem:[%s3722_s7 + $0x5ec] ss:$16 sps:$4 sm:$0xff]  }
  0xaf   : > { %2231 = vmatprep.subr.bf16.mxu0 %v3366_v24  ;;  %2446 = vmatprep.subr.bf16.mxu1 %v3369_v25  ;;  %v3454_v24 = vld [vmem:[%s3722_s7 + $0x5e0] ss:$16 sps:$4 sm:$0xff]   ;;  %v3457_v25 = vld [vmem:[%s3722_s7 + $0x5e8] ss:$16 sps:$4 sm:$0xff]  }
  0xb1   : > { %2221 = vmatmul.mubr.bf16.vlgmr.msra.gmra.mrb[0].mxu0 %v3361_v26  ;;  %2436 = vmatmul.mubr.bf16.vlgmr.msra.gmra.mrb[0].mxu1 %v3361_v26  ;;  %v3465_v26 = vld [vmem:[%s3722_s7 + $0x604] ss:$16 sps:$4 sm:$0xff]  }
  0xb2   : > { %2232 = vmatpush1.bf16.msra.mxu0 %v3364_v27  ;;  %2447 = vmatpush1.bf16.msra.mxu1 %v3367_v28  ;;  %v3468_v27 = vld [vmem:[%s3722_s7 + $0x60c] ss:$16 sps:$4 sm:$0xff]  }
  0xb3   : > { %2233 = vmatprep.subr.bf16.mxu0 %v3372_v29  ;;  %2448 = vmatprep.subr.bf16.mxu1 %v3375_v30  ;;  %v3460_v28 = vld [vmem:[%s3724_s8 + $0x10] ss:$36 sps:$4 sm:$0xff]  }
  0xb4   : > { %2263 = vmatprep.mubr.bf16.mxu0 %v3462_v33  ;;  %2478 = vmatprep.mubr.bf16.mxu1 %v3462_v33  ;;  %v3463_v29 = vld [vmem:[%s3722_s7 + $0x600] ss:$16 sps:$4 sm:$0xff]   ;;  %v3466_v30 = vld [vmem:[%s3722_s7 + $0x608] ss:$16 sps:$4 sm:$0xff]  }
  0xb5   : > { %v3561_v33 = vld [vmem:[%s3724_s8 + $0x1c] ss:$36 sps:$4 sm:$0xff]  }
  0xb6   : > { %2234 = vmatpush1.bf16.msra.mxu0 %v3370_v31  ;;  %2449 = vmatpush1.bf16.msra.mxu1 %v3373_v32  ;;  %v3471_v31 = vld [vmem:[%s3722_s7 + $0x624] ss:$16 sps:$4 sm:$0xff]   ;;  %v3474_v32 = vld [vmem:[%s3722_s7 + $0x62c] ss:$16 sps:$4 sm:$0xff]  }
  0xb7   : > { %2235 = vmatprep.subr.bf16.mxu0 %v3378_v34  ;;  %2450 = vmatprep.subr.bf16.mxu1 %v3381_v35  ;;  %v3469_v34 = vld [vmem:[%s3722_s7 + $0x620] ss:$16 sps:$4 sm:$0xff]   ;;  %v3472_v35 = vld [vmem:[%s3722_s7 + $0x628] ss:$16 sps:$4 sm:$0xff]  }
  0xba   : > { %2236 = vmatpush1.bf16.msra.mxu0 %v3376_v36  ;;  %2451 = vmatpush1.bf16.msra.mxu1 %v3379_v37  ;;  %v3477_v36 = vld [vmem:[%s3722_s7 + $0x644] ss:$16 sps:$4 sm:$0xff]   ;;  %v3480_v37 = vld [vmem:[%s3722_s7 + $0x64c] ss:$16 sps:$4 sm:$0xff]  }
  0xbb   : > { %2237 = vmatprep.subr.bf16.mxu0 %v3384_v38  ;;  %2452 = vmatprep.subr.bf16.mxu1 %v3387_v39  ;;  %v3475_v38 = vld [vmem:[%s3722_s7 + $0x640] ss:$16 sps:$4 sm:$0xff]   ;;  %v3478_v39 = vld [vmem:[%s3722_s7 + $0x648] ss:$16 sps:$4 sm:$0xff]  }
  0xbe   : > { %2238 = vmatpush1.bf16.msra.mxu0 %v3382_v40  ;;  %2453 = vmatpush1.bf16.msra.mxu1 %v3385_v41  ;;  %v3483_v40 = vld [vmem:[%s3722_s7 + $0x664] ss:$16 sps:$4 sm:$0xff]   ;;  %v3486_v41 = vld [vmem:[%s3722_s7 + $0x66c] ss:$16 sps:$4 sm:$0xff]  }
  0xbf   : > { %2239 = vmatprep.subr.bf16.mxu0 %v3390_v42  ;;  %2454 = vmatprep.subr.bf16.mxu1 %v3393_v43  ;;  %v3481_v42 = vld [vmem:[%s3722_s7 + $0x660] ss:$16 sps:$4 sm:$0xff]   ;;  %v3484_v43 = vld [vmem:[%s3722_s7 + $0x668] ss:$16 sps:$4 sm:$0xff]  }
  0xc2   : > { %2240 = vmatpush1.bf16.msra.mxu0 %v3388_v44  ;;  %2455 = vmatpush1.bf16.msra.mxu1 %v3391_v45  ;;  %v3489_v44 = vld [vmem:[%s3722_s7 + $0x684] ss:$16 sps:$4 sm:$0xff]   ;;  %v3492_v45 = vld [vmem:[%s3722_s7 + $0x68c] ss:$16 sps:$4 sm:$0xff]  }
  0xc3   : > { %2241 = vmatprep.subr.bf16.mxu0 %v3396_v46  ;;  %2456 = vmatprep.subr.bf16.mxu1 %v3399_v47  ;;  %v3487_v46 = vld [vmem:[%s3722_s7 + $0x680] ss:$16 sps:$4 sm:$0xff]   ;;  %v3490_v47 = vld [vmem:[%s3722_s7 + $0x688] ss:$16 sps:$4 sm:$0xff]  }
  0xc6   : > { %2242 = vmatpush1.bf16.msra.mxu0 %v3394_v48  ;;  %2457 = vmatpush1.bf16.msra.mxu1 %v3397_v49  ;;  %v3495_v48 = vld [vmem:[%s3722_s7 + $0x6a4] ss:$16 sps:$4 sm:$0xff]   ;;  %v3498_v49 = vld [vmem:[%s3722_s7 + $0x6ac] ss:$16 sps:$4 sm:$0xff]  }
  0xc7   : > { %2243 = vmatprep.subr.bf16.mxu0 %v3402_v50  ;;  %2458 = vmatprep.subr.bf16.mxu1 %v3405_v51  ;;  %v3493_v50 = vld [vmem:[%s3722_s7 + $0x6a0] ss:$16 sps:$4 sm:$0xff]   ;;  %v3496_v51 = vld [vmem:[%s3722_s7 + $0x6a8] ss:$16 sps:$4 sm:$0xff]  }
  0xca   : > { %2244 = vmatpush1.bf16.msra.mxu0 %v3400_v52  ;;  %2459 = vmatpush1.bf16.msra.mxu1 %v3403_v53  ;;  %v3501_v52 = vld [vmem:[%s3722_s7 + $0x6c4] ss:$16 sps:$4 sm:$0xff]   ;;  %v3504_v53 = vld [vmem:[%s3722_s7 + $0x6cc] ss:$16 sps:$4 sm:$0xff]  }
  0xcb   : > { %2245 = vmatprep.subr.bf16.mxu0 %v3408_v54  ;;  %2460 = vmatprep.subr.bf16.mxu1 %v3411_v55  ;;  %v3499_v54 = vld [vmem:[%s3722_s7 + $0x6c0] ss:$16 sps:$4 sm:$0xff]   ;;  %v3502_v55 = vld [vmem:[%s3722_s7 + $0x6c8] ss:$16 sps:$4 sm:$0xff]  }
  0xce   : > { %2246 = vmatpush1.bf16.msra.mxu0 %v3406_v56  ;;  %2461 = vmatpush1.bf16.msra.mxu1 %v3409_v57  ;;  %v3507_v56 = vld [vmem:[%s3722_s7 + $0x6e4] ss:$16 sps:$4 sm:$0xff]   ;;  %v3510_v57 = vld [vmem:[%s3722_s7 + $0x6ec] ss:$16 sps:$4 sm:$0xff]  }
  0xcf   : > { %2247 = vmatprep.subr.bf16.mxu0 %v3414_v58  ;;  %2462 = vmatprep.subr.bf16.mxu1 %v3417_v59  ;;  %v3505_v58 = vld [vmem:[%s3722_s7 + $0x6e0] ss:$16 sps:$4 sm:$0xff]   ;;  %v3508_v59 = vld [vmem:[%s3722_s7 + $0x6e8] ss:$16 sps:$4 sm:$0xff]  }
  0xd2   : > { %2248 = vmatpush1.bf16.msra.mxu0 %v3412_v60  ;;  %2463 = vmatpush1.bf16.msra.mxu1 %v3415_v61  ;;  %v3513_v60 = vld [vmem:[%s3722_s7 + $0x704] ss:$16 sps:$4 sm:$0xff]   ;;  %v3516_v61 = vld [vmem:[%s3722_s7 + $0x70c] ss:$16 sps:$4 sm:$0xff]  }
  0xd3   : > { %2249 = vmatprep.subr.bf16.mxu0 %v3420_v62  ;;  %2464 = vmatprep.subr.bf16.mxu1 %v3423_v63  ;;  %v3511_v62 = vld [vmem:[%s3722_s7 + $0x700] ss:$16 sps:$4 sm:$0xff]   ;;  %v3514_v63 = vld [vmem:[%s3722_s7 + $0x708] ss:$16 sps:$4 sm:$0xff]  }
  0xd6   : > { %2250 = vmatpush1.bf16.msra.mxu0 %v3418_v0  ;;  %2465 = vmatpush1.bf16.msra.mxu1 %v3421_v1  ;;  %v3519_v0 = vld [vmem:[%s3722_s7 + $0x724] ss:$16 sps:$4 sm:$0xff]   ;;  %v3522_v1 = vld [vmem:[%s3722_s7 + $0x72c] ss:$16 sps:$4 sm:$0xff]  }
  0xd7   : > { %2251 = vmatprep.subr.bf16.mxu0 %v3426_v2  ;;  %2466 = vmatprep.subr.bf16.mxu1 %v3429_v3  ;;  %v3517_v2 = vld [vmem:[%s3722_s7 + $0x720] ss:$16 sps:$4 sm:$0xff]   ;;  %v3520_v3 = vld [vmem:[%s3722_s7 + $0x728] ss:$16 sps:$4 sm:$0xff]  }
  0xda   : > { %2252 = vmatpush1.bf16.msra.mxu0 %v3424_v4  ;;  %2467 = vmatpush1.bf16.msra.mxu1 %v3427_v5  ;;  %v3525_v4 = vld [vmem:[%s3722_s7 + $0x744] ss:$16 sps:$4 sm:$0xff]   ;;  %v3528_v5 = vld [vmem:[%s3722_s7 + $0x74c] ss:$16 sps:$4 sm:$0xff]  }
  0xdb   : > { %2253 = vmatprep.subr.bf16.mxu0 %v3432_v6  ;;  %2468 = vmatprep.subr.bf16.mxu1 %v3435_v7  ;;  %v3523_v6 = vld [vmem:[%s3722_s7 + $0x740] ss:$16 sps:$4 sm:$0xff]   ;;  %v3526_v7 = vld [vmem:[%s3722_s7 + $0x748] ss:$16 sps:$4 sm:$0xff]  }
  0xde   : > { %2254 = vmatpush1.bf16.msra.mxu0 %v3430_v8  ;;  %2469 = vmatpush1.bf16.msra.mxu1 %v3433_v9  ;;  %v3531_v8 = vld [vmem:[%s3722_s7 + $0x764] ss:$16 sps:$4 sm:$0xff]   ;;  %v3534_v9 = vld [vmem:[%s3722_s7 + $0x76c] ss:$16 sps:$4 sm:$0xff]  }
  0xdf   : > { %2255 = vmatprep.subr.bf16.mxu0 %v3438_v10  ;;  %2470 = vmatprep.subr.bf16.mxu1 %v3441_v11  ;;  %v3529_v10 = vld [vmem:[%s3722_s7 + $0x760] ss:$16 sps:$4 sm:$0xff]   ;;  %v3532_v11 = vld [vmem:[%s3722_s7 + $0x768] ss:$16 sps:$4 sm:$0xff]  }
  0xe2   : > { %2256 = vmatpush1.bf16.msra.mxu0 %v3436_v12  ;;  %2471 = vmatpush1.bf16.msra.mxu1 %v3439_v13  ;;  %v3537_v12 = vld [vmem:[%s3722_s7 + $0x784] ss:$16 sps:$4 sm:$0xff]   ;;  %v3540_v13 = vld [vmem:[%s3722_s7 + $0x78c] ss:$16 sps:$4 sm:$0xff]  }
  0xe3   : > { %2257 = vmatprep.subr.bf16.mxu0 %v3444_v14  ;;  %2472 = vmatprep.subr.bf16.mxu1 %v3447_v15  ;;  %v3535_v14 = vld [vmem:[%s3722_s7 + $0x780] ss:$16 sps:$4 sm:$0xff]   ;;  %v3538_v15 = vld [vmem:[%s3722_s7 + $0x788] ss:$16 sps:$4 sm:$0xff]  }
  0xe6   : > { %2258 = vmatpush1.bf16.msra.mxu0 %v3442_v16  ;;  %2473 = vmatpush1.bf16.msra.mxu1 %v3445_v17  ;;  %v3543_v16 = vld [vmem:[%s3722_s7 + $0x7a4] ss:$16 sps:$4 sm:$0xff]   ;;  %v3546_v17 = vld [vmem:[%s3722_s7 + $0x7ac] ss:$16 sps:$4 sm:$0xff]  }
  0xe7   : > { %2259 = vmatprep.subr.bf16.mxu0 %v3450_v18  ;;  %2474 = vmatprep.subr.bf16.mxu1 %v3453_v19  ;;  %v3541_v18 = vld [vmem:[%s3722_s7 + $0x7a0] ss:$16 sps:$4 sm:$0xff]   ;;  %v3544_v19 = vld [vmem:[%s3722_s7 + $0x7a8] ss:$16 sps:$4 sm:$0xff]  }
  0xea   : > { %2260 = vmatpush1.bf16.msra.mxu0 %v3448_v20  ;;  %2475 = vmatpush1.bf16.msra.mxu1 %v3451_v21  ;;  %v3549_v20 = vld [vmem:[%s3722_s7 + $0x7c4] ss:$16 sps:$4 sm:$0xff]   ;;  %v3552_v21 = vld [vmem:[%s3722_s7 + $0x7cc] ss:$16 sps:$4 sm:$0xff]  }
  0xeb   : > { %2261 = vmatprep.subr.bf16.mxu0 %v3456_v22  ;;  %2476 = vmatprep.subr.bf16.mxu1 %v3459_v23  ;;  %v3547_v22 = vld [vmem:[%s3722_s7 + $0x7c0] ss:$16 sps:$4 sm:$0xff]   ;;  %v3550_v23 = vld [vmem:[%s3722_s7 + $0x7c8] ss:$16 sps:$4 sm:$0xff]  }
  0xee   : > { %2262 = vmatpush1.bf16.msra.mxu0 %v3454_v24  ;;  %2477 = vmatpush1.bf16.msra.mxu1 %v3457_v25  ;;  %v3555_v24 = vld [vmem:[%s3722_s7 + $0x7e4] ss:$16 sps:$4 sm:$0xff]   ;;  %v3558_v25 = vld [vmem:[%s3722_s7 + $0x7ec] ss:$16 sps:$4 sm:$0xff]  }
  0xef   : > { %2274 = vmatprep.subr.bf16.mxu0 %v3465_v26  ;;  %2489 = vmatprep.subr.bf16.mxu1 %v3468_v27  ;;  %v3553_v26 = vld [vmem:[%s3722_s7 + $0x7e0] ss:$16 sps:$4 sm:$0xff]   ;;  %v3556_v27 = vld [vmem:[%s3722_s7 + $0x7e8] ss:$16 sps:$4 sm:$0xff]  }
  0xf1   : > { %2264 = vmatmul.mubr.bf16.vlgmr.msra.gmra.mrb[0].mxu0 %v3460_v28  ;;  %2479 = vmatmul.mubr.bf16.vlgmr.msra.gmra.mrb[0].mxu1 %v3460_v28  ;;  %v3564_v28 = vld [vmem:[%s3722_s7 + $0x804] ss:$16 sps:$4 sm:$0xff]  }
  0xf2   : > { %2275 = vmatpush1.bf16.msra.mxu0 %v3463_v29  ;;  %2490 = vmatpush1.bf16.msra.mxu1 %v3466_v30  ;;  %v3567_v29 = vld [vmem:[%s3722_s7 + $0x80c] ss:$16 sps:$4 sm:$0xff]  }
  0xf3   : > { %2276 = vmatprep.subr.bf16.mxu0 %v3471_v31  ;;  %2491 = vmatprep.subr.bf16.mxu1 %v3474_v32  ;;  %v3559_v30 = vld [vmem:[%s3724_s8 + $0x18] ss:$36 sps:$4 sm:$0xff]  }
  0xf4   : > { %2306 = vmatprep.mubr.bf16.mxu0 %v3561_v33  ;;  %2521 = vmatprep.mubr.bf16.mxu1 %v3561_v33  ;;  %v3562_v31 = vld [vmem:[%s3722_s7 + $0x800] ss:$16 sps:$4 sm:$0xff]   ;;  %v3565_v32 = vld [vmem:[%s3722_s7 + $0x808] ss:$16 sps:$4 sm:$0xff]   ;;  %v3570_v33 = vld [vmem:[%s3722_s7 + $0x824] ss:$16 sps:$4 sm:$0xff]  }
  0xf6   : > { %2277 = vmatpush1.bf16.msra.mxu0 %v3469_v34  ;;  %2492 = vmatpush1.bf16.msra.mxu1 %v3472_v35  ;;  %v3573_v34 = vld [vmem:[%s3722_s7 + $0x82c] ss:$16 sps:$4 sm:$0xff]   ;;  %v3568_v35 = vld [vmem:[%s3722_s7 + $0x820] ss:$16 sps:$4 sm:$0xff]  }
  0xf7   : > { %2278 = vmatprep.subr.bf16.mxu0 %v3477_v36  ;;  %2493 = vmatprep.subr.bf16.mxu1 %v3480_v37  ;;  %v3571_v36 = vld [vmem:[%s3722_s7 + $0x828] ss:$16 sps:$4 sm:$0xff]   ;;  %v3576_v37 = vld [vmem:[%s3722_s7 + $0x844] ss:$16 sps:$4 sm:$0xff]  }
  0xfa   : > { %2279 = vmatpush1.bf16.msra.mxu0 %v3475_v38  ;;  %2494 = vmatpush1.bf16.msra.mxu1 %v3478_v39  ;;  %v3579_v38 = vld [vmem:[%s3722_s7 + $0x84c] ss:$16 sps:$4 sm:$0xff]   ;;  %v3651_v39 = vmov 0  }
  0xfb   : > { %2280 = vmatprep.subr.bf16.mxu0 %v3483_v40  ;;  %2495 = vmatprep.subr.bf16.mxu1 %v3486_v41  ;;  %v3574_v40 = vld [vmem:[%s3722_s7 + $0x840] ss:$16 sps:$4 sm:$0xff]   ;;  %v3577_v41 = vld [vmem:[%s3722_s7 + $0x848] ss:$16 sps:$4 sm:$0xff]  }
  0xfe   : > { %2281 = vmatpush1.bf16.msra.mxu0 %v3481_v42  ;;  %2496 = vmatpush1.bf16.msra.mxu1 %v3484_v43  ;;  %v3582_v42 = vld [vmem:[%s3722_s7 + $0x864] ss:$16 sps:$4 sm:$0xff]   ;;  %v3585_v43 = vld [vmem:[%s3722_s7 + $0x86c] ss:$16 sps:$4 sm:$0xff]  }
  0xff   : > { %2282 = vmatprep.subr.bf16.mxu0 %v3489_v44  ;;  %2497 = vmatprep.subr.bf16.mxu1 %v3492_v45  ;;  %v3580_v44 = vld [vmem:[%s3722_s7 + $0x860] ss:$16 sps:$4 sm:$0xff]   ;;  %v3583_v45 = vld [vmem:[%s3722_s7 + $0x868] ss:$16 sps:$4 sm:$0xff]  }
 0x102   : > { %2283 = vmatpush1.bf16.msra.mxu0 %v3487_v46  ;;  %2498 = vmatpush1.bf16.msra.mxu1 %v3490_v47  ;;  %v3588_v46 = vld [vmem:[%s3722_s7 + $0x884] ss:$16 sps:$4 sm:$0xff]   ;;  %v3591_v47 = vld [vmem:[%s3722_s7 + $0x88c] ss:$16 sps:$4 sm:$0xff]  }
 0x103   : > { %2284 = vmatprep.subr.bf16.mxu0 %v3495_v48  ;;  %2499 = vmatprep.subr.bf16.mxu1 %v3498_v49  ;;  %v3586_v48 = vld [vmem:[%s3722_s7 + $0x880] ss:$16 sps:$4 sm:$0xff]   ;;  %v3589_v49 = vld [vmem:[%s3722_s7 + $0x888] ss:$16 sps:$4 sm:$0xff]  }
 0x106   : > { %2285 = vmatpush1.bf16.msra.mxu0 %v3493_v50  ;;  %2500 = vmatpush1.bf16.msra.mxu1 %v3496_v51  ;;  %v3594_v50 = vld [vmem:[%s3722_s7 + $0x8a4] ss:$16 sps:$4 sm:$0xff]   ;;  %v3597_v51 = vld [vmem:[%s3722_s7 + $0x8ac] ss:$16 sps:$4 sm:$0xff]  }
 0x107   : > { %2286 = vmatprep.subr.bf16.mxu0 %v3501_v52  ;;  %2501 = vmatprep.subr.bf16.mxu1 %v3504_v53  ;;  %v3592_v52 = vld [vmem:[%s3722_s7 + $0x8a0] ss:$16 sps:$4 sm:$0xff]   ;;  %v3595_v53 = vld [vmem:[%s3722_s7 + $0x8a8] ss:$16 sps:$4 sm:$0xff]  }
 0x10a   : > { %2287 = vmatpush1.bf16.msra.mxu0 %v3499_v54  ;;  %2502 = vmatpush1.bf16.msra.mxu1 %v3502_v55  ;;  %v3600_v54 = vld [vmem:[%s3722_s7 + $0x8c4] ss:$16 sps:$4 sm:$0xff]   ;;  %v3603_v55 = vld [vmem:[%s3722_s7 + $0x8cc] ss:$16 sps:$4 sm:$0xff]  }
 0x10b   : > { %2288 = vmatprep.subr.bf16.mxu0 %v3507_v56  ;;  %2503 = vmatprep.subr.bf16.mxu1 %v3510_v57  ;;  %v3598_v56 = vld [vmem:[%s3722_s7 + $0x8c0] ss:$16 sps:$4 sm:$0xff]   ;;  %v3601_v57 = vld [vmem:[%s3722_s7 + $0x8c8] ss:$16 sps:$4 sm:$0xff]  }
 0x10e   : > { %2289 = vmatpush1.bf16.msra.mxu0 %v3505_v58  ;;  %2504 = vmatpush1.bf16.msra.mxu1 %v3508_v59  ;;  %v3606_v58 = vld [vmem:[%s3722_s7 + $0x8e4] ss:$16 sps:$4 sm:$0xff]   ;;  %v3609_v59 = vld [vmem:[%s3722_s7 + $0x8ec] ss:$16 sps:$4 sm:$0xff]  }
 0x10f   : > { %2290 = vmatprep.subr.bf16.mxu0 %v3513_v60  ;;  %2505 = vmatprep.subr.bf16.mxu1 %v3516_v61  ;;  %v3604_v60 = vld [vmem:[%s3722_s7 + $0x8e0] ss:$16 sps:$4 sm:$0xff]   ;;  %v3607_v61 = vld [vmem:[%s3722_s7 + $0x8e8] ss:$16 sps:$4 sm:$0xff]  }
 0x112   : > { %2291 = vmatpush1.bf16.msra.mxu0 %v3511_v62  ;;  %2506 = vmatpush1.bf16.msra.mxu1 %v3514_v63  ;;  %v3610_v62 = vld [vmem:[%s3724_s8 + $0x20] ss:$36 sps:$4 sm:$0xff]  }
 0x113   : > { %2292 = vmatprep.subr.bf16.mxu0 %v3519_v0  ;;  %2507 = vmatprep.subr.bf16.mxu1 %v3522_v1  ;;  %v353_v63 = vld [vmem:[#allocation2] sm:$0xff]  ;;  %v355_v0 = vld [vmem:[#allocation2 + $0x10] sm:$0xff]  ;;  %v354_v1 = vld [vmem:[#allocation2 + $0x8] sm:$0xff] }
 0x116   : > { %2293 = vmatpush1.bf16.msra.mxu0 %v3517_v2  ;;  %2508 = vmatpush1.bf16.msra.mxu1 %v3520_v3  ;;  %v356_v2 = vld [vmem:[#allocation2 + $0x18] sm:$0xff] }
 0x117   : > { %2294 = vmatprep.subr.bf16.mxu0 %v3525_v4  ;;  %2509 = vmatprep.subr.bf16.mxu1 %v3528_v5  ;;  %v357_v5 = vld [vmem:[#allocation2 + $0x20] sm:$0xff] }
 0x11a   : > { %2295 = vmatpush1.bf16.msra.mxu0 %v3523_v6  ;;  %2510 = vmatpush1.bf16.msra.mxu1 %v3526_v7  ;;  %v359_v6 = vld [vmem:[#allocation2 + $0x30] sm:$0xff] }
 0x11b   : > { %2296 = vmatprep.subr.bf16.mxu0 %v3531_v8  ;;  %2511 = vmatprep.subr.bf16.mxu1 %v3534_v9 }
 0x11e   : > { %2297 = vmatpush1.bf16.msra.mxu0 %v3529_v10  ;;  %2512 = vmatpush1.bf16.msra.mxu1 %v3532_v11  ;;  %v358_v11 = vld [vmem:[#allocation2 + $0x28] sm:$0xff] }
 0x11f   : > { %2298 = vmatprep.subr.bf16.mxu0 %v3537_v12  ;;  %2513 = vmatprep.subr.bf16.mxu1 %v3540_v13  ;;  %v360_v12 = vld [vmem:[#allocation2 + $0x38] sm:$0xff] }
 0x122   : > { %2299 = vmatpush1.bf16.msra.mxu0 %v3535_v14  ;;  %2514 = vmatpush1.bf16.msra.mxu1 %v3538_v15 }
 0x123   : > { %2300 = vmatprep.subr.bf16.mxu0 %v3543_v16  ;;  %2515 = vmatprep.subr.bf16.mxu1 %v3546_v17 }
 0x126   : > { %2301 = vmatpush1.bf16.msra.mxu0 %v3541_v18  ;;  %2516 = vmatpush1.bf16.msra.mxu1 %v3544_v19 }
 0x127   : > { %2302 = vmatprep.subr.bf16.mxu0 %v3549_v20  ;;  %2517 = vmatprep.subr.bf16.mxu1 %v3552_v21 }
 0x12a   : > { %2303 = vmatpush1.bf16.msra.mxu0 %v3547_v22  ;;  %2518 = vmatpush1.bf16.msra.mxu1 %v3550_v23 }
 0x12b   : > { %2304 = vmatprep.subr.bf16.mxu0 %v3555_v24  ;;  %2519 = vmatprep.subr.bf16.mxu1 %v3558_v25 }
 0x12e   : > { %2305 = vmatpush1.bf16.msra.mxu0 %v3553_v26  ;;  %2520 = vmatpush1.bf16.msra.mxu1 %v3556_v27 }
 0x12f   : > { %2317 = vmatprep.subr.bf16.mxu0 %v3564_v28  ;;  %2532 = vmatprep.subr.bf16.mxu1 %v3567_v29 }
 0x131   : > { %2307 = vmatmul.mubr.bf16.vlgmr.msra.gmra.mrb[0].mxu0 %v3559_v30  ;;  %2522 = vmatmul.mubr.bf16.vlgmr.msra.gmra.mrb[0].mxu1 %v3559_v30 }
 0x132   : > { %2318 = vmatpush1.bf16.msra.mxu0 %v3562_v31  ;;  %2533 = vmatpush1.bf16.msra.mxu1 %v3565_v32 }
 0x133   : > { %2319 = vmatprep.subr.bf16.mxu0 %v3570_v33  ;;  %2534 = vmatprep.subr.bf16.mxu1 %v3573_v34 }
 0x134   : > { %2349 = vmatprep.mubr.bf16.mxu0 %v3651_v39  ;;  %2564 = vmatprep.mubr.bf16.mxu1 %v3651_v39 }
 0x136   : > { %2320 = vmatpush1.bf16.msra.mxu0 %v3568_v35  ;;  %2535 = vmatpush1.bf16.msra.mxu1 %v3571_v36 }
 0x137   : > { %2321 = vmatprep.subr.bf16.mxu0 %v3576_v37  ;;  %2536 = vmatprep.subr.bf16.mxu1 %v3579_v38 }
 0x13a   : > { %2322 = vmatpush1.bf16.msra.mxu0 %v3574_v40  ;;  %2537 = vmatpush1.bf16.msra.mxu1 %v3577_v41 }
 0x13b   : > { %2323 = vmatprep.subr.bf16.mxu0 %v3582_v42  ;;  %2538 = vmatprep.subr.bf16.mxu1 %v3585_v43 }
 0x13e   : > { %2324 = vmatpush1.bf16.msra.mxu0 %v3580_v44  ;;  %2539 = vmatpush1.bf16.msra.mxu1 %v3583_v45 }
 0x13f   : > { %2325 = vmatprep.subr.bf16.mxu0 %v3588_v46  ;;  %2540 = vmatprep.subr.bf16.mxu1 %v3591_v47 }
 0x142   : > { %2326 = vmatpush1.bf16.msra.mxu0 %v3586_v48  ;;  %2541 = vmatpush1.bf16.msra.mxu1 %v3589_v49 }
 0x143   : > { %2327 = vmatprep.subr.bf16.mxu0 %v3594_v50  ;;  %2542 = vmatprep.subr.bf16.mxu1 %v3597_v51 }
 0x146   : > { %2328 = vmatpush1.bf16.msra.mxu0 %v3592_v52  ;;  %2543 = vmatpush1.bf16.msra.mxu1 %v3595_v53 }
 0x147   : > { %2329 = vmatprep.subr.bf16.mxu0 %v3600_v54  ;;  %2544 = vmatprep.subr.bf16.mxu1 %v3603_v55 }
 0x14a   : > { %2330 = vmatpush1.bf16.msra.mxu0 %v3598_v56  ;;  %2545 = vmatpush1.bf16.msra.mxu1 %v3601_v57 }
 0x14b   : > { %2331 = vmatprep.subr.bf16.mxu0 %v3606_v58  ;;  %2546 = vmatprep.subr.bf16.mxu1 %v3609_v59 }
 0x14e   : > { %2332 = vmatpush1.bf16.msra.mxu0 %v3604_v60  ;;  %2547 = vmatpush1.bf16.msra.mxu1 %v3607_v61 }
 0x151   : > { %2350 = vmatmul.mubr.bf16.vlgmr.msra.gmra.mrb[0].mxu0 %v3610_v62  ;;  %2565 = vmatmul.mubr.bf16.vlgmr.msra.gmra.mrb[0].mxu1 %v3610_v62 }
 0x224   : > { %v2351_v3 = vpop.f32.mrb[0].mxu0  ;;  %v2566_v4 = vpop.f32.mrb[0].mxu1  ;;  %2594 = sbr.rel (%p3076_p11) target bundleno = 567 (0x237), region = 66 }
 0x225   : > { %v2575_v7 = vadd.f32 %v2351_v3, %v353_v63  ;;  %v2577_v8 = vadd.f32 %v2566_v4, %v355_v0  ;;  %v2353_v9 = vpop.f32.mrb[1].mxu0  ;;  %v2568_v10 = vpop.f32.mrb[1].mxu1 }
 0x226   : > { %v2576_v13 = vadd.f32 %v2353_v9, %v354_v1  ;;  %v2578_v14 = vadd.f32 %v2568_v10, %v356_v2  ;;  %v2355_v15 = vpop.f32.mrb[2].mxu0  ;;  %v2570_v16 = vpop.f32.mrb[2].mxu1 }
 0x227   : > { %2583 = vst [vmem:[#allocation2] sm:$0xff] %v2575_v7  ;;  %2585 = vst [vmem:[#allocation2 + $0x10] sm:$0xff] %v2577_v8  ;;  %v2579_v17 = vadd.f32 %v2355_v15, %v357_v5  ;;  %v2581_v18 = vadd.f32 %v2570_v16, %v359_v6  ;;  %v2357_v19 = vpop.f32.mrb[3].mxu0  ;;  %v2572_v20 = vpop.f32.mrb[3].mxu1 }
 0x228   : > { %2584 = vst [vmem:[#allocation2 + $0x8] sm:$0xff] %v2576_v13  ;;  %2586 = vst [vmem:[#allocation2 + $0x18] sm:$0xff] %v2578_v14  ;;  %v2580_v21 = vadd.f32 %v2357_v19, %v358_v11  ;;  %v2582_v22 = vadd.f32 %v2572_v20, %v360_v12 }
 0x229   : > { %2587 = vst [vmem:[#allocation2 + $0x20] sm:$0xff] %v2579_v17  ;;  %2589 = vst [vmem:[#allocation2 + $0x30] sm:$0xff] %v2581_v18 }
 0x22a   : > { %2588 = vst [vmem:[#allocation2 + $0x28] sm:$0xff] %v2580_v21  ;;  %2590 = vst [vmem:[#allocation2 + $0x38] sm:$0xff] %v2582_v22 }
 0x22e   : > { %v2595_v23 = vld [vmem:[#allocation2] sm:$0xff]  ;;  %v2597_v25 = vld [vmem:[#allocation2 + $0x10] sm:$0xff] }
 0x22f   : > { %v2596_v24 = vld [vmem:[#allocation2 + $0x8] sm:$0xff]  ;;  %v2603_v26 = vmax.f32 %v2595_v23, 0.0  ;;  %v2598_v28 = vld [vmem:[#allocation2 + $0x18] sm:$0xff]  ;;  %v2605_v29 = vmax.f32 %v2597_v25, 0.0 }
 0x230   : > { %v2604_v27 = vmax.f32 %v2596_v24, 0.0  ;;  %v2599_v30 = vld [vmem:[#allocation2 + $0x20] sm:$0xff]  ;;  %v2606_v32 = vmax.f32 %v2598_v28, 0.0  ;;  %v2601_v35 = vld [vmem:[#allocation2 + $0x30] sm:$0xff] }
 0x231   : > { %v2600_v31 = vld [vmem:[#allocation2 + $0x28] sm:$0xff]  ;;  %v2607_v33 = vmax.f32 %v2599_v30, 0.0  ;;  %v2602_v36 = vld [vmem:[#allocation2 + $0x38] sm:$0xff]  ;;  %v2609_v38 = vmax.f32 %v2601_v35, 0.0 }
 0x232   : > { %v2608_v34 = vmax.f32 %v2600_v31, 0.0  ;;  %v3087_v37 = vpack.c.bf16 %v2604_v27, %v2603_v26  ;;  %v2610_v39 = vmax.f32 %v2602_v36, 0.0  ;;  %v3088_v40 = vpack.c.bf16 %v2606_v32, %v2605_v29 }
 0x234   : > { %v3089_v41 = vpack.c.bf16 %v2608_v34, %v2607_v33  ;;  %2635 = vst [vmem:[%s4058_s3] sm:$0xff] %v3087_v37  ;;  %v3090_v42 = vpack.c.bf16 %v2610_v39, %v2609_v38  ;;  %2636 = vst [vmem:[%s4058_s3 + $0x8] sm:$0xff] %v3088_v40 }
 0x236   : > { %2637 = vst [vmem:[%s4058_s3 + $0x10] sm:$0xff] %v3089_v41  ;;  %2638 = vst [vmem:[%s4058_s3 + $0x18] sm:$0xff] %v3090_v42 }
 0x237 PF: > { %s13_s16 = sadd.s32 1, %s3649_s16   ;;  %s4059_s12 = smov %s3637_s13 }
 0x238   : > { %p10_p12 = scmp.ge.s32.totalorder %s13_s16, 4   ;;  %s4060_s13 = smov %s3707_s20 }
 0x239   : > { %s4061_s14 = smov %s3645_s15  ;;  %s4062_s15 = smov %s4064_s17 }
 0x23a   :  { %12 = sbr.rel (!%p10_p12) target bundleno = 3 (0x3), region = 113 }

// kernel: _lambda_.37
= control target key start
LH: loop header
LB: loop body
LE: loop exit
PB: predicated region body
PF: predicated region fallthrough
CT: control target
= control target key end

     0   :  { %s4705_s15 = smov 0   ;;  %s4707_s16 = smov 0   ;;  %s5199_s0 = inlined_call_operand.vmem [shape: bf16[16,4608], index: 0, kind: input, shape index: {}]   ;;  %s5200_s1 = inlined_call_operand.vmem [shape: bf16[4608,512], index: 1, kind: input, shape index: {}]   ;;  %s5201_s2 = inlined_call_operand.vmem [shape: f32[1,512], index: 2, kind: input, shape index: {}]   ;;  %s5202_s3 = inlined_call_operand.vmem [shape: bf16[16,512], index: 3, kind: input, shape index: {}]   ;;  %s5203_s4 = inlined_call_operand.vmem [shape: bf16[16,512], index: 4, kind: output, shape index: {}]  }
   0x1   :  { %s4709_s17 = smov 0   ;;  %s4711_s18 = smov 0  }
   0x2   :  { %s4713_s19 = smov 0  }
   0x3 LB: > { %s26_s20 = sadd.s32 1, %s4674_s18  ;;  %p49_p1 = scmp.ne.s32.totalorder %s4666_s16, %s4662_s15  ;;  %s4678_s19 = sphi %s4713_s19, %s14_s19   ;;  %s4674_s18 = sphi %s4711_s18, %s5207_s18   ;;  %s4670_s17 = sphi %s4709_s17, %s5206_s17   ;;  %s4666_s16 = sphi %s4707_s16, %s5205_s16   ;;  %s4662_s15 = sphi %s4705_s15, %s5204_s15  }
   0x4   : > { %p27_p0 = scmp.ge.s32.totalorder %s26_s20, 3  ;;  %p50_p2 = scmp.eq.s32.totalorder %s4678_s19, 0 }
   0x5   : > { %s42_s22 = sadd.s32 1, %s4666_s16  ;;  %p3547_p5 = scmp.ge.s32.totalorder %s4678_s19, 3 }
   0x6   : > { %s5209_s20 = smov (%p27_p0, %s26_s20), 0  ;;  %p51_p3 = por %p50_p2, %p49_p1 }
   0x7   : > { %s38_s21 = ssub.s32 %s4674_s18, %s5209_s20  ;;  %208 = sbr.rel (%p3547_p5) target bundleno = 25 (0x19), region = 24 }
   0x8   : > { %p40_p4 = scmp.eq.s32.totalorder %s38_s21, 0 }
   0xa   : > { %s4740_s23 = scalar_select %p40_p4, %s4666_s16, %s42_s22  }
   0xe   : > { %211 = sbr.rel (!%p51_p3) target bundleno = 25 (0x19), region = 28  ;;  %s213_s24 = sand.u32 (%p51_p3), 1, %s4666_s16  }
   0xf   : > { %s3958_s25 = smul.u32 (%p51_p3), 48, %s4674_s18 }
  0x10   : > { %s4004_s26 = smul.u32 (%p51_p3), 96, %s213_s24 }
  0x11   : > { %s221_s29 = scalar_lea.vmem (%p51_p3), %s5199_s0, %s3958_s25 }
  0x12   : > { %v234_v0 = vld [vmem:[%s221_s29] sm:$0xff] (%p51_p3)  ;;  %v236_v1 = vld [vmem:[%s221_s29 + $0x8] sm:$0xff] (%p51_p3)  ;;  %v238_v2 = vld [vmem:[%s221_s29 + $0x10] sm:$0xff] (%p51_p3)  ;;  %s215_s30 = scalar_lea.vmem (%p51_p3), [#allocation3], %s4004_s26 }
  0x13   : > { %235 = vst [vmem:[%s215_s30] sm:$0xff] (%p51_p3), %v234_v0  ;;  %237 = vst [vmem:[%s215_s30 + $0x8] sm:$0xff] (%p51_p3), %v236_v1  ;;  %v240_v3 = vld [vmem:[%s221_s29 + $0x18] sm:$0xff] (%p51_p3)  ;;  %v242_v4 = vld [vmem:[%s221_s29 + $0x20] sm:$0xff] (%p51_p3) }
  0x14   : > { %239 = vst [vmem:[%s215_s30 + $0x10] sm:$0xff] (%p51_p3), %v238_v2  ;;  %v244_v5 = vld [vmem:[%s221_s29 + $0x28] sm:$0xff] (%p51_p3)  ;;  %241 = vst [vmem:[%s215_s30 + $0x18] sm:$0xff] (%p51_p3), %v240_v3  ;;  %v246_v6 = vld [vmem:[%s221_s29 + $0x90] sm:$0xff] (%p51_p3) }
  0x15   : > { %243 = vst [vmem:[%s215_s30 + $0x20] sm:$0xff] %v242_v4  ;;  %245 = vst [vmem:[%s215_s30 + $0x28] sm:$0xff] %v244_v5  ;;  %v248_v7 = vld [vmem:[%s221_s29 + $0x98] sm:$0xff]  ;;  %v250_v8 = vld [vmem:[%s221_s29 + $0xa0] sm:$0xff] }
  0x16   : > { %247 = vst [vmem:[%s215_s30 + $0x30] sm:$0xff] %v246_v6  ;;  %249 = vst [vmem:[%s215_s30 + $0x38] sm:$0xff] %v248_v7  ;;  %v252_v9 = vld [vmem:[%s221_s29 + $0xa8] sm:$0xff]  ;;  %v254_v10 = vld [vmem:[%s221_s29 + $0xb0] sm:$0xff] }
  0x17   : > { %251 = vst [vmem:[%s215_s30 + $0x40] sm:$0xff] %v250_v8  ;;  %v256_v11 = vld [vmem:[%s221_s29 + $0xb8] sm:$0xff]  ;;  %253 = vst [vmem:[%s215_s30 + $0x48] sm:$0xff] %v252_v9 }
  0x18   : > { %255 = vst [vmem:[%s215_s30 + $0x50] sm:$0xff] %v254_v10  ;;  %257 = vst [vmem:[%s215_s30 + $0x58] sm:$0xff] %v256_v11 }
  0x19 PF: > { %p3549_p6 = scmp.ge.s32.totalorder %s4678_s19, 1  ;;  %p277_p7 = scmp.lt.s32.totalorder %s4678_s19, 4 }
  0x1b   : > { %p278_p8 = pnand %p3549_p6, %p277_p7 }
  0x1c   : > { %s284_s5 = sand.u32 (!%p278_p8), 1, %s4662_s15   ;;  %s340_s6 = smul.u32 (!%p278_p8), 192, %s4670_s17 }
  0x1d   : > { %281 = sbr.rel (%p278_p8) target bundleno = 666 (0x29a), region = 55  ;;  %p3552_p10 = scmp.ne.s32.totalorder (!%p278_p8), %s4670_s17, 0 }
  0x1e   : > { %s4005_s7 = smul.u32 (!%p278_p8), 96, %s284_s5  ;;  %p342_p9 = scmp.lt.s32.totalorder (!%p278_p8), %s340_s6, 575 }
  0x20   : > { %s4757_s12 = scalar_lea.vmem (!%p278_p8), [#allocation3], %s4005_s7 }
  0x24   : > { %s5211_s6 = smov (!%p342_p9, %s340_s6), 575  ;;  %384 = sbr.rel (%p3552_p10) target bundleno = 49 (0x31), region = 63 }
  0x25   : > { %s3959_s8 = sshll.u32 %s5211_s6, 4  ;;  %v387_v12 = vlaneseq (!%p3552_p10)  ;;  %v385_v14 = vld [vmem:[%s5201_s2] sm:$0xf] (!%p3552_p10) }
  0x26   : > { %s4755_s11 = scalar_lea.vmem %s5200_s1, %s3959_s8 }
  0x27   : > { %v388_v13 = vshrl.u32 (!%p3552_p10), %v387_v12, 7 }
  0x29   : > { %v389_v15 = vsub.s32 (!%p3552_p10), 0, %v388_v13  ;;  %v393_v16 = vsub.s32 (!%p3552_p10), 1, %v388_v13  ;;  %v397_v17 = vsub.s32 (!%p3552_p10), 2, %v388_v13  ;;  %v401_v18 = vsub.s32 (!%p3552_p10), 3, %v388_v13 }
  0x2b   : > { %v390_v19 = vrot.slane %v385_v14, %v389_v15  ;;  %v394_v20 = vrot.slane %v385_v14, %v393_v16  ;;  %v398_v21 = vrot.slane %v385_v14, %v397_v17  ;;  %v402_v22 = vrot.slane %v385_v14, %v401_v18 }
  0x2d   : > { %407 = vst [vmem:[#allocation2] sm:$0xff] %v390_v19  ;;  %411 = vst [vmem:[#allocation2 + $0x20] sm:$0xff] %v390_v19 }
  0x2e   : > { %408 = vst [vmem:[#allocation2 + $0x8] sm:$0xff] %v394_v20  ;;  %412 = vst [vmem:[#allocation2 + $0x28] sm:$0xff] %v394_v20 }
  0x2f   : > { %409 = vst [vmem:[#allocation2 + $0x10] sm:$0xff] %v398_v21  ;;  %413 = vst [vmem:[#allocation2 + $0x30] sm:$0xff] %v398_v21 }
  0x30   : > { %410 = vst [vmem:[#allocation2 + $0x18] sm:$0xff] %v402_v22  ;;  %414 = vst [vmem:[#allocation2 + $0x38] sm:$0xff] %v402_v22 }
  0x31 PF: > { %v4046_v23 = vld [vmem:[%s4755_s11 + $0x4] ss:$16 sps:$4 sm:$0xff]   ;;  %v4048_v24 = vld [vmem:[%s4755_s11 + $0xc] ss:$16 sps:$4 sm:$0xff]   ;;  %v4050_v25 = vld [vmem:[%s4755_s11] ss:$16 sps:$4 sm:$0xff]  }
  0x32   : > { %2799 = vmatprep.subr.bf16.mxu0 %v4046_v23  ;;  %v4051_v26 = vld [vmem:[%s4755_s11 + $0x8] ss:$16 sps:$4 sm:$0xff]   ;;  %3057 = vmatprep.subr.bf16.mxu1 %v4048_v24  ;;  %v4052_v27 = vld [vmem:[%s4755_s11 + $0x24] ss:$16 sps:$4 sm:$0xff]   ;;  %v4054_v28 = vld [vmem:[%s4755_s11 + $0x2c] ss:$16 sps:$4 sm:$0xff]  }
  0x33   : > { %2800 = vmatpush1.bf16.msra.mxu0 %v4050_v25  ;;  %3058 = vmatpush1.bf16.msra.mxu1 %v4051_v26  ;;  %v4056_v29 = vld [vmem:[%s4755_s11 + $0x20] ss:$16 sps:$4 sm:$0xff]   ;;  %v4057_v30 = vld [vmem:[%s4755_s11 + $0x28] ss:$16 sps:$4 sm:$0xff]   ;;  %v4058_v31 = vld [vmem:[%s4755_s11 + $0x44] ss:$16 sps:$4 sm:$0xff]  }
  0x34   : > { %2801 = vmatprep.subr.bf16.mxu0 %v4052_v27  ;;  %3059 = vmatprep.subr.bf16.mxu1 %v4054_v28  ;;  %v4060_v32 = vld [vmem:[%s4755_s11 + $0x4c] ss:$16 sps:$4 sm:$0xff]   ;;  %v4062_v33 = vld [vmem:[%s4755_s11 + $0x40] ss:$16 sps:$4 sm:$0xff]   ;;  %v4063_v34 = vld [vmem:[%s4755_s11 + $0x48] ss:$16 sps:$4 sm:$0xff]  }
  0x35   : > { %v4064_v35 = vld [vmem:[%s4755_s11 + $0x64] ss:$16 sps:$4 sm:$0xff]   ;;  %v4066_v36 = vld [vmem:[%s4755_s11 + $0x6c] ss:$16 sps:$4 sm:$0xff]   ;;  %v4068_v37 = vld [vmem:[%s4755_s11 + $0x60] ss:$16 sps:$4 sm:$0xff]  }
  0x36   : > { %v4069_v38 = vld [vmem:[%s4755_s11 + $0x68] ss:$16 sps:$4 sm:$0xff]   ;;  %v4070_v39 = vld [vmem:[%s4755_s11 + $0x84] ss:$16 sps:$4 sm:$0xff]   ;;  %v4072_v40 = vld [vmem:[%s4755_s11 + $0x8c] ss:$16 sps:$4 sm:$0xff]  }
  0x37   : > { %2802 = vmatpush1.bf16.msra.mxu0 %v4056_v29  ;;  %3060 = vmatpush1.bf16.msra.mxu1 %v4057_v30  ;;  %v4074_v41 = vld [vmem:[%s4755_s11 + $0x80] ss:$16 sps:$4 sm:$0xff]   ;;  %v4075_v42 = vld [vmem:[%s4755_s11 + $0x88] ss:$16 sps:$4 sm:$0xff]   ;;  %v4076_v43 = vld [vmem:[%s4755_s11 + $0xa4] ss:$16 sps:$4 sm:$0xff]  }
  0x38   : > { %2803 = vmatprep.subr.bf16.mxu0 %v4058_v31  ;;  %3061 = vmatprep.subr.bf16.mxu1 %v4060_v32  ;;  %v4078_v44 = vld [vmem:[%s4755_s11 + $0xac] ss:$16 sps:$4 sm:$0xff]   ;;  %v4080_v45 = vld [vmem:[%s4755_s11 + $0xa0] ss:$16 sps:$4 sm:$0xff]   ;;  %v4081_v46 = vld [vmem:[%s4755_s11 + $0xa8] ss:$16 sps:$4 sm:$0xff]  }
  0x39   : > { %v4082_v47 = vld [vmem:[%s4755_s11 + $0xc4] ss:$16 sps:$4 sm:$0xff]   ;;  %v4084_v48 = vld [vmem:[%s4755_s11 + $0xcc] ss:$16 sps:$4 sm:$0xff]   ;;  %v4086_v49 = vld [vmem:[%s4755_s11 + $0xc0] ss:$16 sps:$4 sm:$0xff]  }
  0x3a   : > { %v4087_v50 = vld [vmem:[%s4755_s11 + $0xc8] ss:$16 sps:$4 sm:$0xff]   ;;  %v4088_v51 = vld [vmem:[%s4755_s11 + $0xe4] ss:$16 sps:$4 sm:$0xff]   ;;  %v4090_v52 = vld [vmem:[%s4755_s11 + $0xec] ss:$16 sps:$4 sm:$0xff]  }
  0x3b   : > { %2804 = vmatpush1.bf16.msra.mxu0 %v4062_v33  ;;  %3062 = vmatpush1.bf16.msra.mxu1 %v4063_v34  ;;  %v4092_v53 = vld [vmem:[%s4755_s11 + $0xe0] ss:$16 sps:$4 sm:$0xff]   ;;  %v4093_v54 = vld [vmem:[%s4755_s11 + $0xe8] ss:$16 sps:$4 sm:$0xff]   ;;  %v4094_v55 = vld [vmem:[%s4755_s11 + $0x104] ss:$16 sps:$4 sm:$0xff]  }
  0x3c   : > { %2805 = vmatprep.subr.bf16.mxu0 %v4064_v35  ;;  %3063 = vmatprep.subr.bf16.mxu1 %v4066_v36  ;;  %v4096_v56 = vld [vmem:[%s4755_s11 + $0x10c] ss:$16 sps:$4 sm:$0xff]   ;;  %v4098_v57 = vld [vmem:[%s4755_s11 + $0x100] ss:$16 sps:$4 sm:$0xff]   ;;  %v4099_v58 = vld [vmem:[%s4755_s11 + $0x108] ss:$16 sps:$4 sm:$0xff]  }
  0x3d   : > { %v4100_v59 = vld [vmem:[%s4755_s11 + $0x124] ss:$16 sps:$4 sm:$0xff]   ;;  %v4102_v60 = vld [vmem:[%s4755_s11 + $0x12c] ss:$16 sps:$4 sm:$0xff]   ;;  %v4104_v61 = vld [vmem:[%s4755_s11 + $0x120] ss:$16 sps:$4 sm:$0xff]  }
  0x3e   : > { %v4105_v62 = vld [vmem:[%s4755_s11 + $0x128] ss:$16 sps:$4 sm:$0xff]   ;;  %v4106_v63 = vld [vmem:[%s4755_s11 + $0x144] ss:$16 sps:$4 sm:$0xff]   ;;  %v4108_v0 = vld [vmem:[%s4755_s11 + $0x14c] ss:$16 sps:$4 sm:$0xff]  }
  0x3f   : > { %2806 = vmatpush1.bf16.msra.mxu0 %v4068_v37  ;;  %3064 = vmatpush1.bf16.msra.mxu1 %v4069_v38  ;;  %v4110_v1 = vld [vmem:[%s4755_s11 + $0x140] ss:$16 sps:$4 sm:$0xff]   ;;  %v4111_v2 = vld [vmem:[%s4755_s11 + $0x148] ss:$16 sps:$4 sm:$0xff]   ;;  %v4112_v3 = vld [vmem:[%s4755_s11 + $0x164] ss:$16 sps:$4 sm:$0xff]  }
  0x40   : > { %2807 = vmatprep.subr.bf16.mxu0 %v4070_v39  ;;  %3065 = vmatprep.subr.bf16.mxu1 %v4072_v40  ;;  %v4114_v4 = vld [vmem:[%s4755_s11 + $0x16c] ss:$16 sps:$4 sm:$0xff]   ;;  %v4116_v5 = vld [vmem:[%s4755_s11 + $0x160] ss:$16 sps:$4 sm:$0xff]   ;;  %v4117_v6 = vld [vmem:[%s4755_s11 + $0x168] ss:$16 sps:$4 sm:$0xff]  }
  0x41   : > { %v4144_v7 = vld [vmem:[%s4757_s12 + $0x4] ss:$48 sps:$4 sm:$0xff]   ;;  %v4120_v9 = vld [vmem:[%s4755_s11 + $0x18c] ss:$16 sps:$4 sm:$0xff]   ;;  %v4122_v10 = vld [vmem:[%s4755_s11 + $0x180] ss:$16 sps:$4 sm:$0xff]  }
  0x42   : > { %v4118_v8 = vld [vmem:[%s4755_s11 + $0x184] ss:$16 sps:$4 sm:$0xff]   ;;  %2831 = vmatprep.mubr.bf16.mxu0 %v4144_v7  ;;  %3089 = vmatprep.mubr.bf16.mxu1 %v4144_v7  ;;  %v4123_v11 = vld [vmem:[%s4755_s11 + $0x188] ss:$16 sps:$4 sm:$0xff]   ;;  %v4126_v13 = vld [vmem:[%s4755_s11 + $0x1ac] ss:$16 sps:$4 sm:$0xff]  }
  0x43   : > { %2808 = vmatpush1.bf16.msra.mxu0 %v4074_v41  ;;  %3066 = vmatpush1.bf16.msra.mxu1 %v4075_v42  ;;  %v4124_v12 = vld [vmem:[%s4755_s11 + $0x1a4] ss:$16 sps:$4 sm:$0xff]   ;;  %v4128_v14 = vld [vmem:[%s4755_s11 + $0x1a0] ss:$16 sps:$4 sm:$0xff]   ;;  %v4129_v15 = vld [vmem:[%s4755_s11 + $0x1a8] ss:$16 sps:$4 sm:$0xff]  }
  0x44   : > { %2809 = vmatprep.subr.bf16.mxu0 %v4076_v43  ;;  %3067 = vmatprep.subr.bf16.mxu1 %v4078_v44  ;;  %v4130_v16 = vld [vmem:[%s4755_s11 + $0x1c4] ss:$16 sps:$4 sm:$0xff]   ;;  %v4132_v17 = vld [vmem:[%s4755_s11 + $0x1cc] ss:$16 sps:$4 sm:$0xff]   ;;  %v4134_v18 = vld [vmem:[%s4755_s11 + $0x1c0] ss:$16 sps:$4 sm:$0xff]  }
  0x45   : > { %v4135_v19 = vld [vmem:[%s4755_s11 + $0x1c8] ss:$16 sps:$4 sm:$0xff]   ;;  %v4136_v20 = vld [vmem:[%s4755_s11 + $0x1e4] ss:$16 sps:$4 sm:$0xff]   ;;  %v4138_v21 = vld [vmem:[%s4755_s11 + $0x1ec] ss:$16 sps:$4 sm:$0xff]  }
  0x46   : > { %v4140_v22 = vld [vmem:[%s4755_s11 + $0x1e0] ss:$16 sps:$4 sm:$0xff]   ;;  %v4141_v23 = vld [vmem:[%s4755_s11 + $0x1e8] ss:$16 sps:$4 sm:$0xff]   ;;  %v4147_v24 = vld [vmem:[%s4755_s11 + $0x204] ss:$16 sps:$4 sm:$0xff]  }
  0x47   : > { %2810 = vmatpush1.bf16.msra.mxu0 %v4080_v45  ;;  %3068 = vmatpush1.bf16.msra.mxu1 %v4081_v46  ;;  %v4150_v25 = vld [vmem:[%s4755_s11 + $0x20c] ss:$16 sps:$4 sm:$0xff]   ;;  %v4142_v26 = vld [vmem:[%s4757_s12] ss:$48 sps:$4 sm:$0xff]   ;;  %v4148_v28 = vld [vmem:[%s4755_s11 + $0x208] ss:$16 sps:$4 sm:$0xff]  }
  0x48   : > { %2811 = vmatprep.subr.bf16.mxu0 %v4082_v47  ;;  %3069 = vmatprep.subr.bf16.mxu1 %v4084_v48  ;;  %v4145_v27 = vld [vmem:[%s4755_s11 + $0x200] ss:$16 sps:$4 sm:$0xff]   ;;  %v4153_v29 = vld [vmem:[%s4755_s11 + $0x224] ss:$16 sps:$4 sm:$0xff]   ;;  %v4156_v30 = vld [vmem:[%s4755_s11 + $0x22c] ss:$16 sps:$4 sm:$0xff]  }
  0x49   : > { %v4151_v31 = vld [vmem:[%s4755_s11 + $0x220] ss:$16 sps:$4 sm:$0xff]   ;;  %v4154_v32 = vld [vmem:[%s4755_s11 + $0x228] ss:$16 sps:$4 sm:$0xff]   ;;  %v4159_v33 = vld [vmem:[%s4755_s11 + $0x244] ss:$16 sps:$4 sm:$0xff]  }
  0x4a   : > { %v4162_v34 = vld [vmem:[%s4755_s11 + $0x24c] ss:$16 sps:$4 sm:$0xff]   ;;  %v4157_v35 = vld [vmem:[%s4755_s11 + $0x240] ss:$16 sps:$4 sm:$0xff]   ;;  %v4160_v36 = vld [vmem:[%s4755_s11 + $0x248] ss:$16 sps:$4 sm:$0xff]  }
  0x4b   : > { %2812 = vmatpush1.bf16.msra.mxu0 %v4086_v49  ;;  %3070 = vmatpush1.bf16.msra.mxu1 %v4087_v50  ;;  %v4165_v37 = vld [vmem:[%s4755_s11 + $0x264] ss:$16 sps:$4 sm:$0xff]   ;;  %v4168_v38 = vld [vmem:[%s4755_s11 + $0x26c] ss:$16 sps:$4 sm:$0xff]   ;;  %v4163_v39 = vld [vmem:[%s4755_s11 + $0x260] ss:$16 sps:$4 sm:$0xff]  }
  0x4c   : > { %2813 = vmatprep.subr.bf16.mxu0 %v4088_v51  ;;  %3071 = vmatprep.subr.bf16.mxu1 %v4090_v52  ;;  %v4166_v40 = vld [vmem:[%s4755_s11 + $0x268] ss:$16 sps:$4 sm:$0xff]   ;;  %v4171_v41 = vld [vmem:[%s4755_s11 + $0x284] ss:$16 sps:$4 sm:$0xff]   ;;  %v4174_v42 = vld [vmem:[%s4755_s11 + $0x28c] ss:$16 sps:$4 sm:$0xff]  }
  0x4d   : > { %v4169_v43 = vld [vmem:[%s4755_s11 + $0x280] ss:$16 sps:$4 sm:$0xff]   ;;  %v4172_v44 = vld [vmem:[%s4755_s11 + $0x288] ss:$16 sps:$4 sm:$0xff]   ;;  %v4177_v45 = vld [vmem:[%s4755_s11 + $0x2a4] ss:$16 sps:$4 sm:$0xff]  }
  0x4e   : > { %v4180_v46 = vld [vmem:[%s4755_s11 + $0x2ac] ss:$16 sps:$4 sm:$0xff]   ;;  %v4175_v47 = vld [vmem:[%s4755_s11 + $0x2a0] ss:$16 sps:$4 sm:$0xff]   ;;  %v4178_v48 = vld [vmem:[%s4755_s11 + $0x2a8] ss:$16 sps:$4 sm:$0xff]  }
  0x4f   : > { %2814 = vmatpush1.bf16.msra.mxu0 %v4092_v53  ;;  %3072 = vmatpush1.bf16.msra.mxu1 %v4093_v54  ;;  %v4183_v49 = vld [vmem:[%s4755_s11 + $0x2c4] ss:$16 sps:$4 sm:$0xff]   ;;  %v4186_v50 = vld [vmem:[%s4755_s11 + $0x2cc] ss:$16 sps:$4 sm:$0xff]   ;;  %v4181_v51 = vld [vmem:[%s4755_s11 + $0x2c0] ss:$16 sps:$4 sm:$0xff]  }
  0x50   : > { %2815 = vmatprep.subr.bf16.mxu0 %v4094_v55  ;;  %3073 = vmatprep.subr.bf16.mxu1 %v4096_v56  ;;  %v4184_v52 = vld [vmem:[%s4755_s11 + $0x2c8] ss:$16 sps:$4 sm:$0xff]   ;;  %v4243_v53 = vld [vmem:[%s4757_s12 + $0xc] ss:$48 sps:$4 sm:$0xff]   ;;  %v4189_v54 = vld [vmem:[%s4755_s11 + $0x2e4] ss:$16 sps:$4 sm:$0xff]  }
  0x51   : > { %v4192_v55 = vld [vmem:[%s4755_s11 + $0x2ec] ss:$16 sps:$4 sm:$0xff]   ;;  %v4187_v56 = vld [vmem:[%s4755_s11 + $0x2e0] ss:$16 sps:$4 sm:$0xff]   ;;  %p3949_p11 = scmp.ne.s32.totalorder %s4670_s17, 2 }
  0x52   : > { %v4216_v7 = vld [vmem:[%s4755_s11 + $0x36c] ss:$16 sps:$4 sm:$0xff]  }
  0x53   : > { %2816 = vmatpush1.bf16.msra.mxu0 %v4098_v57  ;;  %3074 = vmatpush1.bf16.msra.mxu1 %v4099_v58  ;;  %v4190_v57 = vld [vmem:[%s4755_s11 + $0x2e8] ss:$16 sps:$4 sm:$0xff]   ;;  %v4195_v58 = vld [vmem:[%s4755_s11 + $0x304] ss:$16 sps:$4 sm:$0xff]  }
  0x54   : > { %2817 = vmatprep.subr.bf16.mxu0 %v4100_v59  ;;  %3075 = vmatprep.subr.bf16.mxu1 %v4102_v60  ;;  %v4198_v59 = vld [vmem:[%s4755_s11 + $0x30c] ss:$16 sps:$4 sm:$0xff]   ;;  %v4193_v60 = vld [vmem:[%s4755_s11 + $0x300] ss:$16 sps:$4 sm:$0xff]  }
  0x57   : > { %2818 = vmatpush1.bf16.msra.mxu0 %v4104_v61  ;;  %3076 = vmatpush1.bf16.msra.mxu1 %v4105_v62  ;;  %v4196_v61 = vld [vmem:[%s4755_s11 + $0x308] ss:$16 sps:$4 sm:$0xff]   ;;  %v4201_v62 = vld [vmem:[%s4755_s11 + $0x324] ss:$16 sps:$4 sm:$0xff]  }
  0x58   : > { %2819 = vmatprep.subr.bf16.mxu0 %v4106_v63  ;;  %3077 = vmatprep.subr.bf16.mxu1 %v4108_v0  ;;  %v4204_v63 = vld [vmem:[%s4755_s11 + $0x32c] ss:$16 sps:$4 sm:$0xff]   ;;  %v4199_v0 = vld [vmem:[%s4755_s11 + $0x320] ss:$16 sps:$4 sm:$0xff]  }
  0x5b   : > { %2820 = vmatpush1.bf16.msra.mxu0 %v4110_v1  ;;  %3078 = vmatpush1.bf16.msra.mxu1 %v4111_v2  ;;  %v4202_v1 = vld [vmem:[%s4755_s11 + $0x328] ss:$16 sps:$4 sm:$0xff]   ;;  %v4207_v2 = vld [vmem:[%s4755_s11 + $0x344] ss:$16 sps:$4 sm:$0xff]  }
  0x5c   : > { %2821 = vmatprep.subr.bf16.mxu0 %v4112_v3  ;;  %3079 = vmatprep.subr.bf16.mxu1 %v4114_v4  ;;  %v4210_v3 = vld [vmem:[%s4755_s11 + $0x34c] ss:$16 sps:$4 sm:$0xff]   ;;  %v4205_v4 = vld [vmem:[%s4755_s11 + $0x340] ss:$16 sps:$4 sm:$0xff]  }
  0x5f   : > { %2822 = vmatpush1.bf16.msra.mxu0 %v4116_v5  ;;  %3080 = vmatpush1.bf16.msra.mxu1 %v4117_v6  ;;  %v4208_v5 = vld [vmem:[%s4755_s11 + $0x348] ss:$16 sps:$4 sm:$0xff]   ;;  %v4213_v6 = vld [vmem:[%s4755_s11 + $0x364] ss:$16 sps:$4 sm:$0xff]  }
  0x60   : > { %2823 = vmatprep.subr.bf16.mxu0 %v4118_v8  ;;  %3081 = vmatprep.subr.bf16.mxu1 %v4120_v9  ;;  %v4211_v8 = vld [vmem:[%s4755_s11 + $0x360] ss:$16 sps:$4 sm:$0xff]   ;;  %v4214_v9 = vld [vmem:[%s4755_s11 + $0x368] ss:$16 sps:$4 sm:$0xff]  }
  0x63   : > { %2824 = vmatpush1.bf16.msra.mxu0 %v4122_v10  ;;  %3082 = vmatpush1.bf16.msra.mxu1 %v4123_v11  ;;  %v4219_v10 = vld [vmem:[%s4755_s11 + $0x384] ss:$16 sps:$4 sm:$0xff]   ;;  %v4222_v11 = vld [vmem:[%s4755_s11 + $0x38c] ss:$16 sps:$4 sm:$0xff]  }
  0x64   : > { %2825 = vmatprep.subr.bf16.mxu0 %v4124_v12  ;;  %3083 = vmatprep.subr.bf16.mxu1 %v4126_v13  ;;  %v4217_v12 = vld [vmem:[%s4755_s11 + $0x380] ss:$16 sps:$4 sm:$0xff]   ;;  %v4220_v13 = vld [vmem:[%s4755_s11 + $0x388] ss:$16 sps:$4 sm:$0xff]  }
  0x67   : > { %2826 = vmatpush1.bf16.msra.mxu0 %v4128_v14  ;;  %3084 = vmatpush1.bf16.msra.mxu1 %v4129_v15  ;;  %v4225_v14 = vld [vmem:[%s4755_s11 + $0x3a4] ss:$16 sps:$4 sm:$0xff]   ;;  %v4228_v15 = vld [vmem:[%s4755_s11 + $0x3ac] ss:$16 sps:$4 sm:$0xff]  }
  0x68   : > { %2827 = vmatprep.subr.bf16.mxu0 %v4130_v16  ;;  %3085 = vmatprep.subr.bf16.mxu1 %v4132_v17  ;;  %v4223_v16 = vld [vmem:[%s4755_s11 + $0x3a0] ss:$16 sps:$4 sm:$0xff]   ;;  %v4226_v17 = vld [vmem:[%s4755_s11 + $0x3a8] ss:$16 sps:$4 sm:$0xff]  }
  0x6b   : > { %2828 = vmatpush1.bf16.msra.mxu0 %v4134_v18  ;;  %3086 = vmatpush1.bf16.msra.mxu1 %v4135_v19  ;;  %v4231_v18 = vld [vmem:[%s4755_s11 + $0x3c4] ss:$16 sps:$4 sm:$0xff]   ;;  %v4234_v19 = vld [vmem:[%s4755_s11 + $0x3cc] ss:$16 sps:$4 sm:$0xff]  }
  0x6c   : > { %2829 = vmatprep.subr.bf16.mxu0 %v4136_v20  ;;  %3087 = vmatprep.subr.bf16.mxu1 %v4138_v21  ;;  %v4229_v20 = vld [vmem:[%s4755_s11 + $0x3c0] ss:$16 sps:$4 sm:$0xff]   ;;  %v4232_v21 = vld [vmem:[%s4755_s11 + $0x3c8] ss:$16 sps:$4 sm:$0xff]  }
  0x6f   : > { %2830 = vmatpush1.bf16.msra.mxu0 %v4140_v22  ;;  %3088 = vmatpush1.bf16.msra.mxu1 %v4141_v23  ;;  %v4237_v22 = vld [vmem:[%s4755_s11 + $0x3e4] ss:$16 sps:$4 sm:$0xff]   ;;  %v4240_v23 = vld [vmem:[%s4755_s11 + $0x3ec] ss:$16 sps:$4 sm:$0xff]  }
  0x70   : > { %2842 = vmatprep.subr.bf16.mxu0 %v4147_v24  ;;  %3100 = vmatprep.subr.bf16.mxu1 %v4150_v25  ;;  %v4235_v24 = vld [vmem:[%s4755_s11 + $0x3e0] ss:$16 sps:$4 sm:$0xff]   ;;  %v4238_v25 = vld [vmem:[%s4755_s11 + $0x3e8] ss:$16 sps:$4 sm:$0xff]  }
  0x72   : > { %2832 = vmatmul.mubr.bf16.vlgmr.msra.gmra.mrb[0].mxu0 %v4142_v26  ;;  %3090 = vmatmul.mubr.bf16.vlgmr.msra.gmra.mrb[0].mxu1 %v4142_v26  ;;  %v4246_v26 = vld [vmem:[%s4755_s11 + $0x404] ss:$16 sps:$4 sm:$0xff]  }
  0x73   : > { %2843 = vmatpush1.bf16.msra.mxu0 %v4145_v27  ;;  %3101 = vmatpush1.bf16.msra.mxu1 %v4148_v28  ;;  %v4249_v27 = vld [vmem:[%s4755_s11 + $0x40c] ss:$16 sps:$4 sm:$0xff]   ;;  %v4241_v28 = vld [vmem:[%s4757_s12 + $0x8] ss:$48 sps:$4 sm:$0xff]  }
  0x74   : > { %2844 = vmatprep.subr.bf16.mxu0 %v4153_v29  ;;  %3102 = vmatprep.subr.bf16.mxu1 %v4156_v30  ;;  %v4244_v29 = vld [vmem:[%s4755_s11 + $0x400] ss:$16 sps:$4 sm:$0xff]   ;;  %v4247_v30 = vld [vmem:[%s4755_s11 + $0x408] ss:$16 sps:$4 sm:$0xff]  }
  0x75   : > { %2874 = vmatprep.mubr.bf16.mxu0 %v4243_v53  ;;  %3132 = vmatprep.mubr.bf16.mxu1 %v4243_v53  ;;  %v4285_v53 = vld [vmem:[%s4755_s11 + $0x4cc] ss:$16 sps:$4 sm:$0xff]  }
  0x77   : > { %2845 = vmatpush1.bf16.msra.mxu0 %v4151_v31  ;;  %3103 = vmatpush1.bf16.msra.mxu1 %v4154_v32  ;;  %v4252_v31 = vld [vmem:[%s4755_s11 + $0x424] ss:$16 sps:$4 sm:$0xff]   ;;  %v4255_v32 = vld [vmem:[%s4755_s11 + $0x42c] ss:$16 sps:$4 sm:$0xff]  }
  0x78   : > { %2846 = vmatprep.subr.bf16.mxu0 %v4159_v33  ;;  %3104 = vmatprep.subr.bf16.mxu1 %v4162_v34  ;;  %v4250_v33 = vld [vmem:[%s4755_s11 + $0x420] ss:$16 sps:$4 sm:$0xff]   ;;  %v4253_v34 = vld [vmem:[%s4755_s11 + $0x428] ss:$16 sps:$4 sm:$0xff]  }
  0x7b   : > { %2847 = vmatpush1.bf16.msra.mxu0 %v4157_v35  ;;  %3105 = vmatpush1.bf16.msra.mxu1 %v4160_v36  ;;  %v4342_v35 = vld [vmem:[%s4757_s12 + $0x14] ss:$48 sps:$4 sm:$0xff]  }
  0x7c   : > { %2848 = vmatprep.subr.bf16.mxu0 %v4165_v37  ;;  %3106 = vmatprep.subr.bf16.mxu1 %v4168_v38  ;;  %v4258_v36 = vld [vmem:[%s4755_s11 + $0x444] ss:$16 sps:$4 sm:$0xff]   ;;  %v4261_v37 = vld [vmem:[%s4755_s11 + $0x44c] ss:$16 sps:$4 sm:$0xff]   ;;  %v4256_v38 = vld [vmem:[%s4755_s11 + $0x440] ss:$16 sps:$4 sm:$0xff]  }
  0x7f   : > { %2849 = vmatpush1.bf16.msra.mxu0 %v4163_v39  ;;  %3107 = vmatpush1.bf16.msra.mxu1 %v4166_v40  ;;  %v4259_v39 = vld [vmem:[%s4755_s11 + $0x448] ss:$16 sps:$4 sm:$0xff]   ;;  %v4264_v40 = vld [vmem:[%s4755_s11 + $0x464] ss:$16 sps:$4 sm:$0xff]  }
  0x80   : > { %2850 = vmatprep.subr.bf16.mxu0 %v4171_v41  ;;  %3108 = vmatprep.subr.bf16.mxu1 %v4174_v42  ;;  %v4267_v41 = vld [vmem:[%s4755_s11 + $0x46c] ss:$16 sps:$4 sm:$0xff]   ;;  %v4262_v42 = vld [vmem:[%s4755_s11 + $0x460] ss:$16 sps:$4 sm:$0xff]  }
  0x83   : > { %2851 = vmatpush1.bf16.msra.mxu0 %v4169_v43  ;;  %3109 = vmatpush1.bf16.msra.mxu1 %v4172_v44  ;;  %v4265_v43 = vld [vmem:[%s4755_s11 + $0x468] ss:$16 sps:$4 sm:$0xff]   ;;  %v4270_v44 = vld [vmem:[%s4755_s11 + $0x484] ss:$16 sps:$4 sm:$0xff]  }
  0x84   : > { %2852 = vmatprep.subr.bf16.mxu0 %v4177_v45  ;;  %3110 = vmatprep.subr.bf16.mxu1 %v4180_v46  ;;  %v4273_v45 = vld [vmem:[%s4755_s11 + $0x48c] ss:$16 sps:$4 sm:$0xff]   ;;  %v4268_v46 = vld [vmem:[%s4755_s11 + $0x480] ss:$16 sps:$4 sm:$0xff]  }
  0x87   : > { %2853 = vmatpush1.bf16.msra.mxu0 %v4175_v47  ;;  %3111 = vmatpush1.bf16.msra.mxu1 %v4178_v48  ;;  %v4271_v47 = vld [vmem:[%s4755_s11 + $0x488] ss:$16 sps:$4 sm:$0xff]   ;;  %v4276_v48 = vld [vmem:[%s4755_s11 + $0x4a4] ss:$16 sps:$4 sm:$0xff]  }
  0x88   : > { %2854 = vmatprep.subr.bf16.mxu0 %v4183_v49  ;;  %3112 = vmatprep.subr.bf16.mxu1 %v4186_v50  ;;  %v4279_v49 = vld [vmem:[%s4755_s11 + $0x4ac] ss:$16 sps:$4 sm:$0xff]   ;;  %v4274_v50 = vld [vmem:[%s4755_s11 + $0x4a0] ss:$16 sps:$4 sm:$0xff]  }
  0x8b   : > { %2855 = vmatpush1.bf16.msra.mxu0 %v4181_v51  ;;  %3113 = vmatpush1.bf16.msra.mxu1 %v4184_v52  ;;  %v4277_v51 = vld [vmem:[%s4755_s11 + $0x4a8] ss:$16 sps:$4 sm:$0xff]   ;;  %v4282_v52 = vld [vmem:[%s4755_s11 + $0x4c4] ss:$16 sps:$4 sm:$0xff]  }
  0x8c   : > { %2856 = vmatprep.subr.bf16.mxu0 %v4189_v54  ;;  %3114 = vmatprep.subr.bf16.mxu1 %v4192_v55  ;;  %v4280_v54 = vld [vmem:[%s4755_s11 + $0x4c0] ss:$16 sps:$4 sm:$0xff]   ;;  %v4283_v55 = vld [vmem:[%s4755_s11 + $0x4c8] ss:$16 sps:$4 sm:$0xff]  }
  0x8f   : > { %2857 = vmatpush1.bf16.msra.mxu0 %v4187_v56  ;;  %3115 = vmatpush1.bf16.msra.mxu1 %v4190_v57  ;;  %v4288_v56 = vld [vmem:[%s4755_s11 + $0x4e4] ss:$16 sps:$4 sm:$0xff]   ;;  %v4291_v57 = vld [vmem:[%s4755_s11 + $0x4ec] ss:$16 sps:$4 sm:$0xff]  }
  0x90   : > { %2858 = vmatprep.subr.bf16.mxu0 %v4195_v58  ;;  %3116 = vmatprep.subr.bf16.mxu1 %v4198_v59  ;;  %v4286_v58 = vld [vmem:[%s4755_s11 + $0x4e0] ss:$16 sps:$4 sm:$0xff]   ;;  %v4289_v59 = vld [vmem:[%s4755_s11 + $0x4e8] ss:$16 sps:$4 sm:$0xff]  }
  0x93   : > { %2859 = vmatpush1.bf16.msra.mxu0 %v4193_v60  ;;  %3117 = vmatpush1.bf16.msra.mxu1 %v4196_v61  ;;  %v4294_v60 = vld [vmem:[%s4755_s11 + $0x504] ss:$16 sps:$4 sm:$0xff]   ;;  %v4297_v61 = vld [vmem:[%s4755_s11 + $0x50c] ss:$16 sps:$4 sm:$0xff]  }
  0x94   : > { %2860 = vmatprep.subr.bf16.mxu0 %v4201_v62  ;;  %3118 = vmatprep.subr.bf16.mxu1 %v4204_v63  ;;  %v4292_v62 = vld [vmem:[%s4755_s11 + $0x500] ss:$16 sps:$4 sm:$0xff]   ;;  %v4295_v63 = vld [vmem:[%s4755_s11 + $0x508] ss:$16 sps:$4 sm:$0xff]  }
  0x97   : > { %2861 = vmatpush1.bf16.msra.mxu0 %v4199_v0  ;;  %3119 = vmatpush1.bf16.msra.mxu1 %v4202_v1  ;;  %v4300_v0 = vld [vmem:[%s4755_s11 + $0x524] ss:$16 sps:$4 sm:$0xff]   ;;  %v4303_v1 = vld [vmem:[%s4755_s11 + $0x52c] ss:$16 sps:$4 sm:$0xff]  }
  0x98   : > { %2862 = vmatprep.subr.bf16.mxu0 %v4207_v2  ;;  %3120 = vmatprep.subr.bf16.mxu1 %v4210_v3  ;;  %v4298_v2 = vld [vmem:[%s4755_s11 + $0x520] ss:$16 sps:$4 sm:$0xff]   ;;  %v4301_v3 = vld [vmem:[%s4755_s11 + $0x528] ss:$16 sps:$4 sm:$0xff]  }
  0x9b   : > { %2863 = vmatpush1.bf16.msra.mxu0 %v4205_v4  ;;  %3121 = vmatpush1.bf16.msra.mxu1 %v4208_v5  ;;  %v4306_v4 = vld [vmem:[%s4755_s11 + $0x544] ss:$16 sps:$4 sm:$0xff]   ;;  %v4309_v5 = vld [vmem:[%s4755_s11 + $0x54c] ss:$16 sps:$4 sm:$0xff]  }
  0x9c   : > { %2864 = vmatprep.subr.bf16.mxu0 %v4213_v6  ;;  %3122 = vmatprep.subr.bf16.mxu1 %v4216_v7  ;;  %v4304_v6 = vld [vmem:[%s4755_s11 + $0x540] ss:$16 sps:$4 sm:$0xff]   ;;  %v4307_v7 = vld [vmem:[%s4755_s11 + $0x548] ss:$16 sps:$4 sm:$0xff]  }
  0x9f   : > { %2865 = vmatpush1.bf16.msra.mxu0 %v4211_v8  ;;  %3123 = vmatpush1.bf16.msra.mxu1 %v4214_v9  ;;  %v4312_v8 = vld [vmem:[%s4755_s11 + $0x564] ss:$16 sps:$4 sm:$0xff]   ;;  %v4315_v9 = vld [vmem:[%s4755_s11 + $0x56c] ss:$16 sps:$4 sm:$0xff]  }
  0xa0   : > { %2866 = vmatprep.subr.bf16.mxu0 %v4219_v10  ;;  %3124 = vmatprep.subr.bf16.mxu1 %v4222_v11  ;;  %v4310_v10 = vld [vmem:[%s4755_s11 + $0x560] ss:$16 sps:$4 sm:$0xff]   ;;  %v4313_v11 = vld [vmem:[%s4755_s11 + $0x568] ss:$16 sps:$4 sm:$0xff]  }
  0xa3   : > { %2867 = vmatpush1.bf16.msra.mxu0 %v4217_v12  ;;  %3125 = vmatpush1.bf16.msra.mxu1 %v4220_v13  ;;  %v4318_v12 = vld [vmem:[%s4755_s11 + $0x584] ss:$16 sps:$4 sm:$0xff]   ;;  %v4321_v13 = vld [vmem:[%s4755_s11 + $0x58c] ss:$16 sps:$4 sm:$0xff]  }
  0xa4   : > { %2868 = vmatprep.subr.bf16.mxu0 %v4225_v14  ;;  %3126 = vmatprep.subr.bf16.mxu1 %v4228_v15  ;;  %v4316_v14 = vld [vmem:[%s4755_s11 + $0x580] ss:$16 sps:$4 sm:$0xff]   ;;  %v4319_v15 = vld [vmem:[%s4755_s11 + $0x588] ss:$16 sps:$4 sm:$0xff]  }
  0xa7   : > { %2869 = vmatpush1.bf16.msra.mxu0 %v4223_v16  ;;  %3127 = vmatpush1.bf16.msra.mxu1 %v4226_v17  ;;  %v4324_v16 = vld [vmem:[%s4755_s11 + $0x5a4] ss:$16 sps:$4 sm:$0xff]   ;;  %v4327_v17 = vld [vmem:[%s4755_s11 + $0x5ac] ss:$16 sps:$4 sm:$0xff]  }
  0xa8   : > { %2870 = vmatprep.subr.bf16.mxu0 %v4231_v18  ;;  %3128 = vmatprep.subr.bf16.mxu1 %v4234_v19  ;;  %v4322_v18 = vld [vmem:[%s4755_s11 + $0x5a0] ss:$16 sps:$4 sm:$0xff]   ;;  %v4325_v19 = vld [vmem:[%s4755_s11 + $0x5a8] ss:$16 sps:$4 sm:$0xff]  }
  0xab   : > { %2871 = vmatpush1.bf16.msra.mxu0 %v4229_v20  ;;  %3129 = vmatpush1.bf16.msra.mxu1 %v4232_v21  ;;  %v4330_v20 = vld [vmem:[%s4755_s11 + $0x5c4] ss:$16 sps:$4 sm:$0xff]   ;;  %v4333_v21 = vld [vmem:[%s4755_s11 + $0x5cc] ss:$16 sps:$4 sm:$0xff]  }
  0xac   : > { %2872 = vmatprep.subr.bf16.mxu0 %v4237_v22  ;;  %3130 = vmatprep.subr.bf16.mxu1 %v4240_v23  ;;  %v4328_v22 = vld [vmem:[%s4755_s11 + $0x5c0] ss:$16 sps:$4 sm:$0xff]   ;;  %v4331_v23 = vld [vmem:[%s4755_s11 + $0x5c8] ss:$16 sps:$4 sm:$0xff]  }
  0xaf   : > { %2873 = vmatpush1.bf16.msra.mxu0 %v4235_v24  ;;  %3131 = vmatpush1.bf16.msra.mxu1 %v4238_v25  ;;  %v4336_v24 = vld [vmem:[%s4755_s11 + $0x5e4] ss:$16 sps:$4 sm:$0xff]   ;;  %v4339_v25 = vld [vmem:[%s4755_s11 + $0x5ec] ss:$16 sps:$4 sm:$0xff]  }
  0xb0   : > { %2885 = vmatprep.subr.bf16.mxu0 %v4246_v26  ;;  %3143 = vmatprep.subr.bf16.mxu1 %v4249_v27  ;;  %v4334_v26 = vld [vmem:[%s4755_s11 + $0x5e0] ss:$16 sps:$4 sm:$0xff]   ;;  %v4337_v27 = vld [vmem:[%s4755_s11 + $0x5e8] ss:$16 sps:$4 sm:$0xff]  }
  0xb2   : > { %2875 = vmatmul.mubr.bf16.vlgmr.msra.gmra.mrb[0].mxu0 %v4241_v28  ;;  %3133 = vmatmul.mubr.bf16.vlgmr.msra.gmra.mrb[0].mxu1 %v4241_v28  ;;  %v4345_v28 = vld [vmem:[%s4755_s11 + $0x604] ss:$16 sps:$4 sm:$0xff]  }
  0xb3   : > { %2886 = vmatpush1.bf16.msra.mxu0 %v4244_v29  ;;  %3144 = vmatpush1.bf16.msra.mxu1 %v4247_v30  ;;  %v4348_v29 = vld [vmem:[%s4755_s11 + $0x60c] ss:$16 sps:$4 sm:$0xff]   ;;  %v4340_v30 = vld [vmem:[%s4757_s12 + $0x10] ss:$48 sps:$4 sm:$0xff]  }
  0xb4   : > { %2887 = vmatprep.subr.bf16.mxu0 %v4252_v31  ;;  %3145 = vmatprep.subr.bf16.mxu1 %v4255_v32  ;;  %v4343_v31 = vld [vmem:[%s4755_s11 + $0x600] ss:$16 sps:$4 sm:$0xff]   ;;  %v4346_v32 = vld [vmem:[%s4755_s11 + $0x608] ss:$16 sps:$4 sm:$0xff]  }
  0xb5   : > { %2917 = vmatprep.mubr.bf16.mxu0 %v4342_v35  ;;  %3175 = vmatprep.mubr.bf16.mxu1 %v4342_v35  ;;  %v4441_v35 = vld [vmem:[%s4757_s12 + $0x1c] ss:$48 sps:$4 sm:$0xff]  }
  0xb7   : > { %2888 = vmatpush1.bf16.msra.mxu0 %v4250_v33  ;;  %3146 = vmatpush1.bf16.msra.mxu1 %v4253_v34  ;;  %v4351_v33 = vld [vmem:[%s4755_s11 + $0x624] ss:$16 sps:$4 sm:$0xff]   ;;  %v4354_v34 = vld [vmem:[%s4755_s11 + $0x62c] ss:$16 sps:$4 sm:$0xff]  }
  0xb8   : > { %2889 = vmatprep.subr.bf16.mxu0 %v4258_v36  ;;  %3147 = vmatprep.subr.bf16.mxu1 %v4261_v37  ;;  %v4349_v36 = vld [vmem:[%s4755_s11 + $0x620] ss:$16 sps:$4 sm:$0xff]   ;;  %v4352_v37 = vld [vmem:[%s4755_s11 + $0x628] ss:$16 sps:$4 sm:$0xff]  }
  0xbb   : > { %2890 = vmatpush1.bf16.msra.mxu0 %v4256_v38  ;;  %3148 = vmatpush1.bf16.msra.mxu1 %v4259_v39  ;;  %v4357_v38 = vld [vmem:[%s4755_s11 + $0x644] ss:$16 sps:$4 sm:$0xff]   ;;  %v4360_v39 = vld [vmem:[%s4755_s11 + $0x64c] ss:$16 sps:$4 sm:$0xff]  }
  0xbc   : > { %2891 = vmatprep.subr.bf16.mxu0 %v4264_v40  ;;  %3149 = vmatprep.subr.bf16.mxu1 %v4267_v41  ;;  %v4355_v40 = vld [vmem:[%s4755_s11 + $0x640] ss:$16 sps:$4 sm:$0xff]   ;;  %v4358_v41 = vld [vmem:[%s4755_s11 + $0x648] ss:$16 sps:$4 sm:$0xff]  }
  0xbf   : > { %2892 = vmatpush1.bf16.msra.mxu0 %v4262_v42  ;;  %3150 = vmatpush1.bf16.msra.mxu1 %v4265_v43  ;;  %v4363_v42 = vld [vmem:[%s4755_s11 + $0x664] ss:$16 sps:$4 sm:$0xff]   ;;  %v4366_v43 = vld [vmem:[%s4755_s11 + $0x66c] ss:$16 sps:$4 sm:$0xff]  }
  0xc0   : > { %2893 = vmatprep.subr.bf16.mxu0 %v4270_v44  ;;  %3151 = vmatprep.subr.bf16.mxu1 %v4273_v45  ;;  %v4361_v44 = vld [vmem:[%s4755_s11 + $0x660] ss:$16 sps:$4 sm:$0xff]   ;;  %v4364_v45 = vld [vmem:[%s4755_s11 + $0x668] ss:$16 sps:$4 sm:$0xff]  }
  0xc3   : > { %2894 = vmatpush1.bf16.msra.mxu0 %v4268_v46  ;;  %3152 = vmatpush1.bf16.msra.mxu1 %v4271_v47  ;;  %v4369_v46 = vld [vmem:[%s4755_s11 + $0x684] ss:$16 sps:$4 sm:$0xff]   ;;  %v4372_v47 = vld [vmem:[%s4755_s11 + $0x68c] ss:$16 sps:$4 sm:$0xff]  }
  0xc4   : > { %2895 = vmatprep.subr.bf16.mxu0 %v4276_v48  ;;  %3153 = vmatprep.subr.bf16.mxu1 %v4279_v49  ;;  %v4367_v48 = vld [vmem:[%s4755_s11 + $0x680] ss:$16 sps:$4 sm:$0xff]   ;;  %v4370_v49 = vld [vmem:[%s4755_s11 + $0x688] ss:$16 sps:$4 sm:$0xff]  }
  0xc7   : > { %2896 = vmatpush1.bf16.msra.mxu0 %v4274_v50  ;;  %3154 = vmatpush1.bf16.msra.mxu1 %v4277_v51  ;;  %v4375_v50 = vld [vmem:[%s4755_s11 + $0x6a4] ss:$16 sps:$4 sm:$0xff]   ;;  %v4378_v51 = vld [vmem:[%s4755_s11 + $0x6ac] ss:$16 sps:$4 sm:$0xff]  }
  0xc8   : > { %2897 = vmatprep.subr.bf16.mxu0 %v4282_v52  ;;  %3155 = vmatprep.subr.bf16.mxu1 %v4285_v53  ;;  %v4373_v52 = vld [vmem:[%s4755_s11 + $0x6a0] ss:$16 sps:$4 sm:$0xff]   ;;  %v4376_v53 = vld [vmem:[%s4755_s11 + $0x6a8] ss:$16 sps:$4 sm:$0xff]  }
  0xcb   : > { %2898 = vmatpush1.bf16.msra.mxu0 %v4280_v54  ;;  %3156 = vmatpush1.bf16.msra.mxu1 %v4283_v55  ;;  %v4381_v54 = vld [vmem:[%s4755_s11 + $0x6c4] ss:$16 sps:$4 sm:$0xff]   ;;  %v4384_v55 = vld [vmem:[%s4755_s11 + $0x6cc] ss:$16 sps:$4 sm:$0xff]  }
  0xcc   : > { %2899 = vmatprep.subr.bf16.mxu0 %v4288_v56  ;;  %3157 = vmatprep.subr.bf16.mxu1 %v4291_v57  ;;  %v4379_v56 = vld [vmem:[%s4755_s11 + $0x6c0] ss:$16 sps:$4 sm:$0xff]   ;;  %v4382_v57 = vld [vmem:[%s4755_s11 + $0x6c8] ss:$16 sps:$4 sm:$0xff]  }
  0xcf   : > { %2900 = vmatpush1.bf16.msra.mxu0 %v4286_v58  ;;  %3158 = vmatpush1.bf16.msra.mxu1 %v4289_v59  ;;  %v4387_v58 = vld [vmem:[%s4755_s11 + $0x6e4] ss:$16 sps:$4 sm:$0xff]   ;;  %v4390_v59 = vld [vmem:[%s4755_s11 + $0x6ec] ss:$16 sps:$4 sm:$0xff]  }
  0xd0   : > { %2901 = vmatprep.subr.bf16.mxu0 %v4294_v60  ;;  %3159 = vmatprep.subr.bf16.mxu1 %v4297_v61  ;;  %v4385_v60 = vld [vmem:[%s4755_s11 + $0x6e0] ss:$16 sps:$4 sm:$0xff]   ;;  %v4388_v61 = vld [vmem:[%s4755_s11 + $0x6e8] ss:$16 sps:$4 sm:$0xff]  }
  0xd3   : > { %2902 = vmatpush1.bf16.msra.mxu0 %v4292_v62  ;;  %3160 = vmatpush1.bf16.msra.mxu1 %v4295_v63  ;;  %v4393_v62 = vld [vmem:[%s4755_s11 + $0x704] ss:$16 sps:$4 sm:$0xff]   ;;  %v4396_v63 = vld [vmem:[%s4755_s11 + $0x70c] ss:$16 sps:$4 sm:$0xff]  }
  0xd4   : > { %2903 = vmatprep.subr.bf16.mxu0 %v4300_v0  ;;  %3161 = vmatprep.subr.bf16.mxu1 %v4303_v1  ;;  %v4391_v0 = vld [vmem:[%s4755_s11 + $0x700] ss:$16 sps:$4 sm:$0xff]   ;;  %v4394_v1 = vld [vmem:[%s4755_s11 + $0x708] ss:$16 sps:$4 sm:$0xff]  }
  0xd7   : > { %2904 = vmatpush1.bf16.msra.mxu0 %v4298_v2  ;;  %3162 = vmatpush1.bf16.msra.mxu1 %v4301_v3  ;;  %v4399_v2 = vld [vmem:[%s4755_s11 + $0x724] ss:$16 sps:$4 sm:$0xff]   ;;  %v4402_v3 = vld [vmem:[%s4755_s11 + $0x72c] ss:$16 sps:$4 sm:$0xff]  }
  0xd8   : > { %2905 = vmatprep.subr.bf16.mxu0 %v4306_v4  ;;  %3163 = vmatprep.subr.bf16.mxu1 %v4309_v5  ;;  %v4397_v4 = vld [vmem:[%s4755_s11 + $0x720] ss:$16 sps:$4 sm:$0xff]   ;;  %v4400_v5 = vld [vmem:[%s4755_s11 + $0x728] ss:$16 sps:$4 sm:$0xff]  }
  0xdb   : > { %2906 = vmatpush1.bf16.msra.mxu0 %v4304_v6  ;;  %3164 = vmatpush1.bf16.msra.mxu1 %v4307_v7  ;;  %v4405_v6 = vld [vmem:[%s4755_s11 + $0x744] ss:$16 sps:$4 sm:$0xff]   ;;  %v4408_v7 = vld [vmem:[%s4755_s11 + $0x74c] ss:$16 sps:$4 sm:$0xff]  }
  0xdc   : > { %2907 = vmatprep.subr.bf16.mxu0 %v4312_v8  ;;  %3165 = vmatprep.subr.bf16.mxu1 %v4315_v9  ;;  %v4403_v8 = vld [vmem:[%s4755_s11 + $0x740] ss:$16 sps:$4 sm:$0xff]   ;;  %v4406_v9 = vld [vmem:[%s4755_s11 + $0x748] ss:$16 sps:$4 sm:$0xff]  }
  0xdf   : > { %2908 = vmatpush1.bf16.msra.mxu0 %v4310_v10  ;;  %3166 = vmatpush1.bf16.msra.mxu1 %v4313_v11  ;;  %v4411_v10 = vld [vmem:[%s4755_s11 + $0x764] ss:$16 sps:$4 sm:$0xff]   ;;  %v4414_v11 = vld [vmem:[%s4755_s11 + $0x76c] ss:$16 sps:$4 sm:$0xff]  }
  0xe0   : > { %2909 = vmatprep.subr.bf16.mxu0 %v4318_v12  ;;  %3167 = vmatprep.subr.bf16.mxu1 %v4321_v13  ;;  %v4409_v12 = vld [vmem:[%s4755_s11 + $0x760] ss:$16 sps:$4 sm:$0xff]   ;;  %v4412_v13 = vld [vmem:[%s4755_s11 + $0x768] ss:$16 sps:$4 sm:$0xff]  }
  0xe3   : > { %2910 = vmatpush1.bf16.msra.mxu0 %v4316_v14  ;;  %3168 = vmatpush1.bf16.msra.mxu1 %v4319_v15  ;;  %v4417_v14 = vld [vmem:[%s4755_s11 + $0x784] ss:$16 sps:$4 sm:$0xff]   ;;  %v4420_v15 = vld [vmem:[%s4755_s11 + $0x78c] ss:$16 sps:$4 sm:$0xff]  }
  0xe4   : > { %2911 = vmatprep.subr.bf16.mxu0 %v4324_v16  ;;  %3169 = vmatprep.subr.bf16.mxu1 %v4327_v17  ;;  %v4415_v16 = vld [vmem:[%s4755_s11 + $0x780] ss:$16 sps:$4 sm:$0xff]   ;;  %v4418_v17 = vld [vmem:[%s4755_s11 + $0x788] ss:$16 sps:$4 sm:$0xff]  }
  0xe7   : > { %2912 = vmatpush1.bf16.msra.mxu0 %v4322_v18  ;;  %3170 = vmatpush1.bf16.msra.mxu1 %v4325_v19  ;;  %v4423_v18 = vld [vmem:[%s4755_s11 + $0x7a4] ss:$16 sps:$4 sm:$0xff]   ;;  %v4426_v19 = vld [vmem:[%s4755_s11 + $0x7ac] ss:$16 sps:$4 sm:$0xff]  }
  0xe8   : > { %2913 = vmatprep.subr.bf16.mxu0 %v4330_v20  ;;  %3171 = vmatprep.subr.bf16.mxu1 %v4333_v21  ;;  %v4421_v20 = vld [vmem:[%s4755_s11 + $0x7a0] ss:$16 sps:$4 sm:$0xff]   ;;  %v4424_v21 = vld [vmem:[%s4755_s11 + $0x7a8] ss:$16 sps:$4 sm:$0xff]  }
  0xeb   : > { %2914 = vmatpush1.bf16.msra.mxu0 %v4328_v22  ;;  %3172 = vmatpush1.bf16.msra.mxu1 %v4331_v23  ;;  %v4429_v22 = vld [vmem:[%s4755_s11 + $0x7c4] ss:$16 sps:$4 sm:$0xff]   ;;  %v4432_v23 = vld [vmem:[%s4755_s11 + $0x7cc] ss:$16 sps:$4 sm:$0xff]  }
  0xec   : > { %2915 = vmatprep.subr.bf16.mxu0 %v4336_v24  ;;  %3173 = vmatprep.subr.bf16.mxu1 %v4339_v25  ;;  %v4427_v24 = vld [vmem:[%s4755_s11 + $0x7c0] ss:$16 sps:$4 sm:$0xff]   ;;  %v4430_v25 = vld [vmem:[%s4755_s11 + $0x7c8] ss:$16 sps:$4 sm:$0xff]  }
  0xef   : > { %2916 = vmatpush1.bf16.msra.mxu0 %v4334_v26  ;;  %3174 = vmatpush1.bf16.msra.mxu1 %v4337_v27  ;;  %v4435_v26 = vld [vmem:[%s4755_s11 + $0x7e4] ss:$16 sps:$4 sm:$0xff]   ;;  %v4438_v27 = vld [vmem:[%s4755_s11 + $0x7ec] ss:$16 sps:$4 sm:$0xff]  }
  0xf0   : > { %2928 = vmatprep.subr.bf16.mxu0 %v4345_v28  ;;  %3186 = vmatprep.subr.bf16.mxu1 %v4348_v29  ;;  %v4433_v28 = vld [vmem:[%s4755_s11 + $0x7e0] ss:$16 sps:$4 sm:$0xff]   ;;  %v4436_v29 = vld [vmem:[%s4755_s11 + $0x7e8] ss:$16 sps:$4 sm:$0xff]  }
  0xf2   : > { %2918 = vmatmul.mubr.bf16.vlgmr.msra.gmra.mrb[0].mxu0 %v4340_v30  ;;  %3176 = vmatmul.mubr.bf16.vlgmr.msra.gmra.mrb[0].mxu1 %v4340_v30  ;;  %v4444_v30 = vld [vmem:[%s4755_s11 + $0x804] ss:$16 sps:$4 sm:$0xff]  }
  0xf3   : > { %2929 = vmatpush1.bf16.msra.mxu0 %v4343_v31  ;;  %3187 = vmatpush1.bf16.msra.mxu1 %v4346_v32  ;;  %v4447_v31 = vld [vmem:[%s4755_s11 + $0x80c] ss:$16 sps:$4 sm:$0xff]   ;;  %v4439_v32 = vld [vmem:[%s4757_s12 + $0x18] ss:$48 sps:$4 sm:$0xff]  }
  0xf4   : > { %2930 = vmatprep.subr.bf16.mxu0 %v4351_v33  ;;  %3188 = vmatprep.subr.bf16.mxu1 %v4354_v34  ;;  %v4442_v33 = vld [vmem:[%s4755_s11 + $0x800] ss:$16 sps:$4 sm:$0xff]   ;;  %v4445_v34 = vld [vmem:[%s4755_s11 + $0x808] ss:$16 sps:$4 sm:$0xff]  }
  0xf5   : > { %2960 = vmatprep.mubr.bf16.mxu0 %v4441_v35  ;;  %3218 = vmatprep.mubr.bf16.mxu1 %v4441_v35  ;;  %v4450_v35 = vld [vmem:[%s4755_s11 + $0x824] ss:$16 sps:$4 sm:$0xff]  }
  0xf7   : > { %2931 = vmatpush1.bf16.msra.mxu0 %v4349_v36  ;;  %3189 = vmatpush1.bf16.msra.mxu1 %v4352_v37  ;;  %v4453_v36 = vld [vmem:[%s4755_s11 + $0x82c] ss:$16 sps:$4 sm:$0xff]   ;;  %v4540_v37 = vld [vmem:[%s4757_s12 + $0x24] ss:$48 sps:$4 sm:$0xff]  }
  0xf8   : > { %2932 = vmatprep.subr.bf16.mxu0 %v4357_v38  ;;  %3190 = vmatprep.subr.bf16.mxu1 %v4360_v39  ;;  %v4448_v38 = vld [vmem:[%s4755_s11 + $0x820] ss:$16 sps:$4 sm:$0xff]   ;;  %v4451_v39 = vld [vmem:[%s4755_s11 + $0x828] ss:$16 sps:$4 sm:$0xff]  }
  0xfb   : > { %2933 = vmatpush1.bf16.msra.mxu0 %v4355_v40  ;;  %3191 = vmatpush1.bf16.msra.mxu1 %v4358_v41  ;;  %v4456_v40 = vld [vmem:[%s4755_s11 + $0x844] ss:$16 sps:$4 sm:$0xff]   ;;  %v4459_v41 = vld [vmem:[%s4755_s11 + $0x84c] ss:$16 sps:$4 sm:$0xff]  }
  0xfc   : > { %2934 = vmatprep.subr.bf16.mxu0 %v4363_v42  ;;  %3192 = vmatprep.subr.bf16.mxu1 %v4366_v43  ;;  %v4454_v42 = vld [vmem:[%s4755_s11 + $0x840] ss:$16 sps:$4 sm:$0xff]   ;;  %v4457_v43 = vld [vmem:[%s4755_s11 + $0x848] ss:$16 sps:$4 sm:$0xff]  }
  0xff   : > { %2935 = vmatpush1.bf16.msra.mxu0 %v4361_v44  ;;  %3193 = vmatpush1.bf16.msra.mxu1 %v4364_v45  ;;  %v4462_v44 = vld [vmem:[%s4755_s11 + $0x864] ss:$16 sps:$4 sm:$0xff]   ;;  %v4465_v45 = vld [vmem:[%s4755_s11 + $0x86c] ss:$16 sps:$4 sm:$0xff]  }
 0x100   : > { %2936 = vmatprep.subr.bf16.mxu0 %v4369_v46  ;;  %3194 = vmatprep.subr.bf16.mxu1 %v4372_v47  ;;  %v4460_v46 = vld [vmem:[%s4755_s11 + $0x860] ss:$16 sps:$4 sm:$0xff]   ;;  %v4463_v47 = vld [vmem:[%s4755_s11 + $0x868] ss:$16 sps:$4 sm:$0xff]  }
 0x103   : > { %2937 = vmatpush1.bf16.msra.mxu0 %v4367_v48  ;;  %3195 = vmatpush1.bf16.msra.mxu1 %v4370_v49  ;;  %v4468_v48 = vld [vmem:[%s4755_s11 + $0x884] ss:$16 sps:$4 sm:$0xff]   ;;  %v4471_v49 = vld [vmem:[%s4755_s11 + $0x88c] ss:$16 sps:$4 sm:$0xff]  }
 0x104   : > { %2938 = vmatprep.subr.bf16.mxu0 %v4375_v50  ;;  %3196 = vmatprep.subr.bf16.mxu1 %v4378_v51  ;;  %v4466_v50 = vld [vmem:[%s4755_s11 + $0x880] ss:$16 sps:$4 sm:$0xff]   ;;  %v4469_v51 = vld [vmem:[%s4755_s11 + $0x888] ss:$16 sps:$4 sm:$0xff]  }
 0x107   : > { %2939 = vmatpush1.bf16.msra.mxu0 %v4373_v52  ;;  %3197 = vmatpush1.bf16.msra.mxu1 %v4376_v53  ;;  %v4474_v52 = vld [vmem:[%s4755_s11 + $0x8a4] ss:$16 sps:$4 sm:$0xff]   ;;  %v4477_v53 = vld [vmem:[%s4755_s11 + $0x8ac] ss:$16 sps:$4 sm:$0xff]  }
 0x108   : > { %2940 = vmatprep.subr.bf16.mxu0 %v4381_v54  ;;  %3198 = vmatprep.subr.bf16.mxu1 %v4384_v55  ;;  %v4472_v54 = vld [vmem:[%s4755_s11 + $0x8a0] ss:$16 sps:$4 sm:$0xff]   ;;  %v4475_v55 = vld [vmem:[%s4755_s11 + $0x8a8] ss:$16 sps:$4 sm:$0xff]  }
 0x10b   : > { %2941 = vmatpush1.bf16.msra.mxu0 %v4379_v56  ;;  %3199 = vmatpush1.bf16.msra.mxu1 %v4382_v57  ;;  %v4480_v56 = vld [vmem:[%s4755_s11 + $0x8c4] ss:$16 sps:$4 sm:$0xff]   ;;  %v4483_v57 = vld [vmem:[%s4755_s11 + $0x8cc] ss:$16 sps:$4 sm:$0xff]  }
 0x10c   : > { %2942 = vmatprep.subr.bf16.mxu0 %v4387_v58  ;;  %3200 = vmatprep.subr.bf16.mxu1 %v4390_v59  ;;  %v4478_v58 = vld [vmem:[%s4755_s11 + $0x8c0] ss:$16 sps:$4 sm:$0xff]   ;;  %v4481_v59 = vld [vmem:[%s4755_s11 + $0x8c8] ss:$16 sps:$4 sm:$0xff]  }
 0x10f   : > { %2943 = vmatpush1.bf16.msra.mxu0 %v4385_v60  ;;  %3201 = vmatpush1.bf16.msra.mxu1 %v4388_v61  ;;  %v4486_v60 = vld [vmem:[%s4755_s11 + $0x8e4] ss:$16 sps:$4 sm:$0xff]   ;;  %v4489_v61 = vld [vmem:[%s4755_s11 + $0x8ec] ss:$16 sps:$4 sm:$0xff]  }
 0x110   : > { %2944 = vmatprep.subr.bf16.mxu0 %v4393_v62  ;;  %3202 = vmatprep.subr.bf16.mxu1 %v4396_v63  ;;  %v4484_v62 = vld [vmem:[%s4755_s11 + $0x8e0] ss:$16 sps:$4 sm:$0xff]   ;;  %v4487_v63 = vld [vmem:[%s4755_s11 + $0x8e8] ss:$16 sps:$4 sm:$0xff]  }
 0x113   : > { %2945 = vmatpush1.bf16.msra.mxu0 %v4391_v0  ;;  %3203 = vmatpush1.bf16.msra.mxu1 %v4394_v1  ;;  %v4492_v0 = vld [vmem:[%s4755_s11 + $0x904] ss:$16 sps:$4 sm:$0xff]   ;;  %v4495_v1 = vld [vmem:[%s4755_s11 + $0x90c] ss:$16 sps:$4 sm:$0xff]  }
 0x114   : > { %2946 = vmatprep.subr.bf16.mxu0 %v4399_v2  ;;  %3204 = vmatprep.subr.bf16.mxu1 %v4402_v3  ;;  %v4490_v2 = vld [vmem:[%s4755_s11 + $0x900] ss:$16 sps:$4 sm:$0xff]   ;;  %v4493_v3 = vld [vmem:[%s4755_s11 + $0x908] ss:$16 sps:$4 sm:$0xff]  }
 0x117   : > { %2947 = vmatpush1.bf16.msra.mxu0 %v4397_v4  ;;  %3205 = vmatpush1.bf16.msra.mxu1 %v4400_v5  ;;  %v4498_v4 = vld [vmem:[%s4755_s11 + $0x924] ss:$16 sps:$4 sm:$0xff]   ;;  %v4501_v5 = vld [vmem:[%s4755_s11 + $0x92c] ss:$16 sps:$4 sm:$0xff]  }
 0x118   : > { %2948 = vmatprep.subr.bf16.mxu0 %v4405_v6  ;;  %3206 = vmatprep.subr.bf16.mxu1 %v4408_v7  ;;  %v4496_v6 = vld [vmem:[%s4755_s11 + $0x920] ss:$16 sps:$4 sm:$0xff]   ;;  %v4499_v7 = vld [vmem:[%s4755_s11 + $0x928] ss:$16 sps:$4 sm:$0xff]  }
 0x11b   : > { %2949 = vmatpush1.bf16.msra.mxu0 %v4403_v8  ;;  %3207 = vmatpush1.bf16.msra.mxu1 %v4406_v9  ;;  %v4504_v8 = vld [vmem:[%s4755_s11 + $0x944] ss:$16 sps:$4 sm:$0xff]   ;;  %v4507_v9 = vld [vmem:[%s4755_s11 + $0x94c] ss:$16 sps:$4 sm:$0xff]  }
 0x11c   : > { %2950 = vmatprep.subr.bf16.mxu0 %v4411_v10  ;;  %3208 = vmatprep.subr.bf16.mxu1 %v4414_v11  ;;  %v4502_v10 = vld [vmem:[%s4755_s11 + $0x940] ss:$16 sps:$4 sm:$0xff]   ;;  %v4505_v11 = vld [vmem:[%s4755_s11 + $0x948] ss:$16 sps:$4 sm:$0xff]  }
 0x11f   : > { %2951 = vmatpush1.bf16.msra.mxu0 %v4409_v12  ;;  %3209 = vmatpush1.bf16.msra.mxu1 %v4412_v13  ;;  %v4510_v12 = vld [vmem:[%s4755_s11 + $0x964] ss:$16 sps:$4 sm:$0xff]   ;;  %v4513_v13 = vld [vmem:[%s4755_s11 + $0x96c] ss:$16 sps:$4 sm:$0xff]  }
 0x120   : > { %2952 = vmatprep.subr.bf16.mxu0 %v4417_v14  ;;  %3210 = vmatprep.subr.bf16.mxu1 %v4420_v15  ;;  %v4508_v14 = vld [vmem:[%s4755_s11 + $0x960] ss:$16 sps:$4 sm:$0xff]   ;;  %v4511_v15 = vld [vmem:[%s4755_s11 + $0x968] ss:$16 sps:$4 sm:$0xff]  }
 0x123   : > { %2953 = vmatpush1.bf16.msra.mxu0 %v4415_v16  ;;  %3211 = vmatpush1.bf16.msra.mxu1 %v4418_v17  ;;  %v4516_v16 = vld [vmem:[%s4755_s11 + $0x984] ss:$16 sps:$4 sm:$0xff]   ;;  %v4519_v17 = vld [vmem:[%s4755_s11 + $0x98c] ss:$16 sps:$4 sm:$0xff]  }
 0x124   : > { %2954 = vmatprep.subr.bf16.mxu0 %v4423_v18  ;;  %3212 = vmatprep.subr.bf16.mxu1 %v4426_v19  ;;  %v4514_v18 = vld [vmem:[%s4755_s11 + $0x980] ss:$16 sps:$4 sm:$0xff]   ;;  %v4517_v19 = vld [vmem:[%s4755_s11 + $0x988] ss:$16 sps:$4 sm:$0xff]  }
 0x127   : > { %2955 = vmatpush1.bf16.msra.mxu0 %v4421_v20  ;;  %3213 = vmatpush1.bf16.msra.mxu1 %v4424_v21  ;;  %v4522_v20 = vld [vmem:[%s4755_s11 + $0x9a4] ss:$16 sps:$4 sm:$0xff]   ;;  %v4525_v21 = vld [vmem:[%s4755_s11 + $0x9ac] ss:$16 sps:$4 sm:$0xff]  }
 0x128   : > { %2956 = vmatprep.subr.bf16.mxu0 %v4429_v22  ;;  %3214 = vmatprep.subr.bf16.mxu1 %v4432_v23  ;;  %v4520_v22 = vld [vmem:[%s4755_s11 + $0x9a0] ss:$16 sps:$4 sm:$0xff]   ;;  %v4523_v23 = vld [vmem:[%s4755_s11 + $0x9a8] ss:$16 sps:$4 sm:$0xff]  }
 0x12b   : > { %2957 = vmatpush1.bf16.msra.mxu0 %v4427_v24  ;;  %3215 = vmatpush1.bf16.msra.mxu1 %v4430_v25  ;;  %v4528_v24 = vld [vmem:[%s4755_s11 + $0x9c4] ss:$16 sps:$4 sm:$0xff]   ;;  %v4531_v25 = vld [vmem:[%s4755_s11 + $0x9cc] ss:$16 sps:$4 sm:$0xff]  }
 0x12c   : > { %2958 = vmatprep.subr.bf16.mxu0 %v4435_v26  ;;  %3216 = vmatprep.subr.bf16.mxu1 %v4438_v27  ;;  %v4526_v26 = vld [vmem:[%s4755_s11 + $0x9c0] ss:$16 sps:$4 sm:$0xff]   ;;  %v4529_v27 = vld [vmem:[%s4755_s11 + $0x9c8] ss:$16 sps:$4 sm:$0xff]  }
 0x12f   : > { %2959 = vmatpush1.bf16.msra.mxu0 %v4433_v28  ;;  %3217 = vmatpush1.bf16.msra.mxu1 %v4436_v29  ;;  %v4534_v28 = vld [vmem:[%s4755_s11 + $0x9e4] ss:$16 sps:$4 sm:$0xff]   ;;  %v4537_v29 = vld [vmem:[%s4755_s11 + $0x9ec] ss:$16 sps:$4 sm:$0xff]  }
 0x130   : > { %2971 = vmatprep.subr.bf16.mxu0 %v4444_v30  ;;  %3229 = vmatprep.subr.bf16.mxu1 %v4447_v31  ;;  %v4532_v30 = vld [vmem:[%s4755_s11 + $0x9e0] ss:$16 sps:$4 sm:$0xff]   ;;  %v4535_v31 = vld [vmem:[%s4755_s11 + $0x9e8] ss:$16 sps:$4 sm:$0xff]  }
 0x132   : > { %2961 = vmatmul.mubr.bf16.vlgmr.msra.gmra.mrb[0].mxu0 %v4439_v32  ;;  %3219 = vmatmul.mubr.bf16.vlgmr.msra.gmra.mrb[0].mxu1 %v4439_v32  ;;  %v4543_v32 = vld [vmem:[%s4755_s11 + $0xa04] ss:$16 sps:$4 sm:$0xff]  }
 0x133   : > { %2972 = vmatpush1.bf16.msra.mxu0 %v4442_v33  ;;  %3230 = vmatpush1.bf16.msra.mxu1 %v4445_v34  ;;  %v4546_v33 = vld [vmem:[%s4755_s11 + $0xa0c] ss:$16 sps:$4 sm:$0xff]   ;;  %v4538_v34 = vld [vmem:[%s4757_s12 + $0x20] ss:$48 sps:$4 sm:$0xff]  }
 0x134   : > { %2973 = vmatprep.subr.bf16.mxu0 %v4450_v35  ;;  %3231 = vmatprep.subr.bf16.mxu1 %v4453_v36  ;;  %v4541_v35 = vld [vmem:[%s4755_s11 + $0xa00] ss:$16 sps:$4 sm:$0xff]   ;;  %v4544_v36 = vld [vmem:[%s4755_s11 + $0xa08] ss:$16 sps:$4 sm:$0xff]  }
 0x135   : > { %3003 = vmatprep.mubr.bf16.mxu0 %v4540_v37  ;;  %3261 = vmatprep.mubr.bf16.mxu1 %v4540_v37  ;;  %v4549_v37 = vld [vmem:[%s4755_s11 + $0xa24] ss:$16 sps:$4 sm:$0xff]  }
 0x137   : > { %2974 = vmatpush1.bf16.msra.mxu0 %v4448_v38  ;;  %3232 = vmatpush1.bf16.msra.mxu1 %v4451_v39  ;;  %v4552_v38 = vld [vmem:[%s4755_s11 + $0xa2c] ss:$16 sps:$4 sm:$0xff]  }
 0x138   : > { %2975 = vmatprep.subr.bf16.mxu0 %v4456_v40  ;;  %3233 = vmatprep.subr.bf16.mxu1 %v4459_v41  ;;  %v4639_v39 = vld [vmem:[%s4757_s12 + $0x2c] ss:$48 sps:$4 sm:$0xff]   ;;  %v4547_v40 = vld [vmem:[%s4755_s11 + $0xa20] ss:$16 sps:$4 sm:$0xff]   ;;  %v4550_v41 = vld [vmem:[%s4755_s11 + $0xa28] ss:$16 sps:$4 sm:$0xff]  }
 0x13b   : > { %2976 = vmatpush1.bf16.msra.mxu0 %v4454_v42  ;;  %3234 = vmatpush1.bf16.msra.mxu1 %v4457_v43  ;;  %v4555_v42 = vld [vmem:[%s4755_s11 + $0xa44] ss:$16 sps:$4 sm:$0xff]   ;;  %v4558_v43 = vld [vmem:[%s4755_s11 + $0xa4c] ss:$16 sps:$4 sm:$0xff]  }
 0x13c   : > { %2977 = vmatprep.subr.bf16.mxu0 %v4462_v44  ;;  %3235 = vmatprep.subr.bf16.mxu1 %v4465_v45  ;;  %v4553_v44 = vld [vmem:[%s4755_s11 + $0xa40] ss:$16 sps:$4 sm:$0xff]   ;;  %v4556_v45 = vld [vmem:[%s4755_s11 + $0xa48] ss:$16 sps:$4 sm:$0xff]  }
 0x13f   : > { %2978 = vmatpush1.bf16.msra.mxu0 %v4460_v46  ;;  %3236 = vmatpush1.bf16.msra.mxu1 %v4463_v47  ;;  %v4561_v46 = vld [vmem:[%s4755_s11 + $0xa64] ss:$16 sps:$4 sm:$0xff]   ;;  %v4564_v47 = vld [vmem:[%s4755_s11 + $0xa6c] ss:$16 sps:$4 sm:$0xff]  }
 0x140   : > { %2979 = vmatprep.subr.bf16.mxu0 %v4468_v48  ;;  %3237 = vmatprep.subr.bf16.mxu1 %v4471_v49  ;;  %v4559_v48 = vld [vmem:[%s4755_s11 + $0xa60] ss:$16 sps:$4 sm:$0xff]   ;;  %v4562_v49 = vld [vmem:[%s4755_s11 + $0xa68] ss:$16 sps:$4 sm:$0xff]  }
 0x143   : > { %2980 = vmatpush1.bf16.msra.mxu0 %v4466_v50  ;;  %3238 = vmatpush1.bf16.msra.mxu1 %v4469_v51  ;;  %v4567_v50 = vld [vmem:[%s4755_s11 + $0xa84] ss:$16 sps:$4 sm:$0xff]   ;;  %v4570_v51 = vld [vmem:[%s4755_s11 + $0xa8c] ss:$16 sps:$4 sm:$0xff]  }
 0x144   : > { %2981 = vmatprep.subr.bf16.mxu0 %v4474_v52  ;;  %3239 = vmatprep.subr.bf16.mxu1 %v4477_v53  ;;  %v4565_v52 = vld [vmem:[%s4755_s11 + $0xa80] ss:$16 sps:$4 sm:$0xff]   ;;  %v4568_v53 = vld [vmem:[%s4755_s11 + $0xa88] ss:$16 sps:$4 sm:$0xff]  }
 0x147   : > { %2982 = vmatpush1.bf16.msra.mxu0 %v4472_v54  ;;  %3240 = vmatpush1.bf16.msra.mxu1 %v4475_v55  ;;  %v4573_v54 = vld [vmem:[%s4755_s11 + $0xaa4] ss:$16 sps:$4 sm:$0xff]   ;;  %v4576_v55 = vld [vmem:[%s4755_s11 + $0xaac] ss:$16 sps:$4 sm:$0xff]  }
 0x148   : > { %2983 = vmatprep.subr.bf16.mxu0 %v4480_v56  ;;  %3241 = vmatprep.subr.bf16.mxu1 %v4483_v57  ;;  %v4571_v56 = vld [vmem:[%s4755_s11 + $0xaa0] ss:$16 sps:$4 sm:$0xff]   ;;  %v4574_v57 = vld [vmem:[%s4755_s11 + $0xaa8] ss:$16 sps:$4 sm:$0xff]  }
 0x14b   : > { %2984 = vmatpush1.bf16.msra.mxu0 %v4478_v58  ;;  %3242 = vmatpush1.bf16.msra.mxu1 %v4481_v59  ;;  %v4579_v58 = vld [vmem:[%s4755_s11 + $0xac4] ss:$16 sps:$4 sm:$0xff]   ;;  %v4582_v59 = vld [vmem:[%s4755_s11 + $0xacc] ss:$16 sps:$4 sm:$0xff]  }
 0x14c   : > { %2985 = vmatprep.subr.bf16.mxu0 %v4486_v60  ;;  %3243 = vmatprep.subr.bf16.mxu1 %v4489_v61  ;;  %v4577_v60 = vld [vmem:[%s4755_s11 + $0xac0] ss:$16 sps:$4 sm:$0xff]   ;;  %v4580_v61 = vld [vmem:[%s4755_s11 + $0xac8] ss:$16 sps:$4 sm:$0xff]  }
 0x14f   : > { %2986 = vmatpush1.bf16.msra.mxu0 %v4484_v62  ;;  %3244 = vmatpush1.bf16.msra.mxu1 %v4487_v63  ;;  %v4585_v62 = vld [vmem:[%s4755_s11 + $0xae4] ss:$16 sps:$4 sm:$0xff]   ;;  %v4588_v63 = vld [vmem:[%s4755_s11 + $0xaec] ss:$16 sps:$4 sm:$0xff]  }
 0x150   : > { %2987 = vmatprep.subr.bf16.mxu0 %v4492_v0  ;;  %3245 = vmatprep.subr.bf16.mxu1 %v4495_v1  ;;  %v4583_v0 = vld [vmem:[%s4755_s11 + $0xae0] ss:$16 sps:$4 sm:$0xff]   ;;  %v4586_v1 = vld [vmem:[%s4755_s11 + $0xae8] ss:$16 sps:$4 sm:$0xff]  }
 0x153   : > { %2988 = vmatpush1.bf16.msra.mxu0 %v4490_v2  ;;  %3246 = vmatpush1.bf16.msra.mxu1 %v4493_v3  ;;  %v4591_v2 = vld [vmem:[%s4755_s11 + $0xb04] ss:$16 sps:$4 sm:$0xff]   ;;  %v4594_v3 = vld [vmem:[%s4755_s11 + $0xb0c] ss:$16 sps:$4 sm:$0xff]  }
 0x154   : > { %2989 = vmatprep.subr.bf16.mxu0 %v4498_v4  ;;  %3247 = vmatprep.subr.bf16.mxu1 %v4501_v5  ;;  %v4589_v4 = vld [vmem:[%s4755_s11 + $0xb00] ss:$16 sps:$4 sm:$0xff]   ;;  %v4592_v5 = vld [vmem:[%s4755_s11 + $0xb08] ss:$16 sps:$4 sm:$0xff]  }
 0x157   : > { %2990 = vmatpush1.bf16.msra.mxu0 %v4496_v6  ;;  %3248 = vmatpush1.bf16.msra.mxu1 %v4499_v7  ;;  %v4597_v6 = vld [vmem:[%s4755_s11 + $0xb24] ss:$16 sps:$4 sm:$0xff]   ;;  %v4600_v7 = vld [vmem:[%s4755_s11 + $0xb2c] ss:$16 sps:$4 sm:$0xff]  }
 0x158   : > { %2991 = vmatprep.subr.bf16.mxu0 %v4504_v8  ;;  %3249 = vmatprep.subr.bf16.mxu1 %v4507_v9  ;;  %v4595_v8 = vld [vmem:[%s4755_s11 + $0xb20] ss:$16 sps:$4 sm:$0xff]   ;;  %v4598_v9 = vld [vmem:[%s4755_s11 + $0xb28] ss:$16 sps:$4 sm:$0xff]  }
 0x15b   : > { %2992 = vmatpush1.bf16.msra.mxu0 %v4502_v10  ;;  %3250 = vmatpush1.bf16.msra.mxu1 %v4505_v11  ;;  %v4603_v10 = vld [vmem:[%s4755_s11 + $0xb44] ss:$16 sps:$4 sm:$0xff]   ;;  %v4606_v11 = vld [vmem:[%s4755_s11 + $0xb4c] ss:$16 sps:$4 sm:$0xff]  }
 0x15c   : > { %2993 = vmatprep.subr.bf16.mxu0 %v4510_v12  ;;  %3251 = vmatprep.subr.bf16.mxu1 %v4513_v13  ;;  %v4601_v12 = vld [vmem:[%s4755_s11 + $0xb40] ss:$16 sps:$4 sm:$0xff]   ;;  %v4604_v13 = vld [vmem:[%s4755_s11 + $0xb48] ss:$16 sps:$4 sm:$0xff]  }
 0x15f   : > { %2994 = vmatpush1.bf16.msra.mxu0 %v4508_v14  ;;  %3252 = vmatpush1.bf16.msra.mxu1 %v4511_v15  ;;  %v4609_v14 = vld [vmem:[%s4755_s11 + $0xb64] ss:$16 sps:$4 sm:$0xff]   ;;  %v4612_v15 = vld [vmem:[%s4755_s11 + $0xb6c] ss:$16 sps:$4 sm:$0xff]  }
 0x160   : > { %2995 = vmatprep.subr.bf16.mxu0 %v4516_v16  ;;  %3253 = vmatprep.subr.bf16.mxu1 %v4519_v17  ;;  %v4607_v16 = vld [vmem:[%s4755_s11 + $0xb60] ss:$16 sps:$4 sm:$0xff]   ;;  %v4610_v17 = vld [vmem:[%s4755_s11 + $0xb68] ss:$16 sps:$4 sm:$0xff]  }
 0x163   : > { %2996 = vmatpush1.bf16.msra.mxu0 %v4514_v18  ;;  %3254 = vmatpush1.bf16.msra.mxu1 %v4517_v19  ;;  %v4615_v18 = vld [vmem:[%s4755_s11 + $0xb84] ss:$16 sps:$4 sm:$0xff]   ;;  %v4618_v19 = vld [vmem:[%s4755_s11 + $0xb8c] ss:$16 sps:$4 sm:$0xff]  }
 0x164   : > { %2997 = vmatprep.subr.bf16.mxu0 %v4522_v20  ;;  %3255 = vmatprep.subr.bf16.mxu1 %v4525_v21  ;;  %v4613_v20 = vld [vmem:[%s4755_s11 + $0xb80] ss:$16 sps:$4 sm:$0xff]   ;;  %v4616_v21 = vld [vmem:[%s4755_s11 + $0xb88] ss:$16 sps:$4 sm:$0xff]  }
 0x167   : > { %2998 = vmatpush1.bf16.msra.mxu0 %v4520_v22  ;;  %3256 = vmatpush1.bf16.msra.mxu1 %v4523_v23  ;;  %v4621_v22 = vld [vmem:[%s4755_s11 + $0xba4] ss:$16 sps:$4 sm:$0xff]   ;;  %v4624_v23 = vld [vmem:[%s4755_s11 + $0xbac] ss:$16 sps:$4 sm:$0xff]  }
 0x168   : > { %2999 = vmatprep.subr.bf16.mxu0 %v4528_v24  ;;  %3257 = vmatprep.subr.bf16.mxu1 %v4531_v25  ;;  %v4619_v24 = vld [vmem:[%s4755_s11 + $0xba0] ss:$16 sps:$4 sm:$0xff]   ;;  %v4622_v25 = vld [vmem:[%s4755_s11 + $0xba8] ss:$16 sps:$4 sm:$0xff]  }
 0x16b   : > { %3000 = vmatpush1.bf16.msra.mxu0 %v4526_v26  ;;  %3258 = vmatpush1.bf16.msra.mxu1 %v4529_v27  ;;  %v4627_v26 = vld [vmem:[%s4755_s11 + $0xbc4] ss:$16 sps:$4 sm:$0xff]   ;;  %v4630_v27 = vld [vmem:[%s4755_s11 + $0xbcc] ss:$16 sps:$4 sm:$0xff]  }
 0x16c   : > { %3001 = vmatprep.subr.bf16.mxu0 %v4534_v28  ;;  %3259 = vmatprep.subr.bf16.mxu1 %v4537_v29  ;;  %v4625_v28 = vld [vmem:[%s4755_s11 + $0xbc0] ss:$16 sps:$4 sm:$0xff]   ;;  %v4628_v29 = vld [vmem:[%s4755_s11 + $0xbc8] ss:$16 sps:$4 sm:$0xff]  }
 0x16f   : > { %3002 = vmatpush1.bf16.msra.mxu0 %v4532_v30  ;;  %3260 = vmatpush1.bf16.msra.mxu1 %v4535_v31  ;;  %v4633_v30 = vld [vmem:[%s4755_s11 + $0xbe4] ss:$16 sps:$4 sm:$0xff]   ;;  %v4636_v31 = vld [vmem:[%s4755_s11 + $0xbec] ss:$16 sps:$4 sm:$0xff]  }
 0x170   : > { %3014 = vmatprep.subr.bf16.mxu0 %v4543_v32  ;;  %3272 = vmatprep.subr.bf16.mxu1 %v4546_v33  ;;  %v4631_v32 = vld [vmem:[%s4755_s11 + $0xbe0] ss:$16 sps:$4 sm:$0xff]   ;;  %v4634_v33 = vld [vmem:[%s4755_s11 + $0xbe8] ss:$16 sps:$4 sm:$0xff]  }
 0x172   : > { %3004 = vmatmul.mubr.bf16.vlgmr.msra.gmra.mrb[0].mxu0 %v4538_v34  ;;  %3262 = vmatmul.mubr.bf16.vlgmr.msra.gmra.mrb[0].mxu1 %v4538_v34  ;;  %v4637_v34 = vld [vmem:[%s4757_s12 + $0x28] ss:$48 sps:$4 sm:$0xff]  }
 0x173   : > { %3015 = vmatpush1.bf16.msra.mxu0 %v4541_v35  ;;  %3273 = vmatpush1.bf16.msra.mxu1 %v4544_v36  ;;  %v415_v35 = vld [vmem:[#allocation2] sm:$0xff]  ;;  %v417_v36 = vld [vmem:[#allocation2 + $0x10] sm:$0xff] }
 0x174   : > { %3016 = vmatprep.subr.bf16.mxu0 %v4549_v37  ;;  %3274 = vmatprep.subr.bf16.mxu1 %v4552_v38  ;;  %v416_v37 = vld [vmem:[#allocation2 + $0x8] sm:$0xff]  ;;  %v418_v38 = vld [vmem:[#allocation2 + $0x18] sm:$0xff] }
 0x175   : > { %3046 = vmatprep.mubr.bf16.mxu0 %v4639_v39  ;;  %3304 = vmatprep.mubr.bf16.mxu1 %v4639_v39 }
 0x177   : > { %3017 = vmatpush1.bf16.msra.mxu0 %v4547_v40  ;;  %3275 = vmatpush1.bf16.msra.mxu1 %v4550_v41  ;;  %v419_v41 = vld [vmem:[#allocation2 + $0x20] sm:$0xff] }
 0x178   : > { %3018 = vmatprep.subr.bf16.mxu0 %v4555_v42  ;;  %3276 = vmatprep.subr.bf16.mxu1 %v4558_v43  ;;  %v421_v42 = vld [vmem:[#allocation2 + $0x30] sm:$0xff] }
 0x17b   : > { %3019 = vmatpush1.bf16.msra.mxu0 %v4553_v44  ;;  %3277 = vmatpush1.bf16.msra.mxu1 %v4556_v45 }
 0x17c   : > { %3020 = vmatprep.subr.bf16.mxu0 %v4561_v46  ;;  %3278 = vmatprep.subr.bf16.mxu1 %v4564_v47  ;;  %v420_v47 = vld [vmem:[#allocation2 + $0x28] sm:$0xff] }
 0x17f   : > { %3021 = vmatpush1.bf16.msra.mxu0 %v4559_v48  ;;  %3279 = vmatpush1.bf16.msra.mxu1 %v4562_v49  ;;  %v422_v48 = vld [vmem:[#allocation2 + $0x38] sm:$0xff] }
 0x180   : > { %3022 = vmatprep.subr.bf16.mxu0 %v4567_v50  ;;  %3280 = vmatprep.subr.bf16.mxu1 %v4570_v51 }
 0x183   : > { %3023 = vmatpush1.bf16.msra.mxu0 %v4565_v52  ;;  %3281 = vmatpush1.bf16.msra.mxu1 %v4568_v53 }
 0x184   : > { %3024 = vmatprep.subr.bf16.mxu0 %v4573_v54  ;;  %3282 = vmatprep.subr.bf16.mxu1 %v4576_v55 }
 0x187   : > { %3025 = vmatpush1.bf16.msra.mxu0 %v4571_v56  ;;  %3283 = vmatpush1.bf16.msra.mxu1 %v4574_v57 }
 0x188   : > { %3026 = vmatprep.subr.bf16.mxu0 %v4579_v58  ;;  %3284 = vmatprep.subr.bf16.mxu1 %v4582_v59 }
 0x18b   : > { %3027 = vmatpush1.bf16.msra.mxu0 %v4577_v60  ;;  %3285 = vmatpush1.bf16.msra.mxu1 %v4580_v61  ;;  %v3343_v61 = vld [vmem:[%s5202_s3] sm:$0xff] (!%p3949_p11) }
 0x18c   : > { %3028 = vmatprep.subr.bf16.mxu0 %v4585_v62  ;;  %3286 = vmatprep.subr.bf16.mxu1 %v4588_v63  ;;  %v3347_v62 = vunpack.c.l.bf16 (!%p3949_p11), %v3343_v61  ;;  %v3348_v63 = vunpack.c.h.bf16 (!%p3949_p11), %v3343_v61 }
 0x18f   : > { %3029 = vmatpush1.bf16.msra.mxu0 %v4583_v0  ;;  %3287 = vmatpush1.bf16.msra.mxu1 %v4586_v1 }
 0x190   : > { %3030 = vmatprep.subr.bf16.mxu0 %v4591_v2  ;;  %3288 = vmatprep.subr.bf16.mxu1 %v4594_v3  ;;  %v3344_v2 = vld [vmem:[%s5202_s3 + $0x8] sm:$0xff] (!%p3949_p11) }
 0x191   : > { %v3349_v3 = vunpack.c.l.bf16 (!%p3949_p11), %v3344_v2 }
 0x193   : > { %3031 = vmatpush1.bf16.msra.mxu0 %v4589_v4  ;;  %3289 = vmatpush1.bf16.msra.mxu1 %v4592_v5  ;;  %v3350_v4 = vunpack.c.h.bf16 (!%p3949_p11), %v3344_v2 }
 0x194   : > { %3032 = vmatprep.subr.bf16.mxu0 %v4597_v6  ;;  %3290 = vmatprep.subr.bf16.mxu1 %v4600_v7  ;;  %v3345_v7 = vld [vmem:[%s5202_s3 + $0x10] sm:$0xff] (!%p3949_p11) }
 0x197   : > { %3033 = vmatpush1.bf16.msra.mxu0 %v4595_v8  ;;  %3291 = vmatpush1.bf16.msra.mxu1 %v4598_v9 }
 0x198   : > { %3034 = vmatprep.subr.bf16.mxu0 %v4603_v10  ;;  %3292 = vmatprep.subr.bf16.mxu1 %v4606_v11  ;;  %v3351_v10 = vunpack.c.l.bf16 (!%p3949_p11), %v3345_v7  ;;  %v3352_v11 = vunpack.c.h.bf16 (!%p3949_p11), %v3345_v7 }
 0x19b   : > { %3035 = vmatpush1.bf16.msra.mxu0 %v4601_v12  ;;  %3293 = vmatpush1.bf16.msra.mxu1 %v4604_v13 }
 0x19c   : > { %3036 = vmatprep.subr.bf16.mxu0 %v4609_v14  ;;  %3294 = vmatprep.subr.bf16.mxu1 %v4612_v15  ;;  %v3346_v14 = vld [vmem:[%s5202_s3 + $0x18] sm:$0xff] (!%p3949_p11) }
 0x19f   : > { %3037 = vmatpush1.bf16.msra.mxu0 %v4607_v16  ;;  %3295 = vmatpush1.bf16.msra.mxu1 %v4610_v17  ;;  %v3353_v17 = vunpack.c.l.bf16 (!%p3949_p11), %v3346_v14 }
 0x1a0   : > { %3038 = vmatprep.subr.bf16.mxu0 %v4615_v18  ;;  %3296 = vmatprep.subr.bf16.mxu1 %v4618_v19  ;;  %v3354_v18 = vunpack.c.h.bf16 (!%p3949_p11), %v3346_v14 }
 0x1a3   : > { %3039 = vmatpush1.bf16.msra.mxu0 %v4613_v20  ;;  %3297 = vmatpush1.bf16.msra.mxu1 %v4616_v21 }
 0x1a4   : > { %3040 = vmatprep.subr.bf16.mxu0 %v4621_v22  ;;  %3298 = vmatprep.subr.bf16.mxu1 %v4624_v23 }
 0x1a7   : > { %3041 = vmatpush1.bf16.msra.mxu0 %v4619_v24  ;;  %3299 = vmatpush1.bf16.msra.mxu1 %v4622_v25 }
 0x1a8   : > { %3042 = vmatprep.subr.bf16.mxu0 %v4627_v26  ;;  %3300 = vmatprep.subr.bf16.mxu1 %v4630_v27 }
 0x1ab   : > { %3043 = vmatpush1.bf16.msra.mxu0 %v4625_v28  ;;  %3301 = vmatpush1.bf16.msra.mxu1 %v4628_v29 }
 0x1ac   : > { %3044 = vmatprep.subr.bf16.mxu0 %v4633_v30  ;;  %3302 = vmatprep.subr.bf16.mxu1 %v4636_v31 }
 0x1af   : > { %3045 = vmatpush1.bf16.msra.mxu0 %v4631_v32  ;;  %3303 = vmatpush1.bf16.msra.mxu1 %v4634_v33 }
 0x1b2   : > { %3047 = vmatmul.mubr.bf16.vlgmr.msra.gmra.mrb[0].mxu0 %v4637_v34  ;;  %3305 = vmatmul.mubr.bf16.vlgmr.msra.gmra.mrb[0].mxu1 %v4637_v34 }
 0x285   : > { %v3048_v39 = vpop.f32.mrb[0].mxu0  ;;  %v3306_v40 = vpop.f32.mrb[0].mxu1  ;;  %3334 = sbr.rel (%p3949_p11) target bundleno = 666 (0x29a), region = 67 }
 0x286   : > { %v3315_v43 = vadd.f32 %v3048_v39, %v415_v35  ;;  %v3317_v44 = vadd.f32 %v3306_v40, %v417_v36  ;;  %v3050_v45 = vpop.f32.mrb[1].mxu0  ;;  %v3308_v46 = vpop.f32.mrb[1].mxu1 }
 0x287   : > { %v3316_v49 = vadd.f32 %v3050_v45, %v416_v37  ;;  %v3318_v50 = vadd.f32 %v3308_v46, %v418_v38  ;;  %v3052_v51 = vpop.f32.mrb[2].mxu0  ;;  %v3310_v52 = vpop.f32.mrb[2].mxu1 }
 0x288   : > { %3323 = vst [vmem:[#allocation2] sm:$0xff] %v3315_v43  ;;  %3325 = vst [vmem:[#allocation2 + $0x10] sm:$0xff] %v3317_v44  ;;  %v3319_v53 = vadd.f32 %v3052_v51, %v419_v41  ;;  %v3321_v54 = vadd.f32 %v3310_v52, %v421_v42  ;;  %v3054_v55 = vpop.f32.mrb[3].mxu0  ;;  %v3312_v56 = vpop.f32.mrb[3].mxu1 }
 0x289   : > { %3324 = vst [vmem:[#allocation2 + $0x8] sm:$0xff] %v3316_v49  ;;  %3326 = vst [vmem:[#allocation2 + $0x18] sm:$0xff] %v3318_v50  ;;  %v3320_v57 = vadd.f32 %v3054_v55, %v420_v47  ;;  %v3322_v58 = vadd.f32 %v3312_v56, %v422_v48 }
 0x28a   : > { %3327 = vst [vmem:[#allocation2 + $0x20] sm:$0xff] %v3319_v53  ;;  %3329 = vst [vmem:[#allocation2 + $0x30] sm:$0xff] %v3321_v54 }
 0x28b   : > { %3328 = vst [vmem:[#allocation2 + $0x28] sm:$0xff] %v3320_v57  ;;  %3330 = vst [vmem:[#allocation2 + $0x38] sm:$0xff] %v3322_v58 }
 0x28f   : > { %v3335_v59 = vld [vmem:[#allocation2] sm:$0xff]  ;;  %v3337_v0 = vld [vmem:[#allocation2 + $0x10] sm:$0xff] }
 0x290   : > { %v3336_v60 = vld [vmem:[#allocation2 + $0x8] sm:$0xff]  ;;  %v3338_v1 = vld [vmem:[#allocation2 + $0x18] sm:$0xff]  ;;  %v3355_v8 = vadd.f32 %v3347_v62, %v3335_v59  ;;  %v3357_v15 = vadd.f32 %v3349_v3, %v3337_v0 }
 0x291   : > { %v3339_v5 = vld [vmem:[#allocation2 + $0x20] sm:$0xff]  ;;  %v3356_v9 = vadd.f32 %v3348_v63, %v3336_v60  ;;  %v3341_v12 = vld [vmem:[#allocation2 + $0x30] sm:$0xff]  ;;  %v3358_v16 = vadd.f32 %v3350_v4, %v3338_v1 }
 0x292   : > { %v3340_v6 = vld [vmem:[#allocation2 + $0x28] sm:$0xff]  ;;  %v3342_v13 = vld [vmem:[#allocation2 + $0x38] sm:$0xff]  ;;  %v3363_v19 = vmax.f32 %v3355_v8, 0.0  ;;  %v3359_v21 = vadd.f32 %v3351_v10, %v3339_v5  ;;  %v3365_v23 = vmax.f32 %v3357_v15, 0.0  ;;  %v3361_v25 = vadd.f32 %v3353_v17, %v3341_v12 }
 0x293   : > { %v3364_v20 = vmax.f32 %v3356_v9, 0.0  ;;  %v3360_v22 = vadd.f32 %v3352_v11, %v3340_v6  ;;  %v3366_v24 = vmax.f32 %v3358_v16, 0.0  ;;  %v3362_v26 = vadd.f32 %v3354_v18, %v3342_v13 }
 0x294   : > { %v3367_v28 = vmax.f32 %v3359_v21, 0.0  ;;  %v3369_v31 = vmax.f32 %v3361_v25, 0.0 }
 0x295   : > { %v3960_v27 = vpack.c.bf16 %v3364_v20, %v3363_v19  ;;  %v3368_v29 = vmax.f32 %v3360_v22, 0.0  ;;  %v3961_v30 = vpack.c.bf16 %v3366_v24, %v3365_v23  ;;  %v3370_v32 = vmax.f32 %v3362_v26, 0.0 }
 0x297   : > { %3395 = vst [vmem:[%s5203_s4] sm:$0xff] %v3960_v27  ;;  %v3962_v33 = vpack.c.bf16 %v3368_v29, %v3367_v28  ;;  %3396 = vst [vmem:[%s5203_s4 + $0x8] sm:$0xff] %v3961_v30  ;;  %v3963_v34 = vpack.c.bf16 %v3370_v32, %v3369_v31 }
 0x299   : > { %3397 = vst [vmem:[%s5203_s4 + $0x10] sm:$0xff] %v3962_v33  ;;  %3398 = vst [vmem:[%s5203_s4 + $0x18] sm:$0xff] %v3963_v34 }
 0x29a PF: > { %s14_s19 = sadd.s32 1, %s4678_s19   ;;  %s5204_s15 = smov %s4666_s16 }
 0x29b   : > { %p11_p12 = scmp.ge.s32.totalorder %s14_s19, 5   ;;  %s5205_s16 = smov %s4740_s23 }
 0x29c   : > { %s5206_s17 = smov %s4674_s18  ;;  %s5207_s18 = smov %s5209_s20 }
 0x29d   :  { %13 = sbr.rel (!%p11_p12) target bundleno = 3 (0x3), region = 111 }

// kernel: _lambda_.38
= control target key start
LH: loop header
LB: loop body
LE: loop exit
PB: predicated region body
PF: predicated region fallthrough
CT: control target
= control target key end

     0   :  { %s4590_s12 = smov 0   ;;  %s4592_s13 = smov 0   ;;  %s5072_s0 = inlined_call_operand.vmem [shape: bf16[16,4608], index: 0, kind: input, shape index: {}]   ;;  %s5073_s1 = inlined_call_operand.vmem [shape: bf16[4608,512], index: 1, kind: input, shape index: {}]   ;;  %s5074_s2 = inlined_call_operand.vmem [shape: f32[1,512], index: 2, kind: input, shape index: {}]   ;;  %s5075_s3 = inlined_call_operand.vmem [shape: bf16[16,512], index: 3, kind: output, shape index: {}]  }
   0x1   :  { %s4594_s14 = smov 0   ;;  %s4596_s15 = smov 0  }
   0x2   :  { %s4598_s16 = smov 0  }
   0x3 LB: > { %s25_s17 = sadd.s32 1, %s4564_s15  ;;  %p48_p1 = scmp.ne.s32.totalorder %s4556_s13, %s4552_s12  ;;  %s4568_s16 = sphi %s4598_s16, %s13_s16   ;;  %s4564_s15 = sphi %s4596_s15, %s5079_s15   ;;  %s4560_s14 = sphi %s4594_s14, %s5078_s14   ;;  %s4556_s13 = sphi %s4592_s13, %s5077_s13   ;;  %s4552_s12 = sphi %s4590_s12, %s5076_s12  }
   0x4   : > { %p26_p0 = scmp.ge.s32.totalorder %s25_s17, 3  ;;  %p49_p2 = scmp.eq.s32.totalorder %s4568_s16, 0 }
   0x5   : > { %s41_s19 = sadd.s32 1, %s4556_s13  ;;  %p3437_p5 = scmp.ge.s32.totalorder %s4568_s16, 3 }
   0x6   : > { %s5081_s17 = smov (%p26_p0, %s25_s17), 0  ;;  %p50_p3 = por %p49_p2, %p48_p1 }
   0x7   : > { %s37_s18 = ssub.s32 %s4564_s15, %s5081_s17  ;;  %164 = sbr.rel (%p3437_p5) target bundleno = 25 (0x19), region = 20 }
   0x8   : > { %p39_p4 = scmp.eq.s32.totalorder %s37_s18, 0 }
   0xa   : > { %s4625_s20 = scalar_select %p39_p4, %s4556_s13, %s41_s19  }
   0xe   : > { %167 = sbr.rel (!%p50_p3) target bundleno = 25 (0x19), region = 24  ;;  %s169_s21 = sand.u32 (%p50_p3), 1, %s4556_s13  }
   0xf   : > { %s3848_s22 = smul.u32 (%p50_p3), 48, %s4564_s15 }
  0x10   : > { %s3894_s23 = smul.u32 (%p50_p3), 96, %s169_s21 }
  0x11   : > { %s177_s26 = scalar_lea.vmem (%p50_p3), %s5072_s0, %s3848_s22 }
  0x12   : > { %v190_v0 = vld [vmem:[%s177_s26] sm:$0xff] (%p50_p3)  ;;  %v192_v1 = vld [vmem:[%s177_s26 + $0x8] sm:$0xff] (%p50_p3)  ;;  %v194_v2 = vld [vmem:[%s177_s26 + $0x10] sm:$0xff] (%p50_p3)  ;;  %s171_s27 = scalar_lea.vmem (%p50_p3), [#allocation3], %s3894_s23 }
  0x13   : > { %191 = vst [vmem:[%s171_s27] sm:$0xff] (%p50_p3), %v190_v0  ;;  %193 = vst [vmem:[%s171_s27 + $0x8] sm:$0xff] (%p50_p3), %v192_v1  ;;  %v196_v3 = vld [vmem:[%s177_s26 + $0x18] sm:$0xff] (%p50_p3)  ;;  %v198_v4 = vld [vmem:[%s177_s26 + $0x20] sm:$0xff] (%p50_p3) }
  0x14   : > { %195 = vst [vmem:[%s171_s27 + $0x10] sm:$0xff] (%p50_p3), %v194_v2  ;;  %v200_v5 = vld [vmem:[%s177_s26 + $0x28] sm:$0xff] (%p50_p3)  ;;  %197 = vst [vmem:[%s171_s27 + $0x18] sm:$0xff] (%p50_p3), %v196_v3  ;;  %v202_v6 = vld [vmem:[%s177_s26 + $0x90] sm:$0xff] (%p50_p3) }
  0x15   : > { %199 = vst [vmem:[%s171_s27 + $0x20] sm:$0xff] %v198_v4  ;;  %201 = vst [vmem:[%s171_s27 + $0x28] sm:$0xff] %v200_v5  ;;  %v204_v7 = vld [vmem:[%s177_s26 + $0x98] sm:$0xff]  ;;  %v206_v8 = vld [vmem:[%s177_s26 + $0xa0] sm:$0xff] }
  0x16   : > { %203 = vst [vmem:[%s171_s27 + $0x30] sm:$0xff] %v202_v6  ;;  %205 = vst [vmem:[%s171_s27 + $0x38] sm:$0xff] %v204_v7  ;;  %v208_v9 = vld [vmem:[%s177_s26 + $0xa8] sm:$0xff]  ;;  %v210_v10 = vld [vmem:[%s177_s26 + $0xb0] sm:$0xff] }
  0x17   : > { %207 = vst [vmem:[%s171_s27 + $0x40] sm:$0xff] %v206_v8  ;;  %v212_v11 = vld [vmem:[%s177_s26 + $0xb8] sm:$0xff]  ;;  %209 = vst [vmem:[%s171_s27 + $0x48] sm:$0xff] %v208_v9 }
  0x18   : > { %211 = vst [vmem:[%s171_s27 + $0x50] sm:$0xff] %v210_v10  ;;  %213 = vst [vmem:[%s171_s27 + $0x58] sm:$0xff] %v212_v11 }
  0x19 PF: > { %p3439_p6 = scmp.ge.s32.totalorder %s4568_s16, 1  ;;  %p233_p7 = scmp.lt.s32.totalorder %s4568_s16, 4 }
  0x1b   : > { %p234_p8 = pnand %p3439_p6, %p233_p7 }
  0x1c   : > { %s240_s28 = sand.u32 (!%p234_p8), 1, %s4552_s12   ;;  %s284_s29 = smul.u32 (!%p234_p8), 192, %s4560_s14 }
  0x1d   : > { %237 = sbr.rel (%p234_p8) target bundleno = 664 (0x298), region = 51  ;;  %p3442_p10 = scmp.ne.s32.totalorder (!%p234_p8), %s4560_s14, 0 }
  0x1e   : > { %s3895_s30 = smul.u32 (!%p234_p8), 96, %s240_s28  ;;  %p286_p9 = scmp.lt.s32.totalorder (!%p234_p8), %s284_s29, 575 }
  0x20   : > { %s4642_s8 = scalar_lea.vmem (!%p234_p8), [#allocation3], %s3895_s30 }
  0x24   : > { %s5083_s29 = smov (!%p286_p9, %s284_s29), 575  ;;  %316 = sbr.rel (%p3442_p10) target bundleno = 49 (0x31), region = 59 }
  0x25   : > { %s3849_s4 = sshll.u32 %s5083_s29, 4  ;;  %v319_v12 = vlaneseq (!%p3442_p10)  ;;  %v317_v14 = vld [vmem:[%s5074_s2] sm:$0xf] (!%p3442_p10) }
  0x26   : > { %s4640_s7 = scalar_lea.vmem %s5073_s1, %s3849_s4 }
  0x27   : > { %v320_v13 = vshrl.u32 (!%p3442_p10), %v319_v12, 7 }
  0x29   : > { %v321_v15 = vsub.s32 (!%p3442_p10), 0, %v320_v13  ;;  %v325_v16 = vsub.s32 (!%p3442_p10), 1, %v320_v13  ;;  %v329_v17 = vsub.s32 (!%p3442_p10), 2, %v320_v13  ;;  %v333_v18 = vsub.s32 (!%p3442_p10), 3, %v320_v13 }
  0x2b   : > { %v322_v19 = vrot.slane %v317_v14, %v321_v15  ;;  %v326_v20 = vrot.slane %v317_v14, %v325_v16  ;;  %v330_v21 = vrot.slane %v317_v14, %v329_v17  ;;  %v334_v22 = vrot.slane %v317_v14, %v333_v18 }
  0x2d   : > { %339 = vst [vmem:[#allocation2] sm:$0xff] %v322_v19  ;;  %343 = vst [vmem:[#allocation2 + $0x20] sm:$0xff] %v322_v19 }
  0x2e   : > { %340 = vst [vmem:[#allocation2 + $0x8] sm:$0xff] %v326_v20  ;;  %344 = vst [vmem:[#allocation2 + $0x28] sm:$0xff] %v326_v20 }
  0x2f   : > { %341 = vst [vmem:[#allocation2 + $0x10] sm:$0xff] %v330_v21  ;;  %345 = vst [vmem:[#allocation2 + $0x30] sm:$0xff] %v330_v21 }
  0x30   : > { %342 = vst [vmem:[#allocation2 + $0x18] sm:$0xff] %v334_v22  ;;  %346 = vst [vmem:[#allocation2 + $0x38] sm:$0xff] %v334_v22 }
  0x31 PF: > { %v3936_v23 = vld [vmem:[%s4640_s7 + $0x4] ss:$16 sps:$4 sm:$0xff]   ;;  %v3938_v24 = vld [vmem:[%s4640_s7 + $0xc] ss:$16 sps:$4 sm:$0xff]   ;;  %v3940_v25 = vld [vmem:[%s4640_s7] ss:$16 sps:$4 sm:$0xff]  }
  0x32   : > { %2731 = vmatprep.subr.bf16.mxu0 %v3936_v23  ;;  %v3941_v26 = vld [vmem:[%s4640_s7 + $0x8] ss:$16 sps:$4 sm:$0xff]   ;;  %2989 = vmatprep.subr.bf16.mxu1 %v3938_v24  ;;  %v3942_v27 = vld [vmem:[%s4640_s7 + $0x24] ss:$16 sps:$4 sm:$0xff]   ;;  %v3944_v28 = vld [vmem:[%s4640_s7 + $0x2c] ss:$16 sps:$4 sm:$0xff]  }
  0x33   : > { %2732 = vmatpush1.bf16.msra.mxu0 %v3940_v25  ;;  %2990 = vmatpush1.bf16.msra.mxu1 %v3941_v26  ;;  %v3946_v29 = vld [vmem:[%s4640_s7 + $0x20] ss:$16 sps:$4 sm:$0xff]   ;;  %v3947_v30 = vld [vmem:[%s4640_s7 + $0x28] ss:$16 sps:$4 sm:$0xff]   ;;  %v3948_v31 = vld [vmem:[%s4640_s7 + $0x44] ss:$16 sps:$4 sm:$0xff]  }
  0x34   : > { %2733 = vmatprep.subr.bf16.mxu0 %v3942_v27  ;;  %2991 = vmatprep.subr.bf16.mxu1 %v3944_v28  ;;  %v3950_v32 = vld [vmem:[%s4640_s7 + $0x4c] ss:$16 sps:$4 sm:$0xff]   ;;  %v3952_v33 = vld [vmem:[%s4640_s7 + $0x40] ss:$16 sps:$4 sm:$0xff]   ;;  %v3953_v34 = vld [vmem:[%s4640_s7 + $0x48] ss:$16 sps:$4 sm:$0xff]  }
  0x35   : > { %v3954_v35 = vld [vmem:[%s4640_s7 + $0x64] ss:$16 sps:$4 sm:$0xff]   ;;  %v3956_v36 = vld [vmem:[%s4640_s7 + $0x6c] ss:$16 sps:$4 sm:$0xff]   ;;  %v3958_v37 = vld [vmem:[%s4640_s7 + $0x60] ss:$16 sps:$4 sm:$0xff]  }
  0x36   : > { %v3959_v38 = vld [vmem:[%s4640_s7 + $0x68] ss:$16 sps:$4 sm:$0xff]   ;;  %v3960_v39 = vld [vmem:[%s4640_s7 + $0x84] ss:$16 sps:$4 sm:$0xff]   ;;  %v3962_v40 = vld [vmem:[%s4640_s7 + $0x8c] ss:$16 sps:$4 sm:$0xff]  }
  0x37   : > { %2734 = vmatpush1.bf16.msra.mxu0 %v3946_v29  ;;  %2992 = vmatpush1.bf16.msra.mxu1 %v3947_v30  ;;  %v3964_v41 = vld [vmem:[%s4640_s7 + $0x80] ss:$16 sps:$4 sm:$0xff]   ;;  %v3965_v42 = vld [vmem:[%s4640_s7 + $0x88] ss:$16 sps:$4 sm:$0xff]   ;;  %v3966_v43 = vld [vmem:[%s4640_s7 + $0xa4] ss:$16 sps:$4 sm:$0xff]  }
  0x38   : > { %2735 = vmatprep.subr.bf16.mxu0 %v3948_v31  ;;  %2993 = vmatprep.subr.bf16.mxu1 %v3950_v32  ;;  %v3968_v44 = vld [vmem:[%s4640_s7 + $0xac] ss:$16 sps:$4 sm:$0xff]   ;;  %v3970_v45 = vld [vmem:[%s4640_s7 + $0xa0] ss:$16 sps:$4 sm:$0xff]   ;;  %v3971_v46 = vld [vmem:[%s4640_s7 + $0xa8] ss:$16 sps:$4 sm:$0xff]  }
  0x39   : > { %v3972_v47 = vld [vmem:[%s4640_s7 + $0xc4] ss:$16 sps:$4 sm:$0xff]   ;;  %v3974_v48 = vld [vmem:[%s4640_s7 + $0xcc] ss:$16 sps:$4 sm:$0xff]   ;;  %v3976_v49 = vld [vmem:[%s4640_s7 + $0xc0] ss:$16 sps:$4 sm:$0xff]  }
  0x3a   : > { %v3977_v50 = vld [vmem:[%s4640_s7 + $0xc8] ss:$16 sps:$4 sm:$0xff]   ;;  %v3978_v51 = vld [vmem:[%s4640_s7 + $0xe4] ss:$16 sps:$4 sm:$0xff]   ;;  %v3980_v52 = vld [vmem:[%s4640_s7 + $0xec] ss:$16 sps:$4 sm:$0xff]  }
  0x3b   : > { %2736 = vmatpush1.bf16.msra.mxu0 %v3952_v33  ;;  %2994 = vmatpush1.bf16.msra.mxu1 %v3953_v34  ;;  %v3982_v53 = vld [vmem:[%s4640_s7 + $0xe0] ss:$16 sps:$4 sm:$0xff]   ;;  %v3983_v54 = vld [vmem:[%s4640_s7 + $0xe8] ss:$16 sps:$4 sm:$0xff]   ;;  %v3984_v55 = vld [vmem:[%s4640_s7 + $0x104] ss:$16 sps:$4 sm:$0xff]  }
  0x3c   : > { %2737 = vmatprep.subr.bf16.mxu0 %v3954_v35  ;;  %2995 = vmatprep.subr.bf16.mxu1 %v3956_v36  ;;  %v3986_v56 = vld [vmem:[%s4640_s7 + $0x10c] ss:$16 sps:$4 sm:$0xff]   ;;  %v3988_v57 = vld [vmem:[%s4640_s7 + $0x100] ss:$16 sps:$4 sm:$0xff]   ;;  %v3989_v58 = vld [vmem:[%s4640_s7 + $0x108] ss:$16 sps:$4 sm:$0xff]  }
  0x3d   : > { %v3990_v59 = vld [vmem:[%s4640_s7 + $0x124] ss:$16 sps:$4 sm:$0xff]   ;;  %v3992_v60 = vld [vmem:[%s4640_s7 + $0x12c] ss:$16 sps:$4 sm:$0xff]   ;;  %v3994_v61 = vld [vmem:[%s4640_s7 + $0x120] ss:$16 sps:$4 sm:$0xff]  }
  0x3e   : > { %v3995_v62 = vld [vmem:[%s4640_s7 + $0x128] ss:$16 sps:$4 sm:$0xff]   ;;  %v3996_v63 = vld [vmem:[%s4640_s7 + $0x144] ss:$16 sps:$4 sm:$0xff]   ;;  %v3998_v0 = vld [vmem:[%s4640_s7 + $0x14c] ss:$16 sps:$4 sm:$0xff]  }
  0x3f   : > { %2738 = vmatpush1.bf16.msra.mxu0 %v3958_v37  ;;  %2996 = vmatpush1.bf16.msra.mxu1 %v3959_v38  ;;  %v4000_v1 = vld [vmem:[%s4640_s7 + $0x140] ss:$16 sps:$4 sm:$0xff]   ;;  %v4001_v2 = vld [vmem:[%s4640_s7 + $0x148] ss:$16 sps:$4 sm:$0xff]   ;;  %v4002_v3 = vld [vmem:[%s4640_s7 + $0x164] ss:$16 sps:$4 sm:$0xff]  }
  0x40   : > { %2739 = vmatprep.subr.bf16.mxu0 %v3960_v39  ;;  %2997 = vmatprep.subr.bf16.mxu1 %v3962_v40  ;;  %v4004_v4 = vld [vmem:[%s4640_s7 + $0x16c] ss:$16 sps:$4 sm:$0xff]   ;;  %v4006_v5 = vld [vmem:[%s4640_s7 + $0x160] ss:$16 sps:$4 sm:$0xff]   ;;  %v4007_v6 = vld [vmem:[%s4640_s7 + $0x168] ss:$16 sps:$4 sm:$0xff]  }
  0x41   : > { %v4034_v7 = vld [vmem:[%s4642_s8 + $0x4] ss:$48 sps:$4 sm:$0xff]   ;;  %v4010_v9 = vld [vmem:[%s4640_s7 + $0x18c] ss:$16 sps:$4 sm:$0xff]   ;;  %v4012_v10 = vld [vmem:[%s4640_s7 + $0x180] ss:$16 sps:$4 sm:$0xff]  }
  0x42   : > { %v4008_v8 = vld [vmem:[%s4640_s7 + $0x184] ss:$16 sps:$4 sm:$0xff]   ;;  %2763 = vmatprep.mubr.bf16.mxu0 %v4034_v7  ;;  %3021 = vmatprep.mubr.bf16.mxu1 %v4034_v7  ;;  %v4013_v11 = vld [vmem:[%s4640_s7 + $0x188] ss:$16 sps:$4 sm:$0xff]   ;;  %v4016_v13 = vld [vmem:[%s4640_s7 + $0x1ac] ss:$16 sps:$4 sm:$0xff]  }
  0x43   : > { %2740 = vmatpush1.bf16.msra.mxu0 %v3964_v41  ;;  %2998 = vmatpush1.bf16.msra.mxu1 %v3965_v42  ;;  %v4014_v12 = vld [vmem:[%s4640_s7 + $0x1a4] ss:$16 sps:$4 sm:$0xff]   ;;  %v4018_v14 = vld [vmem:[%s4640_s7 + $0x1a0] ss:$16 sps:$4 sm:$0xff]   ;;  %v4019_v15 = vld [vmem:[%s4640_s7 + $0x1a8] ss:$16 sps:$4 sm:$0xff]  }
  0x44   : > { %2741 = vmatprep.subr.bf16.mxu0 %v3966_v43  ;;  %2999 = vmatprep.subr.bf16.mxu1 %v3968_v44  ;;  %v4020_v16 = vld [vmem:[%s4640_s7 + $0x1c4] ss:$16 sps:$4 sm:$0xff]   ;;  %v4022_v17 = vld [vmem:[%s4640_s7 + $0x1cc] ss:$16 sps:$4 sm:$0xff]   ;;  %v4024_v18 = vld [vmem:[%s4640_s7 + $0x1c0] ss:$16 sps:$4 sm:$0xff]  }
  0x45   : > { %v4025_v19 = vld [vmem:[%s4640_s7 + $0x1c8] ss:$16 sps:$4 sm:$0xff]   ;;  %v4026_v20 = vld [vmem:[%s4640_s7 + $0x1e4] ss:$16 sps:$4 sm:$0xff]   ;;  %v4028_v21 = vld [vmem:[%s4640_s7 + $0x1ec] ss:$16 sps:$4 sm:$0xff]  }
  0x46   : > { %v4030_v22 = vld [vmem:[%s4640_s7 + $0x1e0] ss:$16 sps:$4 sm:$0xff]   ;;  %v4031_v23 = vld [vmem:[%s4640_s7 + $0x1e8] ss:$16 sps:$4 sm:$0xff]   ;;  %v4037_v24 = vld [vmem:[%s4640_s7 + $0x204] ss:$16 sps:$4 sm:$0xff]  }
  0x47   : > { %2742 = vmatpush1.bf16.msra.mxu0 %v3970_v45  ;;  %3000 = vmatpush1.bf16.msra.mxu1 %v3971_v46  ;;  %v4040_v25 = vld [vmem:[%s4640_s7 + $0x20c] ss:$16 sps:$4 sm:$0xff]   ;;  %v4032_v26 = vld [vmem:[%s4642_s8] ss:$48 sps:$4 sm:$0xff]   ;;  %v4038_v28 = vld [vmem:[%s4640_s7 + $0x208] ss:$16 sps:$4 sm:$0xff]  }
  0x48   : > { %2743 = vmatprep.subr.bf16.mxu0 %v3972_v47  ;;  %3001 = vmatprep.subr.bf16.mxu1 %v3974_v48  ;;  %v4035_v27 = vld [vmem:[%s4640_s7 + $0x200] ss:$16 sps:$4 sm:$0xff]   ;;  %v4043_v29 = vld [vmem:[%s4640_s7 + $0x224] ss:$16 sps:$4 sm:$0xff]   ;;  %v4046_v30 = vld [vmem:[%s4640_s7 + $0x22c] ss:$16 sps:$4 sm:$0xff]  }
  0x49   : > { %v4041_v31 = vld [vmem:[%s4640_s7 + $0x220] ss:$16 sps:$4 sm:$0xff]   ;;  %v4044_v32 = vld [vmem:[%s4640_s7 + $0x228] ss:$16 sps:$4 sm:$0xff]   ;;  %v4049_v33 = vld [vmem:[%s4640_s7 + $0x244] ss:$16 sps:$4 sm:$0xff]  }
  0x4a   : > { %v4052_v34 = vld [vmem:[%s4640_s7 + $0x24c] ss:$16 sps:$4 sm:$0xff]   ;;  %v4047_v35 = vld [vmem:[%s4640_s7 + $0x240] ss:$16 sps:$4 sm:$0xff]   ;;  %v4050_v36 = vld [vmem:[%s4640_s7 + $0x248] ss:$16 sps:$4 sm:$0xff]  }
  0x4b   : > { %2744 = vmatpush1.bf16.msra.mxu0 %v3976_v49  ;;  %3002 = vmatpush1.bf16.msra.mxu1 %v3977_v50  ;;  %v4055_v37 = vld [vmem:[%s4640_s7 + $0x264] ss:$16 sps:$4 sm:$0xff]   ;;  %v4058_v38 = vld [vmem:[%s4640_s7 + $0x26c] ss:$16 sps:$4 sm:$0xff]   ;;  %v4053_v39 = vld [vmem:[%s4640_s7 + $0x260] ss:$16 sps:$4 sm:$0xff]  }
  0x4c   : > { %2745 = vmatprep.subr.bf16.mxu0 %v3978_v51  ;;  %3003 = vmatprep.subr.bf16.mxu1 %v3980_v52  ;;  %v4056_v40 = vld [vmem:[%s4640_s7 + $0x268] ss:$16 sps:$4 sm:$0xff]   ;;  %v4061_v41 = vld [vmem:[%s4640_s7 + $0x284] ss:$16 sps:$4 sm:$0xff]   ;;  %v4064_v42 = vld [vmem:[%s4640_s7 + $0x28c] ss:$16 sps:$4 sm:$0xff]  }
  0x4d   : > { %v4059_v43 = vld [vmem:[%s4640_s7 + $0x280] ss:$16 sps:$4 sm:$0xff]   ;;  %v4062_v44 = vld [vmem:[%s4640_s7 + $0x288] ss:$16 sps:$4 sm:$0xff]   ;;  %v4067_v45 = vld [vmem:[%s4640_s7 + $0x2a4] ss:$16 sps:$4 sm:$0xff]  }
  0x4e   : > { %v4070_v46 = vld [vmem:[%s4640_s7 + $0x2ac] ss:$16 sps:$4 sm:$0xff]   ;;  %v4065_v47 = vld [vmem:[%s4640_s7 + $0x2a0] ss:$16 sps:$4 sm:$0xff]   ;;  %v4068_v48 = vld [vmem:[%s4640_s7 + $0x2a8] ss:$16 sps:$4 sm:$0xff]  }
  0x4f   : > { %2746 = vmatpush1.bf16.msra.mxu0 %v3982_v53  ;;  %3004 = vmatpush1.bf16.msra.mxu1 %v3983_v54  ;;  %v4073_v49 = vld [vmem:[%s4640_s7 + $0x2c4] ss:$16 sps:$4 sm:$0xff]   ;;  %v4076_v50 = vld [vmem:[%s4640_s7 + $0x2cc] ss:$16 sps:$4 sm:$0xff]   ;;  %v4071_v51 = vld [vmem:[%s4640_s7 + $0x2c0] ss:$16 sps:$4 sm:$0xff]  }
  0x50   : > { %2747 = vmatprep.subr.bf16.mxu0 %v3984_v55  ;;  %3005 = vmatprep.subr.bf16.mxu1 %v3986_v56  ;;  %v4074_v52 = vld [vmem:[%s4640_s7 + $0x2c8] ss:$16 sps:$4 sm:$0xff]   ;;  %v4133_v53 = vld [vmem:[%s4642_s8 + $0xc] ss:$48 sps:$4 sm:$0xff]   ;;  %v4079_v54 = vld [vmem:[%s4640_s7 + $0x2e4] ss:$16 sps:$4 sm:$0xff]  }
  0x51   : > { %v4082_v55 = vld [vmem:[%s4640_s7 + $0x2ec] ss:$16 sps:$4 sm:$0xff]   ;;  %v4077_v56 = vld [vmem:[%s4640_s7 + $0x2e0] ss:$16 sps:$4 sm:$0xff]   ;;  %p3839_p11 = scmp.ne.s32.totalorder %s4560_s14, 2 }
  0x52   : > { %v4106_v7 = vld [vmem:[%s4640_s7 + $0x36c] ss:$16 sps:$4 sm:$0xff]  }
  0x53   : > { %2748 = vmatpush1.bf16.msra.mxu0 %v3988_v57  ;;  %3006 = vmatpush1.bf16.msra.mxu1 %v3989_v58  ;;  %v4080_v57 = vld [vmem:[%s4640_s7 + $0x2e8] ss:$16 sps:$4 sm:$0xff]   ;;  %v4085_v58 = vld [vmem:[%s4640_s7 + $0x304] ss:$16 sps:$4 sm:$0xff]  }
  0x54   : > { %2749 = vmatprep.subr.bf16.mxu0 %v3990_v59  ;;  %3007 = vmatprep.subr.bf16.mxu1 %v3992_v60  ;;  %v4088_v59 = vld [vmem:[%s4640_s7 + $0x30c] ss:$16 sps:$4 sm:$0xff]   ;;  %v4083_v60 = vld [vmem:[%s4640_s7 + $0x300] ss:$16 sps:$4 sm:$0xff]  }
  0x57   : > { %2750 = vmatpush1.bf16.msra.mxu0 %v3994_v61  ;;  %3008 = vmatpush1.bf16.msra.mxu1 %v3995_v62  ;;  %v4086_v61 = vld [vmem:[%s4640_s7 + $0x308] ss:$16 sps:$4 sm:$0xff]   ;;  %v4091_v62 = vld [vmem:[%s4640_s7 + $0x324] ss:$16 sps:$4 sm:$0xff]  }
  0x58   : > { %2751 = vmatprep.subr.bf16.mxu0 %v3996_v63  ;;  %3009 = vmatprep.subr.bf16.mxu1 %v3998_v0  ;;  %v4094_v63 = vld [vmem:[%s4640_s7 + $0x32c] ss:$16 sps:$4 sm:$0xff]   ;;  %v4089_v0 = vld [vmem:[%s4640_s7 + $0x320] ss:$16 sps:$4 sm:$0xff]  }
  0x5b   : > { %2752 = vmatpush1.bf16.msra.mxu0 %v4000_v1  ;;  %3010 = vmatpush1.bf16.msra.mxu1 %v4001_v2  ;;  %v4092_v1 = vld [vmem:[%s4640_s7 + $0x328] ss:$16 sps:$4 sm:$0xff]   ;;  %v4097_v2 = vld [vmem:[%s4640_s7 + $0x344] ss:$16 sps:$4 sm:$0xff]  }
  0x5c   : > { %2753 = vmatprep.subr.bf16.mxu0 %v4002_v3  ;;  %3011 = vmatprep.subr.bf16.mxu1 %v4004_v4  ;;  %v4100_v3 = vld [vmem:[%s4640_s7 + $0x34c] ss:$16 sps:$4 sm:$0xff]   ;;  %v4095_v4 = vld [vmem:[%s4640_s7 + $0x340] ss:$16 sps:$4 sm:$0xff]  }
  0x5f   : > { %2754 = vmatpush1.bf16.msra.mxu0 %v4006_v5  ;;  %3012 = vmatpush1.bf16.msra.mxu1 %v4007_v6  ;;  %v4098_v5 = vld [vmem:[%s4640_s7 + $0x348] ss:$16 sps:$4 sm:$0xff]   ;;  %v4103_v6 = vld [vmem:[%s4640_s7 + $0x364] ss:$16 sps:$4 sm:$0xff]  }
  0x60   : > { %2755 = vmatprep.subr.bf16.mxu0 %v4008_v8  ;;  %3013 = vmatprep.subr.bf16.mxu1 %v4010_v9  ;;  %v4101_v8 = vld [vmem:[%s4640_s7 + $0x360] ss:$16 sps:$4 sm:$0xff]   ;;  %v4104_v9 = vld [vmem:[%s4640_s7 + $0x368] ss:$16 sps:$4 sm:$0xff]  }
  0x63   : > { %2756 = vmatpush1.bf16.msra.mxu0 %v4012_v10  ;;  %3014 = vmatpush1.bf16.msra.mxu1 %v4013_v11  ;;  %v4109_v10 = vld [vmem:[%s4640_s7 + $0x384] ss:$16 sps:$4 sm:$0xff]   ;;  %v4112_v11 = vld [vmem:[%s4640_s7 + $0x38c] ss:$16 sps:$4 sm:$0xff]  }
  0x64   : > { %2757 = vmatprep.subr.bf16.mxu0 %v4014_v12  ;;  %3015 = vmatprep.subr.bf16.mxu1 %v4016_v13  ;;  %v4107_v12 = vld [vmem:[%s4640_s7 + $0x380] ss:$16 sps:$4 sm:$0xff]   ;;  %v4110_v13 = vld [vmem:[%s4640_s7 + $0x388] ss:$16 sps:$4 sm:$0xff]  }
  0x67   : > { %2758 = vmatpush1.bf16.msra.mxu0 %v4018_v14  ;;  %3016 = vmatpush1.bf16.msra.mxu1 %v4019_v15  ;;  %v4115_v14 = vld [vmem:[%s4640_s7 + $0x3a4] ss:$16 sps:$4 sm:$0xff]   ;;  %v4118_v15 = vld [vmem:[%s4640_s7 + $0x3ac] ss:$16 sps:$4 sm:$0xff]  }
  0x68   : > { %2759 = vmatprep.subr.bf16.mxu0 %v4020_v16  ;;  %3017 = vmatprep.subr.bf16.mxu1 %v4022_v17  ;;  %v4113_v16 = vld [vmem:[%s4640_s7 + $0x3a0] ss:$16 sps:$4 sm:$0xff]   ;;  %v4116_v17 = vld [vmem:[%s4640_s7 + $0x3a8] ss:$16 sps:$4 sm:$0xff]  }
  0x6b   : > { %2760 = vmatpush1.bf16.msra.mxu0 %v4024_v18  ;;  %3018 = vmatpush1.bf16.msra.mxu1 %v4025_v19  ;;  %v4121_v18 = vld [vmem:[%s4640_s7 + $0x3c4] ss:$16 sps:$4 sm:$0xff]   ;;  %v4124_v19 = vld [vmem:[%s4640_s7 + $0x3cc] ss:$16 sps:$4 sm:$0xff]  }
  0x6c   : > { %2761 = vmatprep.subr.bf16.mxu0 %v4026_v20  ;;  %3019 = vmatprep.subr.bf16.mxu1 %v4028_v21  ;;  %v4119_v20 = vld [vmem:[%s4640_s7 + $0x3c0] ss:$16 sps:$4 sm:$0xff]   ;;  %v4122_v21 = vld [vmem:[%s4640_s7 + $0x3c8] ss:$16 sps:$4 sm:$0xff]  }
  0x6f   : > { %2762 = vmatpush1.bf16.msra.mxu0 %v4030_v22  ;;  %3020 = vmatpush1.bf16.msra.mxu1 %v4031_v23  ;;  %v4127_v22 = vld [vmem:[%s4640_s7 + $0x3e4] ss:$16 sps:$4 sm:$0xff]   ;;  %v4130_v23 = vld [vmem:[%s4640_s7 + $0x3ec] ss:$16 sps:$4 sm:$0xff]  }
  0x70   : > { %2774 = vmatprep.subr.bf16.mxu0 %v4037_v24  ;;  %3032 = vmatprep.subr.bf16.mxu1 %v4040_v25  ;;  %v4125_v24 = vld [vmem:[%s4640_s7 + $0x3e0] ss:$16 sps:$4 sm:$0xff]   ;;  %v4128_v25 = vld [vmem:[%s4640_s7 + $0x3e8] ss:$16 sps:$4 sm:$0xff]  }
  0x72   : > { %2764 = vmatmul.mubr.bf16.vlgmr.msra.gmra.mrb[0].mxu0 %v4032_v26  ;;  %3022 = vmatmul.mubr.bf16.vlgmr.msra.gmra.mrb[0].mxu1 %v4032_v26  ;;  %v4136_v26 = vld [vmem:[%s4640_s7 + $0x404] ss:$16 sps:$4 sm:$0xff]  }
  0x73   : > { %2775 = vmatpush1.bf16.msra.mxu0 %v4035_v27  ;;  %3033 = vmatpush1.bf16.msra.mxu1 %v4038_v28  ;;  %v4139_v27 = vld [vmem:[%s4640_s7 + $0x40c] ss:$16 sps:$4 sm:$0xff]   ;;  %v4131_v28 = vld [vmem:[%s4642_s8 + $0x8] ss:$48 sps:$4 sm:$0xff]  }
  0x74   : > { %2776 = vmatprep.subr.bf16.mxu0 %v4043_v29  ;;  %3034 = vmatprep.subr.bf16.mxu1 %v4046_v30  ;;  %v4134_v29 = vld [vmem:[%s4640_s7 + $0x400] ss:$16 sps:$4 sm:$0xff]   ;;  %v4137_v30 = vld [vmem:[%s4640_s7 + $0x408] ss:$16 sps:$4 sm:$0xff]  }
  0x75   : > { %2806 = vmatprep.mubr.bf16.mxu0 %v4133_v53  ;;  %3064 = vmatprep.mubr.bf16.mxu1 %v4133_v53  ;;  %v4175_v53 = vld [vmem:[%s4640_s7 + $0x4cc] ss:$16 sps:$4 sm:$0xff]  }
  0x77   : > { %2777 = vmatpush1.bf16.msra.mxu0 %v4041_v31  ;;  %3035 = vmatpush1.bf16.msra.mxu1 %v4044_v32  ;;  %v4142_v31 = vld [vmem:[%s4640_s7 + $0x424] ss:$16 sps:$4 sm:$0xff]   ;;  %v4145_v32 = vld [vmem:[%s4640_s7 + $0x42c] ss:$16 sps:$4 sm:$0xff]  }
  0x78   : > { %2778 = vmatprep.subr.bf16.mxu0 %v4049_v33  ;;  %3036 = vmatprep.subr.bf16.mxu1 %v4052_v34  ;;  %v4140_v33 = vld [vmem:[%s4640_s7 + $0x420] ss:$16 sps:$4 sm:$0xff]   ;;  %v4143_v34 = vld [vmem:[%s4640_s7 + $0x428] ss:$16 sps:$4 sm:$0xff]  }
  0x7b   : > { %2779 = vmatpush1.bf16.msra.mxu0 %v4047_v35  ;;  %3037 = vmatpush1.bf16.msra.mxu1 %v4050_v36  ;;  %v4232_v35 = vld [vmem:[%s4642_s8 + $0x14] ss:$48 sps:$4 sm:$0xff]  }
  0x7c   : > { %2780 = vmatprep.subr.bf16.mxu0 %v4055_v37  ;;  %3038 = vmatprep.subr.bf16.mxu1 %v4058_v38  ;;  %v4148_v36 = vld [vmem:[%s4640_s7 + $0x444] ss:$16 sps:$4 sm:$0xff]   ;;  %v4151_v37 = vld [vmem:[%s4640_s7 + $0x44c] ss:$16 sps:$4 sm:$0xff]   ;;  %v4146_v38 = vld [vmem:[%s4640_s7 + $0x440] ss:$16 sps:$4 sm:$0xff]  }
  0x7f   : > { %2781 = vmatpush1.bf16.msra.mxu0 %v4053_v39  ;;  %3039 = vmatpush1.bf16.msra.mxu1 %v4056_v40  ;;  %v4149_v39 = vld [vmem:[%s4640_s7 + $0x448] ss:$16 sps:$4 sm:$0xff]   ;;  %v4154_v40 = vld [vmem:[%s4640_s7 + $0x464] ss:$16 sps:$4 sm:$0xff]  }
  0x80   : > { %2782 = vmatprep.subr.bf16.mxu0 %v4061_v41  ;;  %3040 = vmatprep.subr.bf16.mxu1 %v4064_v42  ;;  %v4157_v41 = vld [vmem:[%s4640_s7 + $0x46c] ss:$16 sps:$4 sm:$0xff]   ;;  %v4152_v42 = vld [vmem:[%s4640_s7 + $0x460] ss:$16 sps:$4 sm:$0xff]  }
  0x83   : > { %2783 = vmatpush1.bf16.msra.mxu0 %v4059_v43  ;;  %3041 = vmatpush1.bf16.msra.mxu1 %v4062_v44  ;;  %v4155_v43 = vld [vmem:[%s4640_s7 + $0x468] ss:$16 sps:$4 sm:$0xff]   ;;  %v4160_v44 = vld [vmem:[%s4640_s7 + $0x484] ss:$16 sps:$4 sm:$0xff]  }
  0x84   : > { %2784 = vmatprep.subr.bf16.mxu0 %v4067_v45  ;;  %3042 = vmatprep.subr.bf16.mxu1 %v4070_v46  ;;  %v4163_v45 = vld [vmem:[%s4640_s7 + $0x48c] ss:$16 sps:$4 sm:$0xff]   ;;  %v4158_v46 = vld [vmem:[%s4640_s7 + $0x480] ss:$16 sps:$4 sm:$0xff]  }
  0x87   : > { %2785 = vmatpush1.bf16.msra.mxu0 %v4065_v47  ;;  %3043 = vmatpush1.bf16.msra.mxu1 %v4068_v48  ;;  %v4161_v47 = vld [vmem:[%s4640_s7 + $0x488] ss:$16 sps:$4 sm:$0xff]   ;;  %v4166_v48 = vld [vmem:[%s4640_s7 + $0x4a4] ss:$16 sps:$4 sm:$0xff]  }
  0x88   : > { %2786 = vmatprep.subr.bf16.mxu0 %v4073_v49  ;;  %3044 = vmatprep.subr.bf16.mxu1 %v4076_v50  ;;  %v4169_v49 = vld [vmem:[%s4640_s7 + $0x4ac] ss:$16 sps:$4 sm:$0xff]   ;;  %v4164_v50 = vld [vmem:[%s4640_s7 + $0x4a0] ss:$16 sps:$4 sm:$0xff]  }
  0x8b   : > { %2787 = vmatpush1.bf16.msra.mxu0 %v4071_v51  ;;  %3045 = vmatpush1.bf16.msra.mxu1 %v4074_v52  ;;  %v4167_v51 = vld [vmem:[%s4640_s7 + $0x4a8] ss:$16 sps:$4 sm:$0xff]   ;;  %v4172_v52 = vld [vmem:[%s4640_s7 + $0x4c4] ss:$16 sps:$4 sm:$0xff]  }
  0x8c   : > { %2788 = vmatprep.subr.bf16.mxu0 %v4079_v54  ;;  %3046 = vmatprep.subr.bf16.mxu1 %v4082_v55  ;;  %v4170_v54 = vld [vmem:[%s4640_s7 + $0x4c0] ss:$16 sps:$4 sm:$0xff]   ;;  %v4173_v55 = vld [vmem:[%s4640_s7 + $0x4c8] ss:$16 sps:$4 sm:$0xff]  }
  0x8f   : > { %2789 = vmatpush1.bf16.msra.mxu0 %v4077_v56  ;;  %3047 = vmatpush1.bf16.msra.mxu1 %v4080_v57  ;;  %v4178_v56 = vld [vmem:[%s4640_s7 + $0x4e4] ss:$16 sps:$4 sm:$0xff]   ;;  %v4181_v57 = vld [vmem:[%s4640_s7 + $0x4ec] ss:$16 sps:$4 sm:$0xff]  }
  0x90   : > { %2790 = vmatprep.subr.bf16.mxu0 %v4085_v58  ;;  %3048 = vmatprep.subr.bf16.mxu1 %v4088_v59  ;;  %v4176_v58 = vld [vmem:[%s4640_s7 + $0x4e0] ss:$16 sps:$4 sm:$0xff]   ;;  %v4179_v59 = vld [vmem:[%s4640_s7 + $0x4e8] ss:$16 sps:$4 sm:$0xff]  }
  0x93   : > { %2791 = vmatpush1.bf16.msra.mxu0 %v4083_v60  ;;  %3049 = vmatpush1.bf16.msra.mxu1 %v4086_v61  ;;  %v4184_v60 = vld [vmem:[%s4640_s7 + $0x504] ss:$16 sps:$4 sm:$0xff]   ;;  %v4187_v61 = vld [vmem:[%s4640_s7 + $0x50c] ss:$16 sps:$4 sm:$0xff]  }
  0x94   : > { %2792 = vmatprep.subr.bf16.mxu0 %v4091_v62  ;;  %3050 = vmatprep.subr.bf16.mxu1 %v4094_v63  ;;  %v4182_v62 = vld [vmem:[%s4640_s7 + $0x500] ss:$16 sps:$4 sm:$0xff]   ;;  %v4185_v63 = vld [vmem:[%s4640_s7 + $0x508] ss:$16 sps:$4 sm:$0xff]  }
  0x97   : > { %2793 = vmatpush1.bf16.msra.mxu0 %v4089_v0  ;;  %3051 = vmatpush1.bf16.msra.mxu1 %v4092_v1  ;;  %v4190_v0 = vld [vmem:[%s4640_s7 + $0x524] ss:$16 sps:$4 sm:$0xff]   ;;  %v4193_v1 = vld [vmem:[%s4640_s7 + $0x52c] ss:$16 sps:$4 sm:$0xff]  }
  0x98   : > { %2794 = vmatprep.subr.bf16.mxu0 %v4097_v2  ;;  %3052 = vmatprep.subr.bf16.mxu1 %v4100_v3  ;;  %v4188_v2 = vld [vmem:[%s4640_s7 + $0x520] ss:$16 sps:$4 sm:$0xff]   ;;  %v4191_v3 = vld [vmem:[%s4640_s7 + $0x528] ss:$16 sps:$4 sm:$0xff]  }
  0x9b   : > { %2795 = vmatpush1.bf16.msra.mxu0 %v4095_v4  ;;  %3053 = vmatpush1.bf16.msra.mxu1 %v4098_v5  ;;  %v4196_v4 = vld [vmem:[%s4640_s7 + $0x544] ss:$16 sps:$4 sm:$0xff]   ;;  %v4199_v5 = vld [vmem:[%s4640_s7 + $0x54c] ss:$16 sps:$4 sm:$0xff]  }
  0x9c   : > { %2796 = vmatprep.subr.bf16.mxu0 %v4103_v6  ;;  %3054 = vmatprep.subr.bf16.mxu1 %v4106_v7  ;;  %v4194_v6 = vld [vmem:[%s4640_s7 + $0x540] ss:$16 sps:$4 sm:$0xff]   ;;  %v4197_v7 = vld [vmem:[%s4640_s7 + $0x548] ss:$16 sps:$4 sm:$0xff]  }
  0x9f   : > { %2797 = vmatpush1.bf16.msra.mxu0 %v4101_v8  ;;  %3055 = vmatpush1.bf16.msra.mxu1 %v4104_v9  ;;  %v4202_v8 = vld [vmem:[%s4640_s7 + $0x564] ss:$16 sps:$4 sm:$0xff]   ;;  %v4205_v9 = vld [vmem:[%s4640_s7 + $0x56c] ss:$16 sps:$4 sm:$0xff]  }
  0xa0   : > { %2798 = vmatprep.subr.bf16.mxu0 %v4109_v10  ;;  %3056 = vmatprep.subr.bf16.mxu1 %v4112_v11  ;;  %v4200_v10 = vld [vmem:[%s4640_s7 + $0x560] ss:$16 sps:$4 sm:$0xff]   ;;  %v4203_v11 = vld [vmem:[%s4640_s7 + $0x568] ss:$16 sps:$4 sm:$0xff]  }
  0xa3   : > { %2799 = vmatpush1.bf16.msra.mxu0 %v4107_v12  ;;  %3057 = vmatpush1.bf16.msra.mxu1 %v4110_v13  ;;  %v4208_v12 = vld [vmem:[%s4640_s7 + $0x584] ss:$16 sps:$4 sm:$0xff]   ;;  %v4211_v13 = vld [vmem:[%s4640_s7 + $0x58c] ss:$16 sps:$4 sm:$0xff]  }
  0xa4   : > { %2800 = vmatprep.subr.bf16.mxu0 %v4115_v14  ;;  %3058 = vmatprep.subr.bf16.mxu1 %v4118_v15  ;;  %v4206_v14 = vld [vmem:[%s4640_s7 + $0x580] ss:$16 sps:$4 sm:$0xff]   ;;  %v4209_v15 = vld [vmem:[%s4640_s7 + $0x588] ss:$16 sps:$4 sm:$0xff]  }
  0xa7   : > { %2801 = vmatpush1.bf16.msra.mxu0 %v4113_v16  ;;  %3059 = vmatpush1.bf16.msra.mxu1 %v4116_v17  ;;  %v4214_v16 = vld [vmem:[%s4640_s7 + $0x5a4] ss:$16 sps:$4 sm:$0xff]   ;;  %v4217_v17 = vld [vmem:[%s4640_s7 + $0x5ac] ss:$16 sps:$4 sm:$0xff]  }
  0xa8   : > { %2802 = vmatprep.subr.bf16.mxu0 %v4121_v18  ;;  %3060 = vmatprep.subr.bf16.mxu1 %v4124_v19  ;;  %v4212_v18 = vld [vmem:[%s4640_s7 + $0x5a0] ss:$16 sps:$4 sm:$0xff]   ;;  %v4215_v19 = vld [vmem:[%s4640_s7 + $0x5a8] ss:$16 sps:$4 sm:$0xff]  }
  0xab   : > { %2803 = vmatpush1.bf16.msra.mxu0 %v4119_v20  ;;  %3061 = vmatpush1.bf16.msra.mxu1 %v4122_v21  ;;  %v4220_v20 = vld [vmem:[%s4640_s7 + $0x5c4] ss:$16 sps:$4 sm:$0xff]   ;;  %v4223_v21 = vld [vmem:[%s4640_s7 + $0x5cc] ss:$16 sps:$4 sm:$0xff]  }
  0xac   : > { %2804 = vmatprep.subr.bf16.mxu0 %v4127_v22  ;;  %3062 = vmatprep.subr.bf16.mxu1 %v4130_v23  ;;  %v4218_v22 = vld [vmem:[%s4640_s7 + $0x5c0] ss:$16 sps:$4 sm:$0xff]   ;;  %v4221_v23 = vld [vmem:[%s4640_s7 + $0x5c8] ss:$16 sps:$4 sm:$0xff]  }
  0xaf   : > { %2805 = vmatpush1.bf16.msra.mxu0 %v4125_v24  ;;  %3063 = vmatpush1.bf16.msra.mxu1 %v4128_v25  ;;  %v4226_v24 = vld [vmem:[%s4640_s7 + $0x5e4] ss:$16 sps:$4 sm:$0xff]   ;;  %v4229_v25 = vld [vmem:[%s4640_s7 + $0x5ec] ss:$16 sps:$4 sm:$0xff]  }
  0xb0   : > { %2817 = vmatprep.subr.bf16.mxu0 %v4136_v26  ;;  %3075 = vmatprep.subr.bf16.mxu1 %v4139_v27  ;;  %v4224_v26 = vld [vmem:[%s4640_s7 + $0x5e0] ss:$16 sps:$4 sm:$0xff]   ;;  %v4227_v27 = vld [vmem:[%s4640_s7 + $0x5e8] ss:$16 sps:$4 sm:$0xff]  }
  0xb2   : > { %2807 = vmatmul.mubr.bf16.vlgmr.msra.gmra.mrb[0].mxu0 %v4131_v28  ;;  %3065 = vmatmul.mubr.bf16.vlgmr.msra.gmra.mrb[0].mxu1 %v4131_v28  ;;  %v4235_v28 = vld [vmem:[%s4640_s7 + $0x604] ss:$16 sps:$4 sm:$0xff]  }
  0xb3   : > { %2818 = vmatpush1.bf16.msra.mxu0 %v4134_v29  ;;  %3076 = vmatpush1.bf16.msra.mxu1 %v4137_v30  ;;  %v4238_v29 = vld [vmem:[%s4640_s7 + $0x60c] ss:$16 sps:$4 sm:$0xff]   ;;  %v4230_v30 = vld [vmem:[%s4642_s8 + $0x10] ss:$48 sps:$4 sm:$0xff]  }
  0xb4   : > { %2819 = vmatprep.subr.bf16.mxu0 %v4142_v31  ;;  %3077 = vmatprep.subr.bf16.mxu1 %v4145_v32  ;;  %v4233_v31 = vld [vmem:[%s4640_s7 + $0x600] ss:$16 sps:$4 sm:$0xff]   ;;  %v4236_v32 = vld [vmem:[%s4640_s7 + $0x608] ss:$16 sps:$4 sm:$0xff]  }
  0xb5   : > { %2849 = vmatprep.mubr.bf16.mxu0 %v4232_v35  ;;  %3107 = vmatprep.mubr.bf16.mxu1 %v4232_v35  ;;  %v4331_v35 = vld [vmem:[%s4642_s8 + $0x1c] ss:$48 sps:$4 sm:$0xff]  }
  0xb7   : > { %2820 = vmatpush1.bf16.msra.mxu0 %v4140_v33  ;;  %3078 = vmatpush1.bf16.msra.mxu1 %v4143_v34  ;;  %v4241_v33 = vld [vmem:[%s4640_s7 + $0x624] ss:$16 sps:$4 sm:$0xff]   ;;  %v4244_v34 = vld [vmem:[%s4640_s7 + $0x62c] ss:$16 sps:$4 sm:$0xff]  }
  0xb8   : > { %2821 = vmatprep.subr.bf16.mxu0 %v4148_v36  ;;  %3079 = vmatprep.subr.bf16.mxu1 %v4151_v37  ;;  %v4239_v36 = vld [vmem:[%s4640_s7 + $0x620] ss:$16 sps:$4 sm:$0xff]   ;;  %v4242_v37 = vld [vmem:[%s4640_s7 + $0x628] ss:$16 sps:$4 sm:$0xff]  }
  0xbb   : > { %2822 = vmatpush1.bf16.msra.mxu0 %v4146_v38  ;;  %3080 = vmatpush1.bf16.msra.mxu1 %v4149_v39  ;;  %v4247_v38 = vld [vmem:[%s4640_s7 + $0x644] ss:$16 sps:$4 sm:$0xff]   ;;  %v4250_v39 = vld [vmem:[%s4640_s7 + $0x64c] ss:$16 sps:$4 sm:$0xff]  }
  0xbc   : > { %2823 = vmatprep.subr.bf16.mxu0 %v4154_v40  ;;  %3081 = vmatprep.subr.bf16.mxu1 %v4157_v41  ;;  %v4245_v40 = vld [vmem:[%s4640_s7 + $0x640] ss:$16 sps:$4 sm:$0xff]   ;;  %v4248_v41 = vld [vmem:[%s4640_s7 + $0x648] ss:$16 sps:$4 sm:$0xff]  }
  0xbf   : > { %2824 = vmatpush1.bf16.msra.mxu0 %v4152_v42  ;;  %3082 = vmatpush1.bf16.msra.mxu1 %v4155_v43  ;;  %v4253_v42 = vld [vmem:[%s4640_s7 + $0x664] ss:$16 sps:$4 sm:$0xff]   ;;  %v4256_v43 = vld [vmem:[%s4640_s7 + $0x66c] ss:$16 sps:$4 sm:$0xff]  }
  0xc0   : > { %2825 = vmatprep.subr.bf16.mxu0 %v4160_v44  ;;  %3083 = vmatprep.subr.bf16.mxu1 %v4163_v45  ;;  %v4251_v44 = vld [vmem:[%s4640_s7 + $0x660] ss:$16 sps:$4 sm:$0xff]   ;;  %v4254_v45 = vld [vmem:[%s4640_s7 + $0x668] ss:$16 sps:$4 sm:$0xff]  }
  0xc3   : > { %2826 = vmatpush1.bf16.msra.mxu0 %v4158_v46  ;;  %3084 = vmatpush1.bf16.msra.mxu1 %v4161_v47  ;;  %v4259_v46 = vld [vmem:[%s4640_s7 + $0x684] ss:$16 sps:$4 sm:$0xff]   ;;  %v4262_v47 = vld [vmem:[%s4640_s7 + $0x68c] ss:$16 sps:$4 sm:$0xff]  }
  0xc4   : > { %2827 = vmatprep.subr.bf16.mxu0 %v4166_v48  ;;  %3085 = vmatprep.subr.bf16.mxu1 %v4169_v49  ;;  %v4257_v48 = vld [vmem:[%s4640_s7 + $0x680] ss:$16 sps:$4 sm:$0xff]   ;;  %v4260_v49 = vld [vmem:[%s4640_s7 + $0x688] ss:$16 sps:$4 sm:$0xff]  }
  0xc7   : > { %2828 = vmatpush1.bf16.msra.mxu0 %v4164_v50  ;;  %3086 = vmatpush1.bf16.msra.mxu1 %v4167_v51  ;;  %v4265_v50 = vld [vmem:[%s4640_s7 + $0x6a4] ss:$16 sps:$4 sm:$0xff]   ;;  %v4268_v51 = vld [vmem:[%s4640_s7 + $0x6ac] ss:$16 sps:$4 sm:$0xff]  }
  0xc8   : > { %2829 = vmatprep.subr.bf16.mxu0 %v4172_v52  ;;  %3087 = vmatprep.subr.bf16.mxu1 %v4175_v53  ;;  %v4263_v52 = vld [vmem:[%s4640_s7 + $0x6a0] ss:$16 sps:$4 sm:$0xff]   ;;  %v4266_v53 = vld [vmem:[%s4640_s7 + $0x6a8] ss:$16 sps:$4 sm:$0xff]  }
  0xcb   : > { %2830 = vmatpush1.bf16.msra.mxu0 %v4170_v54  ;;  %3088 = vmatpush1.bf16.msra.mxu1 %v4173_v55  ;;  %v4271_v54 = vld [vmem:[%s4640_s7 + $0x6c4] ss:$16 sps:$4 sm:$0xff]   ;;  %v4274_v55 = vld [vmem:[%s4640_s7 + $0x6cc] ss:$16 sps:$4 sm:$0xff]  }
  0xcc   : > { %2831 = vmatprep.subr.bf16.mxu0 %v4178_v56  ;;  %3089 = vmatprep.subr.bf16.mxu1 %v4181_v57  ;;  %v4269_v56 = vld [vmem:[%s4640_s7 + $0x6c0] ss:$16 sps:$4 sm:$0xff]   ;;  %v4272_v57 = vld [vmem:[%s4640_s7 + $0x6c8] ss:$16 sps:$4 sm:$0xff]  }
  0xcf   : > { %2832 = vmatpush1.bf16.msra.mxu0 %v4176_v58  ;;  %3090 = vmatpush1.bf16.msra.mxu1 %v4179_v59  ;;  %v4277_v58 = vld [vmem:[%s4640_s7 + $0x6e4] ss:$16 sps:$4 sm:$0xff]   ;;  %v4280_v59 = vld [vmem:[%s4640_s7 + $0x6ec] ss:$16 sps:$4 sm:$0xff]  }
  0xd0   : > { %2833 = vmatprep.subr.bf16.mxu0 %v4184_v60  ;;  %3091 = vmatprep.subr.bf16.mxu1 %v4187_v61  ;;  %v4275_v60 = vld [vmem:[%s4640_s7 + $0x6e0] ss:$16 sps:$4 sm:$0xff]   ;;  %v4278_v61 = vld [vmem:[%s4640_s7 + $0x6e8] ss:$16 sps:$4 sm:$0xff]  }
  0xd3   : > { %2834 = vmatpush1.bf16.msra.mxu0 %v4182_v62  ;;  %3092 = vmatpush1.bf16.msra.mxu1 %v4185_v63  ;;  %v4283_v62 = vld [vmem:[%s4640_s7 + $0x704] ss:$16 sps:$4 sm:$0xff]   ;;  %v4286_v63 = vld [vmem:[%s4640_s7 + $0x70c] ss:$16 sps:$4 sm:$0xff]  }
  0xd4   : > { %2835 = vmatprep.subr.bf16.mxu0 %v4190_v0  ;;  %3093 = vmatprep.subr.bf16.mxu1 %v4193_v1  ;;  %v4281_v0 = vld [vmem:[%s4640_s7 + $0x700] ss:$16 sps:$4 sm:$0xff]   ;;  %v4284_v1 = vld [vmem:[%s4640_s7 + $0x708] ss:$16 sps:$4 sm:$0xff]  }
  0xd7   : > { %2836 = vmatpush1.bf16.msra.mxu0 %v4188_v2  ;;  %3094 = vmatpush1.bf16.msra.mxu1 %v4191_v3  ;;  %v4289_v2 = vld [vmem:[%s4640_s7 + $0x724] ss:$16 sps:$4 sm:$0xff]   ;;  %v4292_v3 = vld [vmem:[%s4640_s7 + $0x72c] ss:$16 sps:$4 sm:$0xff]  }
  0xd8   : > { %2837 = vmatprep.subr.bf16.mxu0 %v4196_v4  ;;  %3095 = vmatprep.subr.bf16.mxu1 %v4199_v5  ;;  %v4287_v4 = vld [vmem:[%s4640_s7 + $0x720] ss:$16 sps:$4 sm:$0xff]   ;;  %v4290_v5 = vld [vmem:[%s4640_s7 + $0x728] ss:$16 sps:$4 sm:$0xff]  }
  0xdb   : > { %2838 = vmatpush1.bf16.msra.mxu0 %v4194_v6  ;;  %3096 = vmatpush1.bf16.msra.mxu1 %v4197_v7  ;;  %v4295_v6 = vld [vmem:[%s4640_s7 + $0x744] ss:$16 sps:$4 sm:$0xff]   ;;  %v4298_v7 = vld [vmem:[%s4640_s7 + $0x74c] ss:$16 sps:$4 sm:$0xff]  }
  0xdc   : > { %2839 = vmatprep.subr.bf16.mxu0 %v4202_v8  ;;  %3097 = vmatprep.subr.bf16.mxu1 %v4205_v9  ;;  %v4293_v8 = vld [vmem:[%s4640_s7 + $0x740] ss:$16 sps:$4 sm:$0xff]   ;;  %v4296_v9 = vld [vmem:[%s4640_s7 + $0x748] ss:$16 sps:$4 sm:$0xff]  }
  0xdf   : > { %2840 = vmatpush1.bf16.msra.mxu0 %v4200_v10  ;;  %3098 = vmatpush1.bf16.msra.mxu1 %v4203_v11  ;;  %v4301_v10 = vld [vmem:[%s4640_s7 + $0x764] ss:$16 sps:$4 sm:$0xff]   ;;  %v4304_v11 = vld [vmem:[%s4640_s7 + $0x76c] ss:$16 sps:$4 sm:$0xff]  }
  0xe0   : > { %2841 = vmatprep.subr.bf16.mxu0 %v4208_v12  ;;  %3099 = vmatprep.subr.bf16.mxu1 %v4211_v13  ;;  %v4299_v12 = vld [vmem:[%s4640_s7 + $0x760] ss:$16 sps:$4 sm:$0xff]   ;;  %v4302_v13 = vld [vmem:[%s4640_s7 + $0x768] ss:$16 sps:$4 sm:$0xff]  }
  0xe3   : > { %2842 = vmatpush1.bf16.msra.mxu0 %v4206_v14  ;;  %3100 = vmatpush1.bf16.msra.mxu1 %v4209_v15  ;;  %v4307_v14 = vld [vmem:[%s4640_s7 + $0x784] ss:$16 sps:$4 sm:$0xff]   ;;  %v4310_v15 = vld [vmem:[%s4640_s7 + $0x78c] ss:$16 sps:$4 sm:$0xff]  }
  0xe4   : > { %2843 = vmatprep.subr.bf16.mxu0 %v4214_v16  ;;  %3101 = vmatprep.subr.bf16.mxu1 %v4217_v17  ;;  %v4305_v16 = vld [vmem:[%s4640_s7 + $0x780] ss:$16 sps:$4 sm:$0xff]   ;;  %v4308_v17 = vld [vmem:[%s4640_s7 + $0x788] ss:$16 sps:$4 sm:$0xff]  }
  0xe7   : > { %2844 = vmatpush1.bf16.msra.mxu0 %v4212_v18  ;;  %3102 = vmatpush1.bf16.msra.mxu1 %v4215_v19  ;;  %v4313_v18 = vld [vmem:[%s4640_s7 + $0x7a4] ss:$16 sps:$4 sm:$0xff]   ;;  %v4316_v19 = vld [vmem:[%s4640_s7 + $0x7ac] ss:$16 sps:$4 sm:$0xff]  }
  0xe8   : > { %2845 = vmatprep.subr.bf16.mxu0 %v4220_v20  ;;  %3103 = vmatprep.subr.bf16.mxu1 %v4223_v21  ;;  %v4311_v20 = vld [vmem:[%s4640_s7 + $0x7a0] ss:$16 sps:$4 sm:$0xff]   ;;  %v4314_v21 = vld [vmem:[%s4640_s7 + $0x7a8] ss:$16 sps:$4 sm:$0xff]  }
  0xeb   : > { %2846 = vmatpush1.bf16.msra.mxu0 %v4218_v22  ;;  %3104 = vmatpush1.bf16.msra.mxu1 %v4221_v23  ;;  %v4319_v22 = vld [vmem:[%s4640_s7 + $0x7c4] ss:$16 sps:$4 sm:$0xff]   ;;  %v4322_v23 = vld [vmem:[%s4640_s7 + $0x7cc] ss:$16 sps:$4 sm:$0xff]  }
  0xec   : > { %2847 = vmatprep.subr.bf16.mxu0 %v4226_v24  ;;  %3105 = vmatprep.subr.bf16.mxu1 %v4229_v25  ;;  %v4317_v24 = vld [vmem:[%s4640_s7 + $0x7c0] ss:$16 sps:$4 sm:$0xff]   ;;  %v4320_v25 = vld [vmem:[%s4640_s7 + $0x7c8] ss:$16 sps:$4 sm:$0xff]  }
  0xef   : > { %2848 = vmatpush1.bf16.msra.mxu0 %v4224_v26  ;;  %3106 = vmatpush1.bf16.msra.mxu1 %v4227_v27  ;;  %v4325_v26 = vld [vmem:[%s4640_s7 + $0x7e4] ss:$16 sps:$4 sm:$0xff]   ;;  %v4328_v27 = vld [vmem:[%s4640_s7 + $0x7ec] ss:$16 sps:$4 sm:$0xff]  }
  0xf0   : > { %2860 = vmatprep.subr.bf16.mxu0 %v4235_v28  ;;  %3118 = vmatprep.subr.bf16.mxu1 %v4238_v29  ;;  %v4323_v28 = vld [vmem:[%s4640_s7 + $0x7e0] ss:$16 sps:$4 sm:$0xff]   ;;  %v4326_v29 = vld [vmem:[%s4640_s7 + $0x7e8] ss:$16 sps:$4 sm:$0xff]  }
  0xf2   : > { %2850 = vmatmul.mubr.bf16.vlgmr.msra.gmra.mrb[0].mxu0 %v4230_v30  ;;  %3108 = vmatmul.mubr.bf16.vlgmr.msra.gmra.mrb[0].mxu1 %v4230_v30  ;;  %v4334_v30 = vld [vmem:[%s4640_s7 + $0x804] ss:$16 sps:$4 sm:$0xff]  }
  0xf3   : > { %2861 = vmatpush1.bf16.msra.mxu0 %v4233_v31  ;;  %3119 = vmatpush1.bf16.msra.mxu1 %v4236_v32  ;;  %v4337_v31 = vld [vmem:[%s4640_s7 + $0x80c] ss:$16 sps:$4 sm:$0xff]   ;;  %v4329_v32 = vld [vmem:[%s4642_s8 + $0x18] ss:$48 sps:$4 sm:$0xff]  }
  0xf4   : > { %2862 = vmatprep.subr.bf16.mxu0 %v4241_v33  ;;  %3120 = vmatprep.subr.bf16.mxu1 %v4244_v34  ;;  %v4332_v33 = vld [vmem:[%s4640_s7 + $0x800] ss:$16 sps:$4 sm:$0xff]   ;;  %v4335_v34 = vld [vmem:[%s4640_s7 + $0x808] ss:$16 sps:$4 sm:$0xff]  }
  0xf5   : > { %2892 = vmatprep.mubr.bf16.mxu0 %v4331_v35  ;;  %3150 = vmatprep.mubr.bf16.mxu1 %v4331_v35  ;;  %v4340_v35 = vld [vmem:[%s4640_s7 + $0x824] ss:$16 sps:$4 sm:$0xff]  }
  0xf7   : > { %2863 = vmatpush1.bf16.msra.mxu0 %v4239_v36  ;;  %3121 = vmatpush1.bf16.msra.mxu1 %v4242_v37  ;;  %v4343_v36 = vld [vmem:[%s4640_s7 + $0x82c] ss:$16 sps:$4 sm:$0xff]   ;;  %v4430_v37 = vld [vmem:[%s4642_s8 + $0x24] ss:$48 sps:$4 sm:$0xff]  }
  0xf8   : > { %2864 = vmatprep.subr.bf16.mxu0 %v4247_v38  ;;  %3122 = vmatprep.subr.bf16.mxu1 %v4250_v39  ;;  %v4338_v38 = vld [vmem:[%s4640_s7 + $0x820] ss:$16 sps:$4 sm:$0xff]   ;;  %v4341_v39 = vld [vmem:[%s4640_s7 + $0x828] ss:$16 sps:$4 sm:$0xff]  }
  0xfb   : > { %2865 = vmatpush1.bf16.msra.mxu0 %v4245_v40  ;;  %3123 = vmatpush1.bf16.msra.mxu1 %v4248_v41  ;;  %v4346_v40 = vld [vmem:[%s4640_s7 + $0x844] ss:$16 sps:$4 sm:$0xff]   ;;  %v4349_v41 = vld [vmem:[%s4640_s7 + $0x84c] ss:$16 sps:$4 sm:$0xff]  }
  0xfc   : > { %2866 = vmatprep.subr.bf16.mxu0 %v4253_v42  ;;  %3124 = vmatprep.subr.bf16.mxu1 %v4256_v43  ;;  %v4344_v42 = vld [vmem:[%s4640_s7 + $0x840] ss:$16 sps:$4 sm:$0xff]   ;;  %v4347_v43 = vld [vmem:[%s4640_s7 + $0x848] ss:$16 sps:$4 sm:$0xff]  }
  0xff   : > { %2867 = vmatpush1.bf16.msra.mxu0 %v4251_v44  ;;  %3125 = vmatpush1.bf16.msra.mxu1 %v4254_v45  ;;  %v4352_v44 = vld [vmem:[%s4640_s7 + $0x864] ss:$16 sps:$4 sm:$0xff]   ;;  %v4355_v45 = vld [vmem:[%s4640_s7 + $0x86c] ss:$16 sps:$4 sm:$0xff]  }
 0x100   : > { %2868 = vmatprep.subr.bf16.mxu0 %v4259_v46  ;;  %3126 = vmatprep.subr.bf16.mxu1 %v4262_v47  ;;  %v4350_v46 = vld [vmem:[%s4640_s7 + $0x860] ss:$16 sps:$4 sm:$0xff]   ;;  %v4353_v47 = vld [vmem:[%s4640_s7 + $0x868] ss:$16 sps:$4 sm:$0xff]  }
 0x103   : > { %2869 = vmatpush1.bf16.msra.mxu0 %v4257_v48  ;;  %3127 = vmatpush1.bf16.msra.mxu1 %v4260_v49  ;;  %v4358_v48 = vld [vmem:[%s4640_s7 + $0x884] ss:$16 sps:$4 sm:$0xff]   ;;  %v4361_v49 = vld [vmem:[%s4640_s7 + $0x88c] ss:$16 sps:$4 sm:$0xff]  }
 0x104   : > { %2870 = vmatprep.subr.bf16.mxu0 %v4265_v50  ;;  %3128 = vmatprep.subr.bf16.mxu1 %v4268_v51  ;;  %v4356_v50 = vld [vmem:[%s4640_s7 + $0x880] ss:$16 sps:$4 sm:$0xff]   ;;  %v4359_v51 = vld [vmem:[%s4640_s7 + $0x888] ss:$16 sps:$4 sm:$0xff]  }
 0x107   : > { %2871 = vmatpush1.bf16.msra.mxu0 %v4263_v52  ;;  %3129 = vmatpush1.bf16.msra.mxu1 %v4266_v53  ;;  %v4364_v52 = vld [vmem:[%s4640_s7 + $0x8a4] ss:$16 sps:$4 sm:$0xff]   ;;  %v4367_v53 = vld [vmem:[%s4640_s7 + $0x8ac] ss:$16 sps:$4 sm:$0xff]  }
 0x108   : > { %2872 = vmatprep.subr.bf16.mxu0 %v4271_v54  ;;  %3130 = vmatprep.subr.bf16.mxu1 %v4274_v55  ;;  %v4362_v54 = vld [vmem:[%s4640_s7 + $0x8a0] ss:$16 sps:$4 sm:$0xff]   ;;  %v4365_v55 = vld [vmem:[%s4640_s7 + $0x8a8] ss:$16 sps:$4 sm:$0xff]  }
 0x10b   : > { %2873 = vmatpush1.bf16.msra.mxu0 %v4269_v56  ;;  %3131 = vmatpush1.bf16.msra.mxu1 %v4272_v57  ;;  %v4370_v56 = vld [vmem:[%s4640_s7 + $0x8c4] ss:$16 sps:$4 sm:$0xff]   ;;  %v4373_v57 = vld [vmem:[%s4640_s7 + $0x8cc] ss:$16 sps:$4 sm:$0xff]  }
 0x10c   : > { %2874 = vmatprep.subr.bf16.mxu0 %v4277_v58  ;;  %3132 = vmatprep.subr.bf16.mxu1 %v4280_v59  ;;  %v4368_v58 = vld [vmem:[%s4640_s7 + $0x8c0] ss:$16 sps:$4 sm:$0xff]   ;;  %v4371_v59 = vld [vmem:[%s4640_s7 + $0x8c8] ss:$16 sps:$4 sm:$0xff]  }
 0x10f   : > { %2875 = vmatpush1.bf16.msra.mxu0 %v4275_v60  ;;  %3133 = vmatpush1.bf16.msra.mxu1 %v4278_v61  ;;  %v4376_v60 = vld [vmem:[%s4640_s7 + $0x8e4] ss:$16 sps:$4 sm:$0xff]   ;;  %v4379_v61 = vld [vmem:[%s4640_s7 + $0x8ec] ss:$16 sps:$4 sm:$0xff]  }
 0x110   : > { %2876 = vmatprep.subr.bf16.mxu0 %v4283_v62  ;;  %3134 = vmatprep.subr.bf16.mxu1 %v4286_v63  ;;  %v4374_v62 = vld [vmem:[%s4640_s7 + $0x8e0] ss:$16 sps:$4 sm:$0xff]   ;;  %v4377_v63 = vld [vmem:[%s4640_s7 + $0x8e8] ss:$16 sps:$4 sm:$0xff]  }
 0x113   : > { %2877 = vmatpush1.bf16.msra.mxu0 %v4281_v0  ;;  %3135 = vmatpush1.bf16.msra.mxu1 %v4284_v1  ;;  %v4382_v0 = vld [vmem:[%s4640_s7 + $0x904] ss:$16 sps:$4 sm:$0xff]   ;;  %v4385_v1 = vld [vmem:[%s4640_s7 + $0x90c] ss:$16 sps:$4 sm:$0xff]  }
 0x114   : > { %2878 = vmatprep.subr.bf16.mxu0 %v4289_v2  ;;  %3136 = vmatprep.subr.bf16.mxu1 %v4292_v3  ;;  %v4380_v2 = vld [vmem:[%s4640_s7 + $0x900] ss:$16 sps:$4 sm:$0xff]   ;;  %v4383_v3 = vld [vmem:[%s4640_s7 + $0x908] ss:$16 sps:$4 sm:$0xff]  }
 0x117   : > { %2879 = vmatpush1.bf16.msra.mxu0 %v4287_v4  ;;  %3137 = vmatpush1.bf16.msra.mxu1 %v4290_v5  ;;  %v4388_v4 = vld [vmem:[%s4640_s7 + $0x924] ss:$16 sps:$4 sm:$0xff]   ;;  %v4391_v5 = vld [vmem:[%s4640_s7 + $0x92c] ss:$16 sps:$4 sm:$0xff]  }
 0x118   : > { %2880 = vmatprep.subr.bf16.mxu0 %v4295_v6  ;;  %3138 = vmatprep.subr.bf16.mxu1 %v4298_v7  ;;  %v4386_v6 = vld [vmem:[%s4640_s7 + $0x920] ss:$16 sps:$4 sm:$0xff]   ;;  %v4389_v7 = vld [vmem:[%s4640_s7 + $0x928] ss:$16 sps:$4 sm:$0xff]  }
 0x11b   : > { %2881 = vmatpush1.bf16.msra.mxu0 %v4293_v8  ;;  %3139 = vmatpush1.bf16.msra.mxu1 %v4296_v9  ;;  %v4394_v8 = vld [vmem:[%s4640_s7 + $0x944] ss:$16 sps:$4 sm:$0xff]   ;;  %v4397_v9 = vld [vmem:[%s4640_s7 + $0x94c] ss:$16 sps:$4 sm:$0xff]  }
 0x11c   : > { %2882 = vmatprep.subr.bf16.mxu0 %v4301_v10  ;;  %3140 = vmatprep.subr.bf16.mxu1 %v4304_v11  ;;  %v4392_v10 = vld [vmem:[%s4640_s7 + $0x940] ss:$16 sps:$4 sm:$0xff]   ;;  %v4395_v11 = vld [vmem:[%s4640_s7 + $0x948] ss:$16 sps:$4 sm:$0xff]  }
 0x11f   : > { %2883 = vmatpush1.bf16.msra.mxu0 %v4299_v12  ;;  %3141 = vmatpush1.bf16.msra.mxu1 %v4302_v13  ;;  %v4400_v12 = vld [vmem:[%s4640_s7 + $0x964] ss:$16 sps:$4 sm:$0xff]   ;;  %v4403_v13 = vld [vmem:[%s4640_s7 + $0x96c] ss:$16 sps:$4 sm:$0xff]  }
 0x120   : > { %2884 = vmatprep.subr.bf16.mxu0 %v4307_v14  ;;  %3142 = vmatprep.subr.bf16.mxu1 %v4310_v15  ;;  %v4398_v14 = vld [vmem:[%s4640_s7 + $0x960] ss:$16 sps:$4 sm:$0xff]   ;;  %v4401_v15 = vld [vmem:[%s4640_s7 + $0x968] ss:$16 sps:$4 sm:$0xff]  }
 0x123   : > { %2885 = vmatpush1.bf16.msra.mxu0 %v4305_v16  ;;  %3143 = vmatpush1.bf16.msra.mxu1 %v4308_v17  ;;  %v4406_v16 = vld [vmem:[%s4640_s7 + $0x984] ss:$16 sps:$4 sm:$0xff]   ;;  %v4409_v17 = vld [vmem:[%s4640_s7 + $0x98c] ss:$16 sps:$4 sm:$0xff]  }
 0x124   : > { %2886 = vmatprep.subr.bf16.mxu0 %v4313_v18  ;;  %3144 = vmatprep.subr.bf16.mxu1 %v4316_v19  ;;  %v4404_v18 = vld [vmem:[%s4640_s7 + $0x980] ss:$16 sps:$4 sm:$0xff]   ;;  %v4407_v19 = vld [vmem:[%s4640_s7 + $0x988] ss:$16 sps:$4 sm:$0xff]  }
 0x127   : > { %2887 = vmatpush1.bf16.msra.mxu0 %v4311_v20  ;;  %3145 = vmatpush1.bf16.msra.mxu1 %v4314_v21  ;;  %v4412_v20 = vld [vmem:[%s4640_s7 + $0x9a4] ss:$16 sps:$4 sm:$0xff]   ;;  %v4415_v21 = vld [vmem:[%s4640_s7 + $0x9ac] ss:$16 sps:$4 sm:$0xff]  }
 0x128   : > { %2888 = vmatprep.subr.bf16.mxu0 %v4319_v22  ;;  %3146 = vmatprep.subr.bf16.mxu1 %v4322_v23  ;;  %v4410_v22 = vld [vmem:[%s4640_s7 + $0x9a0] ss:$16 sps:$4 sm:$0xff]   ;;  %v4413_v23 = vld [vmem:[%s4640_s7 + $0x9a8] ss:$16 sps:$4 sm:$0xff]  }
 0x12b   : > { %2889 = vmatpush1.bf16.msra.mxu0 %v4317_v24  ;;  %3147 = vmatpush1.bf16.msra.mxu1 %v4320_v25  ;;  %v4418_v24 = vld [vmem:[%s4640_s7 + $0x9c4] ss:$16 sps:$4 sm:$0xff]   ;;  %v4421_v25 = vld [vmem:[%s4640_s7 + $0x9cc] ss:$16 sps:$4 sm:$0xff]  }
 0x12c   : > { %2890 = vmatprep.subr.bf16.mxu0 %v4325_v26  ;;  %3148 = vmatprep.subr.bf16.mxu1 %v4328_v27  ;;  %v4416_v26 = vld [vmem:[%s4640_s7 + $0x9c0] ss:$16 sps:$4 sm:$0xff]   ;;  %v4419_v27 = vld [vmem:[%s4640_s7 + $0x9c8] ss:$16 sps:$4 sm:$0xff]  }
 0x12f   : > { %2891 = vmatpush1.bf16.msra.mxu0 %v4323_v28  ;;  %3149 = vmatpush1.bf16.msra.mxu1 %v4326_v29  ;;  %v4424_v28 = vld [vmem:[%s4640_s7 + $0x9e4] ss:$16 sps:$4 sm:$0xff]   ;;  %v4427_v29 = vld [vmem:[%s4640_s7 + $0x9ec] ss:$16 sps:$4 sm:$0xff]  }
 0x130   : > { %2903 = vmatprep.subr.bf16.mxu0 %v4334_v30  ;;  %3161 = vmatprep.subr.bf16.mxu1 %v4337_v31  ;;  %v4422_v30 = vld [vmem:[%s4640_s7 + $0x9e0] ss:$16 sps:$4 sm:$0xff]   ;;  %v4425_v31 = vld [vmem:[%s4640_s7 + $0x9e8] ss:$16 sps:$4 sm:$0xff]  }
 0x132   : > { %2893 = vmatmul.mubr.bf16.vlgmr.msra.gmra.mrb[0].mxu0 %v4329_v32  ;;  %3151 = vmatmul.mubr.bf16.vlgmr.msra.gmra.mrb[0].mxu1 %v4329_v32  ;;  %v4433_v32 = vld [vmem:[%s4640_s7 + $0xa04] ss:$16 sps:$4 sm:$0xff]  }
 0x133   : > { %2904 = vmatpush1.bf16.msra.mxu0 %v4332_v33  ;;  %3162 = vmatpush1.bf16.msra.mxu1 %v4335_v34  ;;  %v4436_v33 = vld [vmem:[%s4640_s7 + $0xa0c] ss:$16 sps:$4 sm:$0xff]   ;;  %v4428_v34 = vld [vmem:[%s4642_s8 + $0x20] ss:$48 sps:$4 sm:$0xff]  }
 0x134   : > { %2905 = vmatprep.subr.bf16.mxu0 %v4340_v35  ;;  %3163 = vmatprep.subr.bf16.mxu1 %v4343_v36  ;;  %v4431_v35 = vld [vmem:[%s4640_s7 + $0xa00] ss:$16 sps:$4 sm:$0xff]   ;;  %v4434_v36 = vld [vmem:[%s4640_s7 + $0xa08] ss:$16 sps:$4 sm:$0xff]  }
 0x135   : > { %2935 = vmatprep.mubr.bf16.mxu0 %v4430_v37  ;;  %3193 = vmatprep.mubr.bf16.mxu1 %v4430_v37  ;;  %v4439_v37 = vld [vmem:[%s4640_s7 + $0xa24] ss:$16 sps:$4 sm:$0xff]  }
 0x137   : > { %2906 = vmatpush1.bf16.msra.mxu0 %v4338_v38  ;;  %3164 = vmatpush1.bf16.msra.mxu1 %v4341_v39  ;;  %v4442_v38 = vld [vmem:[%s4640_s7 + $0xa2c] ss:$16 sps:$4 sm:$0xff]  }
 0x138   : > { %2907 = vmatprep.subr.bf16.mxu0 %v4346_v40  ;;  %3165 = vmatprep.subr.bf16.mxu1 %v4349_v41  ;;  %v4529_v39 = vld [vmem:[%s4642_s8 + $0x2c] ss:$48 sps:$4 sm:$0xff]   ;;  %v4437_v40 = vld [vmem:[%s4640_s7 + $0xa20] ss:$16 sps:$4 sm:$0xff]   ;;  %v4440_v41 = vld [vmem:[%s4640_s7 + $0xa28] ss:$16 sps:$4 sm:$0xff]  }
 0x13b   : > { %2908 = vmatpush1.bf16.msra.mxu0 %v4344_v42  ;;  %3166 = vmatpush1.bf16.msra.mxu1 %v4347_v43  ;;  %v4445_v42 = vld [vmem:[%s4640_s7 + $0xa44] ss:$16 sps:$4 sm:$0xff]   ;;  %v4448_v43 = vld [vmem:[%s4640_s7 + $0xa4c] ss:$16 sps:$4 sm:$0xff]  }
 0x13c   : > { %2909 = vmatprep.subr.bf16.mxu0 %v4352_v44  ;;  %3167 = vmatprep.subr.bf16.mxu1 %v4355_v45  ;;  %v4443_v44 = vld [vmem:[%s4640_s7 + $0xa40] ss:$16 sps:$4 sm:$0xff]   ;;  %v4446_v45 = vld [vmem:[%s4640_s7 + $0xa48] ss:$16 sps:$4 sm:$0xff]  }
 0x13f   : > { %2910 = vmatpush1.bf16.msra.mxu0 %v4350_v46  ;;  %3168 = vmatpush1.bf16.msra.mxu1 %v4353_v47  ;;  %v4451_v46 = vld [vmem:[%s4640_s7 + $0xa64] ss:$16 sps:$4 sm:$0xff]   ;;  %v4454_v47 = vld [vmem:[%s4640_s7 + $0xa6c] ss:$16 sps:$4 sm:$0xff]  }
 0x140   : > { %2911 = vmatprep.subr.bf16.mxu0 %v4358_v48  ;;  %3169 = vmatprep.subr.bf16.mxu1 %v4361_v49  ;;  %v4449_v48 = vld [vmem:[%s4640_s7 + $0xa60] ss:$16 sps:$4 sm:$0xff]   ;;  %v4452_v49 = vld [vmem:[%s4640_s7 + $0xa68] ss:$16 sps:$4 sm:$0xff]  }
 0x143   : > { %2912 = vmatpush1.bf16.msra.mxu0 %v4356_v50  ;;  %3170 = vmatpush1.bf16.msra.mxu1 %v4359_v51  ;;  %v4457_v50 = vld [vmem:[%s4640_s7 + $0xa84] ss:$16 sps:$4 sm:$0xff]   ;;  %v4460_v51 = vld [vmem:[%s4640_s7 + $0xa8c] ss:$16 sps:$4 sm:$0xff]  }
 0x144   : > { %2913 = vmatprep.subr.bf16.mxu0 %v4364_v52  ;;  %3171 = vmatprep.subr.bf16.mxu1 %v4367_v53  ;;  %v4455_v52 = vld [vmem:[%s4640_s7 + $0xa80] ss:$16 sps:$4 sm:$0xff]   ;;  %v4458_v53 = vld [vmem:[%s4640_s7 + $0xa88] ss:$16 sps:$4 sm:$0xff]  }
 0x147   : > { %2914 = vmatpush1.bf16.msra.mxu0 %v4362_v54  ;;  %3172 = vmatpush1.bf16.msra.mxu1 %v4365_v55  ;;  %v4463_v54 = vld [vmem:[%s4640_s7 + $0xaa4] ss:$16 sps:$4 sm:$0xff]   ;;  %v4466_v55 = vld [vmem:[%s4640_s7 + $0xaac] ss:$16 sps:$4 sm:$0xff]  }
 0x148   : > { %2915 = vmatprep.subr.bf16.mxu0 %v4370_v56  ;;  %3173 = vmatprep.subr.bf16.mxu1 %v4373_v57  ;;  %v4461_v56 = vld [vmem:[%s4640_s7 + $0xaa0] ss:$16 sps:$4 sm:$0xff]   ;;  %v4464_v57 = vld [vmem:[%s4640_s7 + $0xaa8] ss:$16 sps:$4 sm:$0xff]  }
 0x14b   : > { %2916 = vmatpush1.bf16.msra.mxu0 %v4368_v58  ;;  %3174 = vmatpush1.bf16.msra.mxu1 %v4371_v59  ;;  %v4469_v58 = vld [vmem:[%s4640_s7 + $0xac4] ss:$16 sps:$4 sm:$0xff]   ;;  %v4472_v59 = vld [vmem:[%s4640_s7 + $0xacc] ss:$16 sps:$4 sm:$0xff]  }
 0x14c   : > { %2917 = vmatprep.subr.bf16.mxu0 %v4376_v60  ;;  %3175 = vmatprep.subr.bf16.mxu1 %v4379_v61  ;;  %v4467_v60 = vld [vmem:[%s4640_s7 + $0xac0] ss:$16 sps:$4 sm:$0xff]   ;;  %v4470_v61 = vld [vmem:[%s4640_s7 + $0xac8] ss:$16 sps:$4 sm:$0xff]  }
 0x14f   : > { %2918 = vmatpush1.bf16.msra.mxu0 %v4374_v62  ;;  %3176 = vmatpush1.bf16.msra.mxu1 %v4377_v63  ;;  %v4475_v62 = vld [vmem:[%s4640_s7 + $0xae4] ss:$16 sps:$4 sm:$0xff]   ;;  %v4478_v63 = vld [vmem:[%s4640_s7 + $0xaec] ss:$16 sps:$4 sm:$0xff]  }
 0x150   : > { %2919 = vmatprep.subr.bf16.mxu0 %v4382_v0  ;;  %3177 = vmatprep.subr.bf16.mxu1 %v4385_v1  ;;  %v4473_v0 = vld [vmem:[%s4640_s7 + $0xae0] ss:$16 sps:$4 sm:$0xff]   ;;  %v4476_v1 = vld [vmem:[%s4640_s7 + $0xae8] ss:$16 sps:$4 sm:$0xff]  }
 0x153   : > { %2920 = vmatpush1.bf16.msra.mxu0 %v4380_v2  ;;  %3178 = vmatpush1.bf16.msra.mxu1 %v4383_v3  ;;  %v4481_v2 = vld [vmem:[%s4640_s7 + $0xb04] ss:$16 sps:$4 sm:$0xff]   ;;  %v4484_v3 = vld [vmem:[%s4640_s7 + $0xb0c] ss:$16 sps:$4 sm:$0xff]  }
 0x154   : > { %2921 = vmatprep.subr.bf16.mxu0 %v4388_v4  ;;  %3179 = vmatprep.subr.bf16.mxu1 %v4391_v5  ;;  %v4479_v4 = vld [vmem:[%s4640_s7 + $0xb00] ss:$16 sps:$4 sm:$0xff]   ;;  %v4482_v5 = vld [vmem:[%s4640_s7 + $0xb08] ss:$16 sps:$4 sm:$0xff]  }
 0x157   : > { %2922 = vmatpush1.bf16.msra.mxu0 %v4386_v6  ;;  %3180 = vmatpush1.bf16.msra.mxu1 %v4389_v7  ;;  %v4487_v6 = vld [vmem:[%s4640_s7 + $0xb24] ss:$16 sps:$4 sm:$0xff]   ;;  %v4490_v7 = vld [vmem:[%s4640_s7 + $0xb2c] ss:$16 sps:$4 sm:$0xff]  }
 0x158   : > { %2923 = vmatprep.subr.bf16.mxu0 %v4394_v8  ;;  %3181 = vmatprep.subr.bf16.mxu1 %v4397_v9  ;;  %v4485_v8 = vld [vmem:[%s4640_s7 + $0xb20] ss:$16 sps:$4 sm:$0xff]   ;;  %v4488_v9 = vld [vmem:[%s4640_s7 + $0xb28] ss:$16 sps:$4 sm:$0xff]  }
 0x15b   : > { %2924 = vmatpush1.bf16.msra.mxu0 %v4392_v10  ;;  %3182 = vmatpush1.bf16.msra.mxu1 %v4395_v11  ;;  %v4493_v10 = vld [vmem:[%s4640_s7 + $0xb44] ss:$16 sps:$4 sm:$0xff]   ;;  %v4496_v11 = vld [vmem:[%s4640_s7 + $0xb4c] ss:$16 sps:$4 sm:$0xff]  }
 0x15c   : > { %2925 = vmatprep.subr.bf16.mxu0 %v4400_v12  ;;  %3183 = vmatprep.subr.bf16.mxu1 %v4403_v13  ;;  %v4491_v12 = vld [vmem:[%s4640_s7 + $0xb40] ss:$16 sps:$4 sm:$0xff]   ;;  %v4494_v13 = vld [vmem:[%s4640_s7 + $0xb48] ss:$16 sps:$4 sm:$0xff]  }
 0x15f   : > { %2926 = vmatpush1.bf16.msra.mxu0 %v4398_v14  ;;  %3184 = vmatpush1.bf16.msra.mxu1 %v4401_v15  ;;  %v4499_v14 = vld [vmem:[%s4640_s7 + $0xb64] ss:$16 sps:$4 sm:$0xff]   ;;  %v4502_v15 = vld [vmem:[%s4640_s7 + $0xb6c] ss:$16 sps:$4 sm:$0xff]  }
 0x160   : > { %2927 = vmatprep.subr.bf16.mxu0 %v4406_v16  ;;  %3185 = vmatprep.subr.bf16.mxu1 %v4409_v17  ;;  %v4497_v16 = vld [vmem:[%s4640_s7 + $0xb60] ss:$16 sps:$4 sm:$0xff]   ;;  %v4500_v17 = vld [vmem:[%s4640_s7 + $0xb68] ss:$16 sps:$4 sm:$0xff]  }
 0x163   : > { %2928 = vmatpush1.bf16.msra.mxu0 %v4404_v18  ;;  %3186 = vmatpush1.bf16.msra.mxu1 %v4407_v19  ;;  %v4505_v18 = vld [vmem:[%s4640_s7 + $0xb84] ss:$16 sps:$4 sm:$0xff]   ;;  %v4508_v19 = vld [vmem:[%s4640_s7 + $0xb8c] ss:$16 sps:$4 sm:$0xff]  }
 0x164   : > { %2929 = vmatprep.subr.bf16.mxu0 %v4412_v20  ;;  %3187 = vmatprep.subr.bf16.mxu1 %v4415_v21  ;;  %v4503_v20 = vld [vmem:[%s4640_s7 + $0xb80] ss:$16 sps:$4 sm:$0xff]   ;;  %v4506_v21 = vld [vmem:[%s4640_s7 + $0xb88] ss:$16 sps:$4 sm:$0xff]  }
 0x167   : > { %2930 = vmatpush1.bf16.msra.mxu0 %v4410_v22  ;;  %3188 = vmatpush1.bf16.msra.mxu1 %v4413_v23  ;;  %v4511_v22 = vld [vmem:[%s4640_s7 + $0xba4] ss:$16 sps:$4 sm:$0xff]   ;;  %v4514_v23 = vld [vmem:[%s4640_s7 + $0xbac] ss:$16 sps:$4 sm:$0xff]  }
 0x168   : > { %2931 = vmatprep.subr.bf16.mxu0 %v4418_v24  ;;  %3189 = vmatprep.subr.bf16.mxu1 %v4421_v25  ;;  %v4509_v24 = vld [vmem:[%s4640_s7 + $0xba0] ss:$16 sps:$4 sm:$0xff]   ;;  %v4512_v25 = vld [vmem:[%s4640_s7 + $0xba8] ss:$16 sps:$4 sm:$0xff]  }
 0x16b   : > { %2932 = vmatpush1.bf16.msra.mxu0 %v4416_v26  ;;  %3190 = vmatpush1.bf16.msra.mxu1 %v4419_v27  ;;  %v4517_v26 = vld [vmem:[%s4640_s7 + $0xbc4] ss:$16 sps:$4 sm:$0xff]   ;;  %v4520_v27 = vld [vmem:[%s4640_s7 + $0xbcc] ss:$16 sps:$4 sm:$0xff]  }
 0x16c   : > { %2933 = vmatprep.subr.bf16.mxu0 %v4424_v28  ;;  %3191 = vmatprep.subr.bf16.mxu1 %v4427_v29  ;;  %v4515_v28 = vld [vmem:[%s4640_s7 + $0xbc0] ss:$16 sps:$4 sm:$0xff]   ;;  %v4518_v29 = vld [vmem:[%s4640_s7 + $0xbc8] ss:$16 sps:$4 sm:$0xff]  }
 0x16f   : > { %2934 = vmatpush1.bf16.msra.mxu0 %v4422_v30  ;;  %3192 = vmatpush1.bf16.msra.mxu1 %v4425_v31  ;;  %v4523_v30 = vld [vmem:[%s4640_s7 + $0xbe4] ss:$16 sps:$4 sm:$0xff]   ;;  %v4526_v31 = vld [vmem:[%s4640_s7 + $0xbec] ss:$16 sps:$4 sm:$0xff]  }
 0x170   : > { %2946 = vmatprep.subr.bf16.mxu0 %v4433_v32  ;;  %3204 = vmatprep.subr.bf16.mxu1 %v4436_v33  ;;  %v4521_v32 = vld [vmem:[%s4640_s7 + $0xbe0] ss:$16 sps:$4 sm:$0xff]   ;;  %v4524_v33 = vld [vmem:[%s4640_s7 + $0xbe8] ss:$16 sps:$4 sm:$0xff]  }
 0x172   : > { %2936 = vmatmul.mubr.bf16.vlgmr.msra.gmra.mrb[0].mxu0 %v4428_v34  ;;  %3194 = vmatmul.mubr.bf16.vlgmr.msra.gmra.mrb[0].mxu1 %v4428_v34  ;;  %v4527_v34 = vld [vmem:[%s4642_s8 + $0x28] ss:$48 sps:$4 sm:$0xff]  }
 0x173   : > { %2947 = vmatpush1.bf16.msra.mxu0 %v4431_v35  ;;  %3205 = vmatpush1.bf16.msra.mxu1 %v4434_v36  ;;  %v347_v35 = vld [vmem:[#allocation2] sm:$0xff]  ;;  %v349_v36 = vld [vmem:[#allocation2 + $0x10] sm:$0xff] }
 0x174   : > { %2948 = vmatprep.subr.bf16.mxu0 %v4439_v37  ;;  %3206 = vmatprep.subr.bf16.mxu1 %v4442_v38  ;;  %v348_v37 = vld [vmem:[#allocation2 + $0x8] sm:$0xff]  ;;  %v350_v38 = vld [vmem:[#allocation2 + $0x18] sm:$0xff] }
 0x175   : > { %2978 = vmatprep.mubr.bf16.mxu0 %v4529_v39  ;;  %3236 = vmatprep.mubr.bf16.mxu1 %v4529_v39 }
 0x177   : > { %2949 = vmatpush1.bf16.msra.mxu0 %v4437_v40  ;;  %3207 = vmatpush1.bf16.msra.mxu1 %v4440_v41  ;;  %v351_v41 = vld [vmem:[#allocation2 + $0x20] sm:$0xff] }
 0x178   : > { %2950 = vmatprep.subr.bf16.mxu0 %v4445_v42  ;;  %3208 = vmatprep.subr.bf16.mxu1 %v4448_v43  ;;  %v353_v42 = vld [vmem:[#allocation2 + $0x30] sm:$0xff] }
 0x17b   : > { %2951 = vmatpush1.bf16.msra.mxu0 %v4443_v44  ;;  %3209 = vmatpush1.bf16.msra.mxu1 %v4446_v45 }
 0x17c   : > { %2952 = vmatprep.subr.bf16.mxu0 %v4451_v46  ;;  %3210 = vmatprep.subr.bf16.mxu1 %v4454_v47  ;;  %v352_v47 = vld [vmem:[#allocation2 + $0x28] sm:$0xff] }
 0x17f   : > { %2953 = vmatpush1.bf16.msra.mxu0 %v4449_v48  ;;  %3211 = vmatpush1.bf16.msra.mxu1 %v4452_v49  ;;  %v354_v48 = vld [vmem:[#allocation2 + $0x38] sm:$0xff] }
 0x180   : > { %2954 = vmatprep.subr.bf16.mxu0 %v4457_v50  ;;  %3212 = vmatprep.subr.bf16.mxu1 %v4460_v51 }
 0x183   : > { %2955 = vmatpush1.bf16.msra.mxu0 %v4455_v52  ;;  %3213 = vmatpush1.bf16.msra.mxu1 %v4458_v53 }
 0x184   : > { %2956 = vmatprep.subr.bf16.mxu0 %v4463_v54  ;;  %3214 = vmatprep.subr.bf16.mxu1 %v4466_v55 }
 0x187   : > { %2957 = vmatpush1.bf16.msra.mxu0 %v4461_v56  ;;  %3215 = vmatpush1.bf16.msra.mxu1 %v4464_v57 }
 0x188   : > { %2958 = vmatprep.subr.bf16.mxu0 %v4469_v58  ;;  %3216 = vmatprep.subr.bf16.mxu1 %v4472_v59 }
 0x18b   : > { %2959 = vmatpush1.bf16.msra.mxu0 %v4467_v60  ;;  %3217 = vmatpush1.bf16.msra.mxu1 %v4470_v61 }
 0x18c   : > { %2960 = vmatprep.subr.bf16.mxu0 %v4475_v62  ;;  %3218 = vmatprep.subr.bf16.mxu1 %v4478_v63 }
 0x18f   : > { %2961 = vmatpush1.bf16.msra.mxu0 %v4473_v0  ;;  %3219 = vmatpush1.bf16.msra.mxu1 %v4476_v1 }
 0x190   : > { %2962 = vmatprep.subr.bf16.mxu0 %v4481_v2  ;;  %3220 = vmatprep.subr.bf16.mxu1 %v4484_v3 }
 0x193   : > { %2963 = vmatpush1.bf16.msra.mxu0 %v4479_v4  ;;  %3221 = vmatpush1.bf16.msra.mxu1 %v4482_v5 }
 0x194   : > { %2964 = vmatprep.subr.bf16.mxu0 %v4487_v6  ;;  %3222 = vmatprep.subr.bf16.mxu1 %v4490_v7 }
 0x197   : > { %2965 = vmatpush1.bf16.msra.mxu0 %v4485_v8  ;;  %3223 = vmatpush1.bf16.msra.mxu1 %v4488_v9 }
 0x198   : > { %2966 = vmatprep.subr.bf16.mxu0 %v4493_v10  ;;  %3224 = vmatprep.subr.bf16.mxu1 %v4496_v11 }
 0x19b   : > { %2967 = vmatpush1.bf16.msra.mxu0 %v4491_v12  ;;  %3225 = vmatpush1.bf16.msra.mxu1 %v4494_v13 }
 0x19c   : > { %2968 = vmatprep.subr.bf16.mxu0 %v4499_v14  ;;  %3226 = vmatprep.subr.bf16.mxu1 %v4502_v15 }
 0x19f   : > { %2969 = vmatpush1.bf16.msra.mxu0 %v4497_v16  ;;  %3227 = vmatpush1.bf16.msra.mxu1 %v4500_v17 }
 0x1a0   : > { %2970 = vmatprep.subr.bf16.mxu0 %v4505_v18  ;;  %3228 = vmatprep.subr.bf16.mxu1 %v4508_v19 }
 0x1a3   : > { %2971 = vmatpush1.bf16.msra.mxu0 %v4503_v20  ;;  %3229 = vmatpush1.bf16.msra.mxu1 %v4506_v21 }
 0x1a4   : > { %2972 = vmatprep.subr.bf16.mxu0 %v4511_v22  ;;  %3230 = vmatprep.subr.bf16.mxu1 %v4514_v23 }
 0x1a7   : > { %2973 = vmatpush1.bf16.msra.mxu0 %v4509_v24  ;;  %3231 = vmatpush1.bf16.msra.mxu1 %v4512_v25 }
 0x1a8   : > { %2974 = vmatprep.subr.bf16.mxu0 %v4517_v26  ;;  %3232 = vmatprep.subr.bf16.mxu1 %v4520_v27 }
 0x1ab   : > { %2975 = vmatpush1.bf16.msra.mxu0 %v4515_v28  ;;  %3233 = vmatpush1.bf16.msra.mxu1 %v4518_v29 }
 0x1ac   : > { %2976 = vmatprep.subr.bf16.mxu0 %v4523_v30  ;;  %3234 = vmatprep.subr.bf16.mxu1 %v4526_v31 }
 0x1af   : > { %2977 = vmatpush1.bf16.msra.mxu0 %v4521_v32  ;;  %3235 = vmatpush1.bf16.msra.mxu1 %v4524_v33 }
 0x1b2   : > { %2979 = vmatmul.mubr.bf16.vlgmr.msra.gmra.mrb[0].mxu0 %v4527_v34  ;;  %3237 = vmatmul.mubr.bf16.vlgmr.msra.gmra.mrb[0].mxu1 %v4527_v34 }
 0x285   : > { %v2980_v39 = vpop.f32.mrb[0].mxu0  ;;  %v3238_v40 = vpop.f32.mrb[0].mxu1  ;;  %3266 = sbr.rel (%p3839_p11) target bundleno = 664 (0x298), region = 63 }
 0x286   : > { %v3247_v43 = vadd.f32 %v2980_v39, %v347_v35  ;;  %v3249_v44 = vadd.f32 %v3238_v40, %v349_v36  ;;  %v2982_v45 = vpop.f32.mrb[1].mxu0  ;;  %v3240_v46 = vpop.f32.mrb[1].mxu1 }
 0x287   : > { %v3248_v49 = vadd.f32 %v2982_v45, %v348_v37  ;;  %v3250_v50 = vadd.f32 %v3240_v46, %v350_v38  ;;  %v2984_v51 = vpop.f32.mrb[2].mxu0  ;;  %v3242_v52 = vpop.f32.mrb[2].mxu1 }
 0x288   : > { %3255 = vst [vmem:[#allocation2] sm:$0xff] %v3247_v43  ;;  %3257 = vst [vmem:[#allocation2 + $0x10] sm:$0xff] %v3249_v44  ;;  %v3251_v53 = vadd.f32 %v2984_v51, %v351_v41  ;;  %v3253_v54 = vadd.f32 %v3242_v52, %v353_v42  ;;  %v2986_v55 = vpop.f32.mrb[3].mxu0  ;;  %v3244_v56 = vpop.f32.mrb[3].mxu1 }
 0x289   : > { %3256 = vst [vmem:[#allocation2 + $0x8] sm:$0xff] %v3248_v49  ;;  %3258 = vst [vmem:[#allocation2 + $0x18] sm:$0xff] %v3250_v50  ;;  %v3252_v57 = vadd.f32 %v2986_v55, %v352_v47  ;;  %v3254_v58 = vadd.f32 %v3244_v56, %v354_v48 }
 0x28a   : > { %3259 = vst [vmem:[#allocation2 + $0x20] sm:$0xff] %v3251_v53  ;;  %3261 = vst [vmem:[#allocation2 + $0x30] sm:$0xff] %v3253_v54 }
 0x28b   : > { %3260 = vst [vmem:[#allocation2 + $0x28] sm:$0xff] %v3252_v57  ;;  %3262 = vst [vmem:[#allocation2 + $0x38] sm:$0xff] %v3254_v58 }
 0x28f   : > { %v3267_v59 = vld [vmem:[#allocation2] sm:$0xff]  ;;  %v3269_v61 = vld [vmem:[#allocation2 + $0x10] sm:$0xff] }
 0x290   : > { %v3268_v60 = vld [vmem:[#allocation2 + $0x8] sm:$0xff]  ;;  %v3275_v62 = vmax.f32 %v3267_v59, 0.0  ;;  %v3270_v0 = vld [vmem:[#allocation2 + $0x18] sm:$0xff]  ;;  %v3277_v1 = vmax.f32 %v3269_v61, 0.0 }
 0x291   : > { %v3276_v63 = vmax.f32 %v3268_v60, 0.0  ;;  %v3271_v2 = vld [vmem:[#allocation2 + $0x20] sm:$0xff]  ;;  %v3278_v4 = vmax.f32 %v3270_v0, 0.0  ;;  %v3273_v7 = vld [vmem:[#allocation2 + $0x30] sm:$0xff] }
 0x292   : > { %v3272_v3 = vld [vmem:[#allocation2 + $0x28] sm:$0xff]  ;;  %v3279_v5 = vmax.f32 %v3271_v2, 0.0  ;;  %v3274_v8 = vld [vmem:[#allocation2 + $0x38] sm:$0xff]  ;;  %v3281_v10 = vmax.f32 %v3273_v7, 0.0 }
 0x293   : > { %v3280_v6 = vmax.f32 %v3272_v3, 0.0  ;;  %v3850_v9 = vpack.c.bf16 %v3276_v63, %v3275_v62  ;;  %v3282_v11 = vmax.f32 %v3274_v8, 0.0  ;;  %v3851_v12 = vpack.c.bf16 %v3278_v4, %v3277_v1 }
 0x295   : > { %v3852_v13 = vpack.c.bf16 %v3280_v6, %v3279_v5  ;;  %3307 = vst [vmem:[%s5075_s3] sm:$0xff] %v3850_v9  ;;  %v3853_v14 = vpack.c.bf16 %v3282_v11, %v3281_v10  ;;  %3308 = vst [vmem:[%s5075_s3 + $0x8] sm:$0xff] %v3851_v12 }
 0x297   : > { %3309 = vst [vmem:[%s5075_s3 + $0x10] sm:$0xff] %v3852_v13  ;;  %3310 = vst [vmem:[%s5075_s3 + $0x18] sm:$0xff] %v3853_v14 }
 0x298 PF: > { %s13_s16 = sadd.s32 1, %s4568_s16   ;;  %s5076_s12 = smov %s4556_s13 }
 0x299   : > { %p10_p12 = scmp.ge.s32.totalorder %s13_s16, 5   ;;  %s5077_s13 = smov %s4625_s20 }
 0x29a   : > { %s5078_s14 = smov %s4564_s15  ;;  %s5079_s15 = smov %s5081_s17 }
 0x29b   :  { %12 = sbr.rel (!%p10_p12) target bundleno = 3 (0x3), region = 104 }

</bundles_post_ra>
